<compile_context>
chip_gen: v7x
topology: tpu7x:2x2x1
jax: 0.10.0
libtpu: 0.0.40
codegen_flags: <defaults>
</compile_context>

<pallas_src>
import functools

import jax
import jax.numpy as jnp
from jax.experimental import pallas as pl
from jax.experimental.pallas import tpu as pltpu

EPS = 1e-5
MATMUL_DTYPE = jnp.bfloat16   # MXU input dtype for the per-point layers (f32 accumulate)


# ----------------------------------------------------------------------------
# Kernel A/B: fused per-point MLP (3 -> 64 -> 128 -> 1024) + points reduction
# ----------------------------------------------------------------------------
def _point_mlp_reduce_kernel(reduce_op, last_relu,
                             x_ref, w1_ref, s1_ref, w2_ref, s2_ref, w3_ref, s3_ref,
                             o_ref):
    j = pl.program_id(1)

    @pl.when(j == 0)
    def _init():
        if reduce_op == "max":
            o_ref[...] = jnp.full(o_ref.shape, -jnp.inf, o_ref.dtype)
        else:
            o_ref[...] = jnp.zeros(o_ref.shape, o_ref.dtype)

    x = x_ref[0].astype(MATMUL_DTYPE)                                  # (tn, 3)
    h = jnp.dot(x, w1_ref[0], preferred_element_type=jnp.float32) + s1_ref[...]
    h = jnp.maximum(h, 0.0)                                            # (tn, 64)
    h = jnp.dot(h.astype(MATMUL_DTYPE), w2_ref[...],
                preferred_element_type=jnp.float32) + s2_ref[...]
    h = jnp.maximum(h, 0.0)                                            # (tn, 128)
    h = jnp.dot(h.astype(MATMUL_DTYPE), w3_ref[...],
                preferred_element_type=jnp.float32) + s3_ref[...]      # (tn, 1024)
    if last_relu:
        h = jnp.maximum(h, 0.0)

    if reduce_op == "max":
        tile = jnp.max(h, axis=0)[None, None, :]                       # (1, 1, 1024)
        o_ref[...] = jnp.maximum(o_ref[...], tile)
    else:
        tile = jnp.sum(h, axis=0)[None, None, :]
        o_ref[...] = o_ref[...] + tile


def point_mlp_reduce(x, w1, s1, w2, s2, w3, s3, *, reduce_op, last_relu, tn):
    """x: (B, N, 3) f32.  w1: (1|B, 3, C1) bf16 (per-batch if the STN transform is
    folded in).  Returns the reduced global feature (B, 1, C3) f32."""
    B, N, Cin = x.shape
    C1, C2, C3 = w1.shape[2], w2.shape[1], w3.shape[1]
    assert N % tn == 0, (N, tn)

    if w1.shape[0] == 1:
        w1_map = lambda b, j: (0, 0, 0)
    else:
        w1_map = lambda b, j: (b, 0, 0)

    return pl.pallas_call(
        functools.partial(_point_mlp_reduce_kernel, reduce_op, last_relu),
        out_shape=jax.ShapeDtypeStruct((B, 1, C3), jnp.float32),
        grid=(B, N // tn),
        in_specs=[
            pl.BlockSpec((1, tn, Cin), lambda b, j: (b, j, 0)),
            pl.BlockSpec((1, Cin, C1), w1_map),
            pl.BlockSpec((1, C1), lambda b, j: (0, 0)),
            pl.BlockSpec((C1, C2), lambda b, j: (0, 0)),
            pl.BlockSpec((1, C2), lambda b, j: (0, 0)),
            pl.BlockSpec((C2, C3), lambda b, j: (0, 0)),
            pl.BlockSpec((1, C3), lambda b, j: (0, 0)),
        ],
        out_specs=pl.BlockSpec((1, 1, C3), lambda b, j: (b, 0, 0)),
        compiler_params=pltpu.CompilerParams(
            dimension_semantics=("parallel", "arbitrary")),
    )(x, w1, s1, w2, s2, w3, s3)


# ----------------------------------------------------------------------------
# Kernel C/D: small fused 3-layer MLP (M = batch, weights resident in VMEM)
# ----------------------------------------------------------------------------
def _mlp3_kernel(log_softmax_dim0, x_ref, w1, s1, w2, s2, w3, s3, o_ref):
    h = jnp.dot(x_ref[...], w1[...], preferred_element_type=jnp.float32) + s1[...]
    h = jnp.maximum(h, 0.0)
    h = jnp.dot(h, w2[...], preferred_element_type=jnp.float32) + s2[...]
    h = jnp.maximum(h, 0.0)
    y = jnp.dot(h, w3[...], preferred_element_type=jnp.float32) + s3[...]
    if log_softmax_dim0:
        # Reference module applies F.log_softmax(x, dim=0), i.e. over the BATCH axis.
        m = jnp.max(y, axis=0, keepdims=True)
        z = y - m
        lse = jnp.log(jnp.sum(jnp.exp(z), axis=0, keepdims=True))
        y = z - lse
    o_ref[...] = y.astype(o_ref.dtype)


def _full_spec(arr):
    nd = arr.ndim
    return pl.BlockSpec(arr.shape, lambda i, nd=nd: (0,) * nd)


def dense_mlp3(x, w1, s1, w2, s2, w3, s3, *, log_softmax_dim0):
    M = x.shape[0]
    Cout = w3.shape[1]
    return pl.pallas_call(
        functools.partial(_mlp3_kernel, log_softmax_dim0),
        out_shape=jax.ShapeDtypeStruct((M, Cout), jnp.float32),
        grid=(1,),
        in_specs=[_full_spec(a) for a in (x, w1, s1, w2, s2, w3, s3)],
        out_specs=pl.BlockSpec((M, Cout), lambda i: (0, 0)),
    )(x, w1, s1, w2, s2, w3, s3)


# ----------------------------------------------------------------------------
# Parameter init (deterministic, synthetic) + host-side folding
# ----------------------------------------------------------------------------
def make_linear(key, cin, cout):
    k1, k2 = jax.random.split(key)
    w = jax.random.normal(k1, (cin, cout), jnp.float32) * (1.0 / jnp.sqrt(cin))
    b = jax.random.normal(k2, (cout,), jnp.float32) * 0.01
    return {"w": w, "b": b}


def make_bn(key, c):
    k1, k2, k3, k4 = jax.random.split(key, 4)
    return {
        "gamma": 1.0 + 0.1 * jax.random.normal(k1, (c,), jnp.float32),
        "beta": 0.05 * jax.random.normal(k2, (c,), jnp.float32),
        "mean": 0.1 * jax.random.normal(k3, (c,), jnp.float32),
        "var": 0.5 + jax.random.uniform(k4, (c,), jnp.float32),
    }


def init_params(key, k_classes):
    keys = iter(jax.random.split(key, 32))
    stn = {
        "conv1": make_linear(next(keys), 3, 64),
        "conv2": make_linear(next(keys), 64, 128),
        "conv3": make_linear(next(keys), 128, 1024),
        "fc1": make_linear(next(keys), 1024, 512),
        "fc2": make_linear(next(keys), 512, 256),
        "fc3": make_linear(next(keys), 256, 9),
        "bn1": make_bn(next(keys), 64),
        "bn2": make_bn(next(keys), 128),
        "bn3": make_bn(next(keys), 1024),
        "bn4": make_bn(next(keys), 512),
        "bn5": make_bn(next(keys), 256),
    }
    feat = {
        "stn": stn,
        "conv1": make_linear(next(keys), 3, 64),
        "conv2": make_linear(next(keys), 64, 128),
        "conv3": make_linear(next(keys), 128, 1024),
        "bn1": make_bn(next(keys), 64),
        "bn2": make_bn(next(keys), 128),
        "bn3": make_bn(next(keys), 1024),
    }
    return {
        "feat": feat,
        "fc1": make_linear(next(keys), 1024, 512),
        "fc2": make_linear(next(keys), 512, 256),
        "fc3": make_linear(next(keys), 256, k_classes),
        "bn1": make_bn(next(keys), 512),
        "bn2": make_bn(next(keys), 256),
    }


def _fold_bn(lin, bn):
    """Fold Conv1d(k=1)/Linear bias + inference-mode BN into (W*scale, shift')."""
    w, b = lin["w"], lin["b"]
    cout = w.shape[1]
    if bn is None:
        scale = jnp.ones((cout,), jnp.float32)
        shift = jnp.zeros((cout,), jnp.float32)
    else:
        scale = bn["gamma"] * jax.lax.rsqrt(bn["var"] + EPS)
        shift = bn["beta"] - bn["mean"] * scale
    return w * scale[None, :], (b * scale + shift).reshape(1, cout)


def prepare_params(p):
    feat = p["feat"]
    stn = feat["stn"]
    cast = lambda w: w.astype(MATMUL_DTYPE)

    # STN per-point convs (bf16 matmul path)
    sw1, ss1 = _fold_bn(stn["conv1"], stn["bn1"])
    sw2, ss2 = _fold_bn(stn["conv2"], stn["bn2"])
    sw3, ss3 = _fold_bn(stn["conv3"], stn["bn3"])
    # STN fc tail (f32); fold the 3x3 identity into the fc3 bias
    fw1, fs1 = _fold_bn(stn["fc1"], stn["bn4"])
    fw2, fs2 = _fold_bn(stn["fc2"], stn["bn5"])
    fw3, fs3 = _fold_bn(stn["fc3"], None)
    fs3 = fs3 + jnp.eye(3, dtype=jnp.float32).reshape(1, 9)

    # feat per-point convs; conv1 kept f32 so the per-batch STN transform can be
    # folded in at run time (W1b = trans @ W1), then cast to bf16.
    gw1, gs1 = _fold_bn(feat["conv1"], feat["bn1"])
    gw2, gs2 = _fold_bn(feat["conv2"], feat["bn2"])
    gw3, gs3 = _fold_bn(feat["conv3"], feat["bn3"])   # no ReLU after bn3

    # classifier head (f32, tiny M)
    cw1, cs1 = _fold_bn(p["fc1"], p["bn1"])
    cw2, cs2 = _fold_bn(p["fc2"], p["bn2"])
    cw3, cs3 = _fold_bn(p["fc3"], None)

    return {
        "stn_pt": (cast(sw1)[None], ss1, cast(sw2), ss2, cast(sw3), ss3),
        "stn_fc": (fw1, fs1, fw2, fs2, fw3, fs3),
        "feat_w1": gw1,
        "feat_pt": (gs1, cast(gw2), gs2, cast(gw3), gs3),
        "cls_fc": (cw1, cs1, cw2, cs2, cw3, cs3),
    }


# ----------------------------------------------------------------------------
# Forward pass
# ----------------------------------------------------------------------------
def _pick_tile(n, cap=512):
    # cap=512 keeps comfortable VMEM headroom on v7x (64 MiB); multiples of 128/8.
    if n <= cap:
        return n
    for t in (512, 256, 128, 64, 32, 16, 8):
        if t <= cap and n % t == 0:
            return t
    return n


def pointnet_cls_forward(prep, x, *, tn=None):
    """x: (B, 3, N) — PyTorch NCL convention. Returns (log_softmax(dim=0) preds, trans)."""
    B, _, N = x.shape
    tn = _pick_tile(N) if tn is None else tn
    x_bn3 = jnp.transpose(x, (0, 2, 1))                                # (B, N, 3)

    # ---- STN3d: fused per-point MLP + max pool, then fused FC tail ----
    sw1, ss1, sw2, ss2, sw3, ss3 = prep["stn_pt"]
    gmax = point_mlp_reduce(x_bn3, sw1, ss1, sw2, ss2, sw3, ss3,
                            reduce_op="max", last_relu=True, tn=tn)[:, 0, :]   # (B, 1024)
    fw1, fs1, fw2, fs2, fw3, fs3 = prep["stn_fc"]
    trans = dense_mlp3(gmax, fw1, fs1, fw2, fs2, fw3, fs3,
                       log_softmax_dim0=False).reshape(B, 3, 3)

    # ---- PointNetfeat (global_feat=True): fold trans into conv1, fused MLP + sum ----
    gs1, gw2, gs2, gw3, gs3 = prep["feat_pt"]
    w1b = jnp.einsum("bij,jk->bik", trans, prep["feat_w1"]).astype(MATMUL_DTYPE)  # (B,3,64)
    gsum = point_mlp_reduce(x_bn3, w1b, gs1, gw2, gs2, gw3, gs3,
                            reduce_op="sum", last_relu=False, tn=tn)[:, 0, :]    # (B, 1024)

    # ---- classifier head + log_softmax over dim=0 (as in the reference) ----
    cw1, cs1, cw2, cs2, cw3, cs3 = prep["cls_fc"]
    pred = dense_mlp3(gsum, cw1, cs1, cw2, cs2, cw3, cs3, log_softmax_dim0=True)
    return pred, trans


# ----------------------------------------------------------------------------
# Pure-JAX reference (same folded params / same bf16 casts) for validation
# ----------------------------------------------------------------------------
def pointnet_cls_reference(prep, x):
    B, _, N = x.shape
    xb = jnp.transpose(x, (0, 2, 1)).astype(MATMUL_DTYPE)

    def point_mlp(xc, w1, s1, w2, s2, w3, s3, last_relu):
        h = jnp.einsum("bnc,bck->bnk", xc, w1,
                       preferred_element_type=jnp.float32) + s1
        h = jnp.maximum(h, 0.0)
        h = jnp.dot(h.astype(MATMUL_DTYPE), w2,
                    preferred_element_type=jnp.float32) + s2
        h = jnp.maximum(h, 0.0)
        h = jnp.dot(h.astype(MATMUL_DTYPE), w3,
                    preferred_element_type=jnp.float32) + s3
        return jnp.maximum(h, 0.0) if last_relu else h

    sw1, ss1, sw2, ss2, sw3, ss3 = prep["stn_pt"]
    h = point_mlp(xb, jnp.broadcast_to(sw1, (B,) + sw1.shape[1:]),
                  ss1, sw2, ss2, sw3, ss3, True)
    gmax = jnp.max(h, axis=1)
    fw1, fs1, fw2, fs2, fw3, fs3 = prep["stn_fc"]
    t = jnp.maximum(gmax @ fw1 + fs1, 0.0)
    t = jnp.maximum(t @ fw2 + fs2, 0.0)
    trans = (t @ fw3 + fs3).reshape(B, 3, 3)

    gs1, gw2, gs2, gw3, gs3 = prep["feat_pt"]
    w1b = jnp.einsum("bij,jk->bik", trans, prep["feat_w1"]).astype(MATMUL_DTYPE)
    h = point_mlp(xb, w1b, gs1, gw2, gs2, gw3, gs3, False)
    gsum = jnp.sum(h, axis=1)

    cw1, cs1, cw2, cs2, cw3, cs3 = prep["cls_fc"]
    c = jnp.maximum(gsum @ cw1 + cs1, 0.0)
    c = jnp.maximum(c @ cw2 + cs2, 0.0)
    logits = c @ cw3 + cs3
    return jax.nn.log_softmax(logits, axis=0), trans


if __name__ == "__main__":
    B, N, K = 2, 256, 2
    key = jax.random.PRNGKey(0)
    kx, kp = jax.random.split(key)
    x = jax.random.normal(kx, (B, 3, N), jnp.float32)      # PyTorch-style (B, C=3, n_pts)

    raw = init_params(kp, K)
    prep = prepare_params(raw)

    fwd = jax.jit(functools.partial(pointnet_cls_forward, tn=128))  # 2 tiles per batch
    pred, trans = fwd(prep, x)
    jax.block_until_ready((pred, trans))

    assert pred.shape == (B, K), pred.shape
    assert trans.shape == (B, 3, 3), trans.shape
    assert bool(jnp.all(jnp.isfinite(pred))) and bool(jnp.all(jnp.isfinite(trans)))
    # log_softmax is over dim=0 (batch) in the reference module -> columns sum to 1.
    assert jnp.allclose(jnp.sum(jnp.exp(pred), axis=0), 1.0, atol=1e-4)

    # Cross-check against a pure-JAX reference using the same folded params & casts.
    pred_ref, trans_ref = pointnet_cls_reference(prep, x)
    assert jnp.allclose(trans, trans_ref, atol=5e-2, rtol=5e-2), \
        float(jnp.max(jnp.abs(trans - trans_ref)))
    assert jnp.allclose(pred, pred_ref, atol=5e-1, rtol=1e-1), \
        float(jnp.max(jnp.abs(pred - pred_ref)))

    print("KERNEL_OK")
</pallas_src>

<mosaic_0001>
module attributes {stable_mosaic.version = 11 : i64} {
  func.func @_point_mlp_reduce_kernel(%arg0: i32, %arg1: i32, %arg2: memref<1x128x3xf32, #tpu.memory_space<vmem>>, %arg3: memref<1x3x64xbf16, #tpu.memory_space<vmem>>, %arg4: memref<1x64xf32, #tpu.memory_space<vmem>>, %arg5: memref<64x128xbf16, #tpu.memory_space<vmem>>, %arg6: memref<1x128xf32, #tpu.memory_space<vmem>>, %arg7: memref<128x1024xbf16, #tpu.memory_space<vmem>>, %arg8: memref<1x1024xf32, #tpu.memory_space<vmem>>, %arg9: memref<1x1x1024xf32, #tpu.memory_space<vmem>>) attributes {dimension_semantics = [#tpu.dimension_semantics<parallel>, #tpu.dimension_semantics<arbitrary>], iteration_bounds = array<i64: 2, 2>, scalar_prefetch = 0 : i64, scratch_operands = 0 : i64, tpu.core_type = #tpu.core_type<tc>, window_params = [{transform_indices = @transform_0, window_bounds = array<i64: 1, 128, 3>}, {transform_indices = @transform_1, window_bounds = array<i64: 1, 3, 64>}, {pipeline_mode = #tpu.pipeline_mode<synchronous>, transform_indices = @transform_2, window_bounds = array<i64: 1, 64>}, {pipeline_mode = #tpu.pipeline_mode<synchronous>, transform_indices = @transform_3, window_bounds = array<i64: 64, 128>}, {pipeline_mode = #tpu.pipeline_mode<synchronous>, transform_indices = @transform_4, window_bounds = array<i64: 1, 128>}, {pipeline_mode = #tpu.pipeline_mode<synchronous>, transform_indices = @transform_5, window_bounds = array<i64: 128, 1024>}, {pipeline_mode = #tpu.pipeline_mode<synchronous>, transform_indices = @transform_6, window_bounds = array<i64: 1, 1024>}, {transform_indices = @transform_7, window_bounds = array<i64: 1, 1, 1024>}]} {
    %c0_i32 = arith.constant 0 : i32
    %0 = arith.cmpi eq, %arg1, %c0_i32 : i32
    %1 = arith.extui %0 : i1 to i32
    %c0_i32_0 = arith.constant 0 : i32
    %2 = arith.cmpi ne, %1, %c0_i32_0 : i32
    scf.if %2 {
      %cst_27 = arith.constant 0.000000e+00 : f32
      %33 = vector.broadcast %cst_27 : f32 to vector<1x1x1024xf32>
      %c0_28 = arith.constant 0 : index
      %c0_29 = arith.constant 0 : index
      %c0_30 = arith.constant 0 : index
      %34 = vector.load %arg9[%c0_28, %c0_29, %c0_30] : memref<1x1x1024xf32, #tpu.memory_space<vmem>>, vector<1x1x1024xf32>
      tpu.vector_store %arg9[%c0_28, %c0_29, %c0_30], %33 {strides = array<i32>} : memref<1x1x1024xf32, #tpu.memory_space<vmem>>, vector<1x1x1024xf32>,
    } else {
    }
    %c0 = arith.constant 0 : index
    %c0_1 = arith.constant 0 : index
    %c0_2 = arith.constant 0 : index
    %3 = vector.load %arg2[%c0, %c0_1, %c0_2] : memref<1x128x3xf32, #tpu.memory_space<vmem>>, vector<1x128x3xf32>
    %4 = vector.shape_cast %3 : vector<1x128x3xf32> to vector<128x3xf32>
    %5 = arith.truncf %4 : vector<128x3xf32> to vector<128x3xbf16>
    %c0_3 = arith.constant 0 : index
    %c0_4 = arith.constant 0 : index
    %c0_5 = arith.constant 0 : index
    %6 = vector.load %arg3[%c0_3, %c0_4, %c0_5] : memref<1x3x64xbf16, #tpu.memory_space<vmem>>, vector<1x3x64xbf16>
    %7 = vector.shape_cast %6 : vector<1x3x64xbf16> to vector<3x64xbf16>
    %cst = arith.constant dense<0.000000e+00> : vector<128x64xf32>
    %8 = tpu.matmul %5, %7, %cst {dimension_numbers = #tpu.dot_dimension_numbers<[1], [0], [0], [1], [0, 0, 1, 1], [], []>} : vector<128x3xbf16>, vector<3x64xbf16>, vector<128x64xf32> -> vector<128x64xf32>
    %c0_6 = arith.constant 0 : index
    %c0_7 = arith.constant 0 : index
    %9 = vector.load %arg4[%c0_6, %c0_7] : memref<1x64xf32, #tpu.memory_space<vmem>>, vector<1x64xf32>
    %10 = vector.broadcast %9 : vector<1x64xf32> to vector<128x64xf32>
    %11 = arith.addf %8, %10 : vector<128x64xf32>
    %cst_8 = arith.constant 0.000000e+00 : f32
    %12 = vector.broadcast %cst_8 : f32 to vector<128x64xf32>
    %13 = arith.maximumf %11, %12 : vector<128x64xf32>
    %14 = arith.truncf %13 : vector<128x64xf32> to vector<128x64xbf16>
    %c0_9 = arith.constant 0 : index
    %c0_10 = arith.constant 0 : index
    %15 = vector.load %arg5[%c0_9, %c0_10] : memref<64x128xbf16, #tpu.memory_space<vmem>>, vector<64x128xbf16>
    %cst_11 = arith.constant dense<0.000000e+00> : vector<128x128xf32>
    %16 = tpu.matmul %14, %15, %cst_11 {dimension_numbers = #tpu.dot_dimension_numbers<[1], [0], [0], [1], [0, 0, 1, 1], [], []>} : vector<128x64xbf16>, vector<64x128xbf16>, vector<128x128xf32> -> vector<128x128xf32>
    %c0_12 = arith.constant 0 : index
    %c0_13 = arith.constant 0 : index
    %17 = vector.load %arg6[%c0_12, %c0_13] : memref<1x128xf32, #tpu.memory_space<vmem>>, vector<1x128xf32>
    %18 = vector.broadcast %17 : vector<1x128xf32> to vector<128x128xf32>
    %19 = arith.addf %16, %18 : vector<128x128xf32>
    %cst_14 = arith.constant 0.000000e+00 : f32
    %20 = vector.broadcast %cst_14 : f32 to vector<128x128xf32>
    %21 = arith.maximumf %19, %20 : vector<128x128xf32>
    %22 = arith.truncf %21 : vector<128x128xf32> to vector<128x128xbf16>
    %c0_15 = arith.constant 0 : index
    %c0_16 = arith.constant 0 : index
    %23 = vector.load %arg7[%c0_15, %c0_16] : memref<128x1024xbf16, #tpu.memory_space<vmem>>, vector<128x1024xbf16>
    %cst_17 = arith.constant dense<0.000000e+00> : vector<128x1024xf32>
    %24 = tpu.matmul %22, %23, %cst_17 {dimension_numbers = #tpu.dot_dimension_numbers<[1], [0], [0], [1], [0, 0, 1, 1], [], []>} : vector<128x128xbf16>, vector<128x1024xbf16>, vector<128x1024xf32> -> vector<128x1024xf32>
    %c0_18 = arith.constant 0 : index
    %c0_19 = arith.constant 0 : index
    %25 = vector.load %arg8[%c0_18, %c0_19] : memref<1x1024xf32, #tpu.memory_space<vmem>>, vector<1x1024xf32>
    %26 = vector.broadcast %25 : vector<1x1024xf32> to vector<128x1024xf32>
    %27 = arith.addf %24, %26 : vector<128x1024xf32>
    %cst_20 = arith.constant dense<0.000000e+00> : vector<1024xf32>
    %28 = vector.multi_reduction <add>, %27, %cst_20 [0] : vector<128x1024xf32> to vector<1024xf32>
    %29 = vector.shape_cast %28 : vector<1024xf32> to vector<1x1x1024xf32>
    %c0_21 = arith.constant 0 : index
    %c0_22 = arith.constant 0 : index
    %c0_23 = arith.constant 0 : index
    %30 = vector.load %arg9[%c0_21, %c0_22, %c0_23] : memref<1x1x1024xf32, #tpu.memory_space<vmem>>, vector<1x1x1024xf32>
    %31 = arith.addf %30, %29 : vector<1x1x1024xf32>
    %c0_24 = arith.constant 0 : index
    %c0_25 = arith.constant 0 : index
    %c0_26 = arith.constant 0 : index
    %32 = vector.load %arg9[%c0_24, %c0_25, %c0_26] : memref<1x1x1024xf32, #tpu.memory_space<vmem>>, vector<1x1x1024xf32>
    tpu.vector_store %arg9[%c0_24, %c0_25, %c0_26], %31 {strides = array<i32>} : memref<1x1x1024xf32, #tpu.memory_space<vmem>>, vector<1x1x1024xf32>,
    return
  }
  func.func @transform_0(%arg0: i32, %arg1: i32) -> (i32, i32, i32) {
    %c0_i32 = arith.constant 0 : i32
    %c0_i32_0 = arith.constant 0 : i32
    return %arg0, %arg1, %c0_i32 : i32, i32, i32
  }
  func.func @transform_1(%arg0: i32, %arg1: i32) -> (i32, i32, i32) {
    %c0_i32 = arith.constant 0 : i32
    %c0_i32_0 = arith.constant 0 : i32
    %c0_i32_1 = arith.constant 0 : i32
    return %arg0, %c0_i32, %c0_i32_0 : i32, i32, i32
  }
  func.func @transform_2(%arg0: i32, %arg1: i32) -> (i32, i32) {
    %c0_i32 = arith.constant 0 : i32
    %c0_i32_0 = arith.constant 0 : i32
    %c0_i32_1 = arith.constant 0 : i32
    return %c0_i32, %c0_i32_0 : i32, i32
  }
  func.func @transform_3(%arg0: i32, %arg1: i32) -> (i32, i32) {
    %c0_i32 = arith.constant 0 : i32
    %c0_i32_0 = arith.constant 0 : i32
    %c0_i32_1 = arith.constant 0 : i32
    return %c0_i32, %c0_i32_0 : i32, i32
  }
  func.func @transform_4(%arg0: i32, %arg1: i32) -> (i32, i32) {
    %c0_i32 = arith.constant 0 : i32
    %c0_i32_0 = arith.constant 0 : i32
    %c0_i32_1 = arith.constant 0 : i32
    return %c0_i32, %c0_i32_0 : i32, i32
  }
  func.func @transform_5(%arg0: i32, %arg1: i32) -> (i32, i32) {
    %c0_i32 = arith.constant 0 : i32
    %c0_i32_0 = arith.constant 0 : i32
    %c0_i32_1 = arith.constant 0 : i32
    return %c0_i32, %c0_i32_0 : i32, i32
  }
  func.func @transform_6(%arg0: i32, %arg1: i32) -> (i32, i32) {
    %c0_i32 = arith.constant 0 : i32
    %c0_i32_0 = arith.constant 0 : i32
    %c0_i32_1 = arith.constant 0 : i32
    return %c0_i32, %c0_i32_0 : i32, i32
  }
  func.func @transform_7(%arg0: i32, %arg1: i32) -> (i32, i32, i32) {
    %c0_i32 = arith.constant 0 : i32
    %c0_i32_0 = arith.constant 0 : i32
    %c0_i32_1 = arith.constant 0 : i32
    return %arg0, %c0_i32, %c0_i32_0 : i32, i32, i32
  }
}

module attributes {stable_mosaic.version = 11 : i64} {
  func.func @_point_mlp_reduce_kernel(%arg0: i32, %arg1: i32, %arg2: memref<1x128x3xf32, #tpu.memory_space<vmem>>, %arg3: memref<1x3x64xbf16, #tpu.memory_space<vmem>>, %arg4: memref<1x64xf32, #tpu.memory_space<vmem>>, %arg5: memref<64x128xbf16, #tpu.memory_space<vmem>>, %arg6: memref<1x128xf32, #tpu.memory_space<vmem>>, %arg7: memref<128x1024xbf16, #tpu.memory_space<vmem>>, %arg8: memref<1x1024xf32, #tpu.memory_space<vmem>>, %arg9: memref<1x1x1024xf32, #tpu.memory_space<vmem>>) attributes {dimension_semantics = [#tpu.dimension_semantics<parallel>, #tpu.dimension_semantics<arbitrary>], iteration_bounds = array<i64: 2, 2>, scalar_prefetch = 0 : i64, scratch_operands = 0 : i64, tpu.core_type = #tpu.core_type<tc>, window_params = [{transform_indices = @transform_0, window_bounds = array<i64: 1, 128, 3>}, {pipeline_mode = #tpu.pipeline_mode<synchronous>, transform_indices = @transform_1, window_bounds = array<i64: 1, 3, 64>}, {pipeline_mode = #tpu.pipeline_mode<synchronous>, transform_indices = @transform_2, window_bounds = array<i64: 1, 64>}, {pipeline_mode = #tpu.pipeline_mode<synchronous>, transform_indices = @transform_3, window_bounds = array<i64: 64, 128>}, {pipeline_mode = #tpu.pipeline_mode<synchronous>, transform_indices = @transform_4, window_bounds = array<i64: 1, 128>}, {pipeline_mode = #tpu.pipeline_mode<synchronous>, transform_indices = @transform_5, window_bounds = array<i64: 128, 1024>}, {pipeline_mode = #tpu.pipeline_mode<synchronous>, transform_indices = @transform_6, window_bounds = array<i64: 1, 1024>}, {transform_indices = @transform_7, window_bounds = array<i64: 1, 1, 1024>}]} {
    %c0_i32 = arith.constant 0 : i32
    %0 = arith.cmpi eq, %arg1, %c0_i32 : i32
    %1 = arith.extui %0 : i1 to i32
    %c0_i32_0 = arith.constant 0 : i32
    %2 = arith.cmpi ne, %1, %c0_i32_0 : i32
    scf.if %2 {
      %cst_28 = arith.constant 0xFF800000 : f32
      %35 = vector.broadcast %cst_28 : f32 to vector<1x1x1024xf32>
      %c0_29 = arith.constant 0 : index
      %c0_30 = arith.constant 0 : index
      %c0_31 = arith.constant 0 : index
      %36 = vector.load %arg9[%c0_29, %c0_30, %c0_31] : memref<1x1x1024xf32, #tpu.memory_space<vmem>>, vector<1x1x1024xf32>
      tpu.vector_store %arg9[%c0_29, %c0_30, %c0_31], %35 {strides = array<i32>} : memref<1x1x1024xf32, #tpu.memory_space<vmem>>, vector<1x1x1024xf32>,
    } else {
    }
    %c0 = arith.constant 0 : index
    %c0_1 = arith.constant 0 : index
    %c0_2 = arith.constant 0 : index
    %3 = vector.load %arg2[%c0, %c0_1, %c0_2] : memref<1x128x3xf32, #tpu.memory_space<vmem>>, vector<1x128x3xf32>
    %4 = vector.shape_cast %3 : vector<1x128x3xf32> to vector<128x3xf32>
    %5 = arith.truncf %4 : vector<128x3xf32> to vector<128x3xbf16>
    %c0_3 = arith.constant 0 : index
    %c0_4 = arith.constant 0 : index
    %c0_5 = arith.constant 0 : index
    %6 = vector.load %arg3[%c0_3, %c0_4, %c0_5] : memref<1x3x64xbf16, #tpu.memory_space<vmem>>, vector<1x3x64xbf16>
    %7 = vector.shape_cast %6 : vector<1x3x64xbf16> to vector<3x64xbf16>
    %cst = arith.constant dense<0.000000e+00> : vector<128x64xf32>
    %8 = tpu.matmul %5, %7, %cst {dimension_numbers = #tpu.dot_dimension_numbers<[1], [0], [0], [1], [0, 0, 1, 1], [], []>} : vector<128x3xbf16>, vector<3x64xbf16>, vector<128x64xf32> -> vector<128x64xf32>
    %c0_6 = arith.constant 0 : index
    %c0_7 = arith.constant 0 : index
    %9 = vector.load %arg4[%c0_6, %c0_7] : memref<1x64xf32, #tpu.memory_space<vmem>>, vector<1x64xf32>
    %10 = vector.broadcast %9 : vector<1x64xf32> to vector<128x64xf32>
    %11 = arith.addf %8, %10 : vector<128x64xf32>
    %cst_8 = arith.constant 0.000000e+00 : f32
    %12 = vector.broadcast %cst_8 : f32 to vector<128x64xf32>
    %13 = arith.maximumf %11, %12 : vector<128x64xf32>
    %14 = arith.truncf %13 : vector<128x64xf32> to vector<128x64xbf16>
    %c0_9 = arith.constant 0 : index
    %c0_10 = arith.constant 0 : index
    %15 = vector.load %arg5[%c0_9, %c0_10] : memref<64x128xbf16, #tpu.memory_space<vmem>>, vector<64x128xbf16>
    %cst_11 = arith.constant dense<0.000000e+00> : vector<128x128xf32>
    %16 = tpu.matmul %14, %15, %cst_11 {dimension_numbers = #tpu.dot_dimension_numbers<[1], [0], [0], [1], [0, 0, 1, 1], [], []>} : vector<128x64xbf16>, vector<64x128xbf16>, vector<128x128xf32> -> vector<128x128xf32>
    %c0_12 = arith.constant 0 : index
    %c0_13 = arith.constant 0 : index
    %17 = vector.load %arg6[%c0_12, %c0_13] : memref<1x128xf32, #tpu.memory_space<vmem>>, vector<1x128xf32>
    %18 = vector.broadcast %17 : vector<1x128xf32> to vector<128x128xf32>
    %19 = arith.addf %16, %18 : vector<128x128xf32>
    %cst_14 = arith.constant 0.000000e+00 : f32
    %20 = vector.broadcast %cst_14 : f32 to vector<128x128xf32>
    %21 = arith.maximumf %19, %20 : vector<128x128xf32>
    %22 = arith.truncf %21 : vector<128x128xf32> to vector<128x128xbf16>
    %c0_15 = arith.constant 0 : index
    %c0_16 = arith.constant 0 : index
    %23 = vector.load %arg7[%c0_15, %c0_16] : memref<128x1024xbf16, #tpu.memory_space<vmem>>, vector<128x1024xbf16>
    %cst_17 = arith.constant dense<0.000000e+00> : vector<128x1024xf32>
    %24 = tpu.matmul %22, %23, %cst_17 {dimension_numbers = #tpu.dot_dimension_numbers<[1], [0], [0], [1], [0, 0, 1, 1], [], []>} : vector<128x128xbf16>, vector<128x1024xbf16>, vector<128x1024xf32> -> vector<128x1024xf32>
    %c0_18 = arith.constant 0 : index
    %c0_19 = arith.constant 0 : index
    %25 = vector.load %arg8[%c0_18, %c0_19] : memref<1x1024xf32, #tpu.memory_space<vmem>>, vector<1x1024xf32>
    %26 = vector.broadcast %25 : vector<1x1024xf32> to vector<128x1024xf32>
    %27 = arith.addf %24, %26 : vector<128x1024xf32>
    %cst_20 = arith.constant 0.000000e+00 : f32
    %28 = vector.broadcast %cst_20 : f32 to vector<128x1024xf32>
    %29 = arith.maximumf %27, %28 : vector<128x1024xf32>
    %cst_21 = arith.constant dense<0xFF800000> : vector<1024xf32>
    %30 = vector.multi_reduction <maximumf>, %29, %cst_21 [0] : vector<128x1024xf32> to vector<1024xf32>
    %31 = vector.shape_cast %30 : vector<1024xf32> to vector<1x1x1024xf32>
    %c0_22 = arith.constant 0 : index
    %c0_23 = arith.constant 0 : index
    %c0_24 = arith.constant 0 : index
    %32 = vector.load %arg9[%c0_22, %c0_23, %c0_24] : memref<1x1x1024xf32, #tpu.memory_space<vmem>>, vector<1x1x1024xf32>
    %33 = arith.maximumf %32, %31 : vector<1x1x1024xf32>
    %c0_25 = arith.constant 0 : index
    %c0_26 = arith.constant 0 : index
    %c0_27 = arith.constant 0 : index
    %34 = vector.load %arg9[%c0_25, %c0_26, %c0_27] : memref<1x1x1024xf32, #tpu.memory_space<vmem>>, vector<1x1x1024xf32>
    tpu.vector_store %arg9[%c0_25, %c0_26, %c0_27], %33 {strides = array<i32>} : memref<1x1x1024xf32, #tpu.memory_space<vmem>>, vector<1x1x1024xf32>,
    return
  }
  func.func @transform_0(%arg0: i32, %arg1: i32) -> (i32, i32, i32) {
    %c0_i32 = arith.constant 0 : i32
    %c0_i32_0 = arith.constant 0 : i32
    return %arg0, %arg1, %c0_i32 : i32, i32, i32
  }
  func.func @transform_1(%arg0: i32, %arg1: i32) -> (i32, i32, i32) {
    %c0_i32 = arith.constant 0 : i32
    %c0_i32_0 = arith.constant 0 : i32
    %c0_i32_1 = arith.constant 0 : i32
    %c0_i32_2 = arith.constant 0 : i32
    return %c0_i32, %c0_i32_0, %c0_i32_1 : i32, i32, i32
  }
  func.func @transform_2(%arg0: i32, %arg1: i32) -> (i32, i32) {
    %c0_i32 = arith.constant 0 : i32
    %c0_i32_0 = arith.constant 0 : i32
    %c0_i32_1 = arith.constant 0 : i32
    return %c0_i32, %c0_i32_0 : i32, i32
  }
  func.func @transform_3(%arg0: i32, %arg1: i32) -> (i32, i32) {
    %c0_i32 = arith.constant 0 : i32
    %c0_i32_0 = arith.constant 0 : i32
    %c0_i32_1 = arith.constant 0 : i32
    return %c0_i32, %c0_i32_0 : i32, i32
  }
  func.func @transform_4(%arg0: i32, %arg1: i32) -> (i32, i32) {
    %c0_i32 = arith.constant 0 : i32
    %c0_i32_0 = arith.constant 0 : i32
    %c0_i32_1 = arith.constant 0 : i32
    return %c0_i32, %c0_i32_0 : i32, i32
  }
  func.func @transform_5(%arg0: i32, %arg1: i32) -> (i32, i32) {
    %c0_i32 = arith.constant 0 : i32
    %c0_i32_0 = arith.constant 0 : i32
    %c0_i32_1 = arith.constant 0 : i32
    return %c0_i32, %c0_i32_0 : i32, i32
  }
  func.func @transform_6(%arg0: i32, %arg1: i32) -> (i32, i32) {
    %c0_i32 = arith.constant 0 : i32
    %c0_i32_0 = arith.constant 0 : i32
    %c0_i32_1 = arith.constant 0 : i32
    return %c0_i32, %c0_i32_0 : i32, i32
  }
  func.func @transform_7(%arg0: i32, %arg1: i32) -> (i32, i32, i32) {
    %c0_i32 = arith.constant 0 : i32
    %c0_i32_0 = arith.constant 0 : i32
    %c0_i32_1 = arith.constant 0 : i32
    return %arg0, %c0_i32, %c0_i32_0 : i32, i32, i32
  }
}

module attributes {stable_mosaic.version = 11 : i64} {
  func.func @_mlp3_kernel(%arg0: i32, %arg1: memref<2x1024xf32, #tpu.memory_space<vmem>>, %arg2: memref<1024x512xf32, #tpu.memory_space<vmem>>, %arg3: memref<1x512xf32, #tpu.memory_space<vmem>>, %arg4: memref<512x256xf32, #tpu.memory_space<vmem>>, %arg5: memref<1x256xf32, #tpu.memory_space<vmem>>, %arg6: memref<256x9xf32, #tpu.memory_space<vmem>>, %arg7: memref<1x9xf32, #tpu.memory_space<vmem>>, %arg8: memref<2x9xf32, #tpu.memory_space<vmem>>) attributes {dimension_semantics = [#tpu.dimension_semantics<arbitrary>], iteration_bounds = array<i64: 1>, scalar_prefetch = 0 : i64, scratch_operands = 0 : i64, tpu.core_type = #tpu.core_type<tc>, window_params = [{pipeline_mode = #tpu.pipeline_mode<synchronous>, transform_indices = @transform_0, window_bounds = array<i64: 2, 1024>}, {pipeline_mode = #tpu.pipeline_mode<synchronous>, transform_indices = @transform_1, window_bounds = array<i64: 1024, 512>}, {pipeline_mode = #tpu.pipeline_mode<synchronous>, transform_indices = @transform_2, window_bounds = array<i64: 1, 512>}, {pipeline_mode = #tpu.pipeline_mode<synchronous>, transform_indices = @transform_3, window_bounds = array<i64: 512, 256>}, {pipeline_mode = #tpu.pipeline_mode<synchronous>, transform_indices = @transform_4, window_bounds = array<i64: 1, 256>}, {pipeline_mode = #tpu.pipeline_mode<synchronous>, transform_indices = @transform_5, window_bounds = array<i64: 256, 9>}, {pipeline_mode = #tpu.pipeline_mode<synchronous>, transform_indices = @transform_6, window_bounds = array<i64: 1, 9>}, {pipeline_mode = #tpu.pipeline_mode<synchronous>, transform_indices = @transform_7, window_bounds = array<i64: 2, 9>}]} {
    %c0 = arith.constant 0 : index
    %c0_0 = arith.constant 0 : index
    %0 = vector.load %arg1[%c0, %c0_0] : memref<2x1024xf32, #tpu.memory_space<vmem>>, vector<2x1024xf32>
    %c0_1 = arith.constant 0 : index
    %c0_2 = arith.constant 0 : index
    %1 = vector.load %arg2[%c0_1, %c0_2] : memref<1024x512xf32, #tpu.memory_space<vmem>>, vector<1024x512xf32>
    %cst = arith.constant dense<0.000000e+00> : vector<2x512xf32>
    %2 = tpu.matmul %0, %1, %cst {dimension_numbers = #tpu.dot_dimension_numbers<[1], [0], [0], [1], [0, 0, 1, 1], [], []>} : vector<2x1024xf32>, vector<1024x512xf32>, vector<2x512xf32> -> vector<2x512xf32>
    %c0_3 = arith.constant 0 : index
    %c0_4 = arith.constant 0 : index
    %3 = vector.load %arg3[%c0_3, %c0_4] : memref<1x512xf32, #tpu.memory_space<vmem>>, vector<1x512xf32>
    %4 = vector.broadcast %3 : vector<1x512xf32> to vector<2x512xf32>
    %5 = arith.addf %2, %4 : vector<2x512xf32>
    %cst_5 = arith.constant 0.000000e+00 : f32
    %6 = vector.broadcast %cst_5 : f32 to vector<2x512xf32>
    %7 = arith.maximumf %5, %6 : vector<2x512xf32>
    %c0_6 = arith.constant 0 : index
    %c0_7 = arith.constant 0 : index
    %8 = vector.load %arg4[%c0_6, %c0_7] : memref<512x256xf32, #tpu.memory_space<vmem>>, vector<512x256xf32>
    %cst_8 = arith.constant dense<0.000000e+00> : vector<2x256xf32>
    %9 = tpu.matmul %7, %8, %cst_8 {dimension_numbers = #tpu.dot_dimension_numbers<[1], [0], [0], [1], [0, 0, 1, 1], [], []>} : vector<2x512xf32>, vector<512x256xf32>, vector<2x256xf32> -> vector<2x256xf32>
    %c0_9 = arith.constant 0 : index
    %c0_10 = arith.constant 0 : index
    %10 = vector.load %arg5[%c0_9, %c0_10] : memref<1x256xf32, #tpu.memory_space<vmem>>, vector<1x256xf32>
    %11 = vector.broadcast %10 : vector<1x256xf32> to vector<2x256xf32>
    %12 = arith.addf %9, %11 : vector<2x256xf32>
    %cst_11 = arith.constant 0.000000e+00 : f32
    %13 = vector.broadcast %cst_11 : f32 to vector<2x256xf32>
    %14 = arith.maximumf %12, %13 : vector<2x256xf32>
    %c0_12 = arith.constant 0 : index
    %c0_13 = arith.constant 0 : index
    %15 = vector.load %arg6[%c0_12, %c0_13] : memref<256x9xf32, #tpu.memory_space<vmem>>, vector<256x9xf32>
    %cst_14 = arith.constant dense<0.000000e+00> : vector<2x9xf32>
    %16 = tpu.matmul %14, %15, %cst_14 {dimension_numbers = #tpu.dot_dimension_numbers<[1], [0], [0], [1], [0, 0, 1, 1], [], []>} : vector<2x256xf32>, vector<256x9xf32>, vector<2x9xf32> -> vector<2x9xf32>
    %c0_15 = arith.constant 0 : index
    %c0_16 = arith.constant 0 : index
    %17 = vector.load %arg7[%c0_15, %c0_16] : memref<1x9xf32, #tpu.memory_space<vmem>>, vector<1x9xf32>
    %18 = vector.broadcast %17 : vector<1x9xf32> to vector<2x9xf32>
    %19 = arith.addf %16, %18 : vector<2x9xf32>
    %c0_17 = arith.constant 0 : index
    %c0_18 = arith.constant 0 : index
    %20 = vector.load %arg8[%c0_17, %c0_18] : memref<2x9xf32, #tpu.memory_space<vmem>>, vector<2x9xf32>
    tpu.vector_store %arg8[%c0_17, %c0_18], %19 {strides = array<i32>} : memref<2x9xf32, #tpu.memory_space<vmem>>, vector<2x9xf32>,
    return
  }
  func.func @transform_0(%arg0: i32) -> (i32, i32) {
    %c0_i32 = arith.constant 0 : i32
    %c0_i32_0 = arith.constant 0 : i32
    %c0_i32_1 = arith.constant 0 : i32
    return %c0_i32, %c0_i32_0 : i32, i32
  }
  func.func @transform_1(%arg0: i32) -> (i32, i32) {
    %c0_i32 = arith.constant 0 : i32
    %c0_i32_0 = arith.constant 0 : i32
    %c0_i32_1 = arith.constant 0 : i32
    return %c0_i32, %c0_i32_0 : i32, i32
  }
  func.func @transform_2(%arg0: i32) -> (i32, i32) {
    %c0_i32 = arith.constant 0 : i32
    %c0_i32_0 = arith.constant 0 : i32
    %c0_i32_1 = arith.constant 0 : i32
    return %c0_i32, %c0_i32_0 : i32, i32
  }
  func.func @transform_3(%arg0: i32) -> (i32, i32) {
    %c0_i32 = arith.constant 0 : i32
    %c0_i32_0 = arith.constant 0 : i32
    %c0_i32_1 = arith.constant 0 : i32
    return %c0_i32, %c0_i32_0 : i32, i32
  }
  func.func @transform_4(%arg0: i32) -> (i32, i32) {
    %c0_i32 = arith.constant 0 : i32
    %c0_i32_0 = arith.constant 0 : i32
    %c0_i32_1 = arith.constant 0 : i32
    return %c0_i32, %c0_i32_0 : i32, i32
  }
  func.func @transform_5(%arg0: i32) -> (i32, i32) {
    %c0_i32 = arith.constant 0 : i32
    %c0_i32_0 = arith.constant 0 : i32
    %c0_i32_1 = arith.constant 0 : i32
    return %c0_i32, %c0_i32_0 : i32, i32
  }
  func.func @transform_6(%arg0: i32) -> (i32, i32) {
    %c0_i32 = arith.constant 0 : i32
    %c0_i32_0 = arith.constant 0 : i32
    %c0_i32_1 = arith.constant 0 : i32
    return %c0_i32, %c0_i32_0 : i32, i32
  }
  func.func @transform_7(%arg0: i32) -> (i32, i32) {
    %c0_i32 = arith.constant 0 : i32
    %c0_i32_0 = arith.constant 0 : i32
    %c0_i32_1 = arith.constant 0 : i32
    return %c0_i32, %c0_i32_0 : i32, i32
  }
}

module attributes {stable_mosaic.version = 11 : i64} {
  func.func @_mlp3_kernel(%arg0: i32, %arg1: memref<2x1024xf32, #tpu.memory_space<vmem>>, %arg2: memref<1024x512xf32, #tpu.memory_space<vmem>>, %arg3: memref<1x512xf32, #tpu.memory_space<vmem>>, %arg4: memref<512x256xf32, #tpu.memory_space<vmem>>, %arg5: memref<1x256xf32, #tpu.memory_space<vmem>>, %arg6: memref<256x2xf32, #tpu.memory_space<vmem>>, %arg7: memref<1x2xf32, #tpu.memory_space<vmem>>, %arg8: memref<2x2xf32, #tpu.memory_space<vmem>>) attributes {dimension_semantics = [#tpu.dimension_semantics<arbitrary>], iteration_bounds = array<i64: 1>, scalar_prefetch = 0 : i64, scratch_operands = 0 : i64, tpu.core_type = #tpu.core_type<tc>, window_params = [{pipeline_mode = #tpu.pipeline_mode<synchronous>, transform_indices = @transform_0, window_bounds = array<i64: 2, 1024>}, {pipeline_mode = #tpu.pipeline_mode<synchronous>, transform_indices = @transform_1, window_bounds = array<i64: 1024, 512>}, {pipeline_mode = #tpu.pipeline_mode<synchronous>, transform_indices = @transform_2, window_bounds = array<i64: 1, 512>}, {pipeline_mode = #tpu.pipeline_mode<synchronous>, transform_indices = @transform_3, window_bounds = array<i64: 512, 256>}, {pipeline_mode = #tpu.pipeline_mode<synchronous>, transform_indices = @transform_4, window_bounds = array<i64: 1, 256>}, {pipeline_mode = #tpu.pipeline_mode<synchronous>, transform_indices = @transform_5, window_bounds = array<i64: 256, 2>}, {pipeline_mode = #tpu.pipeline_mode<synchronous>, transform_indices = @transform_6, window_bounds = array<i64: 1, 2>}, {pipeline_mode = #tpu.pipeline_mode<synchronous>, transform_indices = @transform_7, window_bounds = array<i64: 2, 2>}]} {
    %c0 = arith.constant 0 : index
    %c0_0 = arith.constant 0 : index
    %0 = vector.load %arg1[%c0, %c0_0] : memref<2x1024xf32, #tpu.memory_space<vmem>>, vector<2x1024xf32>
    %c0_1 = arith.constant 0 : index
    %c0_2 = arith.constant 0 : index
    %1 = vector.load %arg2[%c0_1, %c0_2] : memref<1024x512xf32, #tpu.memory_space<vmem>>, vector<1024x512xf32>
    %cst = arith.constant dense<0.000000e+00> : vector<2x512xf32>
    %2 = tpu.matmul %0, %1, %cst {dimension_numbers = #tpu.dot_dimension_numbers<[1], [0], [0], [1], [0, 0, 1, 1], [], []>} : vector<2x1024xf32>, vector<1024x512xf32>, vector<2x512xf32> -> vector<2x512xf32>
    %c0_3 = arith.constant 0 : index
    %c0_4 = arith.constant 0 : index
    %3 = vector.load %arg3[%c0_3, %c0_4] : memref<1x512xf32, #tpu.memory_space<vmem>>, vector<1x512xf32>
    %4 = vector.broadcast %3 : vector<1x512xf32> to vector<2x512xf32>
    %5 = arith.addf %2, %4 : vector<2x512xf32>
    %cst_5 = arith.constant 0.000000e+00 : f32
    %6 = vector.broadcast %cst_5 : f32 to vector<2x512xf32>
    %7 = arith.maximumf %5, %6 : vector<2x512xf32>
    %c0_6 = arith.constant 0 : index
    %c0_7 = arith.constant 0 : index
    %8 = vector.load %arg4[%c0_6, %c0_7] : memref<512x256xf32, #tpu.memory_space<vmem>>, vector<512x256xf32>
    %cst_8 = arith.constant dense<0.000000e+00> : vector<2x256xf32>
    %9 = tpu.matmul %7, %8, %cst_8 {dimension_numbers = #tpu.dot_dimension_numbers<[1], [0], [0], [1], [0, 0, 1, 1], [], []>} : vector<2x512xf32>, vector<512x256xf32>, vector<2x256xf32> -> vector<2x256xf32>
    %c0_9 = arith.constant 0 : index
    %c0_10 = arith.constant 0 : index
    %10 = vector.load %arg5[%c0_9, %c0_10] : memref<1x256xf32, #tpu.memory_space<vmem>>, vector<1x256xf32>
    %11 = vector.broadcast %10 : vector<1x256xf32> to vector<2x256xf32>
    %12 = arith.addf %9, %11 : vector<2x256xf32>
    %cst_11 = arith.constant 0.000000e+00 : f32
    %13 = vector.broadcast %cst_11 : f32 to vector<2x256xf32>
    %14 = arith.maximumf %12, %13 : vector<2x256xf32>
    %c0_12 = arith.constant 0 : index
    %c0_13 = arith.constant 0 : index
    %15 = vector.load %arg6[%c0_12, %c0_13] : memref<256x2xf32, #tpu.memory_space<vmem>>, vector<256x2xf32>
    %cst_14 = arith.constant dense<0.000000e+00> : vector<2x2xf32>
    %16 = tpu.matmul %14, %15, %cst_14 {dimension_numbers = #tpu.dot_dimension_numbers<[1], [0], [0], [1], [0, 0, 1, 1], [], []>} : vector<2x256xf32>, vector<256x2xf32>, vector<2x2xf32> -> vector<2x2xf32>
    %c0_15 = arith.constant 0 : index
    %c0_16 = arith.constant 0 : index
    %17 = vector.load %arg7[%c0_15, %c0_16] : memref<1x2xf32, #tpu.memory_space<vmem>>, vector<1x2xf32>
    %18 = vector.broadcast %17 : vector<1x2xf32> to vector<2x2xf32>
    %19 = arith.addf %16, %18 : vector<2x2xf32>
    %cst_17 = arith.constant dense<0xFF800000> : vector<2xf32>
    %20 = vector.multi_reduction <maximumf>, %19, %cst_17 [0] : vector<2x2xf32> to vector<2xf32>
    %21 = vector.shape_cast %20 : vector<2xf32> to vector<1x2xf32>
    %22 = vector.broadcast %21 : vector<1x2xf32> to vector<2x2xf32>
    %23 = arith.subf %19, %22 : vector<2x2xf32>
    %24 = math.exp %23 : vector<2x2xf32>
    %cst_18 = arith.constant dense<0.000000e+00> : vector<2xf32>
    %25 = vector.multi_reduction <add>, %24, %cst_18 [0] : vector<2x2xf32> to vector<2xf32>
    %26 = vector.shape_cast %25 : vector<2xf32> to vector<1x2xf32>
    %27 = math.log %26 : vector<1x2xf32>
    %28 = vector.broadcast %27 : vector<1x2xf32> to vector<2x2xf32>
    %29 = arith.subf %23, %28 : vector<2x2xf32>
    %c0_19 = arith.constant 0 : index
    %c0_20 = arith.constant 0 : index
    %30 = vector.load %arg8[%c0_19, %c0_20] : memref<2x2xf32, #tpu.memory_space<vmem>>, vector<2x2xf32>
    tpu.vector_store %arg8[%c0_19, %c0_20], %29 {strides = array<i32>} : memref<2x2xf32, #tpu.memory_space<vmem>>, vector<2x2xf32>,
    return
  }
  func.func @transform_0(%arg0: i32) -> (i32, i32) {
    %c0_i32 = arith.constant 0 : i32
    %c0_i32_0 = arith.constant 0 : i32
    %c0_i32_1 = arith.constant 0 : i32
    return %c0_i32, %c0_i32_0 : i32, i32
  }
  func.func @transform_1(%arg0: i32) -> (i32, i32) {
    %c0_i32 = arith.constant 0 : i32
    %c0_i32_0 = arith.constant 0 : i32
    %c0_i32_1 = arith.constant 0 : i32
    return %c0_i32, %c0_i32_0 : i32, i32
  }
  func.func @transform_2(%arg0: i32) -> (i32, i32) {
    %c0_i32 = arith.constant 0 : i32
    %c0_i32_0 = arith.constant 0 : i32
    %c0_i32_1 = arith.constant 0 : i32
    return %c0_i32, %c0_i32_0 : i32, i32
  }
  func.func @transform_3(%arg0: i32) -> (i32, i32) {
    %c0_i32 = arith.constant 0 : i32
    %c0_i32_0 = arith.constant 0 : i32
    %c0_i32_1 = arith.constant 0 : i32
    return %c0_i32, %c0_i32_0 : i32, i32
  }
  func.func @transform_4(%arg0: i32) -> (i32, i32) {
    %c0_i32 = arith.constant 0 : i32
    %c0_i32_0 = arith.constant 0 : i32
    %c0_i32_1 = arith.constant 0 : i32
    return %c0_i32, %c0_i32_0 : i32, i32
  }
  func.func @transform_5(%arg0: i32) -> (i32, i32) {
    %c0_i32 = arith.constant 0 : i32
    %c0_i32_0 = arith.constant 0 : i32
    %c0_i32_1 = arith.constant 0 : i32
    return %c0_i32, %c0_i32_0 : i32, i32
  }
  func.func @transform_6(%arg0: i32) -> (i32, i32) {
    %c0_i32 = arith.constant 0 : i32
    %c0_i32_0 = arith.constant 0 : i32
    %c0_i32_1 = arith.constant 0 : i32
    return %c0_i32, %c0_i32_0 : i32, i32
  }
  func.func @transform_7(%arg0: i32) -> (i32, i32) {
    %c0_i32 = arith.constant 0 : i32
    %c0_i32_0 = arith.constant 0 : i32
    %c0_i32_1 = arith.constant 0 : i32
    return %c0_i32, %c0_i32_0 : i32, i32
  }
}

</mosaic_0001>

<bundles_post_ra>
// kernel: pointnet_cls_forward.6
= control target key start
LH: loop header
LB: loop body
LE: loop exit
PB: predicated region body
PF: predicated region fallthrough
CT: control target
= control target key end

     0   :  { %s2181_s24 = smov 0   ;;  %s2183_s25 = smov 0   ;;  %s2794_s0 = inlined_call_operand.vmem [shape: f32[2,256,3], index: 0, kind: input, shape index: {}]   ;;  %s2795_s1 = inlined_call_operand.vmem [shape: bf16[2,3,64], index: 1, kind: input, shape index: {}]   ;;  %s2796_s2 = inlined_call_operand.vmem [shape: f32[1,64], index: 2, kind: input, shape index: {}]   ;;  %s2797_s3 = inlined_call_operand.vmem [shape: bf16[64,128], index: 3, kind: input, shape index: {}]   ;;  %s2798_s4 = inlined_call_operand.vmem [shape: f32[1,128], index: 4, kind: input, shape index: {}]   ;;  %s2799_s5 = inlined_call_operand.vmem [shape: bf16[128,1024], index: 5, kind: input, shape index: {}]   ;;  %s2800_s6 = inlined_call_operand.vmem [shape: f32[1,1024], index: 6, kind: input, shape index: {}]   ;;  %s2801_s7 = inlined_call_operand.vmem [shape: f32[2,1,1024], index: 7, kind: output, shape index: {}]  }
   0x1   :  { %s2185_s26 = smov 0   ;;  %s2187_s27 = smov 0  }
   0x2   :  { %s2189_s28 = smov 0  }
   0x3 LB: > { %s26_s29 = sadd.s32 1, %s2127_s26  ;;  %s29_s30 = sadd.s32 1, %s2131_s27  ;;  %s2135_s28 = sphi %s2189_s28, %s17_s28   ;;  %s2131_s27 = sphi %s2187_s27, %s2805_s27   ;;  %s2127_s26 = sphi %s2185_s26, %s2804_s26   ;;  %s2123_s25 = sphi %s2183_s25, %s2803_s25   ;;  %s2119_s24 = sphi %s2181_s24, %s2802_s24  }
   0x4   : > { %p27_p0 = scmp.ge.s32.totalorder %s26_s29, 2  ;;  %p1891_p1 = scmp.ge.s32.totalorder %s2135_s28, 1 }
   0x5   : > { %p265_p2 = scmp.lt.s32.totalorder %s2135_s28, 5 }
   0x6   : > { %s2807_s29 = smov (%p27_p0, %s26_s29), 0  ;;  %s2809_s30 = smov (!%p27_p0, %s29_s30), %s2131_s27 }
   0x7   : > { %p266_p3 = pnand %p1891_p1, %p265_p2  ;;  %p31_p4 = scmp.ge.s32.totalorder %s2809_s30, 2 }
   0x8   : > { %s1892_s8 = sshll.u32 (!%p266_p3), %s2119_s24, 4  ;;  %p305_p5 = scmp.lt.s32.totalorder (!%p266_p3), %s2123_s25, 1 }
   0x9   : > { %s2811_s30 = smov (%p31_p4, %s2809_s30), 0  ;;  %269 = sbr.rel (%p266_p3) target bundleno = 844 (0x34c), region = 48 }
   0xa   : > { %p307_p6 = scmp.lt.s32.totalorder (!%p266_p3), %s1892_s8, 31  ;;  %p1897_p7 = scmp.ne.s32.totalorder (!%p266_p3), %s2119_s24, 0 }
  0x10   : > { %s2813_s25 = smov (!%p305_p5, %s2123_s25), 1  ;;  %s2815_s8 = smov (!%p307_p6, %s1892_s8), 31 }
  0x11   : > { %s1893_s9 = sshll.u32 %s2813_s25, 5  ;;  %s1895_s10 = sshll.u32 %s2813_s25, 1  ;;  %v2137_v0 = vmov (!%p1897_p7), 0.0  }
  0x12   : > { %s310_s11 = sadd.s32 %s1893_s9, %s2815_s8  ;;  %s317_s14 = scalar_lea.vmem %s2795_s1, %s1895_s10 }
  0x13   : > { %s1894_s15 = sshll.u32 %s310_s11, 3  ;;  %s1896_s16 = sshll.u32 %s2813_s25, 3 }
  0x14   : > { %s2220_s19 = scalar_lea.vmem %s2794_s0, %s1894_s15  ;;  %s2225_s22 = scalar_lea.vmem %s2801_s7, %s1896_s16 }
  0x15   : > { %326 = sbr.rel (%p1897_p7) target bundleno = 28 (0x1c), region = 52  ;;  %327 = vst [vmem:[%s2225_s22] sm:$0xff] (!%p1897_p7), %v2137_v0 }
  0x1c PF: > { %v352_v1 = vld [vmem:[%s317_s14] sm:$0x3]  ;;  %vm385_vm0 = vcmask 1040384   ;;  %vm386_vm1 = vcmask 1041408   ;;  %v2138_v3 = vmov 65535   ;;  %v329_v5 = vld [vmem:[%s2220_s19 + $0x8] sm:$0xff] }
  0x1d   : > { %v328_v2 = vld [vmem:[%s2220_s19] sm:$0xff]  ;;  %v387_v4 = vsel %vm385_vm0, 4294967295, %v2138_v3  ;;  %vm360_vm2 = vcmask 23552   ;;  %v330_v8 = vld [vmem:[%s2220_s19 + $0x10] sm:$0xff]  ;;  %v331_v9 = vld [vmem:[%s2220_s19 + $0x18] sm:$0xff]  ;;  %vm552_vm3 = vcmask 523264  }
  0x1e   : > { %v388_v6 = vsel %vm386_vm1, %v387_v4, 0  ;;  %v344_v7 = vpack.c.bf16 %v329_v5, %v328_v2  ;;  %v332_v11 = vld [vmem:[%s2220_s19 + $0x20] sm:$0xff]  ;;  %v333_v12 = vld [vmem:[%s2220_s19 + $0x28] sm:$0xff]  ;;  %v345_v13 = vpack.c.bf16 %v331_v9, %v330_v8  ;;  %v334_v17 = vld [vmem:[%s2220_s19 + $0x30] sm:$0xff] }
  0x1f   : > { %v390_v10 = vand.u32 %v388_v6, %v352_v1  ;;  %v346_v14 = vpack.c.bf16 %v333_v12, %v332_v11  ;;  %v2093_v15 = vld [vmem:[%s2797_s3] sm:$0xff]   ;;  %v2094_v16 = vld [vmem:[%s2797_s3 + $0x8] sm:$0xff]   ;;  %v335_v18 = vld [vmem:[%s2220_s19 + $0x38] sm:$0xff] }
  0x20   : > { %2009 = vmatprep.mubr.msk.bf16.mxu0 %vm360_vm2, %v344_v7  ;;  %2025 = vmatprep.subr.bf16.mxu1 %v2093_v15  ;;  %v336_v19 = vld [vmem:[%s2220_s19 + $0x40] sm:$0xff]  ;;  %v337_v20 = vld [vmem:[%s2220_s19 + $0x48] sm:$0xff]  ;;  %v347_v21 = vpack.c.bf16 %v335_v18, %v334_v17  ;;  %v338_v23 = vld [vmem:[%s2220_s19 + $0x50] sm:$0xff] }
  0x21   : > { %2007 = vmatprep.subr.bf16.mxu0 %v390_v10  ;;  %2026 = vmatpush3.bf16.msra.mxu1 %v2093_v15  ;;  %v348_v22 = vpack.c.bf16 %v337_v20, %v336_v19  ;;  %v339_v24 = vld [vmem:[%s2220_s19 + $0x58] sm:$0xff]  ;;  %v340_v25 = vld [vmem:[%s2220_s19 + $0x60] sm:$0xff]  ;;  %v341_v26 = vld [vmem:[%s2220_s19 + $0x68] sm:$0xff] }
  0x22   : > { %2008 = vmatpush3.bf16.msra.mxu0 %v390_v10  ;;  %2027 = vmatprep.subr.bf16.mxu1 %v2094_v16  ;;  %v349_v27 = vpack.c.bf16 %v339_v24, %v338_v23  ;;  %v350_v28 = vpack.c.bf16 %v341_v26, %v340_v25  ;;  %v342_v29 = vld [vmem:[%s2220_s19 + $0x70] sm:$0xff]  ;;  %v343_v30 = vld [vmem:[%s2220_s19 + $0x78] sm:$0xff]  ;;  %v698_v34 = vld [vmem:[%s2799_s5] sm:$0xff] }
  0x23   : > { %v351_v31 = vpack.c.bf16 %v343_v30, %v342_v29  ;;  %v2095_v32 = vld [vmem:[%s2797_s3 + $0x10] sm:$0xff]   ;;  %v2096_v33 = vld [vmem:[%s2797_s3 + $0x18] sm:$0xff]   ;;  %v702_v35 = vld [vmem:[%s2799_s5 + $0x20] sm:$0xff] }
  0x24   : > { %v2274_v36 = vld [vmem:[%s2799_s5 + $0x8] sm:$0xff]  ;;  %v1920_v37 = vcombine.low %v698_v34, %v702_v35  ;;  %v1921_v38 = vcombine.high %v698_v34, %v702_v35  ;;  %v706_v40 = vld [vmem:[%s2799_s5 + $0x40] sm:$0xff] }
  0x25   : > { %2010 = vmatmul.mubr.msk.bf16.vlgmr.msra.gmra.mrb[0].mxu0 %vm360_vm2, %v345_v13  ;;  %2028 = vmatpush3.bf16.msra.mxu1 %v2094_v16  ;;  %v2279_v39 = vld [vmem:[%s2799_s5 + $0x28] sm:$0xff]  ;;  %v710_v41 = vld [vmem:[%s2799_s5 + $0x60] sm:$0xff] }
  0x26   : > { %2013 = vmatprep.mubr.msk.bf16.mxu0 %vm360_vm2, %v346_v14  ;;  %2029 = vmatprep.subr.bf16.mxu1 %v2095_v32  ;;  %v1922_v42 = vcombine.low %v2274_v36, %v2279_v39  ;;  %v1923_v43 = vcombine.high %v2274_v36, %v2279_v39  ;;  %v1929_v44 = vcombine.high %v706_v40, %v710_v41  ;;  %v714_v45 = vld [vmem:[%s2799_s5 + $0x80] sm:$0xff]  ;;  %v707_v11 = vld [vmem:[%s2799_s5 + $0x48] sm:$0xff] }
  0x27   : > { %1124 = vmatprep.subr.bf16.mxu0 %v1921_v38  ;;  %v718_v46 = vld [vmem:[%s2799_s5 + $0xa0] sm:$0xff]  ;;  %v1928_v47 = vcombine.low %v706_v40, %v710_v41  ;;  %v711_v12 = vld [vmem:[%s2799_s5 + $0x68] sm:$0xff] }
  0x28   : > { %1125 = vmatpush1.bf16.msra.mxu0 %v1920_v37  ;;  %v1937_v48 = vcombine.high %v714_v45, %v718_v46  ;;  %v722_v49 = vld [vmem:[%s2799_s5 + $0xc0] sm:$0xff]  ;;  %v1936_v51 = vcombine.low %v714_v45, %v718_v46  ;;  %v1931_v18 = vcombine.high %v707_v11, %v711_v12 }
  0x29   : > { %2030 = vmatpush3.bf16.msra.mxu1 %v2095_v32  ;;  %1126 = vmatprep.subr.bf16.mxu0 %v1929_v44  ;;  %v726_v50 = vld [vmem:[%s2799_s5 + $0xe0] sm:$0xff]  ;;  %v723_v32 = vld [vmem:[%s2799_s5 + $0xc8] sm:$0xff] }
  0x2a   : > { %2031 = vmatprep.subr.bf16.mxu1 %v2096_v33  ;;  %v1945_v52 = vcombine.high %v722_v49, %v726_v50  ;;  %v730_v53 = vld [vmem:[%s2799_s5 + $0x100] sm:$0xff]  ;;  %v1944_v55 = vcombine.low %v722_v49, %v726_v50  ;;  %v735_v44 = vld [vmem:[%s2799_s5 + $0x128] sm:$0xff] }
  0x2b   : > { %v734_v54 = vld [vmem:[%s2799_s5 + $0x120] sm:$0xff] }
  0x2c   : > { %1127 = vmatpush1.bf16.msra.mxu0 %v1928_v47  ;;  %v1953_v56 = vcombine.high %v730_v53, %v734_v54  ;;  %v738_v57 = vld [vmem:[%s2799_s5 + $0x140] sm:$0xff]  ;;  %v1952_v59 = vcombine.low %v730_v53, %v734_v54  ;;  %v739_v54 = vld [vmem:[%s2799_s5 + $0x148] sm:$0xff] }
  0x2d   : > { %2014 = vmatmul.mubr.msk.bf16.gmra.mrb[4].mxu0 %vm360_vm2, %v347_v21  ;;  %2032 = vmatpush3.bf16.msra.mxu1 %v2096_v33  ;;  %v742_v58 = vld [vmem:[%s2799_s5 + $0x160] sm:$0xff]  ;;  %v715_v21 = vld [vmem:[%s2799_s5 + $0x88] sm:$0xff] }
  0x2e   : > { %2017 = vmatprep.mubr.msk.bf16.mxu0 %vm360_vm2, %v348_v22  ;;  %1237 = vmatprep.subr.bf16.mxu1 %v1923_v43  ;;  %v1961_v60 = vcombine.high %v738_v57, %v742_v58  ;;  %v1960_v61 = vcombine.low %v738_v57, %v742_v58  ;;  %v2318_v62 = vld [vmem:[%s2796_s2] ss:$0 sm:$0xff]  ;;  %v719_v22 = vld [vmem:[%s2799_s5 + $0xa8] sm:$0xff] }
  0x2f   : > { %1128 = vmatprep.subr.bf16.mxu0 %v1937_v48  ;;  %v1939_v30 = vcombine.high %v715_v21, %v719_v22  ;;  %v727_v33 = vld [vmem:[%s2799_s5 + $0xe8] sm:$0xff]  ;;  %v1938_v38 = vcombine.low %v715_v21, %v719_v22 }
  0x30   : > { %1129 = vmatpush1.bf16.msra.mxu0 %v1936_v51  ;;  %v1947_v40 = vcombine.high %v723_v32, %v727_v33  ;;  %v731_v43 = vld [vmem:[%s2799_s5 + $0x108] sm:$0xff]  ;;  %v1946_v50 = vcombine.low %v723_v32, %v727_v33  ;;  %v705_v33 = vld [vmem:[%s2799_s5 + $0x38] sm:$0xff] }
  0x31   : > { %1130 = vmatprep.subr.bf16.mxu0 %v1945_v52  ;;  %v1955_v52 = vcombine.high %v731_v43, %v735_v44  ;;  %v755_v21 = vld [vmem:[%s2799_s5 + $0x1c8] sm:$0xff] }
  0x34   : > { %1131 = vmatpush1.bf16.msra.mxu0 %v1944_v55  ;;  %v743_v55 = vld [vmem:[%s2799_s5 + $0x168] sm:$0xff] }
  0x35   : > { %2018 = vmatmul.mubr.msk.bf16.gmra.mrb[8].mxu0 %vm360_vm2, %v349_v27  ;;  %1132 = vmatprep.subr.bf16.mxu0 %v1953_v56 }
  0x36   : > { %2021 = vmatprep.mubr.msk.bf16.mxu0 %vm360_vm2, %v350_v28  ;;  %v1930_v28 = vcombine.low %v707_v11, %v711_v12  ;;  %v746_v12 = vld [vmem:[%s2799_s5 + $0x180] sm:$0xff] }
  0x38   : > { %1133 = vmatpush1.bf16.msra.mxu0 %v1952_v59  ;;  %v1954_v59 = vcombine.low %v731_v43, %v735_v44 }
  0x39   : > { %1134 = vmatprep.subr.bf16.mxu0 %v1961_v60 }
  0x3c   : > { %1135 = vmatpush1.bf16.msra.mxu0 %v1960_v61 }
  0x3d   : > { %2022 = vmatmul.mubr.msk.bf16.gmra.mrb[12].mxu0 %vm360_vm2, %v351_v31 }
  0xf8   : > { %v2011_v63 = vpop.f32.mrb[0].mxu0 }
  0xf9   : > { %v435_v0 = vadd.f32 %v2011_v63, %v2318_v62  ;;  %v426_v1 = vpop.f32.mrb[1].mxu0  ;;  %v1963_v63 = vcombine.high %v739_v54, %v743_v55 }
  0xfa   : > { %v427_v2 = vadd.f32 %v2318_v62, %v426_v1  ;;  %v2012_v3 = vpop.f32.mrb[2].mxu0 }
  0xfb   : > { %v438_v4 = vadd.f32 %v2012_v3, %v2318_v62  ;;  %v429_v5 = vpop.f32.mrb[3].mxu0  ;;  %v491_v7 = vmax.f32 %v435_v0, 0.0 }
  0xfc   : > { %v430_v6 = vadd.f32 %v2318_v62, %v429_v5  ;;  %v489_v9 = vmax.f32 %v427_v2, 0.0 }
  0xfd   : > { %v492_v8 = vmax.f32 %v438_v4, 0.0 }
  0xfe   : > { %v490_v10 = vmax.f32 %v430_v6, 0.0 }
  0xff   : > { %v506_v13 = vpack.c.bf16 %v492_v8, %v491_v7  ;;  %v1962_v7 = vcombine.low %v739_v54, %v743_v55 }
 0x100   : > { %v2015_v14 = vpop.f32.mrb[4].mxu0  ;;  %v505_v15 = vpack.c.bf16 %v490_v10, %v489_v9 }
 0x101   : > { %v451_v16 = vadd.f32 %v2015_v14, %v2318_v62  ;;  %v442_v17 = vpop.f32.mrb[5].mxu0 }
 0x102   : > { %v443_v19 = vadd.f32 %v2318_v62, %v442_v17  ;;  %2033 = vmatprep.mubr.msk.bf16.mxu1 %vm552_vm3, %v505_v15  ;;  %v2016_v20 = vpop.f32.mrb[6].mxu0  ;;  %v751_v15 = vld [vmem:[%s2799_s5 + $0x1a8] sm:$0xff] }
 0x103   : > { %v495_v23 = vmax.f32 %v451_v16, 0.0  ;;  %v454_v24 = vadd.f32 %v2016_v20, %v2318_v62  ;;  %2034 = vmatmul.mubr.msk.bf16.vlgmr.msra.gmra.mrb[0].mxu1 %vm552_vm3, %v506_v13  ;;  %v445_v25 = vpop.f32.mrb[7].mxu0  ;;  %v747_v13 = vld [vmem:[%s2799_s5 + $0x188] sm:$0xff]  ;;  %v758_v20 = vld [vmem:[%s2799_s5 + $0x1e0] sm:$0xff] }
 0x104   : > { %v493_v26 = vmax.f32 %v443_v19, 0.0  ;;  %v446_v27 = vadd.f32 %v2318_v62, %v445_v25  ;;  %1238 = vmatpush1.bf16.msra.mxu1 %v1922_v42  ;;  %v1970_v17 = vcombine.low %v747_v13, %v751_v15  ;;  %v754_v19 = vld [vmem:[%s2799_s5 + $0x1c0] sm:$0xff] }
 0x105   : > { %v496_v29 = vmax.f32 %v454_v24, 0.0  ;;  %1239 = vmatprep.subr.bf16.mxu1 %v1931_v18  ;;  %v1971_v18 = vcombine.high %v747_v13, %v751_v15  ;;  %v1977_v22 = vcombine.high %v754_v19, %v758_v20  ;;  %v1976_v24 = vcombine.low %v754_v19, %v758_v20  ;;  %v725_v15 = vld [vmem:[%s2799_s5 + $0xd8] sm:$0xff] }
 0x106   : > { %v494_v31 = vmax.f32 %v446_v27, 0.0  ;;  %v2139_v27 = vmov 0  }
 0x107   : > { %v508_v34 = vpack.c.bf16 %v496_v29, %v495_v23  ;;  %v759_v23 = vld [vmem:[%s2799_s5 + $0x1e8] sm:$0xff]  ;;  %1156 = vmatprep.mubr.bf16.mxu0 %v2139_v27  ;;  %v704_v29 = vld [vmem:[%s2799_s5 + $0x30] sm:$0xff] }
 0x108   : > { %v507_v35 = vpack.c.bf16 %v494_v31, %v493_v26  ;;  %v2019_v37 = vpop.f32.mrb[8].mxu0  ;;  %1240 = vmatpush1.bf16.msra.mxu1 %v1930_v28  ;;  %v1978_v25 = vcombine.low %v755_v21, %v759_v23  ;;  %v1979_v26 = vcombine.high %v755_v21, %v759_v23  ;;  %v700_v28 = vld [vmem:[%s2799_s5 + $0x10] sm:$0xff] }
 0x109   : > { %v467_v36 = vadd.f32 %v2019_v37, %v2318_v62  ;;  %v458_v39 = vpop.f32.mrb[9].mxu0  ;;  %1241 = vmatprep.subr.bf16.mxu1 %v1939_v30  ;;  %v701_v30 = vld [vmem:[%s2799_s5 + $0x18] sm:$0xff]  ;;  %v1924_v31 = vcombine.low %v700_v28, %v704_v29  ;;  %v1925_v32 = vcombine.high %v700_v28, %v704_v29  ;;  %v2418_v37 = vld [vmem:[%s2798_s4] ss:$0 sm:$0xff] }
 0x10a   : > { %2037 = vmatprep.mubr.msk.bf16.mxu1 %vm552_vm3, %v507_v35  ;;  %v459_v41 = vadd.f32 %v2318_v62, %v458_v39  ;;  %v2020_v42 = vpop.f32.mrb[10].mxu0  ;;  %v1927_v35 = vcombine.high %v701_v30, %v705_v33 }
 0x10b   : > { %2038 = vmatmul.mubr.msk.bf16.gmra.mrb[4].mxu1 %vm552_vm3, %v508_v34  ;;  %v499_v45 = vmax.f32 %v467_v36, 0.0  ;;  %v470_v46 = vadd.f32 %v2020_v42, %v2318_v62  ;;  %v461_v47 = vpop.f32.mrb[11].mxu0  ;;  %v1926_v34 = vcombine.low %v701_v30, %v705_v33  ;;  %v736_v30 = vld [vmem:[%s2799_s5 + $0x130] sm:$0xff] }
 0x10c   : > { %v497_v48 = vmax.f32 %v459_v41, 0.0  ;;  %v462_v49 = vadd.f32 %v2318_v62, %v461_v47  ;;  %1242 = vmatpush1.bf16.msra.mxu1 %v1938_v38  ;;  %v708_v47 = vld [vmem:[%s2799_s5 + $0x50] sm:$0xff] }
 0x10d   : > { %v500_v51 = vmax.f32 %v470_v46, 0.0  ;;  %1243 = vmatprep.subr.bf16.mxu1 %v1947_v40 }
 0x10e   : > { %v498_v53 = vmax.f32 %v462_v49, 0.0 }
 0x10f   : > { %v510_v56 = vpack.c.bf16 %v500_v51, %v499_v45  ;;  %v709_v51 = vld [vmem:[%s2799_s5 + $0x58] sm:$0xff] }
 0x110   : > { %v509_v57 = vpack.c.bf16 %v498_v53, %v497_v48  ;;  %v2023_v58 = vpop.f32.mrb[12].mxu0  ;;  %1244 = vmatpush1.bf16.msra.mxu1 %v1946_v50  ;;  %v712_v50 = vld [vmem:[%s2799_s5 + $0x70] sm:$0xff] }
 0x111   : > { %v483_v60 = vadd.f32 %v2023_v58, %v2318_v62  ;;  %v474_v61 = vpop.f32.mrb[13].mxu0  ;;  %1245 = vmatprep.subr.bf16.mxu1 %v1955_v52  ;;  %v713_v52 = vld [vmem:[%s2799_s5 + $0x78] sm:$0xff] }
 0x112   : > { %2041 = vmatprep.mubr.msk.bf16.mxu1 %vm552_vm3, %v509_v57  ;;  %v475_v0 = vadd.f32 %v2318_v62, %v474_v61  ;;  %v2024_v1 = vpop.f32.mrb[14].mxu0  ;;  %v720_v61 = vld [vmem:[%s2799_s5 + $0xb0] sm:$0xff] }
 0x113   : > { %2042 = vmatmul.mubr.msk.bf16.gmra.mrb[8].mxu1 %vm552_vm3, %v510_v56  ;;  %v503_v2 = vmax.f32 %v483_v60, 0.0  ;;  %v486_v3 = vadd.f32 %v2024_v1, %v2318_v62  ;;  %v477_v4 = vpop.f32.mrb[15].mxu0  ;;  %v716_v56 = vld [vmem:[%s2799_s5 + $0x90] sm:$0xff]  ;;  %v1935_v60 = vcombine.high %v709_v51, %v713_v52 }
 0x114   : > { %v501_v5 = vmax.f32 %v475_v0, 0.0  ;;  %v478_v6 = vadd.f32 %v2318_v62, %v477_v4  ;;  %1246 = vmatpush1.bf16.msra.mxu1 %v1954_v59  ;;  %v750_v62 = vld [vmem:[%s2799_s5 + $0x1a0] sm:$0xff]  ;;  %v1933_v59 = vcombine.high %v708_v47, %v712_v50  ;;  %v721_v0 = vld [vmem:[%s2799_s5 + $0xb8] sm:$0xff]  ;;  %v1940_v20 = vcombine.low %v716_v56, %v720_v61 }
 0x115   : > { %v504_v8 = vmax.f32 %v486_v3, 0.0  ;;  %1247 = vmatprep.subr.bf16.mxu1 %v1963_v63  ;;  %v1969_v14 = vcombine.high %v746_v12, %v750_v62  ;;  %v1968_v16 = vcombine.low %v746_v12, %v750_v62  ;;  %v717_v63 = vld [vmem:[%s2799_s5 + $0x98] sm:$0xff]  ;;  %v724_v62 = vld [vmem:[%s2799_s5 + $0xd0] sm:$0xff] }
 0x116   : > { %v502_v9 = vmax.f32 %v478_v6, 0.0  ;;  %v1932_v6 = vcombine.low %v708_v47, %v712_v50  ;;  %v1942_v21 = vcombine.low %v717_v63, %v721_v0  ;;  %v741_v47 = vld [vmem:[%s2799_s5 + $0x158] sm:$0xff] }
 0x117   : > { %v512_v10 = vpack.c.bf16 %v504_v8, %v503_v2  ;;  %1136 = vmatprep.subr.bf16.mxu0 %v1969_v14  ;;  %v728_v14 = vld [vmem:[%s2799_s5 + $0xf0] sm:$0xff] }
 0x118   : > { %v511_v11 = vpack.c.bf16 %v502_v9, %v501_v5  ;;  %1248 = vmatpush1.bf16.msra.mxu1 %v1962_v7  ;;  %1137 = vmatpush1.bf16.msra.mxu0 %v1968_v16  ;;  %v1934_v7 = vcombine.low %v709_v51, %v713_v52  ;;  %v729_v16 = vld [vmem:[%s2799_s5 + $0xf8] sm:$0xff] }
 0x119   : > { %1249 = vmatprep.subr.bf16.mxu1 %v1971_v18  ;;  %1138 = vmatprep.subr.bf16.mxu0 %v1977_v22 }
 0x11a   : > { %2045 = vmatprep.mubr.msk.bf16.mxu1 %vm552_vm3, %v511_v11  ;;  %v1943_v11 = vcombine.high %v717_v63, %v721_v0  ;;  %v752_v0 = vld [vmem:[%s2799_s5 + $0x1b0] sm:$0xff] }
 0x11b   : > { %2046 = vmatmul.mubr.msk.bf16.gmra.mrb[12].mxu1 %vm552_vm3, %v512_v10  ;;  %v1941_v10 = vcombine.high %v716_v56, %v720_v61 }
 0x11c   : > { %1250 = vmatpush1.bf16.msra.mxu1 %v1970_v17  ;;  %1139 = vmatpush1.bf16.msra.mxu0 %v1976_v24  ;;  %v1949_v24 = vcombine.high %v724_v62, %v728_v14 }
 0x11d   : > { %1251 = vmatprep.subr.bf16.mxu1 %v1979_v26  ;;  %1269 = vmatprep.mubr.bf16.mxu1 %v2139_v27  ;;  %v732_v26 = vld [vmem:[%s2799_s5 + $0x110] sm:$0xff] }
 0x11e   : > { %1350 = vmatprep.subr.bf16.mxu0 %v1925_v32  ;;  %v737_v32 = vld [vmem:[%s2799_s5 + $0x138] sm:$0xff]  ;;  %v1956_v52 = vcombine.low %v732_v26, %v736_v30 }
 0x120   : > { %1252 = vmatpush1.bf16.msra.mxu1 %v1978_v25  ;;  %v1951_v25 = vcombine.high %v725_v15, %v729_v16 }
 0x121   : > { %1463 = vmatprep.subr.bf16.mxu1 %v1927_v35 }
 0x1d6   : > { %v2035_v38 = vpop.f32.mrb[0].mxu1 }
 0x1d7   : > { %v620_v36 = vadd.f32 %v2035_v38, %v2418_v37  ;;  %v611_v39 = vpop.f32.mrb[1].mxu1 }
 0x1d8   : > { %v612_v40 = vadd.f32 %v2418_v37, %v611_v39  ;;  %v2036_v41 = vpop.f32.mrb[2].mxu1  ;;  %v1948_v39 = vcombine.low %v724_v62, %v728_v14  ;;  %v756_v62 = vld [vmem:[%s2799_s5 + $0x1d0] sm:$0xff] }
 0x1d9   : > { %v623_v42 = vadd.f32 %v2036_v41, %v2418_v37  ;;  %v614_v43 = vpop.f32.mrb[3].mxu1  ;;  %v676_v45 = vmax.f32 %v620_v36, 0.0  ;;  %v760_v14 = vld [vmem:[%s2799_s5 + $0x1f0] sm:$0xff] }
 0x1da   : > { %v615_v44 = vadd.f32 %v2418_v37, %v614_v43  ;;  %v674_v48 = vmax.f32 %v612_v40, 0.0  ;;  %v1950_v40 = vcombine.low %v725_v15, %v729_v16  ;;  %v761_v15 = vld [vmem:[%s2799_s5 + $0x1f8] sm:$0xff] }
 0x1db   : > { %v677_v46 = vmax.f32 %v623_v42, 0.0  ;;  %v1957_v42 = vcombine.high %v732_v26, %v736_v30  ;;  %v2599_v26 = vld [vmem:[%s2800_s6] sm:$0xff] }
 0x1dc   : > { %v675_v49 = vmax.f32 %v615_v44, 0.0  ;;  %v740_v44 = vld [vmem:[%s2799_s5 + $0x150] sm:$0xff] }
 0x1dd   : > { %v2436_v53 = vpack.c.bf16 %v677_v46, %v676_v45  ;;  %v744_v46 = vld [vmem:[%s2799_s5 + $0x170] sm:$0xff] }
 0x1de   : > { %v2438_v54 = vpack.c.bf16 %v675_v49, %v674_v48  ;;  %v2039_v55 = vpop.f32.mrb[4].mxu1  ;;  %v745_v48 = vld [vmem:[%s2799_s5 + $0x178] sm:$0xff] }
 0x1df   : > { %v636_v57 = vadd.f32 %v2039_v55, %v2418_v37  ;;  %v627_v58 = vpop.f32.mrb[5].mxu1 }
 0x1e0   : > { %v628_v1 = vadd.f32 %v2418_v37, %v627_v58  ;;  %1157 = vmatmul.mubr.bf16.vlgmr.msra.gmra.mrb[16].mxu0 %v2438_v54  ;;  %1270 = vmatmul.mubr.bf16.vlgmr.msra.gmra.mrb[16].mxu1 %v2438_v54  ;;  %v2040_v2 = vpop.f32.mrb[6].mxu1  ;;  %v1965_v58 = vcombine.high %v740_v44, %v744_v46 }
 0x1e1   : > { %v680_v3 = vmax.f32 %v636_v57, 0.0  ;;  %1351 = vmatpush1.bf16.msra.mxu0 %v1924_v31  ;;  %1464 = vmatpush1.bf16.msra.mxu1 %v1926_v34  ;;  %v639_v4 = vadd.f32 %v2040_v2, %v2418_v37  ;;  %v630_v5 = vpop.f32.mrb[7].mxu1  ;;  %v733_v31 = vld [vmem:[%s2799_s5 + $0x118] sm:$0xff] }
 0x1e2   : > { %v678_v8 = vmax.f32 %v628_v1, 0.0  ;;  %v631_v9 = vadd.f32 %v2418_v37, %v630_v5  ;;  %1166 = vmatprep.mubr.bf16.mxu0 %v2139_v27  ;;  %1279 = vmatprep.mubr.bf16.mxu1 %v2139_v27  ;;  %v1959_v43 = vcombine.high %v733_v31, %v737_v32  ;;  %v1958_v55 = vcombine.low %v733_v31, %v737_v32  ;;  %v749_v1 = vld [vmem:[%s2799_s5 + $0x198] sm:$0xff] }
 0x1e3   : > { %v681_v12 = vmax.f32 %v639_v4, 0.0  ;;  %1352 = vmatprep.subr.bf16.mxu0 %v1933_v59  ;;  %1465 = vmatprep.subr.bf16.mxu1 %v1935_v60  ;;  %v1967_v59 = vcombine.high %v741_v47, %v745_v48  ;;  %v748_v60 = vld [vmem:[%s2799_s5 + $0x190] sm:$0xff]  ;;  %v753_v2 = vld [vmem:[%s2799_s5 + $0x1b8] sm:$0xff] }
 0x1e4   : > { %v679_v13 = vmax.f32 %v631_v9, 0.0  ;;  %v1966_v9 = vcombine.low %v741_v47, %v745_v48 }
 0x1e5   : > { %v2472_v17 = vpack.c.bf16 %v681_v12, %v680_v3  ;;  %1353 = vmatpush1.bf16.msra.mxu0 %v1932_v6  ;;  %1466 = vmatpush1.bf16.msra.mxu1 %v1934_v7  ;;  %v1975_v12 = vcombine.high %v749_v1, %v753_v2 }
 0x1e6   : > { %v2474_v18 = vpack.c.bf16 %v679_v13, %v678_v8  ;;  %v2043_v19 = vpop.f32.mrb[8].mxu1  ;;  %1354 = vmatprep.subr.bf16.mxu0 %v1941_v10  ;;  %1467 = vmatprep.subr.bf16.mxu1 %v1943_v11  ;;  %v1964_v8 = vcombine.low %v740_v44, %v744_v46  ;;  %v1973_v11 = vcombine.high %v748_v60, %v752_v0 }
 0x1e7   : > { %v652_v22 = vadd.f32 %v2043_v19, %v2418_v37  ;;  %v643_v23 = vpop.f32.mrb[9].mxu1 }
 0x1e8   : > { %1167 = vmatmul.mubr.bf16.gmra.mrb[20].mxu0 %v2436_v53  ;;  %1280 = vmatmul.mubr.bf16.gmra.mrb[20].mxu1 %v2436_v53  ;;  %v644_v28 = vadd.f32 %v2418_v37, %v643_v23  ;;  %v2044_v29 = vpop.f32.mrb[10].mxu1 }
 0x1e9   : > { %v684_v33 = vmax.f32 %v652_v22, 0.0  ;;  %1176 = vmatprep.mubr.bf16.mxu0 %v2139_v27  ;;  %1289 = vmatprep.mubr.bf16.mxu1 %v2139_v27  ;;  %v655_v34 = vadd.f32 %v2044_v29, %v2418_v37  ;;  %v646_v35 = vpop.f32.mrb[11].mxu1  ;;  %v1981_v22 = vcombine.high %v756_v62, %v760_v14 }
 0x1ea   : > { %v682_v38 = vmax.f32 %v644_v28, 0.0  ;;  %1355 = vmatpush1.bf16.msra.mxu0 %v1940_v20  ;;  %1468 = vmatpush1.bf16.msra.mxu1 %v1942_v21  ;;  %v647_v36 = vadd.f32 %v2418_v37, %v646_v35  ;;  %v1972_v20 = vcombine.low %v748_v60, %v752_v0  ;;  %v1974_v21 = vcombine.low %v749_v1, %v753_v2 }
 0x1eb   : > { %v685_v41 = vmax.f32 %v655_v34, 0.0  ;;  %1356 = vmatprep.subr.bf16.mxu0 %v1949_v24  ;;  %1469 = vmatprep.subr.bf16.mxu1 %v1951_v25  ;;  %v1980_v24 = vcombine.low %v756_v62, %v760_v14 }
 0x1ec   : > { %v683_v45 = vmax.f32 %v647_v36, 0.0 }
 0x1ed   : > { %v2508_v49 = vpack.c.bf16 %v685_v41, %v684_v33 }
 0x1ee   : > { %v2510_v50 = vpack.c.bf16 %v683_v45, %v682_v38  ;;  %1357 = vmatpush1.bf16.msra.mxu0 %v1948_v39  ;;  %1470 = vmatpush1.bf16.msra.mxu1 %v1950_v40  ;;  %v2047_v51 = vpop.f32.mrb[12].mxu1 }
 0x1ef   : > { %v668_v56 = vadd.f32 %v2047_v51, %v2418_v37  ;;  %1358 = vmatprep.subr.bf16.mxu0 %v1957_v42  ;;  %1471 = vmatprep.subr.bf16.mxu1 %v1959_v43  ;;  %v659_v57 = vpop.f32.mrb[13].mxu1 }
 0x1f0   : > { %1177 = vmatmul.mubr.bf16.gmra.mrb[24].mxu0 %v2474_v18  ;;  %1290 = vmatmul.mubr.bf16.gmra.mrb[24].mxu1 %v2474_v18  ;;  %v660_v61 = vadd.f32 %v2418_v37, %v659_v57  ;;  %v2048_v63 = vpop.f32.mrb[14].mxu1 }
 0x1f1   : > { %1186 = vmatprep.mubr.bf16.mxu0 %v2139_v27  ;;  %1299 = vmatprep.mubr.bf16.mxu1 %v2139_v27  ;;  %v688_v3 = vmax.f32 %v668_v56, 0.0  ;;  %v671_v4 = vadd.f32 %v2048_v63, %v2418_v37  ;;  %v662_v5 = vpop.f32.mrb[15].mxu1 }
 0x1f2   : > { %v686_v6 = vmax.f32 %v660_v61, 0.0  ;;  %1359 = vmatpush1.bf16.msra.mxu0 %v1956_v52  ;;  %1472 = vmatpush1.bf16.msra.mxu1 %v1958_v55  ;;  %v663_v7 = vadd.f32 %v2418_v37, %v662_v5  ;;  %v757_v37 = vld [vmem:[%s2799_s5 + $0x1d8] sm:$0xff] }
 0x1f3   : > { %v689_v10 = vmax.f32 %v671_v4, 0.0  ;;  %1360 = vmatprep.subr.bf16.mxu0 %v1965_v58  ;;  %1473 = vmatprep.subr.bf16.mxu1 %v1967_v59  ;;  %v1983_v23 = vcombine.high %v757_v37, %v761_v15  ;;  %v1982_v25 = vcombine.low %v757_v37, %v761_v15 }
 0x1f4   : > { %v687_v13 = vmax.f32 %v663_v7, 0.0 }
 0x1f5   : > { %v2544_v16 = vpack.c.bf16 %v689_v10, %v688_v3 }
 0x1f6   : > { %v696_v19 = vpack.c.bf16 %v687_v13, %v686_v6  ;;  %1361 = vmatpush1.bf16.msra.mxu0 %v1964_v8  ;;  %1474 = vmatpush1.bf16.msra.mxu1 %v1966_v9 }
 0x1f7   : > { %1362 = vmatprep.subr.bf16.mxu0 %v1973_v11  ;;  %1475 = vmatprep.subr.bf16.mxu1 %v1975_v12 }
 0x1f8   : > { %1187 = vmatmul.mubr.bf16.gmra.mrb[28].mxu0 %v2472_v17  ;;  %1300 = vmatmul.mubr.bf16.gmra.mrb[28].mxu1 %v2472_v17 }
 0x1f9   : > { %1196 = vmatprep.mubr.bf16.mxu0 %v2139_v27  ;;  %1309 = vmatprep.mubr.bf16.mxu1 %v2139_v27 }
 0x1fa   : > { %1363 = vmatpush1.bf16.msra.mxu0 %v1972_v20  ;;  %1476 = vmatpush1.bf16.msra.mxu1 %v1974_v21 }
 0x1fb   : > { %1364 = vmatprep.subr.bf16.mxu0 %v1981_v22  ;;  %1477 = vmatprep.subr.bf16.mxu1 %v1983_v23 }
 0x1fe   : > { %1365 = vmatpush1.bf16.msra.mxu0 %v1980_v24  ;;  %1478 = vmatpush1.bf16.msra.mxu1 %v1982_v25 }
 0x200   : > { %1197 = vmatmul.mubr.bf16.gmra.mrb[32].mxu0 %v2510_v50  ;;  %1310 = vmatmul.mubr.bf16.gmra.mrb[32].mxu1 %v2510_v50 }
 0x201   : > { %1206 = vmatprep.mubr.bf16.mxu0 %v2139_v27  ;;  %1319 = vmatprep.mubr.bf16.mxu1 %v2139_v27 }
 0x208   : > { %1207 = vmatmul.mubr.bf16.gmra.mrb[36].mxu0 %v2508_v49  ;;  %1320 = vmatmul.mubr.bf16.gmra.mrb[36].mxu1 %v2508_v49 }
 0x209   : > { %1216 = vmatprep.mubr.bf16.mxu0 %v2139_v27  ;;  %1329 = vmatprep.mubr.bf16.mxu1 %v2139_v27 }
 0x210   : > { %1217 = vmatmul.mubr.bf16.gmra.mrb[40].mxu0 %v696_v19  ;;  %1330 = vmatmul.mubr.bf16.gmra.mrb[40].mxu1 %v696_v19 }
 0x211   : > { %1226 = vmatprep.mubr.bf16.mxu0 %v2139_v27  ;;  %1339 = vmatprep.mubr.bf16.mxu1 %v2139_v27 }
 0x218   : > { %1227 = vmatmul.mubr.bf16.gmra.mrb[44].mxu0 %v2544_v16  ;;  %1340 = vmatmul.mubr.bf16.gmra.mrb[44].mxu1 %v2544_v16 }
 0x219   : > { %1382 = vmatprep.mubr.bf16.mxu0 %v2139_v27  ;;  %1495 = vmatprep.mubr.bf16.mxu1 %v2139_v27 }
 0x220   : > { %1383 = vmatmul.mubr.bf16.vlgmr.msra.gmra.mrb[48].mxu0 %v2438_v54  ;;  %1496 = vmatmul.mubr.bf16.vlgmr.msra.gmra.mrb[48].mxu1 %v2438_v54 }
 0x221   : > { %1392 = vmatprep.mubr.bf16.mxu0 %v2139_v27  ;;  %1505 = vmatprep.mubr.bf16.mxu1 %v2139_v27 }
 0x228   : > { %1393 = vmatmul.mubr.bf16.gmra.mrb[52].mxu0 %v2436_v53  ;;  %1506 = vmatmul.mubr.bf16.gmra.mrb[52].mxu1 %v2436_v53  ;;  %v764_v53 = vlaneseq }
 0x229   : > { %1402 = vmatprep.mubr.bf16.mxu0 %v2139_v27  ;;  %1515 = vmatprep.mubr.bf16.mxu1 %v2139_v27 }
 0x22a   : > { %v2592_v54 = vshrl.u32 %v764_v53, 7 }
 0x22c   : > { %v770_v28 = vsub.s32 1, %v2592_v54 }
 0x22e   : > { %v2610_v33 = vrot.slane %v2599_v26, %v770_v28 }
 0x230   : > { %1403 = vmatmul.mubr.bf16.gmra.mrb[56].mxu0 %v2474_v18  ;;  %1516 = vmatmul.mubr.bf16.gmra.mrb[56].mxu1 %v2474_v18  ;;  %v774_v18 = vsub.s32 2, %v2592_v54 }
 0x231   : > { %1412 = vmatprep.mubr.bf16.mxu0 %v2139_v27  ;;  %1525 = vmatprep.mubr.bf16.mxu1 %v2139_v27 }
 0x232   : > { %v2607_v30 = vrot.slane %v2599_v26, %v774_v18 }
 0x238   : > { %1413 = vmatmul.mubr.bf16.gmra.mrb[60].mxu0 %v2472_v17  ;;  %1526 = vmatmul.mubr.bf16.gmra.mrb[60].mxu1 %v2472_v17  ;;  %v766_v17 = vsub.s32 0, %v2592_v54 }
 0x239   : > { %1422 = vmatprep.mubr.bf16.mxu0 %v2139_v27  ;;  %1535 = vmatprep.mubr.bf16.mxu1 %v2139_v27 }
 0x23a   : > { %v2604_v29 = vrot.slane %v2599_v26, %v766_v17 }
 0x240   : > { %1423 = vmatmul.mubr.bf16.gmra.mrb[64].mxu0 %v2510_v50  ;;  %1536 = vmatmul.mubr.bf16.gmra.mrb[64].mxu1 %v2510_v50 }
 0x241   : > { %1432 = vmatprep.mubr.bf16.mxu0 %v2139_v27  ;;  %1545 = vmatprep.mubr.bf16.mxu1 %v2139_v27 }
 0x248   : > { %1433 = vmatmul.mubr.bf16.gmra.mrb[68].mxu0 %v2508_v49  ;;  %1546 = vmatmul.mubr.bf16.gmra.mrb[68].mxu1 %v2508_v49 }
 0x249   : > { %1442 = vmatprep.mubr.bf16.mxu0 %v2139_v27  ;;  %1555 = vmatprep.mubr.bf16.mxu1 %v2139_v27 }
 0x250   : > { %1443 = vmatmul.mubr.bf16.gmra.mrb[72].mxu0 %v696_v19  ;;  %1556 = vmatmul.mubr.bf16.gmra.mrb[72].mxu1 %v696_v19 }
 0x251   : > { %1452 = vmatprep.mubr.bf16.mxu0 %v2139_v27  ;;  %1565 = vmatprep.mubr.bf16.mxu1 %v2139_v27  ;;  %v778_v27 = vsub.s32 3, %v2592_v54 }
 0x253   : > { %v2613_v34 = vrot.slane %v2599_v26, %v778_v27 }
 0x258   : > { %1453 = vmatmul.mubr.bf16.gmra.mrb[76].mxu0 %v2544_v16  ;;  %1566 = vmatmul.mubr.bf16.gmra.mrb[76].mxu1 %v2544_v16 }
 0x2b3   : > { %v1158_v31 = vpop.f32.mrb[16].mxu0  ;;  %v1271_v32 = vpop.f32.mrb[16].mxu1 }
 0x2b4   : > { %v1160_v35 = vpop.f32.mrb[17].mxu0  ;;  %v1273_v38 = vpop.f32.mrb[17].mxu1  ;;  %v1159_v40 = vadd.f32 %v1158_v31, %v2604_v29  ;;  %v1272_v41 = vadd.f32 %v1271_v32, %v2607_v30 }
 0x2b5   : > { %v1162_v36 = vpop.f32.mrb[18].mxu0  ;;  %v1275_v39 = vpop.f32.mrb[18].mxu1  ;;  %v1161_v46 = vadd.f32 %v1160_v35, %v2610_v33  ;;  %v1274_v47 = vadd.f32 %v1273_v38, %v2613_v34 }
 0x2b6   : > { %v1163_v42 = vadd.f32 %v1162_v36, %v2604_v29  ;;  %v1276_v43 = vadd.f32 %v1275_v39, %v2607_v30  ;;  %v1164_v44 = vpop.f32.mrb[19].mxu0  ;;  %v1277_v45 = vpop.f32.mrb[19].mxu1 }
 0x2b7   : > { %v1165_v48 = vadd.f32 %v1164_v44, %v2610_v33  ;;  %v1278_v49 = vadd.f32 %v1277_v45, %v2613_v34 }
 0x2b8   : > { %v1576_v50 = vadd.f32 %v1163_v42, %v1159_v40  ;;  %v1618_v51 = vadd.f32 %v1276_v43, %v1272_v41 }
 0x2b9   : > { %v1597_v52 = vadd.f32 %v1165_v48, %v1161_v46  ;;  %v1639_v55 = vadd.f32 %v1278_v49, %v1274_v47 }
 0x2bb   : > { %v1168_v56 = vpop.f32.mrb[20].mxu0  ;;  %v1281_v57 = vpop.f32.mrb[20].mxu1 }
 0x2bc   : > { %v1169_v58 = vadd.f32 %v1168_v56, %v2604_v29  ;;  %v1282_v59 = vadd.f32 %v1281_v57, %v2607_v30  ;;  %v1170_v60 = vpop.f32.mrb[21].mxu0  ;;  %v1283_v61 = vpop.f32.mrb[21].mxu1 }
 0x2bd   : > { %v1171_v63 = vadd.f32 %v1170_v60, %v2610_v33  ;;  %v1284_v0 = vadd.f32 %v1283_v61, %v2613_v34  ;;  %v1172_v1 = vpop.f32.mrb[22].mxu0  ;;  %v1285_v2 = vpop.f32.mrb[22].mxu1 }
 0x2be   : > { %v1577_v3 = vadd.f32 %v1576_v50, %v1169_v58  ;;  %v1619_v4 = vadd.f32 %v1618_v51, %v1282_v59  ;;  %v1173_v5 = vadd.f32 %v1172_v1, %v2604_v29  ;;  %v1286_v6 = vadd.f32 %v1285_v2, %v2607_v30  ;;  %v1174_v7 = vpop.f32.mrb[23].mxu0  ;;  %v1287_v8 = vpop.f32.mrb[23].mxu1 }
 0x2bf   : > { %v1598_v9 = vadd.f32 %v1597_v52, %v1171_v63  ;;  %v1640_v10 = vadd.f32 %v1639_v55, %v1284_v0  ;;  %v1175_v11 = vadd.f32 %v1174_v7, %v2610_v33  ;;  %v1288_v12 = vadd.f32 %v1287_v8, %v2613_v34 }
 0x2c0   : > { %v1578_v62 = vadd.f32 %v1577_v3, %v1173_v5  ;;  %v1620_v13 = vadd.f32 %v1619_v4, %v1286_v6 }
 0x2c1   : > { %v1599_v14 = vadd.f32 %v1598_v9, %v1175_v11  ;;  %v1641_v37 = vadd.f32 %v1640_v10, %v1288_v12 }
 0x2c3   : > { %v1178_v15 = vpop.f32.mrb[24].mxu0  ;;  %v1291_v16 = vpop.f32.mrb[24].mxu1 }
 0x2c4   : > { %v1179_v19 = vadd.f32 %v1178_v15, %v2604_v29  ;;  %v1292_v20 = vadd.f32 %v1291_v16, %v2607_v30  ;;  %v1180_v21 = vpop.f32.mrb[25].mxu0  ;;  %v1293_v22 = vpop.f32.mrb[25].mxu1 }
 0x2c5   : > { %v1181_v23 = vadd.f32 %v1180_v21, %v2610_v33  ;;  %v1294_v24 = vadd.f32 %v1293_v22, %v2613_v34  ;;  %v1182_v25 = vpop.f32.mrb[26].mxu0  ;;  %v1295_v53 = vpop.f32.mrb[26].mxu1 }
 0x2c6   : > { %v1579_v17 = vadd.f32 %v1578_v62, %v1179_v19  ;;  %v1621_v18 = vadd.f32 %v1620_v13, %v1292_v20  ;;  %v1183_v28 = vadd.f32 %v1182_v25, %v2604_v29  ;;  %v1296_v27 = vadd.f32 %v1295_v53, %v2607_v30  ;;  %v1184_v31 = vpop.f32.mrb[27].mxu0  ;;  %v1297_v32 = vpop.f32.mrb[27].mxu1 }
 0x2c7   : > { %v1600_v35 = vadd.f32 %v1599_v14, %v1181_v23  ;;  %v1642_v38 = vadd.f32 %v1641_v37, %v1294_v24  ;;  %v1185_v36 = vadd.f32 %v1184_v31, %v2610_v33  ;;  %v1298_v39 = vadd.f32 %v1297_v32, %v2613_v34 }
 0x2c8   : > { %v1580_v40 = vadd.f32 %v1579_v17, %v1183_v28  ;;  %v1622_v41 = vadd.f32 %v1621_v18, %v1296_v27 }
 0x2c9   : > { %v1601_v42 = vadd.f32 %v1600_v35, %v1185_v36  ;;  %v1643_v43 = vadd.f32 %v1642_v38, %v1298_v39 }
 0x2cb   : > { %v1188_v44 = vpop.f32.mrb[28].mxu0  ;;  %v1301_v45 = vpop.f32.mrb[28].mxu1 }
 0x2cc   : > { %v1189_v46 = vadd.f32 %v1188_v44, %v2604_v29  ;;  %v1302_v47 = vadd.f32 %v1301_v45, %v2607_v30  ;;  %v1190_v48 = vpop.f32.mrb[29].mxu0  ;;  %v1303_v49 = vpop.f32.mrb[29].mxu1 }
 0x2cd   : > { %v1191_v50 = vadd.f32 %v1190_v48, %v2610_v33  ;;  %v1304_v51 = vadd.f32 %v1303_v49, %v2613_v34  ;;  %v1192_v52 = vpop.f32.mrb[30].mxu0  ;;  %v1305_v55 = vpop.f32.mrb[30].mxu1 }
 0x2ce   : > { %v1581_v56 = vadd.f32 %v1580_v40, %v1189_v46  ;;  %v1623_v57 = vadd.f32 %v1622_v41, %v1302_v47  ;;  %v1193_v58 = vadd.f32 %v1192_v52, %v2604_v29  ;;  %v1306_v59 = vadd.f32 %v1305_v55, %v2607_v30  ;;  %v1194_v60 = vpop.f32.mrb[31].mxu0  ;;  %v1307_v61 = vpop.f32.mrb[31].mxu1 }
 0x2cf   : > { %v1602_v63 = vadd.f32 %v1601_v42, %v1191_v50  ;;  %v1644_v0 = vadd.f32 %v1643_v43, %v1304_v51  ;;  %v1195_v1 = vadd.f32 %v1194_v60, %v2610_v33  ;;  %v1308_v2 = vadd.f32 %v1307_v61, %v2613_v34 }
 0x2d0   : > { %v1582_v3 = vadd.f32 %v1581_v56, %v1193_v58  ;;  %v1624_v4 = vadd.f32 %v1623_v57, %v1306_v59 }
 0x2d1   : > { %v1603_v5 = vadd.f32 %v1602_v63, %v1195_v1  ;;  %v1645_v6 = vadd.f32 %v1644_v0, %v1308_v2 }
 0x2d3   : > { %v1198_v7 = vpop.f32.mrb[32].mxu0  ;;  %v1311_v8 = vpop.f32.mrb[32].mxu1 }
 0x2d4   : > { %v1199_v9 = vadd.f32 %v1198_v7, %v2604_v29  ;;  %v1312_v10 = vadd.f32 %v1311_v8, %v2607_v30  ;;  %v1200_v11 = vpop.f32.mrb[33].mxu0  ;;  %v1313_v12 = vpop.f32.mrb[33].mxu1 }
 0x2d5   : > { %v1201_v62 = vadd.f32 %v1200_v11, %v2610_v33  ;;  %v1314_v13 = vadd.f32 %v1313_v12, %v2613_v34  ;;  %v1202_v14 = vpop.f32.mrb[34].mxu0  ;;  %v1315_v37 = vpop.f32.mrb[34].mxu1 }
 0x2d6   : > { %v1583_v15 = vadd.f32 %v1582_v3, %v1199_v9  ;;  %v1625_v16 = vadd.f32 %v1624_v4, %v1312_v10  ;;  %v1203_v19 = vadd.f32 %v1202_v14, %v2604_v29  ;;  %v1316_v20 = vadd.f32 %v1315_v37, %v2607_v30  ;;  %v1204_v21 = vpop.f32.mrb[35].mxu0  ;;  %v1317_v22 = vpop.f32.mrb[35].mxu1 }
 0x2d7   : > { %v1604_v23 = vadd.f32 %v1603_v5, %v1201_v62  ;;  %v1646_v24 = vadd.f32 %v1645_v6, %v1314_v13  ;;  %v1205_v25 = vadd.f32 %v1204_v21, %v2610_v33  ;;  %v1318_v53 = vadd.f32 %v1317_v22, %v2613_v34 }
 0x2d8   : > { %v1584_v17 = vadd.f32 %v1583_v15, %v1203_v19  ;;  %v1626_v18 = vadd.f32 %v1625_v16, %v1316_v20 }
 0x2d9   : > { %v1605_v28 = vadd.f32 %v1604_v23, %v1205_v25  ;;  %v1647_v27 = vadd.f32 %v1646_v24, %v1318_v53  ;;  %v782_v23 = vsub.s32 4, %v2592_v54 }
 0x2db   : > { %v1208_v31 = vpop.f32.mrb[36].mxu0  ;;  %v1321_v32 = vpop.f32.mrb[36].mxu1 }
 0x2dc   : > { %v1209_v35 = vadd.f32 %v1208_v31, %v2604_v29  ;;  %v1322_v38 = vadd.f32 %v1321_v32, %v2607_v30  ;;  %v1210_v36 = vpop.f32.mrb[37].mxu0  ;;  %v1323_v39 = vpop.f32.mrb[37].mxu1 }
 0x2dd   : > { %v1211_v40 = vadd.f32 %v1210_v36, %v2610_v33  ;;  %v1324_v41 = vadd.f32 %v1323_v39, %v2613_v34  ;;  %v1212_v42 = vpop.f32.mrb[38].mxu0  ;;  %v1325_v43 = vpop.f32.mrb[38].mxu1  ;;  %v794_v39 = vsub.s32 7, %v2592_v54 }
 0x2de   : > { %v1585_v44 = vadd.f32 %v1584_v17, %v1209_v35  ;;  %v1627_v45 = vadd.f32 %v1626_v18, %v1322_v38  ;;  %v1213_v46 = vadd.f32 %v1212_v42, %v2604_v29  ;;  %v1326_v47 = vadd.f32 %v1325_v43, %v2607_v30  ;;  %v1214_v48 = vpop.f32.mrb[39].mxu0  ;;  %v1327_v49 = vpop.f32.mrb[39].mxu1 }
 0x2df   : > { %v1606_v50 = vadd.f32 %v1605_v28, %v1211_v40  ;;  %v1648_v51 = vadd.f32 %v1647_v27, %v1324_v41  ;;  %v1215_v52 = vadd.f32 %v1214_v48, %v2610_v33  ;;  %v1328_v55 = vadd.f32 %v1327_v49, %v2613_v34 }
 0x2e0   : > { %v1586_v56 = vadd.f32 %v1585_v44, %v1213_v46  ;;  %v1628_v57 = vadd.f32 %v1627_v45, %v1326_v47  ;;  %v790_v18 = vsub.s32 6, %v2592_v54  ;;  %v786_v28 = vsub.s32 5, %v2592_v54 }
 0x2e1   : > { %v1607_v58 = vadd.f32 %v1606_v50, %v1215_v52  ;;  %v1649_v59 = vadd.f32 %v1648_v51, %v1328_v55  ;;  %v2140_v38 = vmov 1966171168   ;;  %v2684_v52 = vrot.slane %v2599_v26, %v782_v23 }
 0x2e2   : > { %v1758_v36 = vunpack.c.l.s4 %v2140_v38  ;;  %v2687_v55 = vrot.slane %v2599_v26, %v790_v18 }
 0x2e3   : > { %v1218_v60 = vpop.f32.mrb[40].mxu0  ;;  %v1331_v61 = vpop.f32.mrb[40].mxu1 }
 0x2e4   : > { %v1219_v63 = vadd.f32 %v1218_v60, %v2604_v29  ;;  %v1332_v0 = vadd.f32 %v1331_v61, %v2607_v30  ;;  %v1220_v1 = vpop.f32.mrb[41].mxu0  ;;  %v1333_v2 = vpop.f32.mrb[41].mxu1 }
 0x2e5   : > { %v1221_v3 = vadd.f32 %v1220_v1, %v2610_v33  ;;  %v1334_v4 = vadd.f32 %v1333_v2, %v2613_v34  ;;  %v1222_v5 = vpop.f32.mrb[42].mxu0  ;;  %v1335_v6 = vpop.f32.mrb[42].mxu1 }
 0x2e6   : > { %v1587_v7 = vadd.f32 %v1586_v56, %v1219_v63  ;;  %v1629_v8 = vadd.f32 %v1628_v57, %v1332_v0  ;;  %v1223_v9 = vadd.f32 %v1222_v5, %v2604_v29  ;;  %v1336_v10 = vadd.f32 %v1335_v6, %v2607_v30  ;;  %v1224_v11 = vpop.f32.mrb[43].mxu0  ;;  %v1337_v12 = vpop.f32.mrb[43].mxu1 }
 0x2e7   : > { %v1608_v62 = vadd.f32 %v1607_v58, %v1221_v3  ;;  %v1650_v13 = vadd.f32 %v1649_v59, %v1334_v4  ;;  %v1225_v14 = vadd.f32 %v1224_v11, %v2610_v33  ;;  %v1338_v37 = vadd.f32 %v1337_v12, %v2613_v34 }
 0x2e8   : > { %v1588_v15 = vadd.f32 %v1587_v7, %v1223_v9  ;;  %v1630_v16 = vadd.f32 %v1629_v8, %v1336_v10  ;;  %v2693_v57 = vrot.slane %v2599_v26, %v794_v39 }
 0x2e9   : > { %v1609_v19 = vadd.f32 %v1608_v62, %v1225_v14  ;;  %v1651_v20 = vadd.f32 %v1650_v13, %v1338_v37 }
 0x2eb   : > { %v1228_v21 = vpop.f32.mrb[44].mxu0  ;;  %v1341_v22 = vpop.f32.mrb[44].mxu1 }
 0x2ec   : > { %v1229_v24 = vadd.f32 %v1228_v21, %v2604_v29  ;;  %v1342_v25 = vadd.f32 %v1341_v22, %v2607_v30  ;;  %v1230_v53 = vpop.f32.mrb[45].mxu0  ;;  %v1343_v17 = vpop.f32.mrb[45].mxu1 }
 0x2ed   : > { %v1231_v27 = vadd.f32 %v1230_v53, %v2610_v33  ;;  %v1344_v31 = vadd.f32 %v1343_v17, %v2613_v34  ;;  %v1232_v32 = vpop.f32.mrb[46].mxu0  ;;  %v1345_v35 = vpop.f32.mrb[46].mxu1 }
 0x2ee   : > { %v1589_v40 = vadd.f32 %v1588_v15, %v1229_v24  ;;  %v1631_v41 = vadd.f32 %v1630_v16, %v1342_v25  ;;  %v1233_v42 = vadd.f32 %v1232_v32, %v2604_v29  ;;  %v1346_v43 = vadd.f32 %v1345_v35, %v2607_v30  ;;  %v1234_v44 = vpop.f32.mrb[47].mxu0  ;;  %v1347_v45 = vpop.f32.mrb[47].mxu1 }
 0x2ef   : > { %v1610_v46 = vadd.f32 %v1609_v19, %v1231_v27  ;;  %v1652_v47 = vadd.f32 %v1651_v20, %v1344_v31  ;;  %v1235_v48 = vadd.f32 %v1234_v44, %v2610_v33  ;;  %v1348_v49 = vadd.f32 %v1347_v45, %v2613_v34 }
 0x2f0   : > { %v1590_v50 = vadd.f32 %v1589_v40, %v1233_v42  ;;  %v1632_v51 = vadd.f32 %v1631_v41, %v1346_v43  ;;  %v2690_v30 = vrot.slane %v2599_v26, %v786_v28  ;;  %v1759_v34 = vunpack.c.0.s8 %v1758_v36 }
 0x2f1   : > { %v1611_v56 = vadd.f32 %v1610_v46, %v1235_v48  ;;  %v1653_v29 = vadd.f32 %v1652_v47, %v1348_v49 }
 0x2f2   : > { %v1591_v58 = vrot.slane %v1590_v50, 4  ;;  %v1633_v33 = vrot.slane %v1632_v51, 4  ;;  %v2704_v32 = vsub.s32 %v1759_v34, %v2592_v54 }
 0x2f3   : > { %v1612_v59 = vrot.slane %v1611_v56, 4  ;;  %v1654_v60 = vrot.slane %v1653_v29, 4  ;;  %v1384_v61 = vpop.f32.mrb[48].mxu0  ;;  %v1497_v63 = vpop.f32.mrb[48].mxu1 }
 0x2f4   : > { %v1592_v0 = vadd.f32 %v1591_v58, %v1590_v50  ;;  %v1634_v1 = vadd.f32 %v1633_v33, %v1632_v51  ;;  %v1385_v2 = vadd.f32 %v1384_v61, %v2684_v52  ;;  %v1498_v3 = vadd.f32 %v1497_v63, %v2687_v55  ;;  %v1386_v4 = vpop.f32.mrb[49].mxu0  ;;  %v1499_v5 = vpop.f32.mrb[49].mxu1 }
 0x2f5   : > { %v1613_v6 = vadd.f32 %v1612_v59, %v1611_v56  ;;  %v1655_v7 = vadd.f32 %v1654_v60, %v1653_v29  ;;  %v1387_v26 = vadd.f32 %v1386_v4, %v2690_v30  ;;  %v1500_v8 = vadd.f32 %v1499_v5, %v2693_v57  ;;  %v1388_v9 = vpop.f32.mrb[50].mxu0  ;;  %v1501_v10 = vpop.f32.mrb[50].mxu1 }
 0x2f6   : > { %v1593_v11 = vrot.slane %v1592_v0, 2  ;;  %v1635_v12 = vrot.slane %v1634_v1, 2  ;;  %v1389_v62 = vadd.f32 %v1388_v9, %v2684_v52  ;;  %v1502_v13 = vadd.f32 %v1501_v10, %v2687_v55  ;;  %v1390_v14 = vpop.f32.mrb[51].mxu0  ;;  %v1503_v37 = vpop.f32.mrb[51].mxu1 }
 0x2f7   : > { %v1614_v15 = vrot.slane %v1613_v6, 2  ;;  %v1656_v16 = vrot.slane %v1655_v7, 2  ;;  %v1391_v19 = vadd.f32 %v1390_v14, %v2690_v30  ;;  %v1504_v20 = vadd.f32 %v1503_v37, %v2693_v57 }
 0x2f8   : > { %v1594_v21 = vadd.f32 %v1593_v11, %v1592_v0  ;;  %v1636_v22 = vadd.f32 %v1635_v12, %v1634_v1  ;;  %v1660_v23 = vadd.f32 %v1389_v62, %v1385_v2  ;;  %v1702_v24 = vadd.f32 %v1502_v13, %v1498_v3 }
 0x2f9   : > { %v1615_v25 = vadd.f32 %v1614_v15, %v1613_v6  ;;  %v1657_v53 = vadd.f32 %v1656_v16, %v1655_v7  ;;  %v1681_v17 = vadd.f32 %v1391_v19, %v1387_v26  ;;  %v1723_v18 = vadd.f32 %v1504_v20, %v1500_v8 }
 0x2fa   : > { %v1595_v28 = vrot.slane %v1594_v21, 1  ;;  %v1637_v27 = vrot.slane %v1636_v22, 1 }
 0x2fb   : > { %v1616_v31 = vrot.slane %v1615_v25, 1  ;;  %v1658_v35 = vrot.slane %v1657_v53, 1  ;;  %v1394_v38 = vpop.f32.mrb[52].mxu0  ;;  %v1507_v36 = vpop.f32.mrb[52].mxu1 }
 0x2fc   : > { %v1596_v39 = vadd.f32 %v1595_v28, %v1594_v21  ;;  %v1638_v40 = vadd.f32 %v1637_v27, %v1636_v22  ;;  %v1395_v41 = vadd.f32 %v1394_v38, %v2684_v52  ;;  %v1508_v42 = vadd.f32 %v1507_v36, %v2687_v55  ;;  %v1396_v43 = vpop.f32.mrb[53].mxu0  ;;  %v1509_v44 = vpop.f32.mrb[53].mxu1 }
 0x2fd   : > { %v1617_v45 = vadd.f32 %v1616_v31, %v1615_v25  ;;  %v1659_v46 = vadd.f32 %v1658_v35, %v1657_v53  ;;  %v1397_v47 = vadd.f32 %v1396_v43, %v2690_v30  ;;  %v1510_v48 = vadd.f32 %v1509_v44, %v2693_v57  ;;  %v1398_v49 = vpop.f32.mrb[54].mxu0  ;;  %v1511_v54 = vpop.f32.mrb[54].mxu1 }
 0x2fe   : > { %v1661_v50 = vadd.f32 %v1660_v23, %v1395_v41  ;;  %v1703_v51 = vadd.f32 %v1702_v24, %v1508_v42  ;;  %v1399_v56 = vadd.f32 %v1398_v49, %v2684_v52  ;;  %v1512_v29 = vadd.f32 %v1511_v54, %v2687_v55  ;;  %v1400_v58 = vpop.f32.mrb[55].mxu0  ;;  %v1513_v33 = vpop.f32.mrb[55].mxu1 }
 0x2ff   : > { %v1753_v59 = vcombine.low %v1596_v39, %v1617_v45  ;;  %v1754_v34 = vcombine.low %v1638_v40, %v1659_v46  ;;  %v1682_v60 = vadd.f32 %v1681_v17, %v1397_v47  ;;  %v1724_v61 = vadd.f32 %v1723_v18, %v1510_v48 }
 0x300   : > { %v1662_v63 = vadd.f32 %v1661_v50, %v1399_v56  ;;  %v1704_v0 = vadd.f32 %v1703_v51, %v1512_v29  ;;  %v1401_v1 = vadd.f32 %v1400_v58, %v2690_v30  ;;  %v1514_v2 = vadd.f32 %v1513_v33, %v2693_v57 }
 0x301   : > { %v2715_v3 = vrot.slane %v1753_v59, %v2704_v32  ;;  %v2718_v4 = vrot.slane %v1754_v34, %v2704_v32 }
 0x302   : > { %v1683_v5 = vadd.f32 %v1682_v60, %v1401_v1  ;;  %v1725_v6 = vadd.f32 %v1724_v61, %v1514_v2 }
 0x303   : > { %v1785_v7 = vcombine.low %v2715_v3, %v2718_v4  ;;  %v1404_v26 = vpop.f32.mrb[56].mxu0  ;;  %v1517_v8 = vpop.f32.mrb[56].mxu1 }
 0x304   : > { %v1405_v9 = vadd.f32 %v1404_v26, %v2684_v52  ;;  %v1518_v10 = vadd.f32 %v1517_v8, %v2687_v55  ;;  %v1406_v11 = vpop.f32.mrb[57].mxu0  ;;  %v1519_v12 = vpop.f32.mrb[57].mxu1 }
 0x305   : > { %v1407_v62 = vadd.f32 %v1406_v11, %v2690_v30  ;;  %v1520_v13 = vadd.f32 %v1519_v12, %v2693_v57  ;;  %v1408_v14 = vpop.f32.mrb[58].mxu0  ;;  %v1521_v37 = vpop.f32.mrb[58].mxu1 }
 0x306   : > { %v1663_v15 = vadd.f32 %v1662_v63, %v1405_v9  ;;  %v1705_v16 = vadd.f32 %v1704_v0, %v1518_v10  ;;  %v1409_v19 = vadd.f32 %v1408_v14, %v2684_v52  ;;  %v1522_v20 = vadd.f32 %v1521_v37, %v2687_v55  ;;  %v1410_v21 = vpop.f32.mrb[59].mxu0  ;;  %v1523_v22 = vpop.f32.mrb[59].mxu1 }
 0x307   : > { %v1684_v23 = vadd.f32 %v1683_v5, %v1407_v62  ;;  %v1726_v24 = vadd.f32 %v1725_v6, %v1520_v13  ;;  %v1411_v25 = vadd.f32 %v1410_v21, %v2690_v30  ;;  %v1524_v53 = vadd.f32 %v1523_v22, %v2693_v57 }
 0x308   : > { %v1664_v17 = vadd.f32 %v1663_v15, %v1409_v19  ;;  %v1706_v18 = vadd.f32 %v1705_v16, %v1522_v20 }
 0x309   : > { %v1685_v28 = vadd.f32 %v1684_v23, %v1411_v25  ;;  %v1727_v27 = vadd.f32 %v1726_v24, %v1524_v53 }
 0x30b   : > { %v1414_v31 = vpop.f32.mrb[60].mxu0  ;;  %v1527_v35 = vpop.f32.mrb[60].mxu1 }
 0x30c   : > { %v1415_v38 = vadd.f32 %v1414_v31, %v2684_v52  ;;  %v1528_v36 = vadd.f32 %v1527_v35, %v2687_v55  ;;  %v1416_v39 = vpop.f32.mrb[61].mxu0  ;;  %v1529_v40 = vpop.f32.mrb[61].mxu1 }
 0x30d   : > { %v1417_v41 = vadd.f32 %v1416_v39, %v2690_v30  ;;  %v1530_v42 = vadd.f32 %v1529_v40, %v2693_v57  ;;  %v1418_v43 = vpop.f32.mrb[62].mxu0  ;;  %v1531_v44 = vpop.f32.mrb[62].mxu1 }
 0x30e   : > { %v1665_v45 = vadd.f32 %v1664_v17, %v1415_v38  ;;  %v1707_v46 = vadd.f32 %v1706_v18, %v1528_v36  ;;  %v1419_v47 = vadd.f32 %v1418_v43, %v2684_v52  ;;  %v1532_v48 = vadd.f32 %v1531_v44, %v2687_v55  ;;  %v1420_v49 = vpop.f32.mrb[63].mxu0  ;;  %v1533_v54 = vpop.f32.mrb[63].mxu1 }
 0x30f   : > { %v1686_v50 = vadd.f32 %v1685_v28, %v1417_v41  ;;  %v1728_v51 = vadd.f32 %v1727_v27, %v1530_v42  ;;  %v1421_v56 = vadd.f32 %v1420_v49, %v2690_v30  ;;  %v1534_v29 = vadd.f32 %v1533_v54, %v2693_v57 }
 0x310   : > { %v1666_v58 = vadd.f32 %v1665_v45, %v1419_v47  ;;  %v1708_v33 = vadd.f32 %v1707_v46, %v1532_v48 }
 0x311   : > { %v1687_v59 = vadd.f32 %v1686_v50, %v1421_v56  ;;  %v1729_v34 = vadd.f32 %v1728_v51, %v1534_v29 }
 0x313   : > { %v1424_v60 = vpop.f32.mrb[64].mxu0  ;;  %v1537_v61 = vpop.f32.mrb[64].mxu1 }
 0x314   : > { %v1425_v63 = vadd.f32 %v1424_v60, %v2684_v52  ;;  %v1538_v0 = vadd.f32 %v1537_v61, %v2687_v55  ;;  %v1426_v1 = vpop.f32.mrb[65].mxu0  ;;  %v1539_v2 = vpop.f32.mrb[65].mxu1 }
 0x315   : > { %v1427_v5 = vadd.f32 %v1426_v1, %v2690_v30  ;;  %v1540_v6 = vadd.f32 %v1539_v2, %v2693_v57  ;;  %v1428_v26 = vpop.f32.mrb[66].mxu0  ;;  %v1541_v8 = vpop.f32.mrb[66].mxu1 }
 0x316   : > { %v1667_v9 = vadd.f32 %v1666_v58, %v1425_v63  ;;  %v1709_v10 = vadd.f32 %v1708_v33, %v1538_v0  ;;  %v1429_v11 = vadd.f32 %v1428_v26, %v2684_v52  ;;  %v1542_v12 = vadd.f32 %v1541_v8, %v2687_v55  ;;  %v1430_v62 = vpop.f32.mrb[67].mxu0  ;;  %v1543_v13 = vpop.f32.mrb[67].mxu1 }
 0x317   : > { %v1688_v14 = vadd.f32 %v1687_v59, %v1427_v5  ;;  %v1730_v37 = vadd.f32 %v1729_v34, %v1540_v6  ;;  %v1431_v15 = vadd.f32 %v1430_v62, %v2690_v30  ;;  %v1544_v16 = vadd.f32 %v1543_v13, %v2693_v57 }
 0x318   : > { %v1668_v19 = vadd.f32 %v1667_v9, %v1429_v11  ;;  %v1710_v20 = vadd.f32 %v1709_v10, %v1542_v12 }
 0x319   : > { %v1689_v21 = vadd.f32 %v1688_v14, %v1431_v15  ;;  %v1731_v22 = vadd.f32 %v1730_v37, %v1544_v16 }
 0x31b   : > { %v1434_v23 = vpop.f32.mrb[68].mxu0  ;;  %v1547_v24 = vpop.f32.mrb[68].mxu1 }
 0x31c   : > { %v1435_v25 = vadd.f32 %v1434_v23, %v2684_v52  ;;  %v1548_v53 = vadd.f32 %v1547_v24, %v2687_v55  ;;  %v1436_v17 = vpop.f32.mrb[69].mxu0  ;;  %v1549_v18 = vpop.f32.mrb[69].mxu1 }
 0x31d   : > { %v1437_v28 = vadd.f32 %v1436_v17, %v2690_v30  ;;  %v1550_v27 = vadd.f32 %v1549_v18, %v2693_v57  ;;  %v1438_v31 = vpop.f32.mrb[70].mxu0  ;;  %v1551_v35 = vpop.f32.mrb[70].mxu1 }
 0x31e   : > { %v1669_v38 = vadd.f32 %v1668_v19, %v1435_v25  ;;  %v1711_v36 = vadd.f32 %v1710_v20, %v1548_v53  ;;  %v1439_v39 = vadd.f32 %v1438_v31, %v2684_v52  ;;  %v1552_v40 = vadd.f32 %v1551_v35, %v2687_v55  ;;  %v1440_v41 = vpop.f32.mrb[71].mxu0  ;;  %v1553_v42 = vpop.f32.mrb[71].mxu1 }
 0x31f   : > { %v1690_v43 = vadd.f32 %v1689_v21, %v1437_v28  ;;  %v1732_v44 = vadd.f32 %v1731_v22, %v1550_v27  ;;  %v1441_v45 = vadd.f32 %v1440_v41, %v2690_v30  ;;  %v1554_v46 = vadd.f32 %v1553_v42, %v2693_v57 }
 0x320   : > { %v1670_v47 = vadd.f32 %v1669_v38, %v1439_v39  ;;  %v1712_v48 = vadd.f32 %v1711_v36, %v1552_v40 }
 0x321   : > { %v1691_v49 = vadd.f32 %v1690_v43, %v1441_v45  ;;  %v1733_v54 = vadd.f32 %v1732_v44, %v1554_v46 }
 0x323   : > { %v1444_v50 = vpop.f32.mrb[72].mxu0  ;;  %v1557_v51 = vpop.f32.mrb[72].mxu1 }
 0x324   : > { %v1445_v56 = vadd.f32 %v1444_v50, %v2684_v52  ;;  %v1558_v29 = vadd.f32 %v1557_v51, %v2687_v55  ;;  %v1446_v58 = vpop.f32.mrb[73].mxu0  ;;  %v1559_v33 = vpop.f32.mrb[73].mxu1 }
 0x325   : > { %v1447_v59 = vadd.f32 %v1446_v58, %v2690_v30  ;;  %v1560_v34 = vadd.f32 %v1559_v33, %v2693_v57  ;;  %v1448_v60 = vpop.f32.mrb[74].mxu0  ;;  %v1561_v61 = vpop.f32.mrb[74].mxu1 }
 0x326   : > { %v1671_v63 = vadd.f32 %v1670_v47, %v1445_v56  ;;  %v1713_v0 = vadd.f32 %v1712_v48, %v1558_v29  ;;  %v1449_v1 = vadd.f32 %v1448_v60, %v2684_v52  ;;  %v1562_v2 = vadd.f32 %v1561_v61, %v2687_v55  ;;  %v1450_v5 = vpop.f32.mrb[75].mxu0  ;;  %v1563_v6 = vpop.f32.mrb[75].mxu1 }
 0x327   : > { %v1692_v26 = vadd.f32 %v1691_v49, %v1447_v59  ;;  %v1734_v8 = vadd.f32 %v1733_v54, %v1560_v34  ;;  %v1451_v9 = vadd.f32 %v1450_v5, %v2690_v30  ;;  %v1564_v10 = vadd.f32 %v1563_v6, %v2693_v57 }
 0x328   : > { %v1672_v11 = vadd.f32 %v1671_v63, %v1449_v1  ;;  %v1714_v12 = vadd.f32 %v1713_v0, %v1562_v2 }
 0x329   : > { %v1693_v62 = vadd.f32 %v1692_v26, %v1451_v9  ;;  %v1735_v13 = vadd.f32 %v1734_v8, %v1564_v10  ;;  %v1793_v8 = vrot.slane %v1785_v7, %v2704_v32  ;;  %v1744_v10 = vld [vmem:[%s2225_s22] sm:$0xff] }
 0x32b   : > { %v1454_v14 = vpop.f32.mrb[76].mxu0  ;;  %v1567_v37 = vpop.f32.mrb[76].mxu1 }
 0x32c   : > { %v1455_v15 = vadd.f32 %v1454_v14, %v2684_v52  ;;  %v1568_v16 = vadd.f32 %v1567_v37, %v2687_v55  ;;  %v1456_v19 = vpop.f32.mrb[77].mxu0  ;;  %v1569_v20 = vpop.f32.mrb[77].mxu1 }
 0x32d   : > { %v1457_v21 = vadd.f32 %v1456_v19, %v2690_v30  ;;  %v1570_v22 = vadd.f32 %v1569_v20, %v2693_v57  ;;  %v1458_v23 = vpop.f32.mrb[78].mxu0  ;;  %v1571_v24 = vpop.f32.mrb[78].mxu1 }
 0x32e   : > { %v1673_v25 = vadd.f32 %v1672_v11, %v1455_v15  ;;  %v1715_v53 = vadd.f32 %v1714_v12, %v1568_v16  ;;  %v1459_v17 = vadd.f32 %v1458_v23, %v2684_v52  ;;  %v1572_v18 = vadd.f32 %v1571_v24, %v2687_v55  ;;  %v1460_v28 = vpop.f32.mrb[79].mxu0  ;;  %v1573_v27 = vpop.f32.mrb[79].mxu1 }
 0x32f   : > { %v1694_v31 = vadd.f32 %v1693_v62, %v1457_v21  ;;  %v1736_v35 = vadd.f32 %v1735_v13, %v1570_v22  ;;  %v1461_v38 = vadd.f32 %v1460_v28, %v2690_v30  ;;  %v1574_v36 = vadd.f32 %v1573_v27, %v2693_v57 }
 0x330   : > { %v1674_v39 = vadd.f32 %v1673_v25, %v1459_v17  ;;  %v1716_v40 = vadd.f32 %v1715_v53, %v1572_v18 }
 0x331   : > { %v1695_v41 = vadd.f32 %v1694_v31, %v1461_v38  ;;  %v1737_v42 = vadd.f32 %v1736_v35, %v1574_v36 }
 0x332   : > { %v1675_v43 = vrot.slane %v1674_v39, 4  ;;  %v1717_v44 = vrot.slane %v1716_v40, 4 }
 0x333   : > { %v1696_v45 = vrot.slane %v1695_v41, 4  ;;  %v1738_v46 = vrot.slane %v1737_v42, 4 }
 0x334   : > { %v1676_v47 = vadd.f32 %v1675_v43, %v1674_v39  ;;  %v1718_v52 = vadd.f32 %v1717_v44, %v1716_v40 }
 0x335   : > { %v1697_v48 = vadd.f32 %v1696_v45, %v1695_v41  ;;  %v1739_v55 = vadd.f32 %v1738_v46, %v1737_v42 }
 0x336   : > { %v1677_v49 = vrot.slane %v1676_v47, 2  ;;  %v1719_v54 = vrot.slane %v1718_v52, 2 }
 0x337   : > { %v1698_v50 = vrot.slane %v1697_v48, 2  ;;  %v1740_v51 = vrot.slane %v1739_v55, 2 }
 0x338   : > { %v1678_v56 = vadd.f32 %v1677_v49, %v1676_v47  ;;  %v1720_v30 = vadd.f32 %v1719_v54, %v1718_v52 }
 0x339   : > { %v1699_v29 = vadd.f32 %v1698_v50, %v1697_v48  ;;  %v1741_v57 = vadd.f32 %v1740_v51, %v1739_v55 }
 0x33a   : > { %v1679_v58 = vrot.slane %v1678_v56, 1  ;;  %v1721_v33 = vrot.slane %v1720_v30, 1 }
 0x33b   : > { %v1700_v59 = vrot.slane %v1699_v29, 1  ;;  %v1742_v34 = vrot.slane %v1741_v57, 1 }
 0x33c   : > { %v1680_v60 = vadd.f32 %v1679_v58, %v1678_v56  ;;  %v1722_v61 = vadd.f32 %v1721_v33, %v1720_v30 }
 0x33d   : > { %v1701_v63 = vadd.f32 %v1700_v59, %v1699_v29  ;;  %v1743_v0 = vadd.f32 %v1742_v34, %v1741_v57 }
 0x33f   : > { %v1755_v1 = vcombine.low %v1680_v60, %v1701_v63  ;;  %v1756_v2 = vcombine.low %v1722_v61, %v1743_v0 }
 0x341   : > { %v1777_v5 = vrot.slane %v1755_v1, %v2704_v32  ;;  %v1784_v6 = vrot.slane %v1756_v2, %v2704_v32 }
 0x343   : > { %v1786_v26 = vcombine.low %v1777_v5, %v1784_v6 }
 0x345   : > { %v1800_v9 = vrot.slane %v1786_v26, %v2704_v32 }
 0x347   : > { %v1801_v11 = vcombine.low %v1793_v8, %v1800_v9 }
 0x349   : > { %v1803_v12 = vadd.f32 %v1801_v11, %v1744_v10 }
 0x34b   : > { %1804 = vst [vmem:[%s2225_s22] sm:$0xff] %v1803_v12 }
 0x34c PF: > { %s17_s28 = sadd.s32 1, %s2135_s28   ;;  %s2802_s24 = smov %s2127_s26 }
 0x34d   : > { %p14_p8 = scmp.ge.s32.totalorder %s17_s28, 6   ;;  %s2803_s25 = smov %s2131_s27 }
 0x34e   : > { %s2804_s26 = smov %s2807_s29  ;;  %s2805_s27 = smov %s2811_s30 }
 0x34f   :  { %16 = sbr.rel (!%p14_p8) target bundleno = 3 (0x3), region = 85 }

// kernel: pointnet_cls_forward.4
= control target key start
LH: loop header
LB: loop body
LE: loop exit
PB: predicated region body
PF: predicated region fallthrough
CT: control target
= control target key end

     0   :  { %s3250_s0 = inlined_call_operand.vmem [shape: f32[2,256,3], index: 0, kind: input, shape index: {}]   ;;  %s3251_s1 = inlined_call_operand.hbm [shape: bf16[1,3,64], index: 1, kind: input, shape index: {}]   ;;  %s3252_s2 = inlined_call_operand.hbm [shape: f32[1,64], index: 2, kind: input, shape index: {}]   ;;  %s3253_s3 = inlined_call_operand.hbm [shape: bf16[64,128], index: 3, kind: input, shape index: {}]   ;;  %s3254_s4 = inlined_call_operand.hbm [shape: f32[1,128], index: 4, kind: input, shape index: {}]   ;;  %s3255_s5 = inlined_call_operand.hbm [shape: bf16[128,1024], index: 5, kind: input, shape index: {}]   ;;  %s3256_s6 = inlined_call_operand.hbm [shape: f32[1,1024], index: 6, kind: input, shape index: {}]   ;;  %s3257_s7 = inlined_call_operand.vmem [shape: f32[2,1,1024], index: 7, kind: output, shape index: {}]  }
   0x1   :  { %3261 = sst [smem:[#allocation16_spill]] %s3251_s1 }
   0x2   :  { %3262 = sst [smem:[#allocation17_spill]] %s3252_s2 }
   0x3   :  { %12 = vsyncpa [#allocation3], 0 }
   0x4   :  { %13 = vsyncpa [#allocation5], 0 }
   0x5   :  { %14 = vsyncpa [#allocation8], 0 }
   0x6   :  { %15 = vsyncpa [#allocation11], 0  ;;  %s2691_s24 = smov 0   ;;  %s2693_s25 = smov 0  }
   0x7   :  { %s2695_s26 = smov 0   ;;  %s2697_s27 = smov 0  }
   0x8   :  { %s2699_s28 = smov 0  }
   0x9 LB: > { %s2637_s29 = smov [#allocation4]   ;;  %s2127_s8 = sadd.s32 4294967295, %s2635_s28   ;;  %s2635_s28 = sphi %s2699_s28, %s21_s28   ;;  %s2631_s27 = sphi %s2697_s27, %s3275_s27   ;;  %s2627_s26 = sphi %s2695_s26, %s3274_s26   ;;  %s2623_s25 = sphi %s2693_s25, %s3273_s25   ;;  %s2619_s24 = sphi %s2691_s24, %s3272_s24  }
   0xa   : > { %s242_s30 = sshll.u32 %s2637_s29, 4  ;;  %p2129_p0 = scmp.ge.s32.totalorder %s2635_s28, 1  ;;  %s243_s30 = int_to_ptr.vmem [resolvable:$true] %s242_s30 }
   0xb   : > { %p218_p1 = scmp.lt.s32.totalorder %s2635_s28, 5  ;;  %p2719_p2 = scmp.eq.s32.totalorder %s2127_s8, 0 }
   0xc   : > { %s2638_s11 = smov [#allocation7]   ;;  %s3266_s2 = sld [smem:[#allocation17_spill]] }
   0xd   : > { %s3263_s9 = scalar_select %p2719_p2, 1, 0 }
   0xe   : > { %p2723_p3 = pnand %p2129_p0, %p218_p1  ;;  %s266_s12 = sshll.u32 %s2638_s11, 4  ;;  %s2729_s12 = int_to_ptr.vmem [resolvable:$true] %s266_s12 }
  0x10   : > { %s3264_s10 = scalar_select %p2723_p3, 1, 0 }
  0x11   : > { %p2324_p4 = pneg %p2723_p3 }
  0x12   : > { %s2413_s16 = scalar_lea.hbm %s3266_s2, 16 }
  0x13   : > { %p2733_p5 = pnand %p2719_p2, %p2324_p4  ;;  %p2414_p6 = scmp.ne.s32.totalorder %s3266_s2, %s2413_s16 }
  0x14   : > { %p2420_p10 = scmp.lt.u32.totalorder %s2413_s16, %s3266_s2 }
  0x15   : > { %p2745_p7 = pneg %p2733_p5 }
  0x17   : > { %p2416_p8 = pnand %p2745_p7, %p2414_p6 }
  0x19   : > { %p2417_p9 = pneg %p2416_p8 }
  0x1b   : > { %p2422_p11 = pnand %p2420_p10, %p2417_p9 }
  0x1d   : > { %2425 = shalt.err (!%p2422_p11)
}
  0x1e   : > { %s2426_s22 = scalar_lea.vmem %s243_s30, 16  ;;  %s2433_s23 = scalar_lea.vmem %s243_s30, 32 }
  0x1f   : > { %p2427_p12 = scmp.ne.s32.totalorder %s243_s30, %s2426_s22  ;;  %p2434_p1 = scmp.lt.s32.totalorder %s243_s30, %s243_s30 }
  0x20   : > { %p2435_p4 = scmp.lt.s32.totalorder %s2433_s23, %s2426_s22 }
  0x21   : > { %p2429_p13 = pnand %p2427_p12, %p2745_p7 }
  0x22   : > { %p2436_p2 = por %p2435_p4, %p2434_p1 }
  0x23   : > { %p2430_p0 = pneg %p2429_p13 }
  0x25   : > { %p2437_p3 = pnand %p2436_p2, %p2430_p0 }
  0x27   : > { %2440 = shalt.err (!%p2437_p3)
}
  0x28   : > { %2330 = dma.hbm_to_vmem [thread:$0]  (!%p2733_p5), %s3266_s2, 16, %s243_s30, [#allocation5]  }
  0x29   : > { %s2441_s15 = scalar_lea.hbm %s3254_s4, 16 }
  0x2a   : > { %p2442_p6 = scmp.ne.s32.totalorder %s3254_s4, %s2441_s15  ;;  %p2448_p2 = scmp.lt.u32.totalorder %s2441_s15, %s3254_s4 }
  0x2c   : > { %p2444_p8 = pnand %p2442_p6, %p2745_p7 }
  0x2e   : > { %p2445_p9 = pneg %p2444_p8 }
  0x30   : > { %p2450_p3 = pnand %p2448_p2, %p2445_p9 }
  0x32   : > { %2453 = shalt.err (!%p2450_p3)
}
  0x33   : > { %s2454_s30 = scalar_lea.vmem %s2729_s12, 16  ;;  %s2461_s21 = scalar_lea.vmem %s2729_s12, 32 }
  0x34   : > { %p2455_p10 = scmp.ne.s32.totalorder %s2729_s12, %s2454_s30  ;;  %p2462_p13 = scmp.lt.s32.totalorder %s2729_s12, %s2729_s12 }
  0x35   : > { %p2463_p0 = scmp.lt.s32.totalorder %s2461_s21, %s2454_s30 }
  0x36   : > { %p2457_p11 = pnand %p2455_p10, %p2745_p7 }
  0x37   : > { %p2464_p1 = por %p2463_p0, %p2462_p13 }
  0x38   : > { %p2458_p12 = pneg %p2457_p11 }
  0x3a   : > { %p2465_p4 = pnand %p2464_p1, %p2458_p12 }
  0x3c   : > { %2468 = shalt.err (!%p2465_p4)
}
  0x3d   : > { %2336 = dma.hbm_to_vmem [thread:$0]  (!%p2733_p5), %s3254_s4, 16, %s2729_s12, [#allocation8]  }
  0x3e   : > { %s30_s29 = sadd.s32 1, %s2627_s26  ;;  %s33_s8 = sadd.s32 1, %s2631_s27 }
  0x3f   : > { %p31_p6 = scmp.ge.s32.totalorder %s30_s29, 2  ;;  %s2639_s11 = smov [#allocation2]  }
  0x40   : > { %s231_s14 = sshll.u32 %s2639_s11, 4  ;;  %s2640_s15 = smov [#allocation6]   ;;  %s232_s14 = int_to_ptr.vmem [resolvable:$true] %s231_s14 }
  0x41   : > { %s3277_s29 = smov (%p31_p6, %s30_s29), 0  ;;  %s3279_s8 = smov (!%p31_p6, %s33_s8), %s2631_s27 }
  0x42   : > { %s252_s16 = sshll.u32 %s2640_s15, 4  ;;  %s3268_s1 = sld [smem:[#allocation16_spill]]  ;;  %s253_s16 = int_to_ptr.vmem [resolvable:$true] %s252_s16 }
  0x48   : > { %s2469_s20 = scalar_lea.hbm %s3268_s1, 32 }
  0x49   : > { %p2470_p9 = scmp.ne.s32.totalorder %s3268_s1, %s2469_s20  ;;  %p2476_p10 = scmp.lt.u32.totalorder %s2469_s20, %s3268_s1 }
  0x4b   : > { %p2472_p2 = pnand %p2470_p9, %p2745_p7 }
  0x4d   : > { %p2473_p3 = pneg %p2472_p2 }
  0x4f   : > { %p2478_p11 = pnand %p2476_p10, %p2473_p3 }
  0x51   : > { %2481 = shalt.err (!%p2478_p11)
}
  0x52   : > { %s2482_s23 = scalar_lea.vmem %s232_s14, 32  ;;  %p2490_p1 = scmp.lt.s32.totalorder %s232_s14, %s232_s14 }
  0x53   : > { %p2483_p12 = scmp.ne.s32.totalorder %s232_s14, %s2482_s23  ;;  %p2491_p4 = scmp.lt.s32.totalorder %s2482_s23, %s2482_s23 }
  0x55   : > { %p2485_p13 = pnand %p2483_p12, %p2745_p7  ;;  %p2492_p6 = por %p2491_p4, %p2490_p1 }
  0x57   : > { %p2486_p0 = pneg %p2485_p13 }
  0x59   : > { %p2493_p8 = pnand %p2492_p6, %p2486_p0 }
  0x5b   : > { %2496 = shalt.err (!%p2493_p8)
}
  0x5c   : > { %2327 = dma.hbm_to_vmem [thread:$0]  (!%p2733_p5), %s3268_s1, 32, %s232_s14, [#allocation3]  }
  0x5d   : > { %p3269_p9 = scmp.ge.s32.totalorder %s3279_s8, 2  ;;  %s2497_s20 = scalar_lea.hbm %s3253_s3, 512 }
  0x5e   : > { %p2498_p2 = scmp.ne.s32.totalorder %s3253_s3, %s2497_s20  ;;  %p2504_p10 = scmp.lt.u32.totalorder %s2497_s20, %s3253_s3 }
  0x5f   : > { %s3281_s8 = smov (%p3269_p9, %s3279_s8), 0 }
  0x60   : > { %p2500_p8 = pnand %p2498_p2, %p2745_p7 }
  0x62   : > { %p2501_p3 = pneg %p2500_p8 }
  0x64   : > { %p2506_p11 = pnand %p2504_p10, %p2501_p3 }
  0x66   : > { %2509 = shalt.err (!%p2506_p11)
}
  0x67   : > { %s2510_s14 = scalar_lea.vmem %s253_s16, 512  ;;  %p2518_p1 = scmp.lt.s32.totalorder %s253_s16, %s253_s16 }
  0x68   : > { %p2511_p12 = scmp.ne.s32.totalorder %s253_s16, %s2510_s14  ;;  %p2519_p4 = scmp.lt.s32.totalorder %s2510_s14, %s2510_s14 }
  0x6a   : > { %p2513_p13 = pnand %p2511_p12, %p2745_p7  ;;  %p2520_p6 = por %p2519_p4, %p2518_p1 }
  0x6c   : > { %p2514_p0 = pneg %p2513_p13 }
  0x6e   : > { %p2521_p9 = pnand %p2520_p6, %p2514_p0 }
  0x70   : > { %2524 = shalt.err (!%p2521_p9)
}
  0x71   : > { %s2641_s23 = smov 64   ;;  %s2642_s11 = smov 4  }
  0x72   : > { %2333 = dma.hbm_to_vmem [thread:$0]  (!%p2733_p5), %s3253_s3, 512, %s253_s16, [#allocation5], %s2641_s23, %s2641_s23, %s2642_s11  }
  0x73   : > { %s2643_s18 = smov [#allocation9]   ;;  %s2525_s12 = scalar_lea.hbm %s3255_s5, 8192 }
  0x74   : > { %s276_s20 = sshll.u32 %s2643_s18, 4  ;;  %p2526_p2 = scmp.ne.s32.totalorder %s3255_s5, %s2525_s12  ;;  %s277_s20 = int_to_ptr.vmem [resolvable:$true] %s276_s20 }
  0x75   : > { %p2532_p10 = scmp.lt.u32.totalorder %s2525_s12, %s3255_s5 }
  0x76   : > { %p2528_p8 = pnand %p2526_p2, %p2745_p7 }
  0x78   : > { %p2529_p3 = pneg %p2528_p8 }
  0x7a   : > { %p2534_p11 = pnand %p2532_p10, %p2529_p3 }
  0x7c   : > { %2537 = shalt.err (!%p2534_p11)
}
  0x7d   : > { %s2538_s16 = scalar_lea.vmem %s277_s20, 8192  ;;  %p2546_p1 = scmp.lt.s32.totalorder %s277_s20, %s277_s20 }
  0x7e   : > { %p2539_p12 = scmp.ne.s32.totalorder %s277_s20, %s2538_s16  ;;  %p2547_p4 = scmp.lt.s32.totalorder %s2538_s16, %s2538_s16 }
  0x80   : > { %p2541_p13 = pnand %p2539_p12, %p2745_p7  ;;  %p2548_p6 = por %p2547_p4, %p2546_p1 }
  0x82   : > { %p2542_p0 = pneg %p2541_p13 }
  0x84   : > { %p2549_p9 = pnand %p2548_p6, %p2542_p0 }
  0x86   : > { %2552 = shalt.err (!%p2549_p9)
}
  0x87   : > { %s2644_s23 = smov 512   ;;  %s2645_s11 = smov 32  }
  0x88   : > { %2339 = dma.hbm_to_vmem [thread:$0]  (!%p2733_p5), %s3255_s5, 8192, %s277_s20, [#allocation8], %s2644_s23, %s2644_s23, %s2645_s11  }
  0x89   : > { %s2646_s15 = smov [#allocation10]   ;;  %s2553_s21 = scalar_lea.hbm %s3256_s6, 128 }
  0x8a   : > { %s290_s17 = sshll.u32 %s2646_s15, 4  ;;  %p2554_p2 = scmp.ne.s32.totalorder %s3256_s6, %s2553_s21  ;;  %s291_s17 = int_to_ptr.vmem [resolvable:$true] %s290_s17 }
  0x8b   : > { %p2560_p10 = scmp.lt.u32.totalorder %s2553_s21, %s3256_s6 }
  0x8c   : > { %p2556_p8 = pnand %p2554_p2, %p2745_p7 }
  0x8e   : > { %p2557_p3 = pneg %p2556_p8 }
  0x90   : > { %p2562_p11 = pnand %p2560_p10, %p2557_p3 }
  0x92   : > { %2565 = shalt.err (!%p2562_p11)
}
  0x93   : > { %s2566_s20 = scalar_lea.vmem %s291_s17, 128  ;;  %p2574_p1 = scmp.lt.s32.totalorder %s291_s17, %s291_s17 }
  0x94   : > { %p2567_p12 = scmp.ne.s32.totalorder %s291_s17, %s2566_s20  ;;  %p2575_p4 = scmp.lt.s32.totalorder %s2566_s20, %s2566_s20 }
  0x96   : > { %p2569_p13 = pnand %p2567_p12, %p2745_p7  ;;  %p2576_p6 = por %p2575_p4, %p2574_p1 }
  0x98   : > { %p2570_p0 = pneg %p2569_p13 }
  0x9a   : > { %p2577_p9 = pnand %p2576_p6, %p2570_p0 }
  0x9c   : > { %2580 = shalt.err (!%p2577_p9)
}
  0x9d   : > { %2342 = dma.hbm_to_vmem [thread:$0]  (!%p2733_p5), %s3256_s6, 128, %s291_s17, [#allocation11]  }
  0x9e   : > { %p3270_p2 = scmp.ne.s32.totalorder %s3264_s10, 0 }
  0x9f   : > { %p3271_p8 = scmp.ne.s32.totalorder (!%p3270_p2), %s3263_s9, 0 }
  0xa0   : > { %316 = sbr.rel (%p3270_p2) target bundleno = 1005 (0x3ed), region = 48 }
  0xa7   : > { %2602 = dma.done.wait (%p3271_p8), [#allocation3], 32  }
  0xa8   : > { %2604 = vsyncadd (%p3271_p8), [#allocation3], 4294967264 }
  0xa9   : > { %2606 = dma.done.wait (%p3271_p8), [#allocation5], 528  }
  0xaa   : > { %2608 = vsyncadd (%p3271_p8), [#allocation5], 4294966768 }
  0xab   : > { %2610 = dma.done.wait (%p3271_p8), [#allocation8], 8208  }
  0xac   : > { %2612 = vsyncadd (%p3271_p8), [#allocation8], 4294959088 }
  0xad   : > { %2614 = dma.done.wait (%p3271_p8), [#allocation11], 128  }
  0xae   : > { %2616 = vsyncadd (%p3271_p8), [#allocation11], 4294967168  ;;  %s2144_s10 = sshll.u32 %s2619_s24, 4  ;;  %p372_p5 = scmp.lt.s32.totalorder %s2623_s25, 1 }
  0xaf   : > { %p374_p7 = scmp.lt.s32.totalorder %s2144_s10, 31  ;;  %p2148_p3 = scmp.ne.s32.totalorder %s2619_s24, 0 }
  0xb0   : > { %s3283_s25 = smov (!%p372_p5, %s2623_s25), 1  ;;  %v2647_v0 = vmov (!%p2148_p3), -inf  }
  0xb1   : > { %s3285_s10 = smov (!%p374_p7, %s2144_s10), 31  ;;  %s2145_s13 = sshll.u32 %s3283_s25, 5 }
  0xb2   : > { %s2147_s19 = sshll.u32 %s3283_s25, 3  ;;  %s377_s1 = sadd.s32 %s2145_s13, %s3285_s10 }
  0xb3   : > { %s2889_s17 = scalar_lea.vmem %s3257_s7, %s2147_s19  ;;  %s2146_s18 = sshll.u32 %s377_s1, 3 }
  0xb4   : > { %s2894_s21 = scalar_lea.vmem %s3250_s0, %s2146_s18  ;;  %389 = sbr.rel (%p2148_p3) target bundleno = 187 (0xbb), region = 76  ;;  %390 = vst [vmem:[%s2889_s17] sm:$0xff] (!%p2148_p3), %v2647_v0 }
  0xbb PF: > { %v415_v1 = vld [vmem:[#allocation2] sm:$0x3]  ;;  %vm448_vm0 = vcmask 1040384   ;;  %vm449_vm1 = vcmask 1041408   ;;  %v2648_v3 = vmov 65535   ;;  %v392_v5 = vld [vmem:[%s2894_s21 + $0x8] sm:$0xff] }
  0xbc   : > { %v391_v2 = vld [vmem:[%s2894_s21] sm:$0xff]  ;;  %v450_v4 = vsel %vm448_vm0, 4294967295, %v2648_v3  ;;  %vm423_vm2 = vcmask 23552   ;;  %v393_v8 = vld [vmem:[%s2894_s21 + $0x10] sm:$0xff]  ;;  %v394_v9 = vld [vmem:[%s2894_s21 + $0x18] sm:$0xff]  ;;  %vm615_vm3 = vcmask 523264  }
  0xbd   : > { %v451_v6 = vsel %vm449_vm1, %v450_v4, 0  ;;  %v407_v7 = vpack.c.bf16 %v392_v5, %v391_v2  ;;  %v395_v11 = vld [vmem:[%s2894_s21 + $0x20] sm:$0xff]  ;;  %v396_v12 = vld [vmem:[%s2894_s21 + $0x28] sm:$0xff]  ;;  %v408_v13 = vpack.c.bf16 %v394_v9, %v393_v8  ;;  %v397_v17 = vld [vmem:[%s2894_s21 + $0x30] sm:$0xff] }
  0xbe   : > { %v453_v10 = vand.u32 %v451_v6, %v415_v1  ;;  %v409_v14 = vpack.c.bf16 %v396_v12, %v395_v11  ;;  %v2409_v15 = vld [vmem:[#allocation6] sm:$0xff]   ;;  %v2410_v16 = vld [vmem:[#allocation6 + $0x8] sm:$0xff]   ;;  %v398_v18 = vld [vmem:[%s2894_s21 + $0x38] sm:$0xff] }
  0xbf   : > { %2260 = vmatprep.mubr.msk.bf16.mxu0 %vm423_vm2, %v407_v7  ;;  %2276 = vmatprep.subr.bf16.mxu1 %v2409_v15  ;;  %v399_v19 = vld [vmem:[%s2894_s21 + $0x40] sm:$0xff]  ;;  %v400_v20 = vld [vmem:[%s2894_s21 + $0x48] sm:$0xff]  ;;  %v410_v21 = vpack.c.bf16 %v398_v18, %v397_v17  ;;  %v401_v23 = vld [vmem:[%s2894_s21 + $0x50] sm:$0xff] }
  0xc0   : > { %2258 = vmatprep.subr.bf16.mxu0 %v453_v10  ;;  %2277 = vmatpush3.bf16.msra.mxu1 %v2409_v15  ;;  %v411_v22 = vpack.c.bf16 %v400_v20, %v399_v19  ;;  %v402_v24 = vld [vmem:[%s2894_s21 + $0x58] sm:$0xff]  ;;  %v403_v25 = vld [vmem:[%s2894_s21 + $0x60] sm:$0xff]  ;;  %v404_v26 = vld [vmem:[%s2894_s21 + $0x68] sm:$0xff] }
  0xc1   : > { %2259 = vmatpush3.bf16.msra.mxu0 %v453_v10  ;;  %2278 = vmatprep.subr.bf16.mxu1 %v2410_v16  ;;  %v412_v27 = vpack.c.bf16 %v402_v24, %v401_v23  ;;  %v413_v28 = vpack.c.bf16 %v404_v26, %v403_v25  ;;  %v405_v29 = vld [vmem:[%s2894_s21 + $0x70] sm:$0xff]  ;;  %v406_v30 = vld [vmem:[%s2894_s21 + $0x78] sm:$0xff]  ;;  %v761_v34 = vld [vmem:[#allocation9] sm:$0xff] }
  0xc2   : > { %v414_v31 = vpack.c.bf16 %v406_v30, %v405_v29  ;;  %v2411_v32 = vld [vmem:[#allocation6 + $0x10] sm:$0xff]   ;;  %v2412_v33 = vld [vmem:[#allocation6 + $0x18] sm:$0xff]   ;;  %v765_v35 = vld [vmem:[#allocation9 + $0x20] sm:$0xff] }
  0xc3   : > { %v2922_v36 = vld [vmem:[#allocation9 + $0x8] sm:$0xff]  ;;  %v2171_v37 = vcombine.low %v761_v34, %v765_v35  ;;  %v2172_v38 = vcombine.high %v761_v34, %v765_v35  ;;  %v769_v40 = vld [vmem:[#allocation9 + $0x40] sm:$0xff]  ;;  %v2930_v62 = vld [vmem:[#allocation4] ss:$0 sm:$0xff] }
  0xc4   : > { %2261 = vmatmul.mubr.msk.bf16.vlgmr.msra.gmra.mrb[0].mxu0 %vm423_vm2, %v408_v13  ;;  %2279 = vmatpush3.bf16.msra.mxu1 %v2410_v16  ;;  %v2924_v39 = vld [vmem:[#allocation9 + $0x28] sm:$0xff]  ;;  %v773_v41 = vld [vmem:[#allocation9 + $0x60] sm:$0xff] }
  0xc5   : > { %2264 = vmatprep.mubr.msk.bf16.mxu0 %vm423_vm2, %v409_v14  ;;  %2280 = vmatprep.subr.bf16.mxu1 %v2411_v32  ;;  %v2173_v42 = vcombine.low %v2922_v36, %v2924_v39  ;;  %v2174_v43 = vcombine.high %v2922_v36, %v2924_v39  ;;  %v2180_v44 = vcombine.high %v769_v40, %v773_v41  ;;  %v777_v45 = vld [vmem:[#allocation9 + $0x80] sm:$0xff]  ;;  %v770_v11 = vld [vmem:[#allocation9 + $0x48] sm:$0xff] }
  0xc6   : > { %1187 = vmatprep.subr.bf16.mxu0 %v2172_v38  ;;  %v781_v46 = vld [vmem:[#allocation9 + $0xa0] sm:$0xff]  ;;  %v2179_v47 = vcombine.low %v769_v40, %v773_v41  ;;  %v774_v12 = vld [vmem:[#allocation9 + $0x68] sm:$0xff] }
  0xc7   : > { %1188 = vmatpush1.bf16.msra.mxu0 %v2171_v37  ;;  %v2188_v48 = vcombine.high %v777_v45, %v781_v46  ;;  %v785_v49 = vld [vmem:[#allocation9 + $0xc0] sm:$0xff]  ;;  %v2187_v51 = vcombine.low %v777_v45, %v781_v46  ;;  %v2182_v18 = vcombine.high %v770_v11, %v774_v12 }
  0xc8   : > { %2281 = vmatpush3.bf16.msra.mxu1 %v2411_v32  ;;  %1189 = vmatprep.subr.bf16.mxu0 %v2180_v44  ;;  %v789_v50 = vld [vmem:[#allocation9 + $0xe0] sm:$0xff]  ;;  %v786_v32 = vld [vmem:[#allocation9 + $0xc8] sm:$0xff] }
  0xc9   : > { %2282 = vmatprep.subr.bf16.mxu1 %v2412_v33  ;;  %v2196_v52 = vcombine.high %v785_v49, %v789_v50  ;;  %v793_v53 = vld [vmem:[#allocation9 + $0x100] sm:$0xff]  ;;  %v2195_v55 = vcombine.low %v785_v49, %v789_v50  ;;  %v798_v44 = vld [vmem:[#allocation9 + $0x128] sm:$0xff] }
  0xca   : > { %v797_v54 = vld [vmem:[#allocation9 + $0x120] sm:$0xff] }
  0xcb   : > { %1190 = vmatpush1.bf16.msra.mxu0 %v2179_v47  ;;  %v2204_v56 = vcombine.high %v793_v53, %v797_v54  ;;  %v801_v57 = vld [vmem:[#allocation9 + $0x140] sm:$0xff]  ;;  %v2203_v59 = vcombine.low %v793_v53, %v797_v54  ;;  %v802_v54 = vld [vmem:[#allocation9 + $0x148] sm:$0xff] }
  0xcc   : > { %2265 = vmatmul.mubr.msk.bf16.gmra.mrb[4].mxu0 %vm423_vm2, %v410_v21  ;;  %2283 = vmatpush3.bf16.msra.mxu1 %v2412_v33  ;;  %v805_v58 = vld [vmem:[#allocation9 + $0x160] sm:$0xff]  ;;  %v778_v21 = vld [vmem:[#allocation9 + $0x88] sm:$0xff] }
  0xcd   : > { %2268 = vmatprep.mubr.msk.bf16.mxu0 %vm423_vm2, %v411_v22  ;;  %1300 = vmatprep.subr.bf16.mxu1 %v2174_v43  ;;  %v2212_v60 = vcombine.high %v801_v57, %v805_v58  ;;  %v2211_v61 = vcombine.low %v801_v57, %v805_v58  ;;  %v782_v22 = vld [vmem:[#allocation9 + $0xa8] sm:$0xff] }
  0xce   : > { %1191 = vmatprep.subr.bf16.mxu0 %v2188_v48  ;;  %v2190_v30 = vcombine.high %v778_v21, %v782_v22  ;;  %v790_v33 = vld [vmem:[#allocation9 + $0xe8] sm:$0xff]  ;;  %v2189_v38 = vcombine.low %v778_v21, %v782_v22 }
  0xcf   : > { %1192 = vmatpush1.bf16.msra.mxu0 %v2187_v51  ;;  %v2198_v43 = vcombine.high %v786_v32, %v790_v33  ;;  %v2197_v50 = vcombine.low %v786_v32, %v790_v33  ;;  %v818_v21 = vld [vmem:[#allocation9 + $0x1c8] sm:$0xff]  ;;  %v768_v33 = vld [vmem:[#allocation9 + $0x38] sm:$0xff] }
  0xd0   : > { %1193 = vmatprep.subr.bf16.mxu0 %v2196_v52 }
  0xd3   : > { %1194 = vmatpush1.bf16.msra.mxu0 %v2195_v55  ;;  %v806_v55 = vld [vmem:[#allocation9 + $0x168] sm:$0xff] }
  0xd4   : > { %2269 = vmatmul.mubr.msk.bf16.gmra.mrb[8].mxu0 %vm423_vm2, %v412_v27  ;;  %1195 = vmatprep.subr.bf16.mxu0 %v2204_v56 }
  0xd5   : > { %2272 = vmatprep.mubr.msk.bf16.mxu0 %vm423_vm2, %v413_v28  ;;  %v2181_v28 = vcombine.low %v770_v11, %v774_v12  ;;  %v809_v12 = vld [vmem:[#allocation9 + $0x180] sm:$0xff] }
  0xd7   : > { %1196 = vmatpush1.bf16.msra.mxu0 %v2203_v59 }
  0xd8   : > { %1197 = vmatprep.subr.bf16.mxu0 %v2212_v60 }
  0xdb   : > { %1198 = vmatpush1.bf16.msra.mxu0 %v2211_v61 }
  0xdc   : > { %2273 = vmatmul.mubr.msk.bf16.gmra.mrb[12].mxu0 %vm423_vm2, %v414_v31 }
 0x197   : > { %v2262_v63 = vpop.f32.mrb[0].mxu0 }
 0x198   : > { %v498_v0 = vadd.f32 %v2262_v63, %v2930_v62  ;;  %v489_v1 = vpop.f32.mrb[1].mxu0  ;;  %v2214_v63 = vcombine.high %v802_v54, %v806_v55 }
 0x199   : > { %v490_v2 = vadd.f32 %v2930_v62, %v489_v1  ;;  %v2263_v3 = vpop.f32.mrb[2].mxu0 }
 0x19a   : > { %v501_v4 = vadd.f32 %v2263_v3, %v2930_v62  ;;  %v492_v5 = vpop.f32.mrb[3].mxu0  ;;  %v554_v7 = vmax.f32 %v498_v0, 0.0 }
 0x19b   : > { %v493_v6 = vadd.f32 %v2930_v62, %v492_v5  ;;  %v552_v9 = vmax.f32 %v490_v2, 0.0 }
 0x19c   : > { %v555_v8 = vmax.f32 %v501_v4, 0.0 }
 0x19d   : > { %v553_v10 = vmax.f32 %v493_v6, 0.0 }
 0x19e   : > { %v569_v13 = vpack.c.bf16 %v555_v8, %v554_v7  ;;  %v2213_v7 = vcombine.low %v802_v54, %v806_v55 }
 0x19f   : > { %v2266_v14 = vpop.f32.mrb[4].mxu0  ;;  %v568_v15 = vpack.c.bf16 %v553_v10, %v552_v9 }
 0x1a0   : > { %v514_v16 = vadd.f32 %v2266_v14, %v2930_v62  ;;  %v505_v17 = vpop.f32.mrb[5].mxu0  ;;  %v810_v14 = vld [vmem:[#allocation9 + $0x188] sm:$0xff] }
 0x1a1   : > { %v506_v19 = vadd.f32 %v2930_v62, %v505_v17  ;;  %2284 = vmatprep.mubr.msk.bf16.mxu1 %vm615_vm3, %v568_v15  ;;  %v2267_v20 = vpop.f32.mrb[6].mxu0 }
 0x1a2   : > { %v558_v23 = vmax.f32 %v514_v16, 0.0  ;;  %v517_v24 = vadd.f32 %v2267_v20, %v2930_v62  ;;  %2285 = vmatmul.mubr.msk.bf16.vlgmr.msra.gmra.mrb[0].mxu1 %vm615_vm3, %v569_v13  ;;  %v508_v25 = vpop.f32.mrb[7].mxu0  ;;  %v813_v13 = vld [vmem:[#allocation9 + $0x1a0] sm:$0xff]  ;;  %v814_v16 = vld [vmem:[#allocation9 + $0x1a8] sm:$0xff] }
 0x1a3   : > { %v556_v26 = vmax.f32 %v506_v19, 0.0  ;;  %v509_v27 = vadd.f32 %v2930_v62, %v508_v25  ;;  %1301 = vmatpush1.bf16.msra.mxu1 %v2173_v42  ;;  %v794_v42 = vld [vmem:[#allocation9 + $0x108] sm:$0xff]  ;;  %v2220_v15 = vcombine.high %v809_v12, %v813_v13  ;;  %v2219_v17 = vcombine.low %v809_v12, %v813_v13  ;;  %v817_v19 = vld [vmem:[#allocation9 + $0x1c0] sm:$0xff]  ;;  %v787_v13 = vld [vmem:[#allocation9 + $0xd0] sm:$0xff] }
 0x1a4   : > { %v559_v29 = vmax.f32 %v517_v24, 0.0  ;;  %1302 = vmatprep.subr.bf16.mxu1 %v2182_v18  ;;  %v2206_v52 = vcombine.high %v794_v42, %v798_v44  ;;  %v2205_v59 = vcombine.low %v794_v42, %v798_v44  ;;  %v2221_v18 = vcombine.low %v810_v14, %v814_v16  ;;  %v821_v20 = vld [vmem:[#allocation9 + $0x1e0] sm:$0xff] }
 0x1a5   : > { %v557_v31 = vmax.f32 %v509_v27, 0.0  ;;  %1199 = vmatprep.subr.bf16.mxu0 %v2220_v15  ;;  %v2228_v22 = vcombine.high %v817_v19, %v821_v20  ;;  %v2227_v24 = vcombine.low %v817_v19, %v821_v20  ;;  %v2649_v27 = vmov 0   ;;  %v791_v15 = vld [vmem:[#allocation9 + $0xf0] sm:$0xff] }
 0x1a6   : > { %v571_v34 = vpack.c.bf16 %v559_v29, %v558_v23  ;;  %1200 = vmatpush1.bf16.msra.mxu0 %v2219_v17  ;;  %v822_v23 = vld [vmem:[#allocation9 + $0x1e8] sm:$0xff]  ;;  %1219 = vmatprep.mubr.bf16.mxu0 %v2649_v27  ;;  %v767_v29 = vld [vmem:[#allocation9 + $0x30] sm:$0xff]  ;;  %v792_v17 = vld [vmem:[#allocation9 + $0xf8] sm:$0xff] }
 0x1a7   : > { %v570_v35 = vpack.c.bf16 %v557_v31, %v556_v26  ;;  %v2270_v37 = vpop.f32.mrb[8].mxu0  ;;  %1303 = vmatpush1.bf16.msra.mxu1 %v2181_v28  ;;  %v2229_v25 = vcombine.low %v818_v21, %v822_v23  ;;  %v2230_v26 = vcombine.high %v818_v21, %v822_v23  ;;  %1201 = vmatprep.subr.bf16.mxu0 %v2228_v22  ;;  %v763_v28 = vld [vmem:[#allocation9 + $0x10] sm:$0xff] }
 0x1a8   : > { %v530_v40 = vadd.f32 %v2270_v37, %v2930_v62  ;;  %v521_v41 = vpop.f32.mrb[9].mxu0  ;;  %1304 = vmatprep.subr.bf16.mxu1 %v2190_v30  ;;  %v764_v30 = vld [vmem:[#allocation9 + $0x18] sm:$0xff]  ;;  %v2175_v31 = vcombine.low %v763_v28, %v767_v29  ;;  %v2176_v32 = vcombine.high %v763_v28, %v767_v29 }
 0x1a9   : > { %2288 = vmatprep.mubr.msk.bf16.mxu1 %vm615_vm3, %v570_v35  ;;  %v522_v36 = vadd.f32 %v2930_v62, %v521_v41  ;;  %v2271_v39 = vpop.f32.mrb[10].mxu0  ;;  %v2178_v35 = vcombine.high %v764_v30, %v768_v33  ;;  %v2961_v37 = vld [vmem:[#allocation7] ss:$0 sm:$0xff] }
 0x1aa   : > { %2289 = vmatmul.mubr.msk.bf16.gmra.mrb[4].mxu1 %vm615_vm3, %v571_v34  ;;  %v562_v45 = vmax.f32 %v530_v40, 0.0  ;;  %v533_v46 = vadd.f32 %v2271_v39, %v2930_v62  ;;  %v524_v47 = vpop.f32.mrb[11].mxu0  ;;  %1202 = vmatpush1.bf16.msra.mxu0 %v2227_v24  ;;  %v2177_v34 = vcombine.low %v764_v30, %v768_v33  ;;  %v2200_v24 = vcombine.high %v787_v13, %v791_v15  ;;  %v799_v30 = vld [vmem:[#allocation9 + $0x130] sm:$0xff] }
 0x1ab   : > { %v560_v48 = vmax.f32 %v522_v36, 0.0  ;;  %v525_v49 = vadd.f32 %v2930_v62, %v524_v47  ;;  %1305 = vmatpush1.bf16.msra.mxu1 %v2189_v38  ;;  %1413 = vmatprep.subr.bf16.mxu0 %v2176_v32  ;;  %v771_v47 = vld [vmem:[#allocation9 + $0x50] sm:$0xff]  ;;  %v800_v32 = vld [vmem:[#allocation9 + $0x138] sm:$0xff] }
 0x1ac   : > { %v563_v51 = vmax.f32 %v533_v46, 0.0  ;;  %1306 = vmatprep.subr.bf16.mxu1 %v2198_v43 }
 0x1ad   : > { %v561_v53 = vmax.f32 %v525_v49, 0.0 }
 0x1ae   : > { %v573_v56 = vpack.c.bf16 %v563_v51, %v562_v45  ;;  %v772_v51 = vld [vmem:[#allocation9 + $0x58] sm:$0xff] }
 0x1af   : > { %v572_v57 = vpack.c.bf16 %v561_v53, %v560_v48  ;;  %v2274_v58 = vpop.f32.mrb[12].mxu0  ;;  %1307 = vmatpush1.bf16.msra.mxu1 %v2197_v50  ;;  %v775_v50 = vld [vmem:[#allocation9 + $0x70] sm:$0xff] }
 0x1b0   : > { %v546_v60 = vadd.f32 %v2274_v58, %v2930_v62  ;;  %v537_v61 = vpop.f32.mrb[13].mxu0  ;;  %1308 = vmatprep.subr.bf16.mxu1 %v2206_v52  ;;  %v776_v52 = vld [vmem:[#allocation9 + $0x78] sm:$0xff] }
 0x1b1   : > { %2292 = vmatprep.mubr.msk.bf16.mxu1 %vm615_vm3, %v572_v57  ;;  %v538_v0 = vadd.f32 %v2930_v62, %v537_v61  ;;  %v2275_v1 = vpop.f32.mrb[14].mxu0  ;;  %v783_v61 = vld [vmem:[#allocation9 + $0xb0] sm:$0xff] }
 0x1b2   : > { %2293 = vmatmul.mubr.msk.bf16.gmra.mrb[8].mxu1 %vm615_vm3, %v573_v56  ;;  %v566_v2 = vmax.f32 %v546_v60, 0.0  ;;  %v549_v3 = vadd.f32 %v2275_v1, %v2930_v62  ;;  %v540_v4 = vpop.f32.mrb[15].mxu0  ;;  %v779_v56 = vld [vmem:[#allocation9 + $0x90] sm:$0xff]  ;;  %v2186_v60 = vcombine.high %v772_v51, %v776_v52 }
 0x1b3   : > { %v564_v5 = vmax.f32 %v538_v0, 0.0  ;;  %v541_v6 = vadd.f32 %v2930_v62, %v540_v4  ;;  %1309 = vmatpush1.bf16.msra.mxu1 %v2205_v59  ;;  %v2222_v62 = vcombine.high %v810_v14, %v814_v16  ;;  %v2184_v59 = vcombine.high %v771_v47, %v775_v50  ;;  %v784_v0 = vld [vmem:[#allocation9 + $0xb8] sm:$0xff] }
 0x1b4   : > { %v567_v8 = vmax.f32 %v549_v3, 0.0  ;;  %1310 = vmatprep.subr.bf16.mxu1 %v2214_v63  ;;  %v780_v63 = vld [vmem:[#allocation9 + $0x98] sm:$0xff]  ;;  %v2191_v20 = vcombine.low %v779_v56, %v783_v61 }
 0x1b5   : > { %v565_v9 = vmax.f32 %v541_v6, 0.0  ;;  %v2183_v6 = vcombine.low %v771_v47, %v775_v50  ;;  %v788_v16 = vld [vmem:[#allocation9 + $0xd8] sm:$0xff]  ;;  %v2193_v21 = vcombine.low %v780_v63, %v784_v0 }
 0x1b6   : > { %v575_v10 = vpack.c.bf16 %v567_v8, %v566_v2  ;;  %v804_v47 = vld [vmem:[#allocation9 + $0x158] sm:$0xff] }
 0x1b7   : > { %v574_v11 = vpack.c.bf16 %v565_v9, %v564_v5  ;;  %1311 = vmatpush1.bf16.msra.mxu1 %v2213_v7  ;;  %v2185_v7 = vcombine.low %v772_v51, %v776_v52 }
 0x1b8   : > { %1312 = vmatprep.subr.bf16.mxu1 %v2222_v62 }
 0x1b9   : > { %2296 = vmatprep.mubr.msk.bf16.mxu1 %vm615_vm3, %v574_v11  ;;  %v2194_v11 = vcombine.high %v780_v63, %v784_v0  ;;  %v815_v0 = vld [vmem:[#allocation9 + $0x1b0] sm:$0xff] }
 0x1ba   : > { %2297 = vmatmul.mubr.msk.bf16.gmra.mrb[12].mxu1 %vm615_vm3, %v575_v10  ;;  %v2192_v10 = vcombine.high %v779_v56, %v783_v61 }
 0x1bb   : > { %1313 = vmatpush1.bf16.msra.mxu1 %v2221_v18  ;;  %1332 = vmatprep.mubr.bf16.mxu1 %v2649_v27 }
 0x1bc   : > { %1314 = vmatprep.subr.bf16.mxu1 %v2230_v26  ;;  %v795_v26 = vld [vmem:[#allocation9 + $0x110] sm:$0xff] }
 0x1bd   : > { %v2207_v52 = vcombine.low %v795_v26, %v799_v30 }
 0x1bf   : > { %1315 = vmatpush1.bf16.msra.mxu1 %v2229_v25  ;;  %v2202_v25 = vcombine.high %v788_v16, %v792_v17 }
 0x1c0   : > { %1526 = vmatprep.subr.bf16.mxu1 %v2178_v35 }
 0x275   : > { %v2286_v38 = vpop.f32.mrb[0].mxu1 }
 0x276   : > { %v683_v40 = vadd.f32 %v2286_v38, %v2961_v37  ;;  %v674_v41 = vpop.f32.mrb[1].mxu1 }
 0x277   : > { %v675_v43 = vadd.f32 %v2961_v37, %v674_v41  ;;  %v2287_v36 = vpop.f32.mrb[2].mxu1  ;;  %v2199_v41 = vcombine.low %v787_v13, %v791_v15  ;;  %v819_v13 = vld [vmem:[#allocation9 + $0x1d0] sm:$0xff] }
 0x278   : > { %v686_v39 = vadd.f32 %v2287_v36, %v2961_v37  ;;  %v677_v42 = vpop.f32.mrb[3].mxu1  ;;  %v739_v45 = vmax.f32 %v683_v40, 0.0  ;;  %v823_v15 = vld [vmem:[#allocation9 + $0x1f0] sm:$0xff] }
 0x279   : > { %v678_v44 = vadd.f32 %v2961_v37, %v677_v42  ;;  %v737_v48 = vmax.f32 %v675_v43, 0.0  ;;  %v2201_v43 = vcombine.low %v788_v16, %v792_v17  ;;  %v820_v16 = vld [vmem:[#allocation9 + $0x1d8] sm:$0xff] }
 0x27a   : > { %v740_v46 = vmax.f32 %v686_v39, 0.0  ;;  %v2208_v39 = vcombine.high %v795_v26, %v799_v30  ;;  %v824_v17 = vld [vmem:[#allocation9 + $0x1f8] sm:$0xff]  ;;  %v3055_v26 = vld [vmem:[#allocation10] sm:$0xff] }
 0x27b   : > { %v738_v49 = vmax.f32 %v678_v44, 0.0  ;;  %v803_v44 = vld [vmem:[#allocation9 + $0x150] sm:$0xff] }
 0x27c   : > { %v2967_v53 = vpack.c.bf16 %v740_v46, %v739_v45  ;;  %v807_v46 = vld [vmem:[#allocation9 + $0x170] sm:$0xff] }
 0x27d   : > { %v2969_v54 = vpack.c.bf16 %v738_v49, %v737_v48  ;;  %v2290_v55 = vpop.f32.mrb[4].mxu1  ;;  %v808_v48 = vld [vmem:[#allocation9 + $0x178] sm:$0xff] }
 0x27e   : > { %v699_v57 = vadd.f32 %v2290_v55, %v2961_v37  ;;  %v690_v58 = vpop.f32.mrb[5].mxu1 }
 0x27f   : > { %v691_v1 = vadd.f32 %v2961_v37, %v690_v58  ;;  %1220 = vmatmul.mubr.bf16.vlgmr.msra.gmra.mrb[16].mxu0 %v2969_v54  ;;  %1333 = vmatmul.mubr.bf16.vlgmr.msra.gmra.mrb[16].mxu1 %v2969_v54  ;;  %v2291_v2 = vpop.f32.mrb[6].mxu1  ;;  %v2216_v58 = vcombine.high %v803_v44, %v807_v46 }
 0x280   : > { %v743_v3 = vmax.f32 %v699_v57, 0.0  ;;  %1414 = vmatpush1.bf16.msra.mxu0 %v2175_v31  ;;  %1527 = vmatpush1.bf16.msra.mxu1 %v2177_v34  ;;  %v702_v4 = vadd.f32 %v2291_v2, %v2961_v37  ;;  %v693_v5 = vpop.f32.mrb[7].mxu1  ;;  %v796_v31 = vld [vmem:[#allocation9 + $0x118] sm:$0xff] }
 0x281   : > { %v741_v8 = vmax.f32 %v691_v1, 0.0  ;;  %v694_v9 = vadd.f32 %v2961_v37, %v693_v5  ;;  %1229 = vmatprep.mubr.bf16.mxu0 %v2649_v27  ;;  %1342 = vmatprep.mubr.bf16.mxu1 %v2649_v27  ;;  %v2210_v42 = vcombine.high %v796_v31, %v800_v32  ;;  %v2209_v55 = vcombine.low %v796_v31, %v800_v32  ;;  %v812_v1 = vld [vmem:[#allocation9 + $0x198] sm:$0xff] }
 0x282   : > { %v744_v12 = vmax.f32 %v702_v4, 0.0  ;;  %1415 = vmatprep.subr.bf16.mxu0 %v2184_v59  ;;  %1528 = vmatprep.subr.bf16.mxu1 %v2186_v60  ;;  %v2218_v59 = vcombine.high %v804_v47, %v808_v48  ;;  %v811_v60 = vld [vmem:[#allocation9 + $0x190] sm:$0xff]  ;;  %v816_v2 = vld [vmem:[#allocation9 + $0x1b8] sm:$0xff] }
 0x283   : > { %v742_v14 = vmax.f32 %v694_v9, 0.0  ;;  %v2217_v9 = vcombine.low %v804_v47, %v808_v48 }
 0x284   : > { %v2979_v18 = vpack.c.bf16 %v744_v12, %v743_v3  ;;  %1416 = vmatpush1.bf16.msra.mxu0 %v2183_v6  ;;  %1529 = vmatpush1.bf16.msra.mxu1 %v2185_v7  ;;  %v2226_v12 = vcombine.high %v812_v1, %v816_v2 }
 0x285   : > { %v2981_v62 = vpack.c.bf16 %v742_v14, %v741_v8  ;;  %v2294_v19 = vpop.f32.mrb[8].mxu1  ;;  %1417 = vmatprep.subr.bf16.mxu0 %v2192_v10  ;;  %1530 = vmatprep.subr.bf16.mxu1 %v2194_v11  ;;  %v2215_v8 = vcombine.low %v803_v44, %v807_v46  ;;  %v2224_v11 = vcombine.high %v811_v60, %v815_v0 }
 0x286   : > { %v715_v22 = vadd.f32 %v2294_v19, %v2961_v37  ;;  %v706_v23 = vpop.f32.mrb[9].mxu1 }
 0x287   : > { %1230 = vmatmul.mubr.bf16.gmra.mrb[20].mxu0 %v2967_v53  ;;  %1343 = vmatmul.mubr.bf16.gmra.mrb[20].mxu1 %v2967_v53  ;;  %v707_v28 = vadd.f32 %v2961_v37, %v706_v23  ;;  %v2295_v29 = vpop.f32.mrb[10].mxu1  ;;  %v2234_v23 = vcombine.high %v820_v16, %v824_v17 }
 0x288   : > { %v747_v33 = vmax.f32 %v715_v22, 0.0  ;;  %1239 = vmatprep.mubr.bf16.mxu0 %v2649_v27  ;;  %1352 = vmatprep.mubr.bf16.mxu1 %v2649_v27  ;;  %v718_v34 = vadd.f32 %v2295_v29, %v2961_v37  ;;  %v709_v35 = vpop.f32.mrb[11].mxu1  ;;  %v2225_v22 = vcombine.low %v812_v1, %v816_v2 }
 0x289   : > { %v745_v38 = vmax.f32 %v707_v28, 0.0  ;;  %1418 = vmatpush1.bf16.msra.mxu0 %v2191_v20  ;;  %1531 = vmatpush1.bf16.msra.mxu1 %v2193_v21  ;;  %v710_v40 = vadd.f32 %v2961_v37, %v709_v35  ;;  %v2223_v21 = vcombine.low %v811_v60, %v815_v0 }
 0x28a   : > { %v748_v36 = vmax.f32 %v718_v34, 0.0  ;;  %1419 = vmatprep.subr.bf16.mxu0 %v2200_v24  ;;  %1532 = vmatprep.subr.bf16.mxu1 %v2202_v25  ;;  %v2231_v24 = vcombine.low %v819_v13, %v823_v15  ;;  %v2233_v25 = vcombine.low %v820_v16, %v824_v17 }
 0x28b   : > { %v746_v45 = vmax.f32 %v710_v40, 0.0 }
 0x28c   : > { %v2991_v49 = vpack.c.bf16 %v748_v36, %v747_v33 }
 0x28d   : > { %v2993_v50 = vpack.c.bf16 %v746_v45, %v745_v38  ;;  %1420 = vmatpush1.bf16.msra.mxu0 %v2199_v41  ;;  %1533 = vmatpush1.bf16.msra.mxu1 %v2201_v43  ;;  %v2298_v51 = vpop.f32.mrb[12].mxu1 }
 0x28e   : > { %v731_v56 = vadd.f32 %v2298_v51, %v2961_v37  ;;  %1421 = vmatprep.subr.bf16.mxu0 %v2208_v39  ;;  %1534 = vmatprep.subr.bf16.mxu1 %v2210_v42  ;;  %v722_v57 = vpop.f32.mrb[13].mxu1 }
 0x28f   : > { %1240 = vmatmul.mubr.bf16.gmra.mrb[24].mxu0 %v2981_v62  ;;  %1353 = vmatmul.mubr.bf16.gmra.mrb[24].mxu1 %v2981_v62  ;;  %v723_v61 = vadd.f32 %v2961_v37, %v722_v57  ;;  %v2299_v63 = vpop.f32.mrb[14].mxu1 }
 0x290   : > { %1249 = vmatprep.mubr.bf16.mxu0 %v2649_v27  ;;  %1362 = vmatprep.mubr.bf16.mxu1 %v2649_v27  ;;  %v751_v3 = vmax.f32 %v731_v56, 0.0  ;;  %v734_v4 = vadd.f32 %v2299_v63, %v2961_v37  ;;  %v725_v5 = vpop.f32.mrb[15].mxu1 }
 0x291   : > { %v749_v6 = vmax.f32 %v723_v61, 0.0  ;;  %1422 = vmatpush1.bf16.msra.mxu0 %v2207_v52  ;;  %1535 = vmatpush1.bf16.msra.mxu1 %v2209_v55  ;;  %v726_v7 = vadd.f32 %v2961_v37, %v725_v5  ;;  %v2232_v37 = vcombine.high %v819_v13, %v823_v15 }
 0x292   : > { %v752_v10 = vmax.f32 %v734_v4, 0.0  ;;  %1423 = vmatprep.subr.bf16.mxu0 %v2216_v58  ;;  %1536 = vmatprep.subr.bf16.mxu1 %v2218_v59 }
 0x293   : > { %v750_v14 = vmax.f32 %v726_v7, 0.0 }
 0x294   : > { %v3003_v19 = vpack.c.bf16 %v752_v10, %v751_v3 }
 0x295   : > { %v759_v20 = vpack.c.bf16 %v750_v14, %v749_v6  ;;  %1424 = vmatpush1.bf16.msra.mxu0 %v2215_v8  ;;  %1537 = vmatpush1.bf16.msra.mxu1 %v2217_v9 }
 0x296   : > { %1425 = vmatprep.subr.bf16.mxu0 %v2224_v11  ;;  %1538 = vmatprep.subr.bf16.mxu1 %v2226_v12 }
 0x297   : > { %1250 = vmatmul.mubr.bf16.gmra.mrb[28].mxu0 %v2979_v18  ;;  %1363 = vmatmul.mubr.bf16.gmra.mrb[28].mxu1 %v2979_v18 }
 0x298   : > { %1259 = vmatprep.mubr.bf16.mxu0 %v2649_v27  ;;  %1372 = vmatprep.mubr.bf16.mxu1 %v2649_v27 }
 0x299   : > { %1426 = vmatpush1.bf16.msra.mxu0 %v2223_v21  ;;  %1539 = vmatpush1.bf16.msra.mxu1 %v2225_v22 }
 0x29a   : > { %1427 = vmatprep.subr.bf16.mxu0 %v2232_v37  ;;  %1540 = vmatprep.subr.bf16.mxu1 %v2234_v23 }
 0x29d   : > { %1428 = vmatpush1.bf16.msra.mxu0 %v2231_v24  ;;  %1541 = vmatpush1.bf16.msra.mxu1 %v2233_v25 }
 0x29f   : > { %1260 = vmatmul.mubr.bf16.gmra.mrb[32].mxu0 %v2993_v50  ;;  %1373 = vmatmul.mubr.bf16.gmra.mrb[32].mxu1 %v2993_v50 }
 0x2a0   : > { %1269 = vmatprep.mubr.bf16.mxu0 %v2649_v27  ;;  %1382 = vmatprep.mubr.bf16.mxu1 %v2649_v27 }
 0x2a7   : > { %1270 = vmatmul.mubr.bf16.gmra.mrb[36].mxu0 %v2991_v49  ;;  %1383 = vmatmul.mubr.bf16.gmra.mrb[36].mxu1 %v2991_v49 }
 0x2a8   : > { %1279 = vmatprep.mubr.bf16.mxu0 %v2649_v27  ;;  %1392 = vmatprep.mubr.bf16.mxu1 %v2649_v27 }
 0x2af   : > { %1280 = vmatmul.mubr.bf16.gmra.mrb[40].mxu0 %v759_v20  ;;  %1393 = vmatmul.mubr.bf16.gmra.mrb[40].mxu1 %v759_v20 }
 0x2b0   : > { %1289 = vmatprep.mubr.bf16.mxu0 %v2649_v27  ;;  %1402 = vmatprep.mubr.bf16.mxu1 %v2649_v27 }
 0x2b7   : > { %1290 = vmatmul.mubr.bf16.gmra.mrb[44].mxu0 %v3003_v19  ;;  %1403 = vmatmul.mubr.bf16.gmra.mrb[44].mxu1 %v3003_v19 }
 0x2b8   : > { %1445 = vmatprep.mubr.bf16.mxu0 %v2649_v27  ;;  %1558 = vmatprep.mubr.bf16.mxu1 %v2649_v27 }
 0x2bf   : > { %1446 = vmatmul.mubr.bf16.vlgmr.msra.gmra.mrb[48].mxu0 %v2969_v54  ;;  %1559 = vmatmul.mubr.bf16.vlgmr.msra.gmra.mrb[48].mxu1 %v2969_v54 }
 0x2c0   : > { %1455 = vmatprep.mubr.bf16.mxu0 %v2649_v27  ;;  %1568 = vmatprep.mubr.bf16.mxu1 %v2649_v27 }
 0x2c7   : > { %1456 = vmatmul.mubr.bf16.gmra.mrb[52].mxu0 %v2967_v53  ;;  %1569 = vmatmul.mubr.bf16.gmra.mrb[52].mxu1 %v2967_v53  ;;  %v827_v53 = vlaneseq }
 0x2c8   : > { %1465 = vmatprep.mubr.bf16.mxu0 %v2649_v27  ;;  %1578 = vmatprep.mubr.bf16.mxu1 %v2649_v27 }
 0x2c9   : > { %v3051_v54 = vshrl.u32 %v827_v53, 7 }
 0x2cb   : > { %v833_v28 = vsub.s32 1, %v3051_v54  ;;  %v841_v29 = vsub.s32 3, %v3051_v54 }
 0x2cd   : > { %v3066_v31 = vrot.slane %v3055_v26, %v833_v28  ;;  %v3069_v32 = vrot.slane %v3055_v26, %v841_v29 }
 0x2cf   : > { %1466 = vmatmul.mubr.bf16.gmra.mrb[56].mxu0 %v2981_v62  ;;  %1579 = vmatmul.mubr.bf16.gmra.mrb[56].mxu1 %v2981_v62  ;;  %v837_v62 = vsub.s32 2, %v3051_v54 }
 0x2d0   : > { %1475 = vmatprep.mubr.bf16.mxu0 %v2649_v27  ;;  %1588 = vmatprep.mubr.bf16.mxu1 %v2649_v27 }
 0x2d7   : > { %1476 = vmatmul.mubr.bf16.gmra.mrb[60].mxu0 %v2979_v18  ;;  %1589 = vmatmul.mubr.bf16.gmra.mrb[60].mxu1 %v2979_v18  ;;  %v829_v18 = vsub.s32 0, %v3051_v54 }
 0x2d8   : > { %1485 = vmatprep.mubr.bf16.mxu0 %v2649_v27  ;;  %1598 = vmatprep.mubr.bf16.mxu1 %v2649_v27 }
 0x2d9   : > { %v3060_v30 = vrot.slane %v3055_v26, %v829_v18 }
 0x2df   : > { %1486 = vmatmul.mubr.bf16.gmra.mrb[64].mxu0 %v2993_v50  ;;  %1599 = vmatmul.mubr.bf16.gmra.mrb[64].mxu1 %v2993_v50 }
 0x2e0   : > { %1495 = vmatprep.mubr.bf16.mxu0 %v2649_v27  ;;  %1608 = vmatprep.mubr.bf16.mxu1 %v2649_v27 }
 0x2e7   : > { %1496 = vmatmul.mubr.bf16.gmra.mrb[68].mxu0 %v2991_v49  ;;  %1609 = vmatmul.mubr.bf16.gmra.mrb[68].mxu1 %v2991_v49 }
 0x2e8   : > { %1505 = vmatprep.mubr.bf16.mxu0 %v2649_v27  ;;  %1618 = vmatprep.mubr.bf16.mxu1 %v2649_v27 }
 0x2ef   : > { %1506 = vmatmul.mubr.bf16.gmra.mrb[72].mxu0 %v759_v20  ;;  %1619 = vmatmul.mubr.bf16.gmra.mrb[72].mxu1 %v759_v20 }
 0x2f0   : > { %1515 = vmatprep.mubr.bf16.mxu0 %v2649_v27  ;;  %1628 = vmatprep.mubr.bf16.mxu1 %v2649_v27  ;;  %v3063_v27 = vrot.slane %v3055_v26, %v837_v62 }
 0x2f7   : > { %1516 = vmatmul.mubr.bf16.gmra.mrb[76].mxu0 %v3003_v19  ;;  %1629 = vmatmul.mubr.bf16.gmra.mrb[76].mxu1 %v3003_v19 }
 0x352   : > { %v1221_v33 = vpop.f32.mrb[16].mxu0  ;;  %v1334_v34 = vpop.f32.mrb[16].mxu1 }
 0x353   : > { %v1222_v35 = vadd.f32 %v1221_v33, %v3060_v30  ;;  %v1335_v38 = vadd.f32 %v1334_v34, %v3063_v27  ;;  %v1223_v40 = vpop.f32.mrb[17].mxu0  ;;  %v1336_v41 = vpop.f32.mrb[17].mxu1 }
 0x354   : > { %v1224_v43 = vadd.f32 %v1223_v40, %v3066_v31  ;;  %v1337_v36 = vadd.f32 %v1336_v41, %v3069_v32  ;;  %v1225_v39 = vpop.f32.mrb[18].mxu0  ;;  %v1338_v42 = vpop.f32.mrb[18].mxu1 }
 0x355   : > { %v1226_v44 = vadd.f32 %v1225_v39, %v3060_v30  ;;  %v1339_v45 = vadd.f32 %v1338_v42, %v3063_v27  ;;  %v1227_v46 = vpop.f32.mrb[19].mxu0  ;;  %v1340_v47 = vpop.f32.mrb[19].mxu1  ;;  %v1639_v50 = vmax.f32 %v1222_v35, 0.0  ;;  %v1641_v51 = vmax.f32 %v1335_v38, 0.0 }
 0x356   : > { %v1228_v48 = vadd.f32 %v1227_v46, %v3066_v31  ;;  %v1341_v49 = vadd.f32 %v1340_v47, %v3069_v32  ;;  %v1640_v56 = vmax.f32 %v1224_v43, 0.0  ;;  %v1642_v57 = vmax.f32 %v1337_v36, 0.0 }
 0x357   : > { %v1647_v52 = vmax.f32 %v1226_v44, 0.0  ;;  %v1649_v55 = vmax.f32 %v1339_v45, 0.0 }
 0x358   : > { %v1648_v58 = vmax.f32 %v1228_v48, 0.0  ;;  %v1650_v59 = vmax.f32 %v1341_v49, 0.0 }
 0x359   : > { %v1767_v60 = vmax.f32 %v1639_v50, %v1647_v52  ;;  %v1809_v61 = vmax.f32 %v1641_v51, %v1649_v55 }
 0x35a   : > { %v1788_v63 = vmax.f32 %v1640_v56, %v1648_v58  ;;  %v1830_v0 = vmax.f32 %v1642_v57, %v1650_v59  ;;  %v1231_v1 = vpop.f32.mrb[20].mxu0  ;;  %v1344_v2 = vpop.f32.mrb[20].mxu1 }
 0x35b   : > { %v1232_v3 = vadd.f32 %v1231_v1, %v3060_v30  ;;  %v1345_v4 = vadd.f32 %v1344_v2, %v3063_v27  ;;  %v1233_v5 = vpop.f32.mrb[21].mxu0  ;;  %v1346_v6 = vpop.f32.mrb[21].mxu1 }
 0x35c   : > { %v1234_v7 = vadd.f32 %v1233_v5, %v3066_v31  ;;  %v1347_v8 = vadd.f32 %v1346_v6, %v3069_v32  ;;  %v1235_v9 = vpop.f32.mrb[22].mxu0  ;;  %v1348_v10 = vpop.f32.mrb[22].mxu1 }
 0x35d   : > { %v1655_v11 = vmax.f32 %v1232_v3, 0.0  ;;  %v1657_v12 = vmax.f32 %v1345_v4, 0.0  ;;  %v1236_v13 = vadd.f32 %v1235_v9, %v3060_v30  ;;  %v1349_v14 = vadd.f32 %v1348_v10, %v3063_v27  ;;  %v1237_v15 = vpop.f32.mrb[23].mxu0  ;;  %v1350_v16 = vpop.f32.mrb[23].mxu1 }
 0x35e   : > { %v1656_v17 = vmax.f32 %v1234_v7, 0.0  ;;  %v1658_v19 = vmax.f32 %v1347_v8, 0.0  ;;  %v1238_v20 = vadd.f32 %v1237_v15, %v3066_v31  ;;  %v1351_v21 = vadd.f32 %v1350_v16, %v3069_v32 }
 0x35f   : > { %v1768_v22 = vmax.f32 %v1767_v60, %v1655_v11  ;;  %v1810_v37 = vmax.f32 %v1809_v61, %v1657_v12  ;;  %v1663_v23 = vmax.f32 %v1236_v13, 0.0  ;;  %v1665_v24 = vmax.f32 %v1349_v14, 0.0 }
 0x360   : > { %v1789_v25 = vmax.f32 %v1788_v63, %v1656_v17  ;;  %v1831_v53 = vmax.f32 %v1830_v0, %v1658_v19  ;;  %v1664_v18 = vmax.f32 %v1238_v20, 0.0  ;;  %v1666_v62 = vmax.f32 %v1351_v21, 0.0 }
 0x361   : > { %v1769_v28 = vmax.f32 %v1768_v22, %v1663_v23  ;;  %v1811_v29 = vmax.f32 %v1810_v37, %v1665_v24 }
 0x362   : > { %v1790_v33 = vmax.f32 %v1789_v25, %v1664_v18  ;;  %v1832_v34 = vmax.f32 %v1831_v53, %v1666_v62  ;;  %v1241_v35 = vpop.f32.mrb[24].mxu0  ;;  %v1354_v38 = vpop.f32.mrb[24].mxu1 }
 0x363   : > { %v1242_v40 = vadd.f32 %v1241_v35, %v3060_v30  ;;  %v1355_v41 = vadd.f32 %v1354_v38, %v3063_v27  ;;  %v1243_v43 = vpop.f32.mrb[25].mxu0  ;;  %v1356_v36 = vpop.f32.mrb[25].mxu1 }
 0x364   : > { %v1244_v39 = vadd.f32 %v1243_v43, %v3066_v31  ;;  %v1357_v42 = vadd.f32 %v1356_v36, %v3069_v32  ;;  %v1245_v44 = vpop.f32.mrb[26].mxu0  ;;  %v1358_v45 = vpop.f32.mrb[26].mxu1 }
 0x365   : > { %v1671_v46 = vmax.f32 %v1242_v40, 0.0  ;;  %v1673_v47 = vmax.f32 %v1355_v41, 0.0  ;;  %v1246_v48 = vadd.f32 %v1245_v44, %v3060_v30  ;;  %v1359_v49 = vadd.f32 %v1358_v45, %v3063_v27  ;;  %v1247_v50 = vpop.f32.mrb[27].mxu0  ;;  %v1360_v51 = vpop.f32.mrb[27].mxu1 }
 0x366   : > { %v1672_v52 = vmax.f32 %v1244_v39, 0.0  ;;  %v1674_v55 = vmax.f32 %v1357_v42, 0.0  ;;  %v1248_v56 = vadd.f32 %v1247_v50, %v3066_v31  ;;  %v1361_v57 = vadd.f32 %v1360_v51, %v3069_v32 }
 0x367   : > { %v1770_v58 = vmax.f32 %v1769_v28, %v1671_v46  ;;  %v1812_v59 = vmax.f32 %v1811_v29, %v1673_v47  ;;  %v1679_v60 = vmax.f32 %v1246_v48, 0.0  ;;  %v1681_v61 = vmax.f32 %v1359_v49, 0.0 }
 0x368   : > { %v1791_v63 = vmax.f32 %v1790_v33, %v1672_v52  ;;  %v1833_v0 = vmax.f32 %v1832_v34, %v1674_v55  ;;  %v1680_v1 = vmax.f32 %v1248_v56, 0.0  ;;  %v1682_v2 = vmax.f32 %v1361_v57, 0.0 }
 0x369   : > { %v1771_v3 = vmax.f32 %v1770_v58, %v1679_v60  ;;  %v1813_v4 = vmax.f32 %v1812_v59, %v1681_v61 }
 0x36a   : > { %v1792_v5 = vmax.f32 %v1791_v63, %v1680_v1  ;;  %v1834_v6 = vmax.f32 %v1833_v0, %v1682_v2  ;;  %v1251_v7 = vpop.f32.mrb[28].mxu0  ;;  %v1364_v8 = vpop.f32.mrb[28].mxu1 }
 0x36b   : > { %v1252_v9 = vadd.f32 %v1251_v7, %v3060_v30  ;;  %v1365_v10 = vadd.f32 %v1364_v8, %v3063_v27  ;;  %v1253_v11 = vpop.f32.mrb[29].mxu0  ;;  %v1366_v12 = vpop.f32.mrb[29].mxu1 }
 0x36c   : > { %v1254_v13 = vadd.f32 %v1253_v11, %v3066_v31  ;;  %v1367_v14 = vadd.f32 %v1366_v12, %v3069_v32  ;;  %v1255_v15 = vpop.f32.mrb[30].mxu0  ;;  %v1368_v16 = vpop.f32.mrb[30].mxu1 }
 0x36d   : > { %v1687_v17 = vmax.f32 %v1252_v9, 0.0  ;;  %v1689_v19 = vmax.f32 %v1365_v10, 0.0  ;;  %v1256_v20 = vadd.f32 %v1255_v15, %v3060_v30  ;;  %v1369_v21 = vadd.f32 %v1368_v16, %v3063_v27  ;;  %v1257_v22 = vpop.f32.mrb[31].mxu0  ;;  %v1370_v37 = vpop.f32.mrb[31].mxu1 }
 0x36e   : > { %v1688_v23 = vmax.f32 %v1254_v13, 0.0  ;;  %v1690_v24 = vmax.f32 %v1367_v14, 0.0  ;;  %v1258_v25 = vadd.f32 %v1257_v22, %v3066_v31  ;;  %v1371_v53 = vadd.f32 %v1370_v37, %v3069_v32 }
 0x36f   : > { %v1772_v18 = vmax.f32 %v1771_v3, %v1687_v17  ;;  %v1814_v62 = vmax.f32 %v1813_v4, %v1689_v19  ;;  %v1695_v28 = vmax.f32 %v1256_v20, 0.0  ;;  %v1697_v29 = vmax.f32 %v1369_v21, 0.0 }
 0x370   : > { %v1793_v33 = vmax.f32 %v1792_v5, %v1688_v23  ;;  %v1835_v34 = vmax.f32 %v1834_v6, %v1690_v24  ;;  %v1696_v35 = vmax.f32 %v1258_v25, 0.0  ;;  %v1698_v38 = vmax.f32 %v1371_v53, 0.0 }
 0x371   : > { %v1773_v40 = vmax.f32 %v1772_v18, %v1695_v28  ;;  %v1815_v41 = vmax.f32 %v1814_v62, %v1697_v29 }
 0x372   : > { %v1794_v43 = vmax.f32 %v1793_v33, %v1696_v35  ;;  %v1836_v36 = vmax.f32 %v1835_v34, %v1698_v38  ;;  %v1261_v39 = vpop.f32.mrb[32].mxu0  ;;  %v1374_v42 = vpop.f32.mrb[32].mxu1 }
 0x373   : > { %v1262_v44 = vadd.f32 %v1261_v39, %v3060_v30  ;;  %v1375_v45 = vadd.f32 %v1374_v42, %v3063_v27  ;;  %v1263_v46 = vpop.f32.mrb[33].mxu0  ;;  %v1376_v47 = vpop.f32.mrb[33].mxu1 }
 0x374   : > { %v1264_v48 = vadd.f32 %v1263_v46, %v3066_v31  ;;  %v1377_v49 = vadd.f32 %v1376_v47, %v3069_v32  ;;  %v1265_v50 = vpop.f32.mrb[34].mxu0  ;;  %v1378_v51 = vpop.f32.mrb[34].mxu1 }
 0x375   : > { %v1703_v52 = vmax.f32 %v1262_v44, 0.0  ;;  %v1705_v55 = vmax.f32 %v1375_v45, 0.0  ;;  %v1266_v56 = vadd.f32 %v1265_v50, %v3060_v30  ;;  %v1379_v57 = vadd.f32 %v1378_v51, %v3063_v27  ;;  %v1267_v58 = vpop.f32.mrb[35].mxu0  ;;  %v1380_v59 = vpop.f32.mrb[35].mxu1 }
 0x376   : > { %v1704_v60 = vmax.f32 %v1264_v48, 0.0  ;;  %v1706_v61 = vmax.f32 %v1377_v49, 0.0  ;;  %v1268_v63 = vadd.f32 %v1267_v58, %v3066_v31  ;;  %v1381_v0 = vadd.f32 %v1380_v59, %v3069_v32 }
 0x377   : > { %v1774_v1 = vmax.f32 %v1773_v40, %v1703_v52  ;;  %v1816_v2 = vmax.f32 %v1815_v41, %v1705_v55  ;;  %v1711_v3 = vmax.f32 %v1266_v56, 0.0  ;;  %v1713_v4 = vmax.f32 %v1379_v57, 0.0 }
 0x378   : > { %v1795_v5 = vmax.f32 %v1794_v43, %v1704_v60  ;;  %v1837_v6 = vmax.f32 %v1836_v36, %v1706_v61  ;;  %v1712_v7 = vmax.f32 %v1268_v63, 0.0  ;;  %v1714_v8 = vmax.f32 %v1381_v0, 0.0 }
 0x379   : > { %v1775_v9 = vmax.f32 %v1774_v1, %v1711_v3  ;;  %v1817_v10 = vmax.f32 %v1816_v2, %v1713_v4  ;;  %v845_v50 = vsub.s32 4, %v3051_v54  ;;  %v853_v57 = vsub.s32 6, %v3051_v54 }
 0x37a   : > { %v1796_v11 = vmax.f32 %v1795_v5, %v1712_v7  ;;  %v1838_v12 = vmax.f32 %v1837_v6, %v1714_v8  ;;  %v1271_v13 = vpop.f32.mrb[36].mxu0  ;;  %v1384_v14 = vpop.f32.mrb[36].mxu1  ;;  %v849_v58 = vsub.s32 5, %v3051_v54  ;;  %v2650_v0 = vmov 1966171168  }
 0x37b   : > { %v1272_v15 = vadd.f32 %v1271_v13, %v3060_v30  ;;  %v1385_v16 = vadd.f32 %v1384_v14, %v3063_v27  ;;  %v1273_v17 = vpop.f32.mrb[37].mxu0  ;;  %v1386_v19 = vpop.f32.mrb[37].mxu1  ;;  %v1949_v1 = vunpack.c.l.s4 %v2650_v0  ;;  %v857_v2 = vsub.s32 7, %v3051_v54 }
 0x37c   : > { %v1274_v20 = vadd.f32 %v1273_v17, %v3066_v31  ;;  %v1387_v21 = vadd.f32 %v1386_v19, %v3069_v32  ;;  %v1275_v22 = vpop.f32.mrb[38].mxu0  ;;  %v1388_v37 = vpop.f32.mrb[38].mxu1 }
 0x37d   : > { %v1719_v23 = vmax.f32 %v1272_v15, 0.0  ;;  %v1721_v24 = vmax.f32 %v1385_v16, 0.0  ;;  %v1276_v25 = vadd.f32 %v1275_v22, %v3060_v30  ;;  %v1389_v53 = vadd.f32 %v1388_v37, %v3063_v27  ;;  %v1277_v18 = vpop.f32.mrb[39].mxu0  ;;  %v1390_v62 = vpop.f32.mrb[39].mxu1 }
 0x37e   : > { %v1720_v28 = vmax.f32 %v1274_v20, 0.0  ;;  %v1722_v29 = vmax.f32 %v1387_v21, 0.0  ;;  %v1278_v33 = vadd.f32 %v1277_v18, %v3066_v31  ;;  %v1391_v34 = vadd.f32 %v1390_v62, %v3069_v32 }
 0x37f   : > { %v1776_v35 = vmax.f32 %v1775_v9, %v1719_v23  ;;  %v1818_v38 = vmax.f32 %v1817_v10, %v1721_v24  ;;  %v1727_v40 = vmax.f32 %v1276_v25, 0.0  ;;  %v1729_v41 = vmax.f32 %v1389_v53, 0.0 }
 0x380   : > { %v1797_v43 = vmax.f32 %v1796_v11, %v1720_v28  ;;  %v1839_v36 = vmax.f32 %v1838_v12, %v1722_v29  ;;  %v1728_v39 = vmax.f32 %v1278_v33, 0.0  ;;  %v1730_v42 = vmax.f32 %v1391_v34, 0.0 }
 0x381   : > { %v1777_v44 = vmax.f32 %v1776_v35, %v1727_v40  ;;  %v1819_v45 = vmax.f32 %v1818_v38, %v1729_v41  ;;  %v3132_v18 = vrot.slane %v3055_v26, %v845_v50  ;;  %v3137_v34 = vrot.slane %v3055_v26, %v853_v57 }
 0x382   : > { %v1798_v46 = vmax.f32 %v1797_v43, %v1728_v39  ;;  %v1840_v47 = vmax.f32 %v1839_v36, %v1730_v42  ;;  %v1281_v48 = vpop.f32.mrb[40].mxu0  ;;  %v1394_v49 = vpop.f32.mrb[40].mxu1  ;;  %v3140_v35 = vrot.slane %v3055_v26, %v849_v58  ;;  %v1950_v36 = vunpack.c.0.s8 %v1949_v1 }
 0x383   : > { %v1282_v51 = vadd.f32 %v1281_v48, %v3060_v30  ;;  %v1395_v52 = vadd.f32 %v1394_v49, %v3063_v27  ;;  %v1283_v55 = vpop.f32.mrb[41].mxu0  ;;  %v1396_v56 = vpop.f32.mrb[41].mxu1  ;;  %v3145_v39 = vrot.slane %v3055_v26, %v857_v2 }
 0x384   : > { %v1284_v59 = vadd.f32 %v1283_v55, %v3066_v31  ;;  %v1397_v60 = vadd.f32 %v1396_v56, %v3069_v32  ;;  %v1285_v61 = vpop.f32.mrb[42].mxu0  ;;  %v1398_v63 = vpop.f32.mrb[42].mxu1 }
 0x385   : > { %v1735_v3 = vmax.f32 %v1282_v51, 0.0  ;;  %v1737_v4 = vmax.f32 %v1395_v52, 0.0  ;;  %v1286_v5 = vadd.f32 %v1285_v61, %v3060_v30  ;;  %v1399_v6 = vadd.f32 %v1398_v63, %v3063_v27  ;;  %v1287_v7 = vpop.f32.mrb[43].mxu0  ;;  %v1400_v8 = vpop.f32.mrb[43].mxu1 }
 0x386   : > { %v1736_v9 = vmax.f32 %v1284_v59, 0.0  ;;  %v1738_v10 = vmax.f32 %v1397_v60, 0.0  ;;  %v1288_v11 = vadd.f32 %v1287_v7, %v3066_v31  ;;  %v1401_v12 = vadd.f32 %v1400_v8, %v3069_v32 }
 0x387   : > { %v1778_v13 = vmax.f32 %v1777_v44, %v1735_v3  ;;  %v1820_v14 = vmax.f32 %v1819_v45, %v1737_v4  ;;  %v1743_v15 = vmax.f32 %v1286_v5, 0.0  ;;  %v1745_v16 = vmax.f32 %v1399_v6, 0.0 }
 0x388   : > { %v1799_v17 = vmax.f32 %v1798_v46, %v1736_v9  ;;  %v1841_v19 = vmax.f32 %v1840_v47, %v1738_v10  ;;  %v1744_v20 = vmax.f32 %v1288_v11, 0.0  ;;  %v1746_v21 = vmax.f32 %v1401_v12, 0.0 }
 0x389   : > { %v1779_v22 = vmax.f32 %v1778_v13, %v1743_v15  ;;  %v1821_v37 = vmax.f32 %v1820_v14, %v1745_v16 }
 0x38a   : > { %v1800_v23 = vmax.f32 %v1799_v17, %v1744_v20  ;;  %v1842_v24 = vmax.f32 %v1841_v19, %v1746_v21  ;;  %v1291_v25 = vpop.f32.mrb[44].mxu0  ;;  %v1404_v53 = vpop.f32.mrb[44].mxu1 }
 0x38b   : > { %v1292_v62 = vadd.f32 %v1291_v25, %v3060_v30  ;;  %v1405_v28 = vadd.f32 %v1404_v53, %v3063_v27  ;;  %v1293_v29 = vpop.f32.mrb[45].mxu0  ;;  %v1406_v33 = vpop.f32.mrb[45].mxu1 }
 0x38c   : > { %v1294_v38 = vadd.f32 %v1293_v29, %v3066_v31  ;;  %v1407_v40 = vadd.f32 %v1406_v33, %v3069_v32  ;;  %v1295_v41 = vpop.f32.mrb[46].mxu0  ;;  %v1408_v43 = vpop.f32.mrb[46].mxu1 }
 0x38d   : > { %v1751_v42 = vmax.f32 %v1292_v62, 0.0  ;;  %v1753_v44 = vmax.f32 %v1405_v28, 0.0  ;;  %v1296_v45 = vadd.f32 %v1295_v41, %v3060_v30  ;;  %v1409_v46 = vadd.f32 %v1408_v43, %v3063_v27  ;;  %v1297_v47 = vpop.f32.mrb[47].mxu0  ;;  %v1410_v48 = vpop.f32.mrb[47].mxu1 }
 0x38e   : > { %v1752_v49 = vmax.f32 %v1294_v38, 0.0  ;;  %v1754_v50 = vmax.f32 %v1407_v40, 0.0  ;;  %v1298_v51 = vadd.f32 %v1297_v47, %v3066_v31  ;;  %v1411_v52 = vadd.f32 %v1410_v48, %v3069_v32 }
 0x38f   : > { %v1780_v55 = vmax.f32 %v1779_v22, %v1751_v42  ;;  %v1822_v56 = vmax.f32 %v1821_v37, %v1753_v44  ;;  %v1759_v57 = vmax.f32 %v1296_v45, 0.0  ;;  %v1761_v58 = vmax.f32 %v1409_v46, 0.0 }
 0x390   : > { %v1801_v26 = vmax.f32 %v1800_v23, %v1752_v49  ;;  %v1843_v59 = vmax.f32 %v1842_v24, %v1754_v50  ;;  %v1760_v60 = vmax.f32 %v1298_v51, 0.0  ;;  %v1762_v61 = vmax.f32 %v1411_v52, 0.0 }
 0x391   : > { %v1781_v63 = vmax.f32 %v1780_v55, %v1759_v57  ;;  %v1823_v30 = vmax.f32 %v1822_v56, %v1761_v58  ;;  %v3152_v27 = vsub.s32 %v1950_v36, %v3051_v54 }
 0x392   : > { %v1802_v0 = vmax.f32 %v1801_v26, %v1760_v60  ;;  %v1844_v1 = vmax.f32 %v1843_v59, %v1762_v61  ;;  %v1447_v2 = vpop.f32.mrb[48].mxu0  ;;  %v1560_v3 = vpop.f32.mrb[48].mxu1 }
 0x393   : > { %v1782_v31 = vrot.slane %v1781_v63, 4  ;;  %v1824_v4 = vrot.slane %v1823_v30, 4  ;;  %v1448_v32 = vadd.f32 %v1447_v2, %v3132_v18  ;;  %v1561_v5 = vadd.f32 %v1560_v3, %v3137_v34  ;;  %v1449_v6 = vpop.f32.mrb[49].mxu0  ;;  %v1562_v7 = vpop.f32.mrb[49].mxu1 }
 0x394   : > { %v1803_v8 = vrot.slane %v1802_v0, 4  ;;  %v1845_v9 = vrot.slane %v1844_v1, 4  ;;  %v1450_v10 = vadd.f32 %v1449_v6, %v3140_v35  ;;  %v1563_v11 = vadd.f32 %v1562_v7, %v3145_v39  ;;  %v1451_v12 = vpop.f32.mrb[50].mxu0  ;;  %v1564_v54 = vpop.f32.mrb[50].mxu1 }
 0x395   : > { %v1783_v13 = vmax.f32 %v1781_v63, %v1782_v31  ;;  %v1825_v14 = vmax.f32 %v1823_v30, %v1824_v4  ;;  %v1643_v15 = vmax.f32 %v1448_v32, 0.0  ;;  %v1645_v16 = vmax.f32 %v1561_v5, 0.0  ;;  %v1453_v17 = vpop.f32.mrb[51].mxu0  ;;  %v1566_v19 = vpop.f32.mrb[51].mxu1 }
 0x396   : > { %v1804_v20 = vmax.f32 %v1802_v0, %v1803_v8  ;;  %v1846_v21 = vmax.f32 %v1844_v1, %v1845_v9  ;;  %v1644_v22 = vmax.f32 %v1450_v10, 0.0  ;;  %v1646_v37 = vmax.f32 %v1563_v11, 0.0 }
 0x397   : > { %v1784_v23 = vrot.slane %v1783_v13, 2  ;;  %v1826_v24 = vrot.slane %v1825_v14, 2  ;;  %v1452_v25 = vadd.f32 %v1451_v12, %v3132_v18  ;;  %v1565_v53 = vadd.f32 %v1564_v54, %v3137_v34 }
 0x398   : > { %v1805_v62 = vrot.slane %v1804_v20, 2  ;;  %v1847_v28 = vrot.slane %v1846_v21, 2  ;;  %v1454_v29 = vadd.f32 %v1453_v17, %v3140_v35  ;;  %v1567_v33 = vadd.f32 %v1566_v19, %v3145_v39 }
 0x399   : > { %v1785_v38 = vmax.f32 %v1783_v13, %v1784_v23  ;;  %v1827_v40 = vmax.f32 %v1825_v14, %v1826_v24  ;;  %v1651_v41 = vmax.f32 %v1452_v25, 0.0  ;;  %v1653_v43 = vmax.f32 %v1565_v53, 0.0 }
 0x39a   : > { %v1806_v36 = vmax.f32 %v1804_v20, %v1805_v62  ;;  %v1848_v42 = vmax.f32 %v1846_v21, %v1847_v28  ;;  %v1652_v44 = vmax.f32 %v1454_v29, 0.0  ;;  %v1654_v45 = vmax.f32 %v1567_v33, 0.0  ;;  %v1457_v46 = vpop.f32.mrb[52].mxu0  ;;  %v1570_v47 = vpop.f32.mrb[52].mxu1 }
 0x39b   : > { %v1786_v48 = vrot.slane %v1785_v38, 1  ;;  %v1828_v49 = vrot.slane %v1827_v40, 1  ;;  %v1851_v50 = vmax.f32 %v1643_v15, %v1651_v41  ;;  %v1893_v51 = vmax.f32 %v1645_v16, %v1653_v43  ;;  %v1459_v52 = vpop.f32.mrb[53].mxu0  ;;  %v1572_v55 = vpop.f32.mrb[53].mxu1 }
 0x39c   : > { %v1807_v56 = vrot.slane %v1806_v36, 1  ;;  %v1849_v57 = vrot.slane %v1848_v42, 1  ;;  %v1872_v58 = vmax.f32 %v1644_v22, %v1652_v44  ;;  %v1914_v26 = vmax.f32 %v1646_v37, %v1654_v45  ;;  %v1461_v59 = vpop.f32.mrb[54].mxu0  ;;  %v1574_v60 = vpop.f32.mrb[54].mxu1 }
 0x39d   : > { %v1787_v61 = vmax.f32 %v1785_v38, %v1786_v48  ;;  %v1829_v63 = vmax.f32 %v1827_v40, %v1828_v49  ;;  %v1458_v30 = vadd.f32 %v1457_v46, %v3132_v18  ;;  %v1571_v0 = vadd.f32 %v1570_v47, %v3137_v34  ;;  %v1463_v1 = vpop.f32.mrb[55].mxu0  ;;  %v1576_v2 = vpop.f32.mrb[55].mxu1 }
 0x39e   : > { %v1808_v3 = vmax.f32 %v1806_v36, %v1807_v56  ;;  %v1850_v31 = vmax.f32 %v1848_v42, %v1849_v57  ;;  %v1460_v4 = vadd.f32 %v1459_v52, %v3140_v35  ;;  %v1573_v32 = vadd.f32 %v1572_v55, %v3145_v39 }
 0x39f   : > { %v1659_v5 = vmax.f32 %v1458_v30, 0.0  ;;  %v1661_v6 = vmax.f32 %v1571_v0, 0.0  ;;  %v1462_v7 = vadd.f32 %v1461_v59, %v3132_v18  ;;  %v1575_v8 = vadd.f32 %v1574_v60, %v3137_v34 }
 0x3a0   : > { %v1944_v9 = vcombine.low %v1787_v61, %v1808_v3  ;;  %v1945_v10 = vcombine.low %v1829_v63, %v1850_v31  ;;  %v1660_v11 = vmax.f32 %v1460_v4, 0.0  ;;  %v1662_v12 = vmax.f32 %v1573_v32, 0.0 }
 0x3a1   : > { %v1852_v54 = vmax.f32 %v1851_v50, %v1659_v5  ;;  %v1894_v13 = vmax.f32 %v1893_v51, %v1661_v6  ;;  %v1667_v14 = vmax.f32 %v1462_v7, 0.0  ;;  %v1669_v15 = vmax.f32 %v1575_v8, 0.0 }
 0x3a2   : > { %v3169_v16 = vrot.slane %v1944_v9, %v3152_v27  ;;  %v3172_v17 = vrot.slane %v1945_v10, %v3152_v27  ;;  %v1873_v19 = vmax.f32 %v1872_v58, %v1660_v11  ;;  %v1915_v20 = vmax.f32 %v1914_v26, %v1662_v12  ;;  %v1467_v21 = vpop.f32.mrb[56].mxu0  ;;  %v1580_v22 = vpop.f32.mrb[56].mxu1 }
 0x3a3   : > { %v1853_v37 = vmax.f32 %v1852_v54, %v1667_v14  ;;  %v1895_v23 = vmax.f32 %v1894_v13, %v1669_v15  ;;  %v1464_v24 = vadd.f32 %v1463_v1, %v3140_v35  ;;  %v1577_v25 = vadd.f32 %v1576_v2, %v3145_v39  ;;  %v1469_v53 = vpop.f32.mrb[57].mxu0  ;;  %v1582_v62 = vpop.f32.mrb[57].mxu1 }
 0x3a4   : > { %v1976_v28 = vcombine.low %v3169_v16, %v3172_v17  ;;  %v1468_v29 = vadd.f32 %v1467_v21, %v3132_v18  ;;  %v1581_v33 = vadd.f32 %v1580_v22, %v3137_v34  ;;  %v1470_v38 = vadd.f32 %v1469_v53, %v3140_v35  ;;  %v1471_v40 = vpop.f32.mrb[58].mxu0  ;;  %v1584_v41 = vpop.f32.mrb[58].mxu1 }
 0x3a5   : > { %v1668_v43 = vmax.f32 %v1464_v24, 0.0  ;;  %v1670_v36 = vmax.f32 %v1577_v25, 0.0  ;;  %v1583_v42 = vadd.f32 %v1582_v62, %v3145_v39  ;;  %v1472_v44 = vadd.f32 %v1471_v40, %v3132_v18  ;;  %v1473_v45 = vpop.f32.mrb[59].mxu0  ;;  %v1586_v46 = vpop.f32.mrb[59].mxu1 }
 0x3a6   : > { %v1675_v47 = vmax.f32 %v1468_v29, 0.0  ;;  %v1677_v48 = vmax.f32 %v1581_v33, 0.0  ;;  %v1676_v49 = vmax.f32 %v1470_v38, 0.0  ;;  %v1585_v58 = vadd.f32 %v1584_v41, %v3137_v34 }
 0x3a7   : > { %v1874_v50 = vmax.f32 %v1873_v19, %v1668_v43  ;;  %v1916_v51 = vmax.f32 %v1915_v20, %v1670_v36  ;;  %v1678_v52 = vmax.f32 %v1583_v42, 0.0  ;;  %v1683_v55 = vmax.f32 %v1472_v44, 0.0 }
 0x3a8   : > { %v1854_v56 = vmax.f32 %v1853_v37, %v1675_v47  ;;  %v1896_v57 = vmax.f32 %v1895_v23, %v1677_v48  ;;  %v1474_v26 = vadd.f32 %v1473_v45, %v3140_v35  ;;  %v1587_v61 = vadd.f32 %v1586_v46, %v3145_v39 }
 0x3a9   : > { %v1875_v59 = vmax.f32 %v1874_v50, %v1676_v49  ;;  %v1917_v60 = vmax.f32 %v1916_v51, %v1678_v52  ;;  %v1685_v30 = vmax.f32 %v1585_v58, 0.0 }
 0x3aa   : > { %v1855_v63 = vmax.f32 %v1854_v56, %v1683_v55  ;;  %v1684_v0 = vmax.f32 %v1474_v26, 0.0  ;;  %v1477_v1 = vpop.f32.mrb[60].mxu0  ;;  %v1590_v2 = vpop.f32.mrb[60].mxu1  ;;  %v1686_v3 = vmax.f32 %v1587_v61, 0.0 }
 0x3ab   : > { %v1478_v31 = vadd.f32 %v1477_v1, %v3132_v18  ;;  %v1591_v4 = vadd.f32 %v1590_v2, %v3137_v34  ;;  %v1479_v32 = vpop.f32.mrb[61].mxu0  ;;  %v1592_v5 = vpop.f32.mrb[61].mxu1  ;;  %v1897_v6 = vmax.f32 %v1896_v57, %v1685_v30 }
 0x3ac   : > { %v1876_v7 = vmax.f32 %v1875_v59, %v1684_v0  ;;  %v1480_v8 = vadd.f32 %v1479_v32, %v3140_v35  ;;  %v1593_v9 = vadd.f32 %v1592_v5, %v3145_v39  ;;  %v1481_v10 = vpop.f32.mrb[62].mxu0  ;;  %v1594_v11 = vpop.f32.mrb[62].mxu1  ;;  %v1918_v12 = vmax.f32 %v1917_v60, %v1686_v3 }
 0x3ad   : > { %v1691_v54 = vmax.f32 %v1478_v31, 0.0  ;;  %v1693_v13 = vmax.f32 %v1591_v4, 0.0  ;;  %v1482_v14 = vadd.f32 %v1481_v10, %v3132_v18  ;;  %v1483_v15 = vpop.f32.mrb[63].mxu0  ;;  %v1596_v19 = vpop.f32.mrb[63].mxu1  ;;  %v1595_v22 = vadd.f32 %v1594_v11, %v3137_v34 }
 0x3ae   : > { %v1692_v20 = vmax.f32 %v1480_v8, 0.0  ;;  %v1694_v21 = vmax.f32 %v1593_v9, 0.0  ;;  %v1484_v37 = vadd.f32 %v1483_v15, %v3140_v35  ;;  %v1597_v53 = vadd.f32 %v1596_v19, %v3145_v39 }
 0x3af   : > { %v1856_v23 = vmax.f32 %v1855_v63, %v1691_v54  ;;  %v1898_v24 = vmax.f32 %v1897_v6, %v1693_v13  ;;  %v1699_v25 = vmax.f32 %v1482_v14, 0.0  ;;  %v1701_v33 = vmax.f32 %v1595_v22, 0.0 }
 0x3b0   : > { %v1877_v62 = vmax.f32 %v1876_v7, %v1692_v20  ;;  %v1919_v29 = vmax.f32 %v1918_v12, %v1694_v21  ;;  %v1700_v38 = vmax.f32 %v1484_v37, 0.0  ;;  %v1702_v41 = vmax.f32 %v1597_v53, 0.0 }
 0x3b1   : > { %v1857_v40 = vmax.f32 %v1856_v23, %v1699_v25  ;;  %v1899_v43 = vmax.f32 %v1898_v24, %v1701_v33 }
 0x3b2   : > { %v1878_v36 = vmax.f32 %v1877_v62, %v1700_v38  ;;  %v1487_v42 = vpop.f32.mrb[64].mxu0  ;;  %v1600_v44 = vpop.f32.mrb[64].mxu1  ;;  %v1920_v45 = vmax.f32 %v1919_v29, %v1702_v41 }
 0x3b3   : > { %v1488_v46 = vadd.f32 %v1487_v42, %v3132_v18  ;;  %v1601_v47 = vadd.f32 %v1600_v44, %v3137_v34  ;;  %v1489_v48 = vpop.f32.mrb[65].mxu0  ;;  %v1602_v49 = vpop.f32.mrb[65].mxu1 }
 0x3b4   : > { %v1490_v50 = vadd.f32 %v1489_v48, %v3140_v35  ;;  %v1603_v51 = vadd.f32 %v1602_v49, %v3145_v39  ;;  %v1491_v52 = vpop.f32.mrb[66].mxu0  ;;  %v1604_v55 = vpop.f32.mrb[66].mxu1 }
 0x3b5   : > { %v1707_v56 = vmax.f32 %v1488_v46, 0.0  ;;  %v1709_v57 = vmax.f32 %v1601_v47, 0.0  ;;  %v1492_v58 = vadd.f32 %v1491_v52, %v3132_v18  ;;  %v1605_v26 = vadd.f32 %v1604_v55, %v3137_v34  ;;  %v1493_v59 = vpop.f32.mrb[67].mxu0  ;;  %v1606_v60 = vpop.f32.mrb[67].mxu1 }
 0x3b6   : > { %v1708_v61 = vmax.f32 %v1490_v50, 0.0  ;;  %v1710_v63 = vmax.f32 %v1603_v51, 0.0  ;;  %v1494_v30 = vadd.f32 %v1493_v59, %v3140_v35  ;;  %v1607_v0 = vadd.f32 %v1606_v60, %v3145_v39 }
 0x3b7   : > { %v1858_v1 = vmax.f32 %v1857_v40, %v1707_v56  ;;  %v1900_v2 = vmax.f32 %v1899_v43, %v1709_v57  ;;  %v1715_v3 = vmax.f32 %v1492_v58, 0.0  ;;  %v1717_v31 = vmax.f32 %v1605_v26, 0.0 }
 0x3b8   : > { %v1879_v4 = vmax.f32 %v1878_v36, %v1708_v61  ;;  %v1921_v32 = vmax.f32 %v1920_v45, %v1710_v63  ;;  %v1716_v5 = vmax.f32 %v1494_v30, 0.0  ;;  %v1718_v6 = vmax.f32 %v1607_v0, 0.0 }
 0x3b9   : > { %v1859_v7 = vmax.f32 %v1858_v1, %v1715_v3  ;;  %v1901_v8 = vmax.f32 %v1900_v2, %v1717_v31 }
 0x3ba   : > { %v1880_v9 = vmax.f32 %v1879_v4, %v1716_v5  ;;  %v1922_v10 = vmax.f32 %v1921_v32, %v1718_v6  ;;  %v1497_v11 = vpop.f32.mrb[68].mxu0  ;;  %v1610_v12 = vpop.f32.mrb[68].mxu1 }
 0x3bb   : > { %v1498_v54 = vadd.f32 %v1497_v11, %v3132_v18  ;;  %v1611_v13 = vadd.f32 %v1610_v12, %v3137_v34  ;;  %v1499_v14 = vpop.f32.mrb[69].mxu0  ;;  %v1612_v15 = vpop.f32.mrb[69].mxu1 }
 0x3bc   : > { %v1500_v19 = vadd.f32 %v1499_v14, %v3140_v35  ;;  %v1613_v20 = vadd.f32 %v1612_v15, %v3145_v39  ;;  %v1501_v21 = vpop.f32.mrb[70].mxu0  ;;  %v1614_v22 = vpop.f32.mrb[70].mxu1 }
 0x3bd   : > { %v1723_v37 = vmax.f32 %v1498_v54, 0.0  ;;  %v1725_v23 = vmax.f32 %v1611_v13, 0.0  ;;  %v1502_v24 = vadd.f32 %v1501_v21, %v3132_v18  ;;  %v1615_v25 = vadd.f32 %v1614_v22, %v3137_v34  ;;  %v1503_v53 = vpop.f32.mrb[71].mxu0  ;;  %v1616_v62 = vpop.f32.mrb[71].mxu1 }
 0x3be   : > { %v1724_v29 = vmax.f32 %v1500_v19, 0.0  ;;  %v1726_v33 = vmax.f32 %v1613_v20, 0.0  ;;  %v1504_v38 = vadd.f32 %v1503_v53, %v3140_v35  ;;  %v1617_v40 = vadd.f32 %v1616_v62, %v3145_v39 }
 0x3bf   : > { %v1860_v41 = vmax.f32 %v1859_v7, %v1723_v37  ;;  %v1902_v43 = vmax.f32 %v1901_v8, %v1725_v23  ;;  %v1731_v36 = vmax.f32 %v1502_v24, 0.0  ;;  %v1733_v42 = vmax.f32 %v1615_v25, 0.0 }
 0x3c0   : > { %v1881_v44 = vmax.f32 %v1880_v9, %v1724_v29  ;;  %v1923_v45 = vmax.f32 %v1922_v10, %v1726_v33  ;;  %v1732_v46 = vmax.f32 %v1504_v38, 0.0  ;;  %v1734_v47 = vmax.f32 %v1617_v40, 0.0 }
 0x3c1   : > { %v1861_v48 = vmax.f32 %v1860_v41, %v1731_v36  ;;  %v1903_v49 = vmax.f32 %v1902_v43, %v1733_v42 }
 0x3c2   : > { %v1882_v50 = vmax.f32 %v1881_v44, %v1732_v46  ;;  %v1924_v51 = vmax.f32 %v1923_v45, %v1734_v47  ;;  %v1507_v52 = vpop.f32.mrb[72].mxu0  ;;  %v1620_v55 = vpop.f32.mrb[72].mxu1 }
 0x3c3   : > { %v1508_v56 = vadd.f32 %v1507_v52, %v3132_v18  ;;  %v1621_v57 = vadd.f32 %v1620_v55, %v3137_v34  ;;  %v1509_v58 = vpop.f32.mrb[73].mxu0  ;;  %v1622_v26 = vpop.f32.mrb[73].mxu1 }
 0x3c4   : > { %v1510_v59 = vadd.f32 %v1509_v58, %v3140_v35  ;;  %v1623_v60 = vadd.f32 %v1622_v26, %v3145_v39  ;;  %v1511_v61 = vpop.f32.mrb[74].mxu0  ;;  %v1624_v63 = vpop.f32.mrb[74].mxu1 }
 0x3c5   : > { %v1739_v30 = vmax.f32 %v1508_v56, 0.0  ;;  %v1741_v0 = vmax.f32 %v1621_v57, 0.0  ;;  %v1512_v1 = vadd.f32 %v1511_v61, %v3132_v18  ;;  %v1625_v2 = vadd.f32 %v1624_v63, %v3137_v34  ;;  %v1513_v3 = vpop.f32.mrb[75].mxu0  ;;  %v1626_v31 = vpop.f32.mrb[75].mxu1 }
 0x3c6   : > { %v1740_v4 = vmax.f32 %v1510_v59, 0.0  ;;  %v1742_v32 = vmax.f32 %v1623_v60, 0.0  ;;  %v1514_v5 = vadd.f32 %v1513_v3, %v3140_v35  ;;  %v1627_v6 = vadd.f32 %v1626_v31, %v3145_v39 }
 0x3c7   : > { %v1862_v7 = vmax.f32 %v1861_v48, %v1739_v30  ;;  %v1904_v8 = vmax.f32 %v1903_v49, %v1741_v0  ;;  %v1747_v9 = vmax.f32 %v1512_v1, 0.0  ;;  %v1749_v10 = vmax.f32 %v1625_v2, 0.0 }
 0x3c8   : > { %v1883_v11 = vmax.f32 %v1882_v50, %v1740_v4  ;;  %v1925_v12 = vmax.f32 %v1924_v51, %v1742_v32  ;;  %v1748_v54 = vmax.f32 %v1514_v5, 0.0  ;;  %v1750_v13 = vmax.f32 %v1627_v6, 0.0 }
 0x3c9   : > { %v1863_v14 = vmax.f32 %v1862_v7, %v1747_v9  ;;  %v1905_v15 = vmax.f32 %v1904_v8, %v1749_v10 }
 0x3ca   : > { %v1884_v19 = vmax.f32 %v1883_v11, %v1748_v54  ;;  %v1926_v20 = vmax.f32 %v1925_v12, %v1750_v13  ;;  %v1517_v21 = vpop.f32.mrb[76].mxu0  ;;  %v1630_v22 = vpop.f32.mrb[76].mxu1 }
 0x3cb   : > { %v1518_v37 = vadd.f32 %v1517_v21, %v3132_v18  ;;  %v1631_v23 = vadd.f32 %v1630_v22, %v3137_v34  ;;  %v1519_v24 = vpop.f32.mrb[77].mxu0  ;;  %v1632_v25 = vpop.f32.mrb[77].mxu1  ;;  %v1984_v22 = vrot.slane %v1976_v28, %v3152_v27 }
 0x3cc   : > { %v1520_v53 = vadd.f32 %v1519_v24, %v3140_v35  ;;  %v1633_v62 = vadd.f32 %v1632_v25, %v3145_v39  ;;  %v1521_v29 = vpop.f32.mrb[78].mxu0  ;;  %v1634_v33 = vpop.f32.mrb[78].mxu1 }
 0x3cd   : > { %v1755_v38 = vmax.f32 %v1518_v37, 0.0  ;;  %v1757_v40 = vmax.f32 %v1631_v23, 0.0  ;;  %v1522_v41 = vadd.f32 %v1521_v29, %v3132_v18  ;;  %v1635_v43 = vadd.f32 %v1634_v33, %v3137_v34  ;;  %v1523_v36 = vpop.f32.mrb[79].mxu0  ;;  %v1636_v42 = vpop.f32.mrb[79].mxu1  ;;  %v1935_v23 = vld [vmem:[%s2889_s17] sm:$0xff] }
 0x3ce   : > { %v1756_v44 = vmax.f32 %v1520_v53, 0.0  ;;  %v1758_v45 = vmax.f32 %v1633_v62, 0.0  ;;  %v1524_v46 = vadd.f32 %v1523_v36, %v3140_v35  ;;  %v1637_v47 = vadd.f32 %v1636_v42, %v3145_v39 }
 0x3cf   : > { %v1864_v48 = vmax.f32 %v1863_v14, %v1755_v38  ;;  %v1906_v49 = vmax.f32 %v1905_v15, %v1757_v40  ;;  %v1763_v50 = vmax.f32 %v1522_v41, 0.0  ;;  %v1765_v51 = vmax.f32 %v1635_v43, 0.0 }
 0x3d0   : > { %v1885_v52 = vmax.f32 %v1884_v19, %v1756_v44  ;;  %v1927_v55 = vmax.f32 %v1926_v20, %v1758_v45  ;;  %v1764_v56 = vmax.f32 %v1524_v46, 0.0  ;;  %v1766_v57 = vmax.f32 %v1637_v47, 0.0 }
 0x3d1   : > { %v1865_v58 = vmax.f32 %v1864_v48, %v1763_v50  ;;  %v1907_v18 = vmax.f32 %v1906_v49, %v1765_v51 }
 0x3d2   : > { %v1886_v26 = vmax.f32 %v1885_v52, %v1764_v56  ;;  %v1928_v34 = vmax.f32 %v1927_v55, %v1766_v57 }
 0x3d3   : > { %v1866_v59 = vrot.slane %v1865_v58, 4  ;;  %v1908_v60 = vrot.slane %v1907_v18, 4 }
 0x3d4   : > { %v1887_v61 = vrot.slane %v1886_v26, 4  ;;  %v1929_v63 = vrot.slane %v1928_v34, 4 }
 0x3d5   : > { %v1867_v30 = vmax.f32 %v1865_v58, %v1866_v59  ;;  %v1909_v35 = vmax.f32 %v1907_v18, %v1908_v60 }
 0x3d6   : > { %v1888_v0 = vmax.f32 %v1886_v26, %v1887_v61  ;;  %v1930_v39 = vmax.f32 %v1928_v34, %v1929_v63 }
 0x3d7   : > { %v1868_v1 = vrot.slane %v1867_v30, 2  ;;  %v1910_v2 = vrot.slane %v1909_v35, 2 }
 0x3d8   : > { %v1889_v3 = vrot.slane %v1888_v0, 2  ;;  %v1931_v31 = vrot.slane %v1930_v39, 2 }
 0x3d9   : > { %v1869_v4 = vmax.f32 %v1867_v30, %v1868_v1  ;;  %v1911_v32 = vmax.f32 %v1909_v35, %v1910_v2 }
 0x3da   : > { %v1890_v5 = vmax.f32 %v1888_v0, %v1889_v3  ;;  %v1932_v6 = vmax.f32 %v1930_v39, %v1931_v31 }
 0x3db   : > { %v1870_v7 = vrot.slane %v1869_v4, 1  ;;  %v1912_v8 = vrot.slane %v1911_v32, 1 }
 0x3dc   : > { %v1891_v9 = vrot.slane %v1890_v5, 1  ;;  %v1933_v10 = vrot.slane %v1932_v6, 1 }
 0x3dd   : > { %v1871_v11 = vmax.f32 %v1869_v4, %v1870_v7  ;;  %v1913_v12 = vmax.f32 %v1911_v32, %v1912_v8 }
 0x3de   : > { %v1892_v54 = vmax.f32 %v1890_v5, %v1891_v9  ;;  %v1934_v13 = vmax.f32 %v1932_v6, %v1933_v10 }
 0x3e0   : > { %v1946_v14 = vcombine.low %v1871_v11, %v1892_v54  ;;  %v1947_v15 = vcombine.low %v1913_v12, %v1934_v13 }
 0x3e2   : > { %v1968_v19 = vrot.slane %v1946_v14, %v3152_v27  ;;  %v1975_v20 = vrot.slane %v1947_v15, %v3152_v27 }
 0x3e4   : > { %v1977_v21 = vcombine.low %v1968_v19, %v1975_v20 }
 0x3e6   : > { %v1991_v37 = vrot.slane %v1977_v21, %v3152_v27 }
 0x3e8   : > { %v1992_v24 = vcombine.low %v1984_v22, %v1991_v37 }
 0x3ea   : > { %v1994_v25 = vmax.f32 %v1935_v23, %v1992_v24 }
 0x3ec   : > { %1995 = vst [vmem:[%s2889_s17] sm:$0xff] %v1994_v25 }
 0x3ed PF: > { %s21_s28 = sadd.s32 1, %s2635_s28   ;;  %s3272_s24 = smov %s2627_s26 }
 0x3ee   : > { %p18_p10 = scmp.ge.s32.totalorder %s21_s28, 6   ;;  %s3273_s25 = smov %s2631_s27 }
 0x3ef   : > { %s3274_s26 = smov %s3277_s29  ;;  %s3275_s27 = smov %s3281_s8 }
 0x3f0   :  { %20 = sbr.rel (!%p18_p10) target bundleno = 9 (0x9), region = 107 }
 0x3f7   :  { %2015 = vsyncpa [#allocation3], 1 }
 0x3f8   :  { %2017 = vsyncpa [#allocation3 + $0x1], 1 }
 0x3f9   :  { %2018 = vsyncpa [#allocation5], 1 }
 0x3fa   :  { %2019 = vsyncpa [#allocation8], 1 }
 0x3fb   :  { %2020 = vsyncpa [#allocation11], 1 }

// kernel: pointnet_cls_forward.5
= control target key start
LH: loop header
LB: loop body
LE: loop exit
PB: predicated region body
PF: predicated region fallthrough
CT: control target
= control target key end

     0   :  { %12 = vsyncpa [#allocation3], 0  ;;  %s2791_s0 = inlined_call_operand.vmem [shape: f32[2,1024], index: 0, kind: input, shape index: {}]   ;;  %s2792_s1 = inlined_call_operand.hbm [shape: f32[1024,512], index: 1, kind: input, shape index: {}]   ;;  %s2793_s2 = inlined_call_operand.hbm [shape: f32[1,512], index: 2, kind: input, shape index: {}]   ;;  %s2794_s3 = inlined_call_operand.hbm [shape: f32[512,256], index: 3, kind: input, shape index: {}]   ;;  %s2795_s4 = inlined_call_operand.hbm [shape: f32[1,256], index: 4, kind: input, shape index: {}]   ;;  %s2796_s5 = inlined_call_operand.vmem [shape: f32[256,9], index: 5, kind: input, shape index: {}]   ;;  %s2797_s6 = inlined_call_operand.hbm [shape: f32[1,9], index: 6, kind: input, shape index: {}]   ;;  %s2798_s7 = inlined_call_operand.vmem [shape: f32[2,9], index: 7, kind: output, shape index: {}]  }
   0x1   :  { %13 = vsyncpa [#allocation5], 0 }
   0x2   :  { %14 = vsyncpa [#allocation8], 0  ;;  %s2498_s24 = smov [#allocation4]   ;;  %s2499_s26 = smov [#allocation7]  }
   0x3   :  { %s35_s25 = sshll.u32 %s2498_s24, 4  ;;  %s57_s27 = sshll.u32 %s2499_s26, 4  ;;  %s36_s25 = int_to_ptr.vmem [resolvable:$true] %s35_s25  ;;  %s58_s27 = int_to_ptr.vmem [resolvable:$true] %s57_s27 }
   0x4   :  { %s2382_s30 = scalar_lea.hbm %s2793_s2, 64 }
   0x5   :  { %p2383_p0 = scmp.ne.s32.totalorder %s2793_s2, %s2382_s30  ;;  %p2386_p1 = scmp.lt.u32.totalorder %s2382_s30, %s2793_s2 }
   0x7   :  { %p2388_p2 = pnand %p2386_p1, %p2383_p0 }
   0x9   :  { %2391 = shalt.err (!%p2388_p2)
}
   0xa   :  { %s2392_s12 = scalar_lea.vmem %s36_s25, 64  ;;  %p2397_p4 = scmp.lt.s32.totalorder %s36_s25, %s36_s25 }
   0xb   :  { %p2393_p3 = scmp.ne.s32.totalorder %s36_s25, %s2392_s12  ;;  %p2398_p5 = scmp.lt.s32.totalorder %s2392_s12, %s2392_s12 }
   0xd   :  { %p2399_p6 = por %p2398_p5, %p2397_p4 }
   0xf   :  { %p2400_p7 = pnand %p2399_p6, %p2393_p3 }
  0x11   :  { %2403 = shalt.err (!%p2400_p7)
}
  0x12   :  { %38 = dma.hbm_to_vmem [thread:$0]  %s2793_s2, 64, %s36_s25, [#allocation5]  }
  0x13   :  { %s2404_s17 = scalar_lea.hbm %s2795_s4, 32 }
  0x14   :  { %p2405_p8 = scmp.ne.s32.totalorder %s2795_s4, %s2404_s17  ;;  %p2408_p9 = scmp.lt.u32.totalorder %s2404_s17, %s2795_s4 }
  0x16   :  { %p2410_p10 = pnand %p2408_p9, %p2405_p8 }
  0x18   :  { %2413 = shalt.err (!%p2410_p10)
}
  0x19   :  { %s2414_s22 = scalar_lea.vmem %s58_s27, 32  ;;  %p2419_p12 = scmp.lt.s32.totalorder %s58_s27, %s58_s27 }
  0x1a   :  { %p2415_p11 = scmp.ne.s32.totalorder %s58_s27, %s2414_s22  ;;  %p2420_p13 = scmp.lt.s32.totalorder %s2414_s22, %s2414_s22 }
  0x1c   :  { %p2421_p0 = por %p2420_p13, %p2419_p12 }
  0x1e   :  { %p2422_p1 = pnand %p2421_p0, %p2415_p11 }
  0x20   :  { %2425 = shalt.err (!%p2422_p1)
}
  0x21   :  { %60 = dma.hbm_to_vmem [thread:$0]  %s2795_s4, 32, %s58_s27, [#allocation8]  }
  0x22   :  { %s2500_s24 = smov [#allocation2]   ;;  %s2426_s29 = scalar_lea.hbm %s2792_s1, 65536 }
  0x23   :  { %s22_s25 = sshll.u32 %s2500_s24, 4  ;;  %p2427_p2 = scmp.ne.s32.totalorder %s2792_s1, %s2426_s29  ;;  %s23_s25 = int_to_ptr.vmem [resolvable:$true] %s22_s25 }
  0x24   :  { %p2430_p3 = scmp.lt.u32.totalorder %s2426_s29, %s2792_s1 }
  0x26   :  { %p2432_p4 = pnand %p2430_p3, %p2427_p2 }
  0x28   :  { %2435 = shalt.err (!%p2432_p4)
}
  0x29   :  { %s2436_s11 = scalar_lea.vmem %s23_s25, 65536  ;;  %p2441_p6 = scmp.lt.s32.totalorder %s23_s25, %s23_s25 }
  0x2a   :  { %p2437_p5 = scmp.ne.s32.totalorder %s23_s25, %s2436_s11  ;;  %p2442_p7 = scmp.lt.s32.totalorder %s2436_s11, %s2436_s11 }
  0x2c   :  { %p2443_p8 = por %p2442_p7, %p2441_p6 }
  0x2e   :  { %p2444_p9 = pnand %p2443_p8, %p2437_p5 }
  0x30   :  { %2447 = shalt.err (!%p2444_p9)
}
  0x31   :  { %s2501_s4 = smov 512   ;;  %s2502_s27 = smov 32  }
  0x32   :  { %28 = dma.hbm_to_vmem [thread:$0]  %s2792_s1, 65536, %s23_s25, [#allocation3], %s2501_s4, %s2501_s4, %s2502_s27  }
  0x33   :  { %s2503_s14 = smov [#allocation6]   ;;  %s2448_s18 = scalar_lea.hbm %s2794_s3, 16384 }
  0x34   :  { %s44_s15 = sshll.u32 %s2503_s14, 4  ;;  %p2449_p10 = scmp.ne.s32.totalorder %s2794_s3, %s2448_s18  ;;  %s45_s15 = int_to_ptr.vmem [resolvable:$true] %s44_s15 }
  0x35   :  { %p2452_p11 = scmp.lt.u32.totalorder %s2448_s18, %s2794_s3 }
  0x37   :  { %p2454_p12 = pnand %p2452_p11, %p2449_p10 }
  0x39   :  { %2457 = shalt.err (!%p2454_p12)
}
  0x3a   :  { %s2458_s2 = scalar_lea.vmem %s45_s15, 16384  ;;  %p2463_p0 = scmp.lt.s32.totalorder %s45_s15, %s45_s15 }
  0x3b   :  { %p2459_p13 = scmp.ne.s32.totalorder %s45_s15, %s2458_s2  ;;  %p2464_p1 = scmp.lt.s32.totalorder %s2458_s2, %s2458_s2 }
  0x3d   :  { %p2465_p2 = por %p2464_p1, %p2463_p0 }
  0x3f   :  { %p2466_p3 = pnand %p2465_p2, %p2459_p13 }
  0x41   :  { %2469 = shalt.err (!%p2466_p3)
}
  0x42   :  { %s2504_s1 = smov 256   ;;  %s2505_s23 = smov 16  }
  0x43   :  { %50 = dma.hbm_to_vmem [thread:$0]  %s2794_s3, 16384, %s45_s15, [#allocation5], %s2504_s1, %s2504_s1, %s2505_s23  }
  0x44   :  { %s2506_s26 = smov [#allocation9]   ;;  %s2470_s8 = scalar_lea.hbm %s2797_s6, 16 }
  0x45   :  { %s69_s28 = sshll.u32 %s2506_s26, 4  ;;  %p2471_p4 = scmp.ne.s32.totalorder %s2797_s6, %s2470_s8  ;;  %s70_s28 = int_to_ptr.vmem [resolvable:$true] %s69_s28 }
  0x46   :  { %p2474_p5 = scmp.lt.u32.totalorder %s2470_s8, %s2797_s6 }
  0x48   :  { %p2476_p6 = pnand %p2474_p5, %p2471_p4 }
  0x4a   :  { %2479 = shalt.err (!%p2476_p6)
}
  0x4b   :  { %s2480_s27 = scalar_lea.vmem %s70_s28, 16  ;;  %s2484_s3 = scalar_lea.vmem %s70_s28, 32 }
  0x4c   :  { %p2481_p7 = scmp.ne.s32.totalorder %s70_s28, %s2480_s27  ;;  %p2485_p8 = scmp.lt.s32.totalorder %s70_s28, %s70_s28 }
  0x4d   :  { %p2486_p9 = scmp.lt.s32.totalorder %s2484_s3, %s2480_s27 }
  0x4f   :  { %p2487_p10 = por %p2486_p9, %p2485_p8 }
  0x51   :  { %p2488_p11 = pnand %p2487_p10, %p2481_p7 }
  0x53   :  { %2491 = shalt.err (!%p2488_p11)
}
  0x54   :  { %72 = dma.hbm_to_vmem [thread:$0]  %s2797_s6, 16, %s70_s28, [#allocation8]  }
  0x55   :  { %2492 = dma.done.wait [#allocation3], 65536  }
  0x56   :  { %2493 = vsyncadd [#allocation3], 4294901760 }
  0x57   :  { %2494 = dma.done.wait [#allocation5], 16448  }
  0x58   :  { %2495 = vsyncadd [#allocation5], 4294950848 }
  0x59   :  { %2496 = dma.done.wait [#allocation8], 48  }
  0x5a   :  { %2497 = vsyncadd [#allocation8], 4294967248  ;;  %v91_v0 = vld [vmem:[#allocation2 + $0x8] sm:$0xff]  ;;  %v90_v5 = vld [vmem:[#allocation2] sm:$0xff]  ;;  %vm1633_vm0 = vcmask 66560  }
  0x5b   :  { %v95_v1 = vld [vmem:[#allocation2 + $0x28] sm:$0xff]  ;;  %v94_v6 = vld [vmem:[#allocation2 + $0x20] sm:$0xff] }
  0x5c   :  { %v219_v2 = vld [vmem:[#allocation2 + $0x408] sm:$0xff]  ;;  %v1678_v3 = vpack.c.bf16 %v95_v1, %v91_v0  ;;  %v1680_v8 = vpack.c.bf16 %v94_v6, %v90_v5  ;;  %v218_v9 = vld [vmem:[#allocation2 + $0x400] sm:$0xff] }
  0x5d   :  { %v223_v4 = vld [vmem:[#allocation2 + $0x428] sm:$0xff]  ;;  %v222_v10 = vld [vmem:[#allocation2 + $0x420] sm:$0xff] }
  0x5e   :  { %v1742_v7 = vpack.c.bf16 %v223_v4, %v219_v2  ;;  %v99_v11 = vld [vmem:[#allocation2 + $0x48] sm:$0xff]  ;;  %1679 = vmatprep.subr.bf16.mxu1 %v1678_v3  ;;  %v1744_v12 = vpack.c.bf16 %v222_v10, %v218_v9  ;;  %v98_v18 = vld [vmem:[#allocation2 + $0x40] sm:$0xff] }
  0x5f   :  { %v103_v13 = vld [vmem:[#allocation2 + $0x68] sm:$0xff]  ;;  %1681 = vmatpush1.bf16.msra.mxu1 %v1680_v8  ;;  %v102_v19 = vld [vmem:[#allocation2 + $0x60] sm:$0xff] }
  0x60   :  { %v227_v14 = vld [vmem:[#allocation2 + $0x448] sm:$0xff]  ;;  %1743 = vmatprep.subr.bf16.mxu0 %v1742_v7  ;;  %v1682_v16 = vpack.c.bf16 %v103_v13, %v99_v11  ;;  %v226_v20 = vld [vmem:[#allocation2 + $0x440] sm:$0xff]  ;;  %v1684_v21 = vpack.c.bf16 %v102_v19, %v98_v18 }
  0x61   :  { %v231_v15 = vld [vmem:[#allocation2 + $0x468] sm:$0xff]  ;;  %1745 = vmatpush1.bf16.msra.mxu0 %v1744_v12  ;;  %v230_v22 = vld [vmem:[#allocation2 + $0x460] sm:$0xff] }
  0x62   :  { %v1746_v17 = vpack.c.bf16 %v231_v15, %v227_v14  ;;  %v107_v23 = vld [vmem:[#allocation2 + $0x88] sm:$0xff]  ;;  %1683 = vmatprep.subr.bf16.mxu1 %v1682_v16  ;;  %v1748_v25 = vpack.c.bf16 %v230_v22, %v226_v20  ;;  %v106_v29 = vld [vmem:[#allocation2 + $0x80] sm:$0xff] }
  0x63   :  { %v111_v24 = vld [vmem:[#allocation2 + $0xa8] sm:$0xff]  ;;  %v110_v31 = vld [vmem:[#allocation2 + $0xa0] sm:$0xff]  ;;  %1685 = vmatpush1.bf16.msra.mxu1 %v1684_v21 }
  0x64   :  { %1747 = vmatprep.subr.bf16.mxu0 %v1746_v17  ;;  %v1686_v26 = vpack.c.bf16 %v111_v24, %v107_v23  ;;  %v235_v27 = vld [vmem:[#allocation2 + $0x488] sm:$0xff]  ;;  %v234_v32 = vld [vmem:[#allocation2 + $0x480] sm:$0xff]  ;;  %v1688_v34 = vpack.c.bf16 %v110_v31, %v106_v29 }
  0x65   :  { %v239_v28 = vld [vmem:[#allocation2 + $0x4a8] sm:$0xff]  ;;  %v238_v33 = vld [vmem:[#allocation2 + $0x4a0] sm:$0xff]  ;;  %1749 = vmatpush1.bf16.msra.mxu0 %v1748_v25 }
  0x66   :  { %v1750_v30 = vpack.c.bf16 %v239_v28, %v235_v27  ;;  %v115_v35 = vld [vmem:[#allocation2 + $0xc8] sm:$0xff]  ;;  %1687 = vmatprep.subr.bf16.mxu1 %v1686_v26  ;;  %v1752_v38 = vpack.c.bf16 %v238_v33, %v234_v32  ;;  %v114_v41 = vld [vmem:[#allocation2 + $0xc0] sm:$0xff] }
  0x67   :  { %v119_v36 = vld [vmem:[#allocation2 + $0xe8] sm:$0xff]  ;;  %v118_v42 = vld [vmem:[#allocation2 + $0xe0] sm:$0xff]  ;;  %1689 = vmatpush1.bf16.msra.mxu1 %v1688_v34 }
  0x68   :  { %v243_v37 = vld [vmem:[#allocation2 + $0x4c8] sm:$0xff]  ;;  %v1690_v39 = vpack.c.bf16 %v119_v36, %v115_v35  ;;  %1751 = vmatprep.subr.bf16.mxu0 %v1750_v30  ;;  %v242_v44 = vld [vmem:[#allocation2 + $0x4c0] sm:$0xff]  ;;  %v1692_v50 = vpack.c.bf16 %v118_v42, %v114_v41 }
  0x69   :  { %v247_v40 = vld [vmem:[#allocation2 + $0x4e8] sm:$0xff]  ;;  %v246_v45 = vld [vmem:[#allocation2 + $0x4e0] sm:$0xff]  ;;  %1753 = vmatpush1.bf16.msra.mxu0 %v1752_v38 }
  0x6a   :  { %v1754_v43 = vpack.c.bf16 %v247_v40, %v243_v37  ;;  %v123_v46 = vld [vmem:[#allocation2 + $0x108] sm:$0xff]  ;;  %1691 = vmatprep.subr.bf16.mxu1 %v1690_v39  ;;  %v1756_v51 = vpack.c.bf16 %v246_v45, %v242_v44  ;;  %v122_v53 = vld [vmem:[#allocation2 + $0x100] sm:$0xff] }
  0x6b   :  { %v127_v47 = vld [vmem:[#allocation2 + $0x128] sm:$0xff]  ;;  %v126_v54 = vld [vmem:[#allocation2 + $0x120] sm:$0xff]  ;;  %1693 = vmatpush1.bf16.msra.mxu1 %v1692_v50 }
  0x6c   :  { %v251_v48 = vld [vmem:[#allocation2 + $0x508] sm:$0xff]  ;;  %v1694_v52 = vpack.c.bf16 %v127_v47, %v123_v46  ;;  %v250_v55 = vld [vmem:[#allocation2 + $0x500] sm:$0xff]  ;;  %1755 = vmatprep.subr.bf16.mxu0 %v1754_v43  ;;  %v1696_v62 = vpack.c.bf16 %v126_v54, %v122_v53  ;;  %v604_v46 = vlaneseq  ;;  %v2507_v47 = vmov 1983009808  }
  0x6d   :  { %v255_v49 = vld [vmem:[#allocation2 + $0x528] sm:$0xff]  ;;  %v254_v57 = vld [vmem:[#allocation2 + $0x520] sm:$0xff]  ;;  %1757 = vmatpush1.bf16.msra.mxu0 %v1756_v51 }
  0x6e   :  { %v1758_v56 = vpack.c.bf16 %v255_v49, %v251_v48  ;;  %v131_v58 = vld [vmem:[#allocation2 + $0x148] sm:$0xff]  ;;  %1695 = vmatprep.subr.bf16.mxu1 %v1694_v52  ;;  %v1760_v63 = vpack.c.bf16 %v254_v57, %v250_v55  ;;  %v130_v1 = vld [vmem:[#allocation2 + $0x140] sm:$0xff]  ;;  %v628_v48 = vunpack.c.l.s4 %v2507_v47 }
  0x6f   :  { %v135_v59 = vld [vmem:[#allocation2 + $0x168] sm:$0xff]  ;;  %v134_v2 = vld [vmem:[#allocation2 + $0x160] sm:$0xff]  ;;  %1697 = vmatpush1.bf16.msra.mxu1 %v1696_v62 }
  0x70   :  { %v259_v60 = vld [vmem:[#allocation2 + $0x548] sm:$0xff]  ;;  %v1698_v0 = vpack.c.bf16 %v135_v59, %v131_v58  ;;  %v258_v3 = vld [vmem:[#allocation2 + $0x540] sm:$0xff]  ;;  %1759 = vmatprep.subr.bf16.mxu0 %v1758_v56  ;;  %v1700_v10 = vpack.c.bf16 %v134_v2, %v130_v1  ;;  %v629_v62 = vunpack.c.0.s8 %v628_v48 }
  0x71   :  { %v263_v61 = vld [vmem:[#allocation2 + $0x568] sm:$0xff]  ;;  %v262_v5 = vld [vmem:[#allocation2 + $0x560] sm:$0xff]  ;;  %1761 = vmatpush1.bf16.msra.mxu0 %v1760_v63 }
  0x72   :  { %v1762_v4 = vpack.c.bf16 %v263_v61, %v259_v60  ;;  %v139_v6 = vld [vmem:[#allocation2 + $0x188] sm:$0xff]  ;;  %1699 = vmatprep.subr.bf16.mxu1 %v1698_v0  ;;  %v1764_v11 = vpack.c.bf16 %v262_v5, %v258_v3  ;;  %v138_v13 = vld [vmem:[#allocation2 + $0x180] sm:$0xff]  ;;  %v2608_v61 = vshrl.u32 %v604_v46, 7 }
  0x73   :  { %v143_v7 = vld [vmem:[#allocation2 + $0x1a8] sm:$0xff]  ;;  %v142_v14 = vld [vmem:[#allocation2 + $0x1a0] sm:$0xff]  ;;  %1701 = vmatpush1.bf16.msra.mxu1 %v1700_v10 }
  0x74   :  { %v267_v8 = vld [vmem:[#allocation2 + $0x588] sm:$0xff]  ;;  %v1702_v12 = vpack.c.bf16 %v143_v7, %v139_v6  ;;  %v266_v15 = vld [vmem:[#allocation2 + $0x580] sm:$0xff]  ;;  %1763 = vmatprep.subr.bf16.mxu0 %v1762_v4  ;;  %v1704_v22 = vpack.c.bf16 %v142_v14, %v138_v13 }
  0x75   :  { %v271_v9 = vld [vmem:[#allocation2 + $0x5a8] sm:$0xff]  ;;  %v270_v17 = vld [vmem:[#allocation2 + $0x5a0] sm:$0xff]  ;;  %1765 = vmatpush1.bf16.msra.mxu0 %v1764_v11  ;;  %v2611_v11 = vsub.s32 %v629_v62, %v2608_v61 }
  0x76   :  { %v1766_v16 = vpack.c.bf16 %v271_v9, %v267_v8  ;;  %v147_v18 = vld [vmem:[#allocation2 + $0x1c8] sm:$0xff]  ;;  %1703 = vmatprep.subr.bf16.mxu1 %v1702_v12  ;;  %v1768_v23 = vpack.c.bf16 %v270_v17, %v266_v15  ;;  %v146_v25 = vld [vmem:[#allocation2 + $0x1c0] sm:$0xff] }
  0x77   :  { %v151_v19 = vld [vmem:[#allocation2 + $0x1e8] sm:$0xff]  ;;  %v150_v26 = vld [vmem:[#allocation2 + $0x1e0] sm:$0xff]  ;;  %1705 = vmatpush1.bf16.msra.mxu1 %v1704_v22 }
  0x78   :  { %v275_v20 = vld [vmem:[#allocation2 + $0x5c8] sm:$0xff]  ;;  %v1706_v24 = vpack.c.bf16 %v151_v19, %v147_v18  ;;  %v274_v27 = vld [vmem:[#allocation2 + $0x5c0] sm:$0xff]  ;;  %1767 = vmatprep.subr.bf16.mxu0 %v1766_v16  ;;  %v1708_v34 = vpack.c.bf16 %v150_v26, %v146_v25 }
  0x79   :  { %v279_v21 = vld [vmem:[#allocation2 + $0x5e8] sm:$0xff]  ;;  %v278_v29 = vld [vmem:[#allocation2 + $0x5e0] sm:$0xff]  ;;  %1769 = vmatpush1.bf16.msra.mxu0 %v1768_v23 }
  0x7a   :  { %v1770_v28 = vpack.c.bf16 %v279_v21, %v275_v20  ;;  %v155_v30 = vld [vmem:[#allocation2 + $0x208] sm:$0xff]  ;;  %1707 = vmatprep.subr.bf16.mxu1 %v1706_v24  ;;  %v1772_v35 = vpack.c.bf16 %v278_v29, %v274_v27  ;;  %v154_v37 = vld [vmem:[#allocation2 + $0x200] sm:$0xff] }
  0x7b   :  { %v159_v31 = vld [vmem:[#allocation2 + $0x228] sm:$0xff]  ;;  %v158_v38 = vld [vmem:[#allocation2 + $0x220] sm:$0xff]  ;;  %1709 = vmatpush1.bf16.msra.mxu1 %v1708_v34 }
  0x7c   :  { %v283_v32 = vld [vmem:[#allocation2 + $0x608] sm:$0xff]  ;;  %v1710_v36 = vpack.c.bf16 %v159_v31, %v155_v30  ;;  %v282_v39 = vld [vmem:[#allocation2 + $0x600] sm:$0xff]  ;;  %1771 = vmatprep.subr.bf16.mxu0 %v1770_v28  ;;  %v1712_v49 = vpack.c.bf16 %v158_v38, %v154_v37 }
  0x7d   :  { %v287_v33 = vld [vmem:[#allocation2 + $0x628] sm:$0xff]  ;;  %v286_v41 = vld [vmem:[#allocation2 + $0x620] sm:$0xff]  ;;  %1773 = vmatpush1.bf16.msra.mxu0 %v1772_v35 }
  0x7e   :  { %v1774_v40 = vpack.c.bf16 %v287_v33, %v283_v32  ;;  %v163_v42 = vld [vmem:[#allocation2 + $0x248] sm:$0xff]  ;;  %1711 = vmatprep.subr.bf16.mxu1 %v1710_v36  ;;  %v1776_v50 = vpack.c.bf16 %v286_v41, %v282_v39  ;;  %v162_v52 = vld [vmem:[#allocation2 + $0x240] sm:$0xff] }
  0x7f   :  { %v167_v43 = vld [vmem:[#allocation2 + $0x268] sm:$0xff]  ;;  %v166_v53 = vld [vmem:[#allocation2 + $0x260] sm:$0xff]  ;;  %1713 = vmatpush1.bf16.msra.mxu1 %v1712_v49 }
  0x80   :  { %v291_v44 = vld [vmem:[#allocation2 + $0x648] sm:$0xff]  ;;  %v1714_v51 = vpack.c.bf16 %v167_v43, %v163_v42  ;;  %v290_v54 = vld [vmem:[#allocation2 + $0x640] sm:$0xff]  ;;  %1775 = vmatprep.subr.bf16.mxu0 %v1774_v40  ;;  %v1716_v63 = vpack.c.bf16 %v166_v53, %v162_v52 }
  0x81   :  { %v295_v45 = vld [vmem:[#allocation2 + $0x668] sm:$0xff]  ;;  %v294_v56 = vld [vmem:[#allocation2 + $0x660] sm:$0xff]  ;;  %1777 = vmatpush1.bf16.msra.mxu0 %v1776_v50 }
  0x82   :  { %v1778_v55 = vpack.c.bf16 %v295_v45, %v291_v44  ;;  %v171_v57 = vld [vmem:[#allocation2 + $0x288] sm:$0xff]  ;;  %1715 = vmatprep.subr.bf16.mxu1 %v1714_v51  ;;  %v1780_v0 = vpack.c.bf16 %v294_v56, %v290_v54  ;;  %v170_v2 = vld [vmem:[#allocation2 + $0x280] sm:$0xff] }
  0x83   :  { %v175_v58 = vld [vmem:[#allocation2 + $0x2a8] sm:$0xff]  ;;  %v174_v3 = vld [vmem:[#allocation2 + $0x2a0] sm:$0xff]  ;;  %1717 = vmatpush1.bf16.msra.mxu1 %v1716_v63 }
  0x84   :  { %v299_v59 = vld [vmem:[#allocation2 + $0x688] sm:$0xff]  ;;  %v1718_v1 = vpack.c.bf16 %v175_v58, %v171_v57  ;;  %v298_v4 = vld [vmem:[#allocation2 + $0x680] sm:$0xff]  ;;  %1779 = vmatprep.subr.bf16.mxu0 %v1778_v55  ;;  %v1720_v12 = vpack.c.bf16 %v174_v3, %v170_v2 }
  0x85   :  { %v303_v60 = vld [vmem:[#allocation2 + $0x6a8] sm:$0xff]  ;;  %v302_v6 = vld [vmem:[#allocation2 + $0x6a0] sm:$0xff]  ;;  %1781 = vmatpush1.bf16.msra.mxu0 %v1780_v0 }
  0x86   :  { %v1782_v5 = vpack.c.bf16 %v303_v60, %v299_v59  ;;  %v179_v7 = vld [vmem:[#allocation2 + $0x2c8] sm:$0xff]  ;;  %v178_v13 = vld [vmem:[#allocation2 + $0x2c0] sm:$0xff]  ;;  %1719 = vmatprep.subr.bf16.mxu1 %v1718_v1  ;;  %v1784_v14 = vpack.c.bf16 %v302_v6, %v298_v4 }
  0x87   :  { %v183_v8 = vld [vmem:[#allocation2 + $0x2e8] sm:$0xff]  ;;  %v182_v16 = vld [vmem:[#allocation2 + $0x2e0] sm:$0xff]  ;;  %1721 = vmatpush1.bf16.msra.mxu1 %v1720_v12  ;;  %v93_v12 = vld [vmem:[#allocation2 + $0x18] sm:$0xff] }
  0x88   :  { %v307_v9 = vld [vmem:[#allocation2 + $0x6c8] sm:$0xff]  ;;  %v1722_v15 = vpack.c.bf16 %v183_v8, %v179_v7  ;;  %v306_v17 = vld [vmem:[#allocation2 + $0x6c0] sm:$0xff]  ;;  %1783 = vmatprep.subr.bf16.mxu0 %v1782_v5  ;;  %v1724_v27 = vpack.c.bf16 %v182_v16, %v178_v13  ;;  %v97_v13 = vld [vmem:[#allocation2 + $0x38] sm:$0xff] }
  0x89   :  { %v311_v10 = vld [vmem:[#allocation2 + $0x6e8] sm:$0xff]  ;;  %v310_v18 = vld [vmem:[#allocation2 + $0x6e0] sm:$0xff]  ;;  %1785 = vmatpush1.bf16.msra.mxu0 %v1784_v14 }
  0x8a   :  { %v1786_v19 = vpack.c.bf16 %v311_v10, %v307_v9  ;;  %v187_v20 = vld [vmem:[#allocation2 + $0x308] sm:$0xff]  ;;  %v88_v22 = vld [vmem:[%s2791_s0] sm:$0xff]  ;;  %v1788_v28 = vpack.c.bf16 %v310_v18, %v306_v17  ;;  %1723 = vmatprep.subr.bf16.mxu1 %v1722_v15  ;;  %v1934_v18 = vpack.c.bf16 %v97_v13, %v93_v12  ;;  %v133_v13 = vld [vmem:[#allocation2 + $0x158] sm:$0xff] }
  0x8b   :  { %v191_v21 = vld [vmem:[#allocation2 + $0x328] sm:$0xff]  ;;  %v2617_v25 = vrot.slane %v88_v22, %v2611_v11  ;;  %v626_v26 = vcombine.high %v88_v22, %v88_v22  ;;  %v186_v30 = vld [vmem:[#allocation2 + $0x300] sm:$0xff]  ;;  %1725 = vmatpush1.bf16.msra.mxu1 %v1724_v27 }
  0x8c   :  { %v315_v23 = vld [vmem:[#allocation2 + $0x708] sm:$0xff]  ;;  %v1726_v29 = vpack.c.bf16 %v191_v21, %v187_v20  ;;  %v190_v31 = vld [vmem:[#allocation2 + $0x320] sm:$0xff]  ;;  %1787 = vmatprep.subr.bf16.mxu0 %v1786_v19  ;;  %v92_v20 = vld [vmem:[#allocation2 + $0x10] sm:$0xff] }
  0x8d   :  { %v319_v24 = vld [vmem:[#allocation2 + $0x728] sm:$0xff]  ;;  %v314_v32 = vld [vmem:[#allocation2 + $0x700] sm:$0xff]  ;;  %v2621_v33 = vcombine.high %v2617_v25, %v2617_v25  ;;  %v2624_v34 = vrot.slane %v626_v26, %v2611_v11  ;;  %v1728_v42 = vpack.c.bf16 %v190_v31, %v186_v30  ;;  %1789 = vmatpush1.bf16.msra.mxu0 %v1788_v28  ;;  %v96_v21 = vld [vmem:[#allocation2 + $0x30] sm:$0xff] }
  0x8e   :  { %v1790_v35 = vpack.c.bf16 %v319_v24, %v315_v23  ;;  %v318_v36 = vld [vmem:[#allocation2 + $0x720] sm:$0xff]  ;;  %v195_v37 = vld [vmem:[#allocation2 + $0x348] sm:$0xff]  ;;  %1727 = vmatprep.subr.bf16.mxu1 %v1726_v29  ;;  %v101_v24 = vld [vmem:[#allocation2 + $0x58] sm:$0xff]  ;;  %v1936_v29 = vpack.c.bf16 %v96_v21, %v92_v20 }
  0x8f   :  { %v199_v38 = vld [vmem:[#allocation2 + $0x368] sm:$0xff]  ;;  %732 = vmatprep.mubr.f32.mxu1 %v2621_v33  ;;  %v2629_v41 = vcombine.high %v2624_v34, %v2624_v34  ;;  %v1792_v43 = vpack.c.bf16 %v318_v36, %v314_v32  ;;  %v194_v45 = vld [vmem:[#allocation2 + $0x340] sm:$0xff]  ;;  %1729 = vmatpush1.bf16.msra.mxu1 %v1728_v42  ;;  %v105_v26 = vld [vmem:[#allocation2 + $0x78] sm:$0xff] }
  0x90   :  { %v323_v39 = vld [vmem:[#allocation2 + $0x748] sm:$0xff]  ;;  %v1730_v44 = vpack.c.bf16 %v199_v38, %v195_v37  ;;  %v198_v46 = vld [vmem:[#allocation2 + $0x360] sm:$0xff]  ;;  %1791 = vmatprep.subr.bf16.mxu0 %v1790_v35  ;;  %v1938_v31 = vpack.c.bf16 %v105_v26, %v101_v24  ;;  %v100_v35 = vld [vmem:[#allocation2 + $0x50] sm:$0xff] }
  0x91   :  { %v327_v40 = vld [vmem:[#allocation2 + $0x768] sm:$0xff]  ;;  %v322_v47 = vld [vmem:[#allocation2 + $0x740] sm:$0xff]  ;;  %803 = vmatprep.mubr.f32.mxu0 %v2629_v41  ;;  %v1732_v54 = vpack.c.bf16 %v198_v46, %v194_v45  ;;  %1793 = vmatpush1.bf16.msra.mxu0 %v1792_v43  ;;  %v104_v36 = vld [vmem:[#allocation2 + $0x70] sm:$0xff] }
  0x92   :  { %v1794_v48 = vpack.c.bf16 %v327_v40, %v323_v39  ;;  %v326_v49 = vld [vmem:[#allocation2 + $0x760] sm:$0xff]  ;;  %v203_v50 = vld [vmem:[#allocation2 + $0x388] sm:$0xff]  ;;  %1731 = vmatprep.subr.bf16.mxu1 %v1730_v44  ;;  %v109_v39 = vld [vmem:[#allocation2 + $0x98] sm:$0xff]  ;;  %v1940_v44 = vpack.c.bf16 %v104_v36, %v100_v35 }
  0x93   :  { %v207_v51 = vld [vmem:[#allocation2 + $0x3a8] sm:$0xff]  ;;  %v1796_v55 = vpack.c.bf16 %v326_v49, %v322_v47  ;;  %v202_v57 = vld [vmem:[#allocation2 + $0x380] sm:$0xff]  ;;  %1733 = vmatpush1.bf16.msra.mxu1 %v1732_v54  ;;  %v113_v40 = vld [vmem:[#allocation2 + $0xb8] sm:$0xff] }
  0x94   :  { %v331_v52 = vld [vmem:[#allocation2 + $0x788] sm:$0xff]  ;;  %v1734_v56 = vpack.c.bf16 %v207_v51, %v203_v50  ;;  %v206_v58 = vld [vmem:[#allocation2 + $0x3a0] sm:$0xff]  ;;  %1795 = vmatprep.subr.bf16.mxu0 %v1794_v48  ;;  %v1942_v46 = vpack.c.bf16 %v113_v40, %v109_v39  ;;  %v108_v48 = vld [vmem:[#allocation2 + $0x90] sm:$0xff] }
  0x95   :  { %v335_v53 = vld [vmem:[#allocation2 + $0x7a8] sm:$0xff]  ;;  %v330_v59 = vld [vmem:[#allocation2 + $0x780] sm:$0xff]  ;;  %v1736_v3 = vpack.c.bf16 %v206_v58, %v202_v57  ;;  %1797 = vmatpush1.bf16.msra.mxu0 %v1796_v55  ;;  %v112_v49 = vld [vmem:[#allocation2 + $0xb0] sm:$0xff] }
  0x96   :  { %v1798_v60 = vpack.c.bf16 %v335_v53, %v331_v52  ;;  %v334_v62 = vld [vmem:[#allocation2 + $0x7a0] sm:$0xff]  ;;  %v211_v63 = vld [vmem:[#allocation2 + $0x3c8] sm:$0xff]  ;;  %1735 = vmatprep.subr.bf16.mxu1 %v1734_v56  ;;  %v117_v52 = vld [vmem:[#allocation2 + $0xd8] sm:$0xff]  ;;  %v1944_v56 = vpack.c.bf16 %v112_v49, %v108_v48 }
  0x97   :  { %v215_v0 = vld [vmem:[#allocation2 + $0x3e8] sm:$0xff]  ;;  %v1800_v4 = vpack.c.bf16 %v334_v62, %v330_v59  ;;  %v210_v6 = vld [vmem:[#allocation2 + $0x3c0] sm:$0xff]  ;;  %1737 = vmatpush1.bf16.msra.mxu1 %v1736_v3  ;;  %v121_v53 = vld [vmem:[#allocation2 + $0xf8] sm:$0xff] }
  0x98   :  { %v339_v1 = vld [vmem:[#allocation2 + $0x7c8] sm:$0xff]  ;;  %v1738_v5 = vpack.c.bf16 %v215_v0, %v211_v63  ;;  %v214_v7 = vld [vmem:[#allocation2 + $0x3e0] sm:$0xff]  ;;  %1799 = vmatprep.subr.bf16.mxu0 %v1798_v60  ;;  %v1946_v58 = vpack.c.bf16 %v121_v53, %v117_v52  ;;  %v116_v60 = vld [vmem:[#allocation2 + $0xd0] sm:$0xff] }
  0x99   :  { %v343_v2 = vld [vmem:[#allocation2 + $0x7e8] sm:$0xff]  ;;  %v338_v8 = vld [vmem:[#allocation2 + $0x7c0] sm:$0xff]  ;;  %v1740_v16 = vpack.c.bf16 %v214_v7, %v210_v6  ;;  %1801 = vmatpush1.bf16.msra.mxu0 %v1800_v4  ;;  %v120_v62 = vld [vmem:[#allocation2 + $0xf0] sm:$0xff] }
  0x9a   :  { %v1802_v9 = vpack.c.bf16 %v343_v2, %v339_v1  ;;  %v342_v10 = vld [vmem:[#allocation2 + $0x7e0] sm:$0xff]  ;;  %v347_v14 = vld [vmem:[#allocation2 + $0x808] sm:$0xff]  ;;  %1739 = vmatprep.subr.bf16.mxu1 %v1738_v5  ;;  %v125_v1 = vld [vmem:[#allocation2 + $0x118] sm:$0xff] }
  0x9b   :  { %v351_v15 = vld [vmem:[#allocation2 + $0x828] sm:$0xff]  ;;  %v1804_v17 = vpack.c.bf16 %v342_v10, %v338_v8  ;;  %v346_v19 = vld [vmem:[#allocation2 + $0x800] sm:$0xff]  ;;  %1741 = vmatpush1.bf16.msra.mxu1 %v1740_v16  ;;  %v129_v2 = vld [vmem:[#allocation2 + $0x138] sm:$0xff] }
  0x9c   :  { %1803 = vmatprep.subr.bf16.mxu0 %v1802_v9  ;;  %v1806_v22 = vpack.c.bf16 %v351_v15, %v347_v14  ;;  %v350_v23 = vld [vmem:[#allocation2 + $0x820] sm:$0xff]  ;;  %v355_v27 = vld [vmem:[#allocation2 + $0x848] sm:$0xff]  ;;  %1935 = vmatprep.subr.bf16.mxu1 %v1934_v18  ;;  %v1950_v6 = vpack.c.bf16 %v129_v2, %v125_v1  ;;  %v124_v8 = vld [vmem:[#allocation2 + $0x110] sm:$0xff] }
  0x9d   :  { %v359_v28 = vld [vmem:[#allocation2 + $0x868] sm:$0xff]  ;;  %1805 = vmatpush1.bf16.msra.mxu0 %v1804_v17  ;;  %v1808_v30 = vpack.c.bf16 %v350_v23, %v346_v19  ;;  %v354_v32 = vld [vmem:[#allocation2 + $0x840] sm:$0xff]  ;;  %v128_v9 = vld [vmem:[#allocation2 + $0x130] sm:$0xff] }
  0x9e   :  { %1807 = vmatprep.subr.bf16.mxu0 %v1806_v22  ;;  %v1810_v37 = vpack.c.bf16 %v359_v28, %v355_v27  ;;  %v358_v38 = vld [vmem:[#allocation2 + $0x860] sm:$0xff]  ;;  %733 = vmatmul.mubr.f32.vlgmr.msra.gmra.mrb[0].mxu1 %v2617_v25  ;;  %v363_v42 = vld [vmem:[#allocation2 + $0x888] sm:$0xff]  ;;  %v137_v14 = vld [vmem:[#allocation2 + $0x178] sm:$0xff]  ;;  %v1952_v17 = vpack.c.bf16 %v128_v9, %v124_v8 }
  0x9f   :  { %v367_v43 = vld [vmem:[#allocation2 + $0x8a8] sm:$0xff]  ;;  %1937 = vmatpush1.bf16.msra.mxu1 %v1936_v29  ;;  %v1812_v45 = vpack.c.bf16 %v358_v38, %v354_v32  ;;  %v362_v47 = vld [vmem:[#allocation2 + $0x880] sm:$0xff]  ;;  %1016 = vmatprep.mubr.f32.mxu1 %v2621_v33  ;;  %v1948_v33 = vpack.c.bf16 %v120_v62, %v116_v60  ;;  %v1954_v19 = vpack.c.bf16 %v137_v14, %v133_v13  ;;  %v132_v21 = vld [vmem:[#allocation2 + $0x150] sm:$0xff] }
  0xa0   :  { %804 = vmatmul.mubr.f32.vlgmr.msra.gmra.mrb[0].mxu0 %v2624_v34  ;;  %1939 = vmatprep.subr.bf16.mxu1 %v1938_v31  ;;  %v1814_v50 = vpack.c.bf16 %v367_v43, %v363_v42  ;;  %v366_v51 = vld [vmem:[#allocation2 + $0x8a0] sm:$0xff]  ;;  %v371_v54 = vld [vmem:[#allocation2 + $0x8c8] sm:$0xff]  ;;  %v136_v22 = vld [vmem:[#allocation2 + $0x170] sm:$0xff] }
  0xa1   :  { %1809 = vmatpush1.bf16.msra.mxu0 %v1808_v30  ;;  %v375_v55 = vld [vmem:[#allocation2 + $0x8e8] sm:$0xff]  ;;  %v1816_v57 = vpack.c.bf16 %v366_v51, %v362_v47  ;;  %v370_v59 = vld [vmem:[#allocation2 + $0x8c0] sm:$0xff]  ;;  %v141_v26 = vld [vmem:[#allocation2 + $0x198] sm:$0xff]  ;;  %v1956_v30 = vpack.c.bf16 %v136_v22, %v132_v21 }
  0xa2   :  { %1811 = vmatprep.subr.bf16.mxu0 %v1810_v37  ;;  %v1818_v63 = vpack.c.bf16 %v375_v55, %v371_v54  ;;  %v374_v0 = vld [vmem:[#allocation2 + $0x8e0] sm:$0xff]  ;;  %v379_v3 = vld [vmem:[#allocation2 + $0x908] sm:$0xff]  ;;  %v145_v27 = vld [vmem:[#allocation2 + $0x1b8] sm:$0xff] }
  0xa3   :  { %1941 = vmatpush1.bf16.msra.mxu1 %v1940_v44  ;;  %v383_v4 = vld [vmem:[#allocation2 + $0x928] sm:$0xff]  ;;  %v1820_v5 = vpack.c.bf16 %v374_v0, %v370_v59  ;;  %v378_v7 = vld [vmem:[#allocation2 + $0x900] sm:$0xff]  ;;  %v1958_v35 = vpack.c.bf16 %v145_v27, %v141_v26  ;;  %v140_v36 = vld [vmem:[#allocation2 + $0x190] sm:$0xff] }
  0xa4   :  { %1943 = vmatprep.subr.bf16.mxu1 %v1942_v46  ;;  %v1822_v10 = vpack.c.bf16 %v383_v4, %v379_v3  ;;  %v382_v12 = vld [vmem:[#allocation2 + $0x920] sm:$0xff]  ;;  %v387_v15 = vld [vmem:[#allocation2 + $0x948] sm:$0xff]  ;;  %v144_v37 = vld [vmem:[#allocation2 + $0x1b0] sm:$0xff] }
  0xa5   :  { %1813 = vmatpush1.bf16.msra.mxu0 %v1812_v45  ;;  %v391_v16 = vld [vmem:[#allocation2 + $0x968] sm:$0xff]  ;;  %v1824_v18 = vpack.c.bf16 %v382_v12, %v378_v7  ;;  %v386_v20 = vld [vmem:[#allocation2 + $0x940] sm:$0xff]  ;;  %v149_v42 = vld [vmem:[#allocation2 + $0x1d8] sm:$0xff]  ;;  %v1960_v47 = vpack.c.bf16 %v144_v37, %v140_v36 }
  0xa6   :  { %1815 = vmatprep.subr.bf16.mxu0 %v1814_v50  ;;  %v1826_v23 = vpack.c.bf16 %v391_v16, %v387_v15  ;;  %v390_v24 = vld [vmem:[#allocation2 + $0x960] sm:$0xff]  ;;  %v395_v28 = vld [vmem:[#allocation2 + $0x988] sm:$0xff]  ;;  %v153_v43 = vld [vmem:[#allocation2 + $0x1f8] sm:$0xff] }
  0xa7   :  { %1945 = vmatpush1.bf16.msra.mxu1 %v1944_v56  ;;  %v399_v29 = vld [vmem:[#allocation2 + $0x9a8] sm:$0xff]  ;;  %v394_v31 = vld [vmem:[#allocation2 + $0x980] sm:$0xff]  ;;  %v1828_v32 = vpack.c.bf16 %v390_v24, %v386_v20  ;;  %v1962_v50 = vpack.c.bf16 %v153_v43, %v149_v42  ;;  %v148_v52 = vld [vmem:[#allocation2 + $0x1d0] sm:$0xff] }
  0xa8   :  { %1947 = vmatprep.subr.bf16.mxu1 %v1946_v58  ;;  %v2638_v38 = vld [vmem:[%s2791_s0 + $0x8] sm:$0xff]  ;;  %v1830_v39 = vpack.c.bf16 %v399_v29, %v395_v28  ;;  %v398_v40 = vld [vmem:[#allocation2 + $0x9a0] sm:$0xff]  ;;  %v152_v53 = vld [vmem:[#allocation2 + $0x1f0] sm:$0xff] }
  0xa9   :  { %1817 = vmatpush1.bf16.msra.mxu0 %v1816_v57  ;;  %v2642_v44 = vrot.slane %v2638_v38, %v2611_v11  ;;  %v403_v45 = vld [vmem:[#allocation2 + $0x9c8] sm:$0xff]  ;;  %v1832_v49 = vpack.c.bf16 %v398_v40, %v394_v31  ;;  %v402_v51 = vld [vmem:[#allocation2 + $0x9c0] sm:$0xff]  ;;  %v157_v56 = vld [vmem:[#allocation2 + $0x218] sm:$0xff]  ;;  %v1964_v60 = vpack.c.bf16 %v152_v53, %v148_v52 }
  0xaa   :  { %1819 = vmatprep.subr.bf16.mxu0 %v1818_v63  ;;  %v407_v46 = vld [vmem:[#allocation2 + $0x9e8] sm:$0xff]  ;;  %v406_v55 = vld [vmem:[#allocation2 + $0x9e0] sm:$0xff]  ;;  %v161_v57 = vld [vmem:[#allocation2 + $0x238] sm:$0xff] }
  0xab   :  { %1949 = vmatpush1.bf16.msra.mxu1 %v1948_v33  ;;  %v2646_v48 = vcombine.high %v2642_v44, %v2642_v44  ;;  %v1834_v54 = vpack.c.bf16 %v407_v46, %v403_v45  ;;  %v411_v58 = vld [vmem:[#allocation2 + $0xa08] sm:$0xff]  ;;  %v1836_v62 = vpack.c.bf16 %v406_v55, %v402_v51  ;;  %v1966_v63 = vpack.c.bf16 %v161_v57, %v157_v56  ;;  %v410_v0 = vld [vmem:[#allocation2 + $0xa00] sm:$0xff]  ;;  %v156_v1 = vld [vmem:[#allocation2 + $0x210] sm:$0xff] }
  0xac   :  { %1951 = vmatprep.subr.bf16.mxu1 %v1950_v6  ;;  %v415_v59 = vld [vmem:[#allocation2 + $0xa28] sm:$0xff]  ;;  %v160_v2 = vld [vmem:[#allocation2 + $0x230] sm:$0xff]  ;;  %v414_v4 = vld [vmem:[#allocation2 + $0xa20] sm:$0xff] }
  0xad   :  { %1821 = vmatpush1.bf16.msra.mxu0 %v1820_v5  ;;  %874 = vmatprep.mubr.f32.mxu0 %v2646_v48  ;;  %v1838_v3 = vpack.c.bf16 %v415_v59, %v411_v58  ;;  %v165_v33 = vld [vmem:[#allocation2 + $0x258] sm:$0xff]  ;;  %v419_v6 = vld [vmem:[#allocation2 + $0xa48] sm:$0xff]  ;;  %v1968_v8 = vpack.c.bf16 %v160_v2, %v156_v1  ;;  %v1840_v9 = vpack.c.bf16 %v414_v4, %v410_v0  ;;  %v418_v12 = vld [vmem:[#allocation2 + $0xa40] sm:$0xff] }
  0xae   :  { %1823 = vmatprep.subr.bf16.mxu0 %v1822_v10  ;;  %v169_v5 = vld [vmem:[#allocation2 + $0x278] sm:$0xff]  ;;  %v423_v7 = vld [vmem:[#allocation2 + $0xa68] sm:$0xff]  ;;  %v164_v13 = vld [vmem:[#allocation2 + $0x250] sm:$0xff] }
  0xaf   :  { %1953 = vmatpush1.bf16.msra.mxu1 %v1952_v17  ;;  %v1970_v10 = vpack.c.bf16 %v169_v5, %v165_v33  ;;  %v168_v14 = vld [vmem:[#allocation2 + $0x270] sm:$0xff]  ;;  %v1842_v15 = vpack.c.bf16 %v423_v7, %v419_v6  ;;  %v422_v16 = vld [vmem:[#allocation2 + $0xa60] sm:$0xff]  ;;  %v173_v17 = vld [vmem:[#allocation2 + $0x298] sm:$0xff] }
  0xb0   :  { %1955 = vmatprep.subr.bf16.mxu1 %v1954_v19  ;;  %v427_v19 = vld [vmem:[#allocation2 + $0xa88] sm:$0xff]  ;;  %v1972_v21 = vpack.c.bf16 %v168_v14, %v164_v13  ;;  %v1844_v22 = vpack.c.bf16 %v422_v16, %v418_v12  ;;  %v426_v24 = vld [vmem:[#allocation2 + $0xa80] sm:$0xff]  ;;  %v172_v26 = vld [vmem:[#allocation2 + $0x290] sm:$0xff] }
  0xb1   :  { %1825 = vmatpush1.bf16.msra.mxu0 %v1824_v18  ;;  %v177_v18 = vld [vmem:[#allocation2 + $0x2b8] sm:$0xff]  ;;  %v431_v20 = vld [vmem:[#allocation2 + $0xaa8] sm:$0xff]  ;;  %v176_v27 = vld [vmem:[#allocation2 + $0x2b0] sm:$0xff] }
  0xb2   :  { %1827 = vmatprep.subr.bf16.mxu0 %v1826_v23  ;;  %v1974_v23 = vpack.c.bf16 %v177_v18, %v173_v17  ;;  %v1846_v28 = vpack.c.bf16 %v431_v20, %v427_v19  ;;  %v430_v29 = vld [vmem:[#allocation2 + $0xaa0] sm:$0xff]  ;;  %v185_v31 = vld [vmem:[#allocation2 + $0x2f8] sm:$0xff]  ;;  %v1976_v36 = vpack.c.bf16 %v176_v27, %v172_v26  ;;  %v180_v42 = vld [vmem:[#allocation2 + $0x2d0] sm:$0xff] }
  0xb3   :  { %1957 = vmatpush1.bf16.msra.mxu1 %v1956_v30  ;;  %v181_v30 = vld [vmem:[#allocation2 + $0x2d8] sm:$0xff]  ;;  %v1848_v37 = vpack.c.bf16 %v430_v29, %v426_v24  ;;  %v434_v40 = vld [vmem:[#allocation2 + $0xac0] sm:$0xff]  ;;  %v184_v43 = vld [vmem:[#allocation2 + $0x2f0] sm:$0xff] }
  0xb4   :  { %1959 = vmatprep.subr.bf16.mxu1 %v1958_v35  ;;  %v439_v35 = vld [vmem:[#allocation2 + $0xae8] sm:$0xff]  ;;  %v438_v46 = vld [vmem:[#allocation2 + $0xae0] sm:$0xff]  ;;  %v1980_v52 = vpack.c.bf16 %v184_v43, %v180_v42  ;;  %v188_v56 = vld [vmem:[#allocation2 + $0x310] sm:$0xff] }
  0xb5   :  { %1829 = vmatpush1.bf16.msra.mxu0 %v1828_v32  ;;  %v435_v32 = vld [vmem:[#allocation2 + $0xac8] sm:$0xff]  ;;  %v1852_v53 = vpack.c.bf16 %v438_v46, %v434_v40  ;;  %v442_v55 = vld [vmem:[#allocation2 + $0xb00] sm:$0xff]  ;;  %v192_v57 = vld [vmem:[#allocation2 + $0x330] sm:$0xff] }
  0xb6   :  { %1831 = vmatprep.subr.bf16.mxu0 %v1830_v39  ;;  %v1978_v39 = vpack.c.bf16 %v185_v31, %v181_v30  ;;  %v1850_v45 = vpack.c.bf16 %v439_v35, %v435_v32  ;;  %v447_v51 = vld [vmem:[#allocation2 + $0xb28] sm:$0xff]  ;;  %v446_v59 = vld [vmem:[#allocation2 + $0xb20] sm:$0xff]  ;;  %v1984_v1 = vpack.c.bf16 %v192_v57, %v188_v56  ;;  %v196_v33 = vld [vmem:[#allocation2 + $0x350] sm:$0xff] }
  0xb7   :  { %1961 = vmatpush1.bf16.msra.mxu1 %v1960_v47  ;;  %v189_v47 = vld [vmem:[#allocation2 + $0x318] sm:$0xff]  ;;  %v455_v0 = vld [vmem:[#allocation2 + $0xb68] sm:$0xff]  ;;  %v1856_v2 = vpack.c.bf16 %v446_v59, %v442_v55  ;;  %v450_v4 = vld [vmem:[#allocation2 + $0xb40] sm:$0xff] }
  0xb8   :  { %1963 = vmatprep.subr.bf16.mxu1 %v1962_v50  ;;  %v443_v50 = vld [vmem:[#allocation2 + $0xb08] sm:$0xff]  ;;  %v200_v5 = vld [vmem:[#allocation2 + $0x370] sm:$0xff]  ;;  %v454_v7 = vld [vmem:[#allocation2 + $0xb60] sm:$0xff] }
  0xb9   :  { %1833 = vmatpush1.bf16.msra.mxu0 %v1832_v49  ;;  %v193_v49 = vld [vmem:[#allocation2 + $0x338] sm:$0xff]  ;;  %v1854_v58 = vpack.c.bf16 %v447_v51, %v443_v50  ;;  %v463_v12 = vld [vmem:[#allocation2 + $0xba8] sm:$0xff]  ;;  %v1988_v13 = vpack.c.bf16 %v200_v5, %v196_v33  ;;  %v1860_v14 = vpack.c.bf16 %v454_v7, %v450_v4  ;;  %v458_v16 = vld [vmem:[#allocation2 + $0xb80] sm:$0xff] }
  0xba   :  { %1835 = vmatprep.subr.bf16.mxu0 %v1834_v54  ;;  %v1982_v54 = vpack.c.bf16 %v193_v49, %v189_v47  ;;  %v204_v17 = vld [vmem:[#allocation2 + $0x390] sm:$0xff]  ;;  %v462_v20 = vld [vmem:[#allocation2 + $0xba0] sm:$0xff]  ;;  %v471_v24 = vld [vmem:[#allocation2 + $0xbe8] sm:$0xff] }
  0xbb   :  { %1965 = vmatpush1.bf16.msra.mxu1 %v1964_v60  ;;  %v197_v60 = vld [vmem:[#allocation2 + $0x358] sm:$0xff]  ;;  %v208_v18 = vld [vmem:[#allocation2 + $0x3b0] sm:$0xff]  ;;  %v1864_v27 = vpack.c.bf16 %v462_v20, %v458_v16  ;;  %v466_v29 = vld [vmem:[#allocation2 + $0xbc0] sm:$0xff] }
  0xbc   :  { %1967 = vmatprep.subr.bf16.mxu1 %v1966_v63  ;;  %v451_v63 = vld [vmem:[#allocation2 + $0xb48] sm:$0xff]  ;;  %v1992_v26 = vpack.c.bf16 %v208_v18, %v204_v17  ;;  %v212_v30 = vld [vmem:[#allocation2 + $0x3d0] sm:$0xff]  ;;  %v470_v35 = vld [vmem:[#allocation2 + $0xbe0] sm:$0xff] }
  0xbd   :  { %1837 = vmatpush1.bf16.msra.mxu0 %v1836_v62  ;;  %v201_v62 = vld [vmem:[#allocation2 + $0x378] sm:$0xff]  ;;  %v1858_v6 = vpack.c.bf16 %v455_v0, %v451_v63  ;;  %v216_v31 = vld [vmem:[#allocation2 + $0x3f0] sm:$0xff]  ;;  %v475_v40 = vld [vmem:[#allocation2 + $0xc08] sm:$0xff] }
  0xbe   :  { %1839 = vmatprep.subr.bf16.mxu0 %v1838_v3  ;;  %v1986_v3 = vpack.c.bf16 %v201_v62, %v197_v60  ;;  %v479_v42 = vld [vmem:[#allocation2 + $0xc28] sm:$0xff]  ;;  %v1996_v43 = vpack.c.bf16 %v216_v31, %v212_v30  ;;  %v474_v47 = vld [vmem:[#allocation2 + $0xc00] sm:$0xff]  ;;  %v220_v49 = vld [vmem:[#allocation2 + $0x410] sm:$0xff] }
  0xbf   :  { %1969 = vmatpush1.bf16.msra.mxu1 %v1968_v8  ;;  %v205_v8 = vld [vmem:[#allocation2 + $0x398] sm:$0xff]  ;;  %v224_v50 = vld [vmem:[#allocation2 + $0x430] sm:$0xff]  ;;  %v1870_v51 = vpack.c.bf16 %v479_v42, %v475_v40  ;;  %v487_v56 = vld [vmem:[#allocation2 + $0xc68] sm:$0xff] }
  0xc0   :  { %1971 = vmatprep.subr.bf16.mxu1 %v1970_v10  ;;  %v459_v10 = vld [vmem:[#allocation2 + $0xb88] sm:$0xff]  ;;  %v2000_v57 = vpack.c.bf16 %v224_v50, %v220_v49  ;;  %v482_v60 = vld [vmem:[#allocation2 + $0xc40] sm:$0xff]  ;;  %v228_v62 = vld [vmem:[#allocation2 + $0x450] sm:$0xff] }
  0xc1   :  { %1841 = vmatpush1.bf16.msra.mxu0 %v1840_v9  ;;  %v209_v9 = vld [vmem:[#allocation2 + $0x3b8] sm:$0xff]  ;;  %v1862_v19 = vpack.c.bf16 %v463_v12, %v459_v10  ;;  %v232_v63 = vld [vmem:[#allocation2 + $0x470] sm:$0xff]  ;;  %v491_v4 = vld [vmem:[#allocation2 + $0xc88] sm:$0xff] }
  0xc2   :  { %1843 = vmatprep.subr.bf16.mxu0 %v1842_v15  ;;  %v1990_v15 = vpack.c.bf16 %v209_v9, %v205_v8  ;;  %v495_v33 = vld [vmem:[#allocation2 + $0xca8] sm:$0xff]  ;;  %v2004_v5 = vpack.c.bf16 %v232_v63, %v228_v62  ;;  %v490_v8 = vld [vmem:[#allocation2 + $0xc80] sm:$0xff]  ;;  %v236_v9 = vld [vmem:[#allocation2 + $0x490] sm:$0xff] }
  0xc3   :  { %1973 = vmatpush1.bf16.msra.mxu1 %v1972_v21  ;;  %v213_v21 = vld [vmem:[#allocation2 + $0x3d8] sm:$0xff]  ;;  %v240_v10 = vld [vmem:[#allocation2 + $0x4b0] sm:$0xff]  ;;  %v1878_v12 = vpack.c.bf16 %v495_v33, %v491_v4  ;;  %v503_v16 = vld [vmem:[#allocation2 + $0xce8] sm:$0xff] }
  0xc4   :  { %1975 = vmatprep.subr.bf16.mxu1 %v1974_v23  ;;  %v467_v23 = vld [vmem:[#allocation2 + $0xbc8] sm:$0xff]  ;;  %v2008_v17 = vpack.c.bf16 %v240_v10, %v236_v9  ;;  %v498_v20 = vld [vmem:[#allocation2 + $0xcc0] sm:$0xff]  ;;  %v261_v40 = vld [vmem:[#allocation2 + $0x558] sm:$0xff] }
  0xc5   :  { %1845 = vmatpush1.bf16.msra.mxu0 %v1844_v22  ;;  %v217_v22 = vld [vmem:[#allocation2 + $0x3f8] sm:$0xff]  ;;  %v1866_v32 = vpack.c.bf16 %v471_v24, %v467_v23  ;;  %v502_v24 = vld [vmem:[#allocation2 + $0xce0] sm:$0xff] }
  0xc6   :  { %1847 = vmatprep.subr.bf16.mxu0 %v1846_v28  ;;  %v1994_v28 = vpack.c.bf16 %v217_v22, %v213_v21  ;;  %v244_v21 = vld [vmem:[#allocation2 + $0x4d0] sm:$0xff]  ;;  %v265_v42 = vld [vmem:[#allocation2 + $0x578] sm:$0xff]  ;;  %v514_v50 = vld [vmem:[#allocation2 + $0xd40] sm:$0xff] }
  0xc7   :  { %1977 = vmatpush1.bf16.msra.mxu1 %v1976_v36  ;;  %v221_v36 = vld [vmem:[#allocation2 + $0x418] sm:$0xff]  ;;  %v248_v22 = vld [vmem:[#allocation2 + $0x4f0] sm:$0xff]  ;;  %v2018_v49 = vpack.c.bf16 %v265_v42, %v261_v40  ;;  %v522_v63 = vld [vmem:[#allocation2 + $0xd80] sm:$0xff] }
  0xc8   :  { %1979 = vmatprep.subr.bf16.mxu1 %v1978_v39  ;;  %v643_v39 = vcombine.high %v2638_v38, %v2638_v38  ;;  %v483_v38 = vld [vmem:[#allocation2 + $0xc48] sm:$0xff]  ;;  %v2012_v30 = vpack.c.bf16 %v248_v22, %v244_v21  ;;  %v277_v4 = vld [vmem:[#allocation2 + $0x5d8] sm:$0xff]  ;;  %v530_v10 = vld [vmem:[#allocation2 + $0xdc0] sm:$0xff] }
  0xc9   :  { %1849 = vmatpush1.bf16.msra.mxu0 %v1848_v37  ;;  %v225_v37 = vld [vmem:[#allocation2 + $0x438] sm:$0xff]  ;;  %v1874_v0 = vpack.c.bf16 %v487_v56, %v483_v38  ;;  %v538_v22 = vld [vmem:[#allocation2 + $0xe00] sm:$0xff] }
  0xca   :  { %1851 = vmatprep.subr.bf16.mxu0 %v1850_v45  ;;  %v1868_v45 = vpack.c.bf16 %v470_v35, %v466_v29  ;;  %v1998_v46 = vpack.c.bf16 %v225_v37, %v221_v36  ;;  %v2652_v55 = vrot.slane %v643_v39, %v2611_v11  ;;  %v511_v29 = vld [vmem:[#allocation2 + $0xd28] sm:$0xff]  ;;  %v252_v35 = vld [vmem:[#allocation2 + $0x510] sm:$0xff]  ;;  %v510_v39 = vld [vmem:[#allocation2 + $0xd20] sm:$0xff] }
  0xcb   :  { %1981 = vmatpush1.bf16.msra.mxu1 %v1980_v52  ;;  %v478_v52 = vld [vmem:[#allocation2 + $0xc20] sm:$0xff]  ;;  %v256_v36 = vld [vmem:[#allocation2 + $0x530] sm:$0xff]  ;;  %v269_v38 = vld [vmem:[#allocation2 + $0x598] sm:$0xff] }
  0xcc   :  { %1983 = vmatprep.subr.bf16.mxu1 %v1982_v54  ;;  %v233_v54 = vld [vmem:[#allocation2 + $0x478] sm:$0xff]  ;;  %v2656_v11 = vcombine.high %v2652_v55, %v2652_v55  ;;  %v550_v42 = vld [vmem:[#allocation2 + $0xe60] sm:$0xff] }
  0xcd   :  { %1853 = vmatpush1.bf16.msra.mxu0 %v1852_v53  ;;  %v229_v53 = vld [vmem:[#allocation2 + $0x458] sm:$0xff] }
  0xce   :  { %1855 = vmatprep.subr.bf16.mxu0 %v1854_v58  ;;  %v1872_v58 = vpack.c.bf16 %v478_v52, %v474_v47  ;;  %v2002_v59 = vpack.c.bf16 %v233_v54, %v229_v53  ;;  %v264_v52 = vld [vmem:[#allocation2 + $0x570] sm:$0xff]  ;;  %v518_v54 = vld [vmem:[#allocation2 + $0xd60] sm:$0xff]  ;;  %v273_v56 = vld [vmem:[#allocation2 + $0x5b8] sm:$0xff] }
  0xcf   :  { %1985 = vmatpush1.bf16.msra.mxu1 %v1984_v1  ;;  %v486_v1 = vld [vmem:[#allocation2 + $0xc60] sm:$0xff]  ;;  %v2022_v62 = vpack.c.bf16 %v273_v56, %v269_v38  ;;  %v281_v33 = vld [vmem:[#allocation2 + $0x5f8] sm:$0xff] }
  0xd0   :  { %1987 = vmatprep.subr.bf16.mxu1 %v1986_v3  ;;  %v241_v3 = vld [vmem:[#allocation2 + $0x4b8] sm:$0xff]  ;;  %v2026_v9 = vpack.c.bf16 %v281_v33, %v277_v4  ;;  %v558_v56 = vld [vmem:[#allocation2 + $0xea0] sm:$0xff] }
  0xd1   :  { %1857 = vmatpush1.bf16.msra.mxu0 %v1856_v2  ;;  %v237_v2 = vld [vmem:[#allocation2 + $0x498] sm:$0xff]  ;;  %v566_v33 = vld [vmem:[#allocation2 + $0xee0] sm:$0xff] }
  0xd2   :  { %1859 = vmatprep.subr.bf16.mxu0 %v1858_v6  ;;  %v1876_v6 = vpack.c.bf16 %v486_v1, %v482_v60  ;;  %v2006_v7 = vpack.c.bf16 %v241_v3, %v237_v2  ;;  %v1892_v60 = vpack.c.bf16 %v518_v54, %v514_v50  ;;  %v272_v1 = vld [vmem:[#allocation2 + $0x5b0] sm:$0xff]  ;;  %v526_v3 = vld [vmem:[#allocation2 + $0xda0] sm:$0xff] }
  0xd3   :  { %1989 = vmatpush1.bf16.msra.mxu1 %v1988_v13  ;;  %v494_v13 = vld [vmem:[#allocation2 + $0xca0] sm:$0xff]  ;;  %v304_v54 = vld [vmem:[#allocation2 + $0x6b0] sm:$0xff] }
  0xd4   :  { %1991 = vmatprep.subr.bf16.mxu1 %v1990_v15  ;;  %v249_v15 = vld [vmem:[#allocation2 + $0x4f8] sm:$0xff]  ;;  %v1880_v18 = vpack.c.bf16 %v494_v13, %v490_v8  ;;  %v1896_v8 = vpack.c.bf16 %v526_v3, %v522_v63  ;;  %v280_v13 = vld [vmem:[#allocation2 + $0x5f0] sm:$0xff] }
  0xd5   :  { %1861 = vmatpush1.bf16.msra.mxu0 %v1860_v14  ;;  %v245_v14 = vld [vmem:[#allocation2 + $0x4d8] sm:$0xff]  ;;  %v312_v3 = vld [vmem:[#allocation2 + $0x6f0] sm:$0xff] }
  0xd6   :  { %1863 = vmatprep.subr.bf16.mxu0 %v1862_v19  ;;  %v2010_v19 = vpack.c.bf16 %v249_v15, %v245_v14  ;;  %v534_v15 = vld [vmem:[#allocation2 + $0xde0] sm:$0xff] }
  0xd7   :  { %1993 = vmatpush1.bf16.msra.mxu1 %v1992_v26  ;;  %v253_v26 = vld [vmem:[#allocation2 + $0x518] sm:$0xff] }
  0xd8   :  { %1995 = vmatprep.subr.bf16.mxu1 %v1994_v28  ;;  %v507_v28 = vld [vmem:[#allocation2 + $0xd08] sm:$0xff] }
  0xd9   :  { %1865 = vmatpush1.bf16.msra.mxu0 %v1864_v27  ;;  %v257_v27 = vld [vmem:[#allocation2 + $0x538] sm:$0xff]  ;;  %v1886_v37 = vpack.c.bf16 %v511_v29, %v507_v28 }
  0xda   :  { %1867 = vmatprep.subr.bf16.mxu0 %v1866_v32  ;;  %v2014_v31 = vpack.c.bf16 %v257_v27, %v253_v26  ;;  %v506_v32 = vld [vmem:[#allocation2 + $0xd00] sm:$0xff]  ;;  %v293_v28 = vld [vmem:[#allocation2 + $0x658] sm:$0xff] }
  0xdb   :  { %1997 = vmatpush1.bf16.msra.mxu1 %v1996_v43  ;;  %v515_v43 = vld [vmem:[#allocation2 + $0xd48] sm:$0xff]  ;;  %v1888_v47 = vpack.c.bf16 %v510_v39, %v506_v32  ;;  %v542_v27 = vld [vmem:[#allocation2 + $0xe20] sm:$0xff]  ;;  %v297_v29 = vld [vmem:[#allocation2 + $0x678] sm:$0xff] }
  0xdc   :  { %1999 = vmatprep.subr.bf16.mxu1 %v1998_v46  ;;  %v2016_v46 = vpack.c.bf16 %v256_v36, %v252_v35  ;;  %v1904_v32 = vpack.c.bf16 %v542_v27, %v538_v22  ;;  %v2034_v35 = vpack.c.bf16 %v297_v29, %v293_v28  ;;  %v546_v36 = vld [vmem:[#allocation2 + $0xe40] sm:$0xff]  ;;  %v296_v39 = vld [vmem:[#allocation2 + $0x670] sm:$0xff] }
  0xdd   :  { %1869 = vmatpush1.bf16.msra.mxu0 %v1868_v45  ;;  %v519_v45 = vld [vmem:[#allocation2 + $0xd68] sm:$0xff]  ;;  %v1908_v50 = vpack.c.bf16 %v550_v42, %v546_v36  ;;  %v328_v27 = vld [vmem:[#allocation2 + $0x770] sm:$0xff]  ;;  %v582_v29 = vld [vmem:[#allocation2 + $0xf60] sm:$0xff] }
  0xde   :  { %1871 = vmatprep.subr.bf16.mxu0 %v1870_v51  ;;  %1017 = vmatmul.mubr.f32.vlgmr.msra.gmra.mrb[2].mxu1 %v2617_v25  ;;  %v499_v25 = vld [vmem:[#allocation2 + $0xcc8] sm:$0xff]  ;;  %v260_v51 = vld [vmem:[#allocation2 + $0x550] sm:$0xff]  ;;  %v1890_v53 = vpack.c.bf16 %v519_v45, %v515_v43  ;;  %v301_v43 = vld [vmem:[#allocation2 + $0x698] sm:$0xff] }
  0xdf   :  { %2001 = vmatpush1.bf16.msra.mxu1 %v2000_v57  ;;  %1087 = vmatprep.mubr.f32.mxu1 %v2629_v41  ;;  %v1882_v23 = vpack.c.bf16 %v503_v16, %v499_v25  ;;  %v1884_v41 = vpack.c.bf16 %v502_v24, %v498_v20  ;;  %v523_v57 = vld [vmem:[#allocation2 + $0xd88] sm:$0xff]  ;;  %v285_v25 = vld [vmem:[#allocation2 + $0x618] sm:$0xff]  ;;  %v1900_v20 = vpack.c.bf16 %v534_v15, %v530_v10  ;;  %v288_v24 = vld [vmem:[#allocation2 + $0x630] sm:$0xff] }
  0xe0   :  { %875 = vmatmul.mubr.f32.vlgmr.msra.gmra.mrb[0].mxu0 %v2642_v44  ;;  %2003 = vmatprep.subr.bf16.mxu1 %v2002_v59  ;;  %v2020_v59 = vpack.c.bf16 %v264_v52, %v260_v51  ;;  %v289_v16 = vld [vmem:[#allocation2 + $0x638] sm:$0xff]  ;;  %v554_v52 = vld [vmem:[#allocation2 + $0xe80] sm:$0xff]  ;;  %v320_v15 = vld [vmem:[#allocation2 + $0x730] sm:$0xff] }
  0xe1   :  { %1873 = vmatpush1.bf16.msra.mxu0 %v1872_v58  ;;  %945 = vmatprep.mubr.f32.mxu0 %v2656_v11  ;;  %v527_v58 = vld [vmem:[#allocation2 + $0xda8] sm:$0xff]  ;;  %v2030_v21 = vpack.c.bf16 %v289_v16, %v285_v25  ;;  %v305_v45 = vld [vmem:[#allocation2 + $0x6b8] sm:$0xff]  ;;  %v1912_v63 = vpack.c.bf16 %v558_v56, %v554_v52  ;;  %v574_v16 = vld [vmem:[#allocation2 + $0xf20] sm:$0xff] }
  0xe2   :  { %1875 = vmatprep.subr.bf16.mxu0 %v1874_v0  ;;  %v268_v0 = vld [vmem:[#allocation2 + $0x590] sm:$0xff]  ;;  %v1894_v2 = vpack.c.bf16 %v527_v58, %v523_v57  ;;  %v2038_v51 = vpack.c.bf16 %v305_v45, %v301_v43  ;;  %v309_v57 = vld [vmem:[#allocation2 + $0x6d8] sm:$0xff]  ;;  %v590_v45 = vld [vmem:[#allocation2 + $0xfa0] sm:$0xff] }
  0xe3   :  { %2005 = vmatpush1.bf16.msra.mxu1 %v2004_v5  ;;  %v531_v5 = vld [vmem:[#allocation2 + $0xdc8] sm:$0xff]  ;;  %v313_v58 = vld [vmem:[#allocation2 + $0x6f8] sm:$0xff]  ;;  %v336_v42 = vld [vmem:[#allocation2 + $0x7b0] sm:$0xff] }
  0xe4   :  { %2007 = vmatprep.subr.bf16.mxu1 %v2006_v7  ;;  %v2024_v7 = vpack.c.bf16 %v272_v1, %v268_v0  ;;  %v2042_v0 = vpack.c.bf16 %v313_v58, %v309_v57  ;;  %v562_v1 = vld [vmem:[#allocation2 + $0xec0] sm:$0xff]  ;;  %v344_v56 = vld [vmem:[#allocation2 + $0x7f0] sm:$0xff] }
  0xe5   :  { %1877 = vmatpush1.bf16.msra.mxu0 %v1876_v6  ;;  %v535_v6 = vld [vmem:[#allocation2 + $0xde8] sm:$0xff]  ;;  %v1916_v10 = vpack.c.bf16 %v566_v33, %v562_v1  ;;  %v598_v58 = vld [vmem:[#allocation2 + $0xfe0] sm:$0xff]  ;;  %v348_v1 = vld [vmem:[#allocation2 + $0x810] sm:$0xff] }
  0xe6   :  { %1879 = vmatprep.subr.bf16.mxu0 %v1878_v12  ;;  %v276_v12 = vld [vmem:[#allocation2 + $0x5d0] sm:$0xff]  ;;  %v1898_v14 = vpack.c.bf16 %v535_v6, %v531_v5  ;;  %v317_v5 = vld [vmem:[#allocation2 + $0x718] sm:$0xff] }
  0xe7   :  { %2009 = vmatpush1.bf16.msra.mxu1 %v2008_v17  ;;  %v539_v17 = vld [vmem:[#allocation2 + $0xe08] sm:$0xff]  ;;  %v321_v6 = vld [vmem:[#allocation2 + $0x738] sm:$0xff] }
  0xe8   :  { %2011 = vmatprep.subr.bf16.mxu1 %v2010_v19  ;;  %v2028_v19 = vpack.c.bf16 %v280_v13, %v276_v12  ;;  %v2046_v12 = vpack.c.bf16 %v321_v6, %v317_v5  ;;  %v570_v13 = vld [vmem:[#allocation2 + $0xf00] sm:$0xff]  ;;  %v356_v6 = vld [vmem:[#allocation2 + $0x850] sm:$0xff] }
  0xe9   :  { %1881 = vmatpush1.bf16.msra.mxu0 %v1880_v18  ;;  %v543_v18 = vld [vmem:[#allocation2 + $0xe28] sm:$0xff]  ;;  %v1920_v22 = vpack.c.bf16 %v574_v16, %v570_v13 }
  0xea   :  { %1883 = vmatprep.subr.bf16.mxu0 %v1882_v23  ;;  %v284_v23 = vld [vmem:[#allocation2 + $0x610] sm:$0xff]  ;;  %v1902_v26 = vpack.c.bf16 %v543_v18, %v539_v17  ;;  %v325_v17 = vld [vmem:[#allocation2 + $0x758] sm:$0xff] }
  0xeb   :  { %2013 = vmatpush1.bf16.msra.mxu1 %v2012_v30  ;;  %v547_v30 = vld [vmem:[#allocation2 + $0xe48] sm:$0xff]  ;;  %v329_v18 = vld [vmem:[#allocation2 + $0x778] sm:$0xff] }
  0xec   :  { %2015 = vmatprep.subr.bf16.mxu1 %v2014_v31  ;;  %v2032_v31 = vpack.c.bf16 %v288_v24, %v284_v23  ;;  %v2050_v23 = vpack.c.bf16 %v329_v18, %v325_v17  ;;  %v578_v24 = vld [vmem:[#allocation2 + $0xf40] sm:$0xff]  ;;  %v1241_v13 = vld [vmem:[#allocation6 + $0x8] sm:$0xff]  ;;  %v1242_v17 = vld [vmem:[#allocation6 + $0x10] sm:$0xff] }
  0xed   :  { %1885 = vmatpush1.bf16.msra.mxu0 %v1884_v41  ;;  %v551_v41 = vld [vmem:[#allocation2 + $0xe68] sm:$0xff]  ;;  %v1924_v36 = vpack.c.bf16 %v582_v29, %v578_v24 }
  0xee   :  { %1887 = vmatprep.subr.bf16.mxu0 %v1886_v37  ;;  %v292_v37 = vld [vmem:[#allocation2 + $0x650] sm:$0xff]  ;;  %v1906_v40 = vpack.c.bf16 %v551_v41, %v547_v30  ;;  %v333_v30 = vld [vmem:[#allocation2 + $0x798] sm:$0xff] }
  0xef   :  { %2017 = vmatpush1.bf16.msra.mxu1 %v2016_v46  ;;  %v555_v46 = vld [vmem:[#allocation2 + $0xe88] sm:$0xff]  ;;  %v337_v41 = vld [vmem:[#allocation2 + $0x7b8] sm:$0xff] }
  0xf0   :  { %2019 = vmatprep.subr.bf16.mxu1 %v2018_v49  ;;  %v2036_v49 = vpack.c.bf16 %v296_v39, %v292_v37  ;;  %v2054_v37 = vpack.c.bf16 %v337_v41, %v333_v30  ;;  %v586_v39 = vld [vmem:[#allocation2 + $0xf80] sm:$0xff]  ;;  %v1245_v18 = vld [vmem:[#allocation6 + $0x28] sm:$0xff] }
  0xf1   :  { %1889 = vmatpush1.bf16.msra.mxu0 %v1888_v47  ;;  %v559_v47 = vld [vmem:[#allocation2 + $0xea8] sm:$0xff]  ;;  %v1928_v52 = vpack.c.bf16 %v590_v45, %v586_v39  ;;  %v372_v41 = vld [vmem:[#allocation2 + $0x8d0] sm:$0xff]  ;;  %v1255_v39 = vld [vmem:[#allocation6 + $0x78] sm:$0xff] }
  0xf2   :  { %1891 = vmatprep.subr.bf16.mxu0 %v1890_v53  ;;  %v300_v53 = vld [vmem:[#allocation2 + $0x690] sm:$0xff]  ;;  %v1910_v38 = vpack.c.bf16 %v559_v47, %v555_v46  ;;  %v341_v46 = vld [vmem:[#allocation2 + $0x7d8] sm:$0xff] }
  0xf3   :  { %2021 = vmatpush1.bf16.msra.mxu1 %v2020_v59  ;;  %v563_v59 = vld [vmem:[#allocation2 + $0xec8] sm:$0xff]  ;;  %v345_v47 = vld [vmem:[#allocation2 + $0x7f8] sm:$0xff] }
  0xf4   :  { %2023 = vmatprep.subr.bf16.mxu1 %v2022_v62  ;;  %v2040_v62 = vpack.c.bf16 %v304_v54, %v300_v53  ;;  %v2058_v53 = vpack.c.bf16 %v345_v47, %v341_v46  ;;  %v594_v54 = vld [vmem:[#allocation2 + $0xfc0] sm:$0xff]  ;;  %v1249_v24 = vld [vmem:[#allocation6 + $0x48] sm:$0xff] }
  0xf5   :  { %1893 = vmatpush1.bf16.msra.mxu0 %v1892_v60  ;;  %v567_v60 = vld [vmem:[#allocation2 + $0xee8] sm:$0xff]  ;;  %v380_v46 = vld [vmem:[#allocation2 + $0x910] sm:$0xff] }
  0xf6   :  { %1895 = vmatprep.subr.bf16.mxu0 %v1894_v2  ;;  %v308_v2 = vld [vmem:[#allocation2 + $0x6d0] sm:$0xff]  ;;  %v1914_v4 = vpack.c.bf16 %v567_v60, %v563_v59  ;;  %v349_v59 = vld [vmem:[#allocation2 + $0x818] sm:$0xff] }
  0xf7   :  { %2025 = vmatpush1.bf16.msra.mxu1 %v2024_v7  ;;  %v571_v7 = vld [vmem:[#allocation2 + $0xf08] sm:$0xff]  ;;  %v353_v60 = vld [vmem:[#allocation2 + $0x838] sm:$0xff] }
  0xf8   :  { %2027 = vmatprep.subr.bf16.mxu1 %v2026_v9  ;;  %v2044_v9 = vpack.c.bf16 %v312_v3, %v308_v2  ;;  %v352_v2 = vld [vmem:[#allocation2 + $0x830] sm:$0xff]  ;;  %v357_v3 = vld [vmem:[#allocation2 + $0x858] sm:$0xff] }
  0xf9   :  { %1897 = vmatpush1.bf16.msra.mxu0 %v1896_v8  ;;  %v575_v8 = vld [vmem:[#allocation2 + $0xf28] sm:$0xff]  ;;  %v2064_v33 = vpack.c.bf16 %v352_v2, %v348_v1  ;;  %v392_v1 = vld [vmem:[#allocation2 + $0x970] sm:$0xff] }
  0xfa   :  { %1899 = vmatprep.subr.bf16.mxu0 %v1898_v14  ;;  %v316_v14 = vld [vmem:[#allocation2 + $0x710] sm:$0xff]  ;;  %v1918_v25 = vpack.c.bf16 %v575_v8, %v571_v7  ;;  %v365_v8 = vld [vmem:[#allocation2 + $0x898] sm:$0xff] }
  0xfb   :  { %2029 = vmatpush1.bf16.msra.mxu1 %v2028_v19  ;;  %v579_v19 = vld [vmem:[#allocation2 + $0xf48] sm:$0xff]  ;;  %v360_v7 = vld [vmem:[#allocation2 + $0x870] sm:$0xff] }
  0xfc   :  { %2031 = vmatprep.subr.bf16.mxu1 %v2030_v21  ;;  %v2048_v21 = vpack.c.bf16 %v320_v15, %v316_v14  ;;  %v1243_v14 = vld [vmem:[#allocation6 + $0x18] sm:$0xff]  ;;  %v1240_v15 = vld [vmem:[#allocation6] sm:$0xff]  ;;  %v1261_v2 = vld [vmem:[#allocation6 + $0xa8] sm:$0xff] }
  0xfd   :  { %1901 = vmatpush1.bf16.msra.mxu0 %v1900_v20  ;;  %v583_v20 = vld [vmem:[#allocation2 + $0xf68] sm:$0xff]  ;;  %v2190_v16 = vpack.c.bf16 %v1243_v14, %v1241_v13  ;;  %v400_v13 = vld [vmem:[#allocation2 + $0x9b0] sm:$0xff] }
  0xfe   :  { %1903 = vmatprep.subr.bf16.mxu0 %v1902_v26  ;;  %v324_v26 = vld [vmem:[#allocation2 + $0x750] sm:$0xff]  ;;  %v1922_v28 = vpack.c.bf16 %v583_v20, %v579_v19  ;;  %v1247_v19 = vld [vmem:[#allocation6 + $0x38] sm:$0xff] }
  0xff   :  { %2033 = vmatpush1.bf16.msra.mxu1 %v2032_v31  ;;  %v587_v31 = vld [vmem:[#allocation2 + $0xf88] sm:$0xff] }
 0x100   :  { %2035 = vmatprep.subr.bf16.mxu1 %v2034_v35  ;;  %v2052_v35 = vpack.c.bf16 %v328_v27, %v324_v26  ;;  %v373_v26 = vld [vmem:[#allocation2 + $0x8d8] sm:$0xff]  ;;  %v1265_v14 = vld [vmem:[#allocation6 + $0xc8] sm:$0xff] }
 0x101   :  { %1905 = vmatpush1.bf16.msra.mxu0 %v1904_v32  ;;  %v591_v32 = vld [vmem:[#allocation2 + $0xfa8] sm:$0xff]  ;;  %v377_v27 = vld [vmem:[#allocation2 + $0x8f8] sm:$0xff] }
 0x102   :  { %1907 = vmatprep.subr.bf16.mxu0 %v1906_v40  ;;  %v332_v40 = vld [vmem:[#allocation2 + $0x790] sm:$0xff]  ;;  %v1926_v43 = vpack.c.bf16 %v591_v32, %v587_v31  ;;  %v1248_v32 = vld [vmem:[#allocation6 + $0x40] sm:$0xff] }
 0x103   :  { %2037 = vmatpush1.bf16.msra.mxu1 %v2036_v49  ;;  %v595_v49 = vld [vmem:[#allocation2 + $0xfc8] sm:$0xff] }
 0x104   :  { %2039 = vmatprep.subr.bf16.mxu1 %v2038_v51  ;;  %v2056_v51 = vpack.c.bf16 %v336_v42, %v332_v40  ;;  %v381_v40 = vld [vmem:[#allocation2 + $0x918] sm:$0xff] }
 0x105   :  { %1909 = vmatpush1.bf16.msra.mxu0 %v1908_v50  ;;  %v599_v50 = vld [vmem:[#allocation2 + $0xfe8] sm:$0xff]  ;;  %v385_v42 = vld [vmem:[#allocation2 + $0x938] sm:$0xff] }
 0x106   :  { %1911 = vmatprep.subr.bf16.mxu0 %v1910_v38  ;;  %v340_v38 = vld [vmem:[#allocation2 + $0x7d0] sm:$0xff]  ;;  %v1930_v57 = vpack.c.bf16 %v599_v50, %v595_v49  ;;  %v1252_v49 = vld [vmem:[#allocation6 + $0x60] sm:$0xff] }
 0x107   :  { %2041 = vmatpush1.bf16.msra.mxu1 %v2040_v62  ;;  %v2060_v62 = vpack.c.bf16 %v344_v56, %v340_v38  ;;  %v1254_v50 = vld [vmem:[#allocation6 + $0x70] sm:$0xff] }
 0x108   :  { %2043 = vmatprep.subr.bf16.mxu1 %v2042_v0  ;;  %v2062_v0 = vpack.c.bf16 %v353_v60, %v349_v59  ;;  %v389_v38 = vld [vmem:[#allocation2 + $0x958] sm:$0xff]  ;;  %v388_v59 = vld [vmem:[#allocation2 + $0x950] sm:$0xff] }
 0x109   :  { %1913 = vmatpush1.bf16.msra.mxu0 %v1912_v63  ;;  %v1932_v63 = vpack.c.bf16 %v598_v58, %v594_v54  ;;  %v1259_v54 = vld [vmem:[#allocation6 + $0x98] sm:$0xff] }
 0x10a   :  { %1915 = vmatprep.subr.bf16.mxu0 %v1914_v4  ;;  %v361_v4 = vld [vmem:[#allocation2 + $0x878] sm:$0xff] }
 0x10b   :  { %2045 = vmatpush1.bf16.msra.mxu1 %v2044_v9  ;;  %v2066_v5 = vpack.c.bf16 %v361_v4, %v357_v3  ;;  %v369_v9 = vld [vmem:[#allocation2 + $0x8b8] sm:$0xff] }
 0x10c   :  { %2047 = vmatprep.subr.bf16.mxu1 %v2046_v12  ;;  %v368_v12 = vld [vmem:[#allocation2 + $0x8b0] sm:$0xff]  ;;  %v2070_v20 = vpack.c.bf16 %v369_v9, %v365_v8  ;;  %v393_v56 = vld [vmem:[#allocation2 + $0x978] sm:$0xff]  ;;  %v1260_v9 = vld [vmem:[#allocation6 + $0xa0] sm:$0xff] }
 0x10d   :  { %1917 = vmatpush1.bf16.msra.mxu0 %v1916_v10  ;;  %v364_v10 = vld [vmem:[#allocation2 + $0x890] sm:$0xff]  ;;  %v1263_v3 = vld [vmem:[#allocation6 + $0xb8] sm:$0xff] }
 0x10e   :  { %1919 = vmatprep.subr.bf16.mxu0 %v1918_v25  ;;  %v2068_v25 = vpack.c.bf16 %v360_v7, %v356_v6  ;;  %v2072_v30 = vpack.c.bf16 %v368_v12, %v364_v10  ;;  %v397_v4 = vld [vmem:[#allocation2 + $0x998] sm:$0xff]  ;;  %v2084_v6 = vpack.c.bf16 %v392_v1, %v388_v59  ;;  %v396_v7 = vld [vmem:[#allocation2 + $0x990] sm:$0xff]  ;;  %v2210_v8 = vpack.c.bf16 %v1263_v3, %v1261_v2 }
 0x10f   :  { %2049 = vmatpush1.bf16.msra.mxu1 %v2048_v21  ;;  %v2192_v21 = vpack.c.bf16 %v1242_v17, %v1240_v15  ;;  %v1262_v10 = vld [vmem:[#allocation6 + $0xb0] sm:$0xff]  ;;  %v1267_v15 = vld [vmem:[#allocation6 + $0xd8] sm:$0xff]  ;;  %v1281_v2 = vld [vmem:[#allocation6 + $0x148] sm:$0xff] }
 0x110   :  { %2051 = vmatprep.subr.bf16.mxu1 %v2050_v23  ;;  %v1246_v23 = vld [vmem:[#allocation6 + $0x30] sm:$0xff]  ;;  %v2212_v17 = vpack.c.bf16 %v1262_v10, %v1260_v9  ;;  %v1283_v3 = vld [vmem:[#allocation6 + $0x158] sm:$0xff]  ;;  %v1280_v9 = vld [vmem:[#allocation6 + $0x140] sm:$0xff] }
 0x111   :  { %1921 = vmatpush1.bf16.msra.mxu0 %v1920_v22  ;;  %v2194_v22 = vpack.c.bf16 %v1247_v19, %v1245_v18  ;;  %v2088_v18 = vpack.c.bf16 %v400_v13, %v396_v7  ;;  %v404_v19 = vld [vmem:[#allocation2 + $0x9d0] sm:$0xff] }
 0x112   :  { %1923 = vmatprep.subr.bf16.mxu0 %v1922_v28  ;;  %v1251_v28 = vld [vmem:[#allocation6 + $0x58] sm:$0xff]  ;;  %v428_v59 = vld [vmem:[#allocation2 + $0xa90] sm:$0xff] }
 0x113   :  { %2053 = vmatpush1.bf16.msra.mxu1 %v2052_v35  ;;  %v2198_v31 = vpack.c.bf16 %v1251_v28, %v1249_v24  ;;  %v1250_v35 = vld [vmem:[#allocation6 + $0x50] sm:$0xff]  ;;  %v1269_v24 = vld [vmem:[#allocation6 + $0xe8] sm:$0xff] }
 0x114   :  { %2055 = vmatprep.subr.bf16.mxu1 %v2054_v37  ;;  %v1253_v37 = vld [vmem:[#allocation6 + $0x68] sm:$0xff]  ;;  %v417_v28 = vld [vmem:[#allocation2 + $0xa38] sm:$0xff] }
 0x115   :  { %1925 = vmatpush1.bf16.msra.mxu0 %v1924_v36  ;;  %v376_v36 = vld [vmem:[#allocation2 + $0x8f0] sm:$0xff]  ;;  %v2202_v47 = vpack.c.bf16 %v1255_v39, %v1253_v37  ;;  %v1275_v39 = vld [vmem:[#allocation6 + $0x118] sm:$0xff] }
 0x116   :  { %1927 = vmatprep.subr.bf16.mxu0 %v1926_v43  ;;  %v2200_v43 = vpack.c.bf16 %v1250_v35, %v1248_v32  ;;  %v2076_v45 = vpack.c.bf16 %v376_v36, %v372_v41  ;;  %v412_v41 = vld [vmem:[#allocation2 + $0xa10] sm:$0xff]  ;;  %v1268_v32 = vld [vmem:[#allocation6 + $0xe0] sm:$0xff] }
 0x117   :  { %2057 = vmatpush1.bf16.msra.mxu1 %v2056_v51  ;;  %v2078_v51 = vpack.c.bf16 %v385_v42, %v381_v40  ;;  %v1270_v35 = vld [vmem:[#allocation6 + $0xf0] sm:$0xff]  ;;  %v1273_v37 = vld [vmem:[#allocation6 + $0x108] sm:$0xff] }
 0x118   :  { %2059 = vmatprep.subr.bf16.mxu1 %v2058_v53  ;;  %v1257_v53 = vld [vmem:[#allocation6 + $0x88] sm:$0xff]  ;;  %v421_v40 = vld [vmem:[#allocation2 + $0xa58] sm:$0xff] }
 0x119   :  { %1929 = vmatpush1.bf16.msra.mxu0 %v1928_v52  ;;  %v384_v52 = vld [vmem:[#allocation2 + $0x930] sm:$0xff]  ;;  %v2206_v60 = vpack.c.bf16 %v1259_v54, %v1257_v53  ;;  %v425_v42 = vld [vmem:[#allocation2 + $0xa78] sm:$0xff] }
 0x11a   :  { %1931 = vmatprep.subr.bf16.mxu0 %v1930_v57  ;;  %v2204_v57 = vpack.c.bf16 %v1254_v50, %v1252_v49  ;;  %v2080_v58 = vpack.c.bf16 %v384_v52, %v380_v46  ;;  %v416_v36 = vld [vmem:[#allocation2 + $0xa30] sm:$0xff]  ;;  %v1272_v49 = vld [vmem:[#allocation6 + $0x100] sm:$0xff]  ;;  %v1279_v54 = vld [vmem:[#allocation6 + $0x138] sm:$0xff] }
 0x11b   :  { %2061 = vmatpush1.bf16.msra.mxu1 %v2060_v62  ;;  %v1256_v62 = vld [vmem:[#allocation6 + $0x80] sm:$0xff]  ;;  %v420_v46 = vld [vmem:[#allocation2 + $0xa50] sm:$0xff] }
 0x11c   :  { %2063 = vmatprep.subr.bf16.mxu1 %v2062_v0  ;;  %v2082_v0 = vpack.c.bf16 %v393_v56, %v389_v38  ;;  %v1274_v50 = vld [vmem:[#allocation6 + $0x110] sm:$0xff]  ;;  %v1277_v53 = vld [vmem:[#allocation6 + $0x128] sm:$0xff] }
 0x11d   :  { %1933 = vmatpush1.bf16.msra.mxu0 %v1932_v63  ;;  %v1258_v63 = vld [vmem:[#allocation6 + $0x90] sm:$0xff] }
 0x11e   :  { %1088 = vmatmul.mubr.f32.vlgmr.msra.gmra.mrb[2].mxu1 %v2624_v34  ;;  %v1244_v34 = vld [vmem:[#allocation6 + $0x20] sm:$0xff]  ;;  %2191 = vmatprep.subr.bf16.mxu0 %v2190_v16  ;;  %v409_v16 = vld [vmem:[#allocation2 + $0x9f8] sm:$0xff]  ;;  %v424_v52 = vld [vmem:[#allocation2 + $0xa70] sm:$0xff] }
 0x11f   :  { %2065 = vmatpush1.bf16.msra.mxu1 %v2064_v33  ;;  %1158 = vmatprep.mubr.f32.mxu1 %v2646_v48  ;;  %v2196_v29 = vpack.c.bf16 %v1246_v23, %v1244_v34  ;;  %v2074_v48 = vpack.c.bf16 %v377_v27, %v373_v26  ;;  %v401_v33 = vld [vmem:[#allocation2 + $0x9b8] sm:$0xff]  ;;  %v408_v23 = vld [vmem:[#allocation2 + $0x9f0] sm:$0xff] }
 0x120   :  { %946 = vmatmul.mubr.f32.vlgmr.msra.gmra.mrb[0].mxu0 %v2652_v55  ;;  %2067 = vmatprep.subr.bf16.mxu1 %v2066_v5  ;;  %v2208_v5 = vpack.c.bf16 %v1258_v63, %v1256_v62  ;;  %v2086_v12 = vpack.c.bf16 %v401_v33, %v397_v4  ;;  %v1271_v26 = vld [vmem:[#allocation6 + $0xf8] sm:$0xff]  ;;  %v1276_v62 = vld [vmem:[#allocation6 + $0x120] sm:$0xff]  ;;  %v1278_v63 = vld [vmem:[#allocation6 + $0x130] sm:$0xff] }
 0x121   :  { %2193 = vmatpush1.bf16.msra.mxu0 %v2192_v21  ;;  %v1264_v21 = vld [vmem:[#allocation6 + $0xc0] sm:$0xff]  ;;  %v413_v27 = vld [vmem:[#allocation2 + $0xa18] sm:$0xff]  ;;  %v432_v1 = vld [vmem:[#allocation2 + $0xab0] sm:$0xff] }
 0x122   :  { %2195 = vmatprep.subr.bf16.mxu0 %v2194_v22  ;;  %v1266_v22 = vld [vmem:[#allocation6 + $0xd0] sm:$0xff] }
 0x123   :  { %2069 = vmatpush1.bf16.msra.mxu1 %v2068_v25  ;;  %v405_v25 = vld [vmem:[#allocation2 + $0x9d8] sm:$0xff]  ;;  %v436_v7 = vld [vmem:[#allocation2 + $0xad0] sm:$0xff] }
 0x124   :  { %2071 = vmatprep.subr.bf16.mxu1 %v2070_v20  ;;  %v2214_v20 = vpack.c.bf16 %v1267_v15, %v1265_v14  ;;  %v2090_v34 = vpack.c.bf16 %v409_v16, %v405_v25  ;;  %v429_v38 = vld [vmem:[#allocation2 + $0xa98] sm:$0xff]  ;;  %v440_v13 = vld [vmem:[#allocation2 + $0xaf0] sm:$0xff] }
 0x125   :  { %2197 = vmatpush1.bf16.msra.mxu0 %v2196_v29  ;;  %v2216_v29 = vpack.c.bf16 %v1266_v22, %v1264_v21  ;;  %v433_v56 = vld [vmem:[#allocation2 + $0xab8] sm:$0xff]  ;;  %v1285_v14 = vld [vmem:[#allocation6 + $0x168] sm:$0xff]  ;;  %v1284_v21 = vld [vmem:[#allocation6 + $0x160] sm:$0xff] }
 0x126   :  { %2199 = vmatprep.subr.bf16.mxu0 %v2198_v31  ;;  %v2218_v31 = vpack.c.bf16 %v1271_v26, %v1269_v24  ;;  %v437_v4 = vld [vmem:[#allocation2 + $0xad8] sm:$0xff]  ;;  %v1289_v24 = vld [vmem:[#allocation6 + $0x188] sm:$0xff] }
 0x127   :  { %2073 = vmatpush1.bf16.msra.mxu1 %v2072_v30  ;;  %v2092_v30 = vpack.c.bf16 %v408_v23, %v404_v19  ;;  %v441_v33 = vld [vmem:[#allocation2 + $0xaf8] sm:$0xff]  ;;  %v444_v19 = vld [vmem:[#allocation2 + $0xb10] sm:$0xff] }
 0x128   :  { %2075 = vmatprep.subr.bf16.mxu1 %v2074_v48  ;;  %v2094_v48 = vpack.c.bf16 %v417_v28, %v413_v27  ;;  %v1282_v10 = vld [vmem:[#allocation6 + $0x150] sm:$0xff]  ;;  %v1287_v15 = vld [vmem:[#allocation6 + $0x178] sm:$0xff] }
 0x129   :  { %2201 = vmatpush1.bf16.msra.mxu0 %v2200_v43  ;;  %v2220_v43 = vpack.c.bf16 %v1270_v35, %v1268_v32  ;;  %v445_v25 = vld [vmem:[#allocation2 + $0xb18] sm:$0xff]  ;;  %v448_v23 = vld [vmem:[#allocation2 + $0xb30] sm:$0xff]  ;;  %v1288_v32 = vld [vmem:[#allocation6 + $0x180] sm:$0xff] }
 0x12a   :  { %2203 = vmatprep.subr.bf16.mxu0 %v2202_v47  ;;  %v2222_v47 = vpack.c.bf16 %v1275_v39, %v1273_v37  ;;  %v449_v16 = vld [vmem:[#allocation2 + $0xb38] sm:$0xff]  ;;  %v1293_v37 = vld [vmem:[#allocation6 + $0x1a8] sm:$0xff] }
 0x12b   :  { %2077 = vmatpush1.bf16.msra.mxu1 %v2076_v45  ;;  %v2096_v45 = vpack.c.bf16 %v416_v36, %v412_v41  ;;  %v1286_v22 = vld [vmem:[#allocation6 + $0x170] sm:$0xff]  ;;  %v1291_v26 = vld [vmem:[#allocation6 + $0x198] sm:$0xff] }
 0x12c   :  { %2079 = vmatprep.subr.bf16.mxu1 %v2078_v51  ;;  %v2098_v51 = vpack.c.bf16 %v425_v42, %v421_v40  ;;  %v453_v27 = vld [vmem:[#allocation2 + $0xb58] sm:$0xff]  ;;  %v452_v41 = vld [vmem:[#allocation2 + $0xb50] sm:$0xff] }
 0x12d   :  { %2205 = vmatpush1.bf16.msra.mxu0 %v2204_v57  ;;  %v2224_v57 = vpack.c.bf16 %v1274_v50, %v1272_v49  ;;  %v457_v28 = vld [vmem:[#allocation2 + $0xb78] sm:$0xff]  ;;  %v456_v36 = vld [vmem:[#allocation2 + $0xb70] sm:$0xff]  ;;  %v1292_v49 = vld [vmem:[#allocation6 + $0x1a0] sm:$0xff] }
 0x12e   :  { %2207 = vmatprep.subr.bf16.mxu0 %v2206_v60  ;;  %v2226_v60 = vpack.c.bf16 %v1279_v54, %v1277_v53  ;;  %v1290_v35 = vld [vmem:[#allocation6 + $0x190] sm:$0xff]  ;;  %v1295_v39 = vld [vmem:[#allocation6 + $0x1b8] sm:$0xff]  ;;  %v1297_v53 = vld [vmem:[#allocation6 + $0x1c8] sm:$0xff] }
 0x12f   :  { %2081 = vmatpush1.bf16.msra.mxu1 %v2080_v58  ;;  %v2100_v58 = vpack.c.bf16 %v424_v52, %v420_v46  ;;  %v461_v40 = vld [vmem:[#allocation2 + $0xb98] sm:$0xff]  ;;  %v460_v46 = vld [vmem:[#allocation2 + $0xb90] sm:$0xff] }
 0x130   :  { %2083 = vmatprep.subr.bf16.mxu1 %v2082_v0  ;;  %v2102_v0 = vpack.c.bf16 %v433_v56, %v429_v38  ;;  %v465_v42 = vld [vmem:[#allocation2 + $0xbb8] sm:$0xff]  ;;  %v464_v52 = vld [vmem:[#allocation2 + $0xbb0] sm:$0xff] }
 0x131   :  { %2209 = vmatpush1.bf16.msra.mxu0 %v2208_v5  ;;  %v2228_v5 = vpack.c.bf16 %v1278_v63, %v1276_v62  ;;  %v1294_v50 = vld [vmem:[#allocation6 + $0x1b0] sm:$0xff]  ;;  %v1299_v54 = vld [vmem:[#allocation6 + $0x1d8] sm:$0xff] }
 0x132   :  { %2211 = vmatprep.subr.bf16.mxu0 %v2210_v8  ;;  %v2230_v8 = vpack.c.bf16 %v1283_v3, %v1281_v2  ;;  %v469_v38 = vld [vmem:[#allocation2 + $0xbd8] sm:$0xff]  ;;  %v468_v62 = vld [vmem:[#allocation2 + $0xbd0] sm:$0xff] }
 0x133   :  { %2085 = vmatpush1.bf16.msra.mxu1 %v2084_v6  ;;  %v2104_v6 = vpack.c.bf16 %v432_v1, %v428_v59  ;;  %v473_v56 = vld [vmem:[#allocation2 + $0xbf8] sm:$0xff]  ;;  %v2246_v59 = vpack.c.bf16 %v1299_v54, %v1297_v53  ;;  %v472_v63 = vld [vmem:[#allocation2 + $0xbf0] sm:$0xff]  ;;  %v1300_v54 = vld [vmem:[#allocation6 + $0x1e0] sm:$0xff] }
 0x134   :  { %2087 = vmatprep.subr.bf16.mxu1 %v2086_v12  ;;  %v2106_v12 = vpack.c.bf16 %v441_v33, %v437_v4  ;;  %v481_v1 = vld [vmem:[#allocation2 + $0xc38] sm:$0xff]  ;;  %v2124_v2 = vpack.c.bf16 %v472_v63, %v468_v62  ;;  %v476_v4 = vld [vmem:[#allocation2 + $0xc10] sm:$0xff] }
 0x135   :  { %2213 = vmatpush1.bf16.msra.mxu0 %v2212_v17  ;;  %v2232_v17 = vpack.c.bf16 %v1282_v10, %v1280_v9  ;;  %v480_v33 = vld [vmem:[#allocation2 + $0xc30] sm:$0xff]  ;;  %v545_v62 = vld [vmem:[#allocation2 + $0xe38] sm:$0xff] }
 0x136   :  { %2215 = vmatprep.subr.bf16.mxu0 %v2214_v20  ;;  %v2234_v20 = vpack.c.bf16 %v1287_v15, %v1285_v14  ;;  %v484_v9 = vld [vmem:[#allocation2 + $0xc50] sm:$0xff] }
 0x137   :  { %2089 = vmatpush1.bf16.msra.mxu1 %v2088_v18  ;;  %v2108_v18 = vpack.c.bf16 %v440_v13, %v436_v7  ;;  %v2128_v7 = vpack.c.bf16 %v480_v33, %v476_v4  ;;  %v488_v10 = vld [vmem:[#allocation2 + $0xc70] sm:$0xff]  ;;  %v497_v13 = vld [vmem:[#allocation2 + $0xcb8] sm:$0xff] }
 0x138   :  { %2091 = vmatprep.subr.bf16.mxu1 %v2090_v34  ;;  %v2110_v34 = vpack.c.bf16 %v449_v16, %v445_v25  ;;  %v2132_v14 = vpack.c.bf16 %v488_v10, %v484_v9  ;;  %v492_v25 = vld [vmem:[#allocation2 + $0xc90] sm:$0xff]  ;;  %v553_v4 = vld [vmem:[#allocation2 + $0xe78] sm:$0xff] }
 0x139   :  { %2217 = vmatpush1.bf16.msra.mxu0 %v2216_v29  ;;  %v2236_v29 = vpack.c.bf16 %v1286_v22, %v1284_v21  ;;  %v496_v16 = vld [vmem:[#allocation2 + $0xcb0] sm:$0xff] }
 0x13a   :  { %2219 = vmatprep.subr.bf16.mxu0 %v2218_v31  ;;  %v2238_v31 = vpack.c.bf16 %v1291_v26, %v1289_v24  ;;  %v500_v21 = vld [vmem:[#allocation2 + $0xcd0] sm:$0xff] }
 0x13b   :  { %2093 = vmatpush1.bf16.msra.mxu1 %v2092_v30  ;;  %v2112_v30 = vpack.c.bf16 %v448_v23, %v444_v19  ;;  %v2136_v19 = vpack.c.bf16 %v496_v16, %v492_v25  ;;  %v504_v22 = vld [vmem:[#allocation2 + $0xcf0] sm:$0xff]  ;;  %v513_v23 = vld [vmem:[#allocation2 + $0xd38] sm:$0xff] }
 0x13c   :  { %2095 = vmatprep.subr.bf16.mxu1 %v2094_v48  ;;  %v2114_v48 = vpack.c.bf16 %v457_v28, %v453_v27  ;;  %v508_v26 = vld [vmem:[#allocation2 + $0xd10] sm:$0xff]  ;;  %v517_v27 = vld [vmem:[#allocation2 + $0xd58] sm:$0xff] }
 0x13d   :  { %2221 = vmatpush1.bf16.msra.mxu0 %v2220_v43  ;;  %v2240_v43 = vpack.c.bf16 %v1290_v35, %v1288_v32  ;;  %v521_v28 = vld [vmem:[#allocation2 + $0xd78] sm:$0xff]  ;;  %v1305_v33 = vld [vmem:[#allocation6 + $0x208] sm:$0xff] }
 0x13e   :  { %2223 = vmatprep.subr.bf16.mxu0 %v2222_v47  ;;  %v2242_v47 = vpack.c.bf16 %v1295_v39, %v1293_v37  ;;  %v525_v32 = vld [vmem:[#allocation2 + $0xd98] sm:$0xff]  ;;  %v548_v9 = vld [vmem:[#allocation2 + $0xe50] sm:$0xff] }
 0x13f   :  { %2097 = vmatpush1.bf16.msra.mxu1 %v2096_v45  ;;  %v2116_v45 = vpack.c.bf16 %v456_v36, %v452_v41  ;;  %v516_v41 = vld [vmem:[#allocation2 + $0xd50] sm:$0xff]  ;;  %v529_v35 = vld [vmem:[#allocation2 + $0xdb8] sm:$0xff]  ;;  %v1296_v36 = vld [vmem:[#allocation6 + $0x1c0] sm:$0xff] }
 0x140   :  { %2099 = vmatprep.subr.bf16.mxu1 %v2098_v51  ;;  %v2118_v51 = vpack.c.bf16 %v465_v42, %v461_v40  ;;  %v1298_v37 = vld [vmem:[#allocation6 + $0x1d0] sm:$0xff]  ;;  %v2150_v39 = vpack.c.bf16 %v529_v35, %v525_v32 }
 0x141   :  { %2225 = vmatpush1.bf16.msra.mxu0 %v2224_v57  ;;  %v2244_v57 = vpack.c.bf16 %v1294_v50, %v1292_v49  ;;  %v524_v40 = vld [vmem:[#allocation2 + $0xd90] sm:$0xff]  ;;  %v589_v32 = vld [vmem:[#allocation2 + $0xf98] sm:$0xff] }
 0x142   :  { %2227 = vmatprep.subr.bf16.mxu0 %v2226_v60  ;;  %v2122_v60 = vpack.c.bf16 %v473_v56, %v469_v38  ;;  %v528_v42 = vld [vmem:[#allocation2 + $0xdb0] sm:$0xff]  ;;  %v593_v35 = vld [vmem:[#allocation2 + $0xfb8] sm:$0xff] }
 0x143   :  { %2101 = vmatpush1.bf16.msra.mxu1 %v2100_v58  ;;  %v2120_v58 = vpack.c.bf16 %v464_v52, %v460_v46  ;;  %v533_v46 = vld [vmem:[#allocation2 + $0xdd8] sm:$0xff]  ;;  %v1301_v50 = vld [vmem:[#allocation6 + $0x1e8] sm:$0xff]  ;;  %v2152_v52 = vpack.c.bf16 %v528_v42, %v524_v40 }
 0x144   :  { %2103 = vmatprep.subr.bf16.mxu1 %v2102_v0  ;;  %v477_v0 = vld [vmem:[#allocation2 + $0xc18] sm:$0xff]  ;;  %v552_v10 = vld [vmem:[#allocation2 + $0xe70] sm:$0xff] }
 0x145   :  { %2229 = vmatpush1.bf16.msra.mxu0 %v2228_v5  ;;  %v2126_v3 = vpack.c.bf16 %v481_v1, %v477_v0  ;;  %v485_v5 = vld [vmem:[#allocation2 + $0xc58] sm:$0xff]  ;;  %v540_v1 = vld [vmem:[#allocation2 + $0xe10] sm:$0xff] }
 0x146   :  { %2231 = vmatprep.subr.bf16.mxu0 %v2230_v8  ;;  %v1302_v38 = vld [vmem:[#allocation6 + $0x1f0] sm:$0xff] }
 0x147   :  { %2105 = vmatpush1.bf16.msra.mxu1 %v2104_v6  ;;  %v489_v6 = vld [vmem:[#allocation2 + $0xc78] sm:$0xff]  ;;  %v556_v25 = vld [vmem:[#allocation2 + $0xe90] sm:$0xff] }
 0x148   :  { %2107 = vmatprep.subr.bf16.mxu1 %v2106_v12  ;;  %v2130_v8 = vpack.c.bf16 %v489_v6, %v485_v5  ;;  %v493_v12 = vld [vmem:[#allocation2 + $0xc98] sm:$0xff]  ;;  %v560_v16 = vld [vmem:[#allocation2 + $0xeb0] sm:$0xff] }
 0x149   :  { %2233 = vmatpush1.bf16.msra.mxu0 %v2232_v17  ;;  %v2134_v15 = vpack.c.bf16 %v497_v13, %v493_v12  ;;  %v501_v17 = vld [vmem:[#allocation2 + $0xcd8] sm:$0xff] }
 0x14a   :  { %2235 = vmatprep.subr.bf16.mxu0 %v2234_v20  ;;  %v1307_v5 = vld [vmem:[#allocation6 + $0x218] sm:$0xff] }
 0x14b   :  { %2109 = vmatpush1.bf16.msra.mxu1 %v2108_v18  ;;  %v505_v18 = vld [vmem:[#allocation2 + $0xcf8] sm:$0xff]  ;;  %v2254_v6 = vpack.c.bf16 %v1307_v5, %v1305_v33  ;;  %v1308_v33 = vld [vmem:[#allocation6 + $0x220] sm:$0xff] }
 0x14c   :  { %2111 = vmatprep.subr.bf16.mxu1 %v2110_v34  ;;  %v2138_v20 = vpack.c.bf16 %v505_v18, %v501_v17  ;;  %v509_v34 = vld [vmem:[#allocation2 + $0xd18] sm:$0xff] }
 0x14d   :  { %2237 = vmatpush1.bf16.msra.mxu0 %v2236_v29  ;;  %v2142_v24 = vpack.c.bf16 %v513_v23, %v509_v34  ;;  %v557_v12 = vld [vmem:[#allocation2 + $0xe98] sm:$0xff] }
 0x14e   :  { %2239 = vmatprep.subr.bf16.mxu0 %v2238_v31  ;;  %v520_v31 = vld [vmem:[#allocation2 + $0xd70] sm:$0xff]  ;;  %v561_v13 = vld [vmem:[#allocation2 + $0xeb8] sm:$0xff] }
 0x14f   :  { %2113 = vmatpush1.bf16.msra.mxu1 %v2112_v30  ;;  %v2146_v30 = vpack.c.bf16 %v521_v28, %v517_v27  ;;  %v565_v17 = vld [vmem:[#allocation2 + $0xed8] sm:$0xff] }
 0x150   :  { %2115 = vmatprep.subr.bf16.mxu1 %v2114_v48  ;;  %v2148_v48 = vpack.c.bf16 %v520_v31, %v516_v41  ;;  %v569_v18 = vld [vmem:[#allocation2 + $0xef8] sm:$0xff]  ;;  %v580_v41 = vld [vmem:[#allocation2 + $0xf50] sm:$0xff] }
 0x151   :  { %2241 = vmatpush1.bf16.msra.mxu0 %v2240_v43  ;;  %v2248_v43 = vpack.c.bf16 %v1298_v37, %v1296_v36  ;;  %v573_v34 = vld [vmem:[#allocation2 + $0xf18] sm:$0xff]  ;;  %v584_v31 = vld [vmem:[#allocation2 + $0xf70] sm:$0xff]  ;;  %v2182_v36 = vpack.c.bf16 %v593_v35, %v589_v32  ;;  %v1316_v32 = vld [vmem:[#allocation6 + $0x260] sm:$0xff] }
 0x152   :  { %2243 = vmatprep.subr.bf16.mxu0 %v2242_v47  ;;  %v537_v47 = vld [vmem:[#allocation2 + $0xdf8] sm:$0xff]  ;;  %v588_v37 = vld [vmem:[#allocation2 + $0xf90] sm:$0xff] }
 0x153   :  { %2117 = vmatpush1.bf16.msra.mxu1 %v2116_v45  ;;  %v2154_v56 = vpack.c.bf16 %v537_v47, %v533_v46  ;;  %v577_v23 = vld [vmem:[#allocation2 + $0xf38] sm:$0xff]  ;;  %v596_v47 = vld [vmem:[#allocation2 + $0xfd0] sm:$0xff] }
 0x154   :  { %2119 = vmatprep.subr.bf16.mxu1 %v2118_v51  ;;  %v1303_v51 = vld [vmem:[#allocation6 + $0x1f8] sm:$0xff]  ;;  %v1318_v35 = vld [vmem:[#allocation6 + $0x270] sm:$0xff] }
 0x155   :  { %2245 = vmatpush1.bf16.msra.mxu0 %v2244_v57  ;;  %v2250_v53 = vpack.c.bf16 %v1303_v51, %v1301_v50  ;;  %v532_v57 = vld [vmem:[#allocation2 + $0xdd0] sm:$0xff]  ;;  %v581_v27 = vld [vmem:[#allocation2 + $0xf58] sm:$0xff] }
 0x156   :  { %2247 = vmatprep.subr.bf16.mxu0 %v2246_v59  ;;  %v2252_v59 = vpack.c.bf16 %v1302_v38, %v1300_v54  ;;  %v585_v28 = vld [vmem:[#allocation2 + $0xf78] sm:$0xff]  ;;  %v600_v50 = vld [vmem:[#allocation2 + $0xff0] sm:$0xff]  ;;  %v610_v54 = vsub.s32 1, %v2608_v61 }
 0x157   :  { %2121 = vmatpush1.bf16.msra.mxu1 %v2120_v58  ;;  %v536_v58 = vld [vmem:[#allocation2 + $0xdf0] sm:$0xff]  ;;  %v597_v40 = vld [vmem:[#allocation2 + $0xfd8] sm:$0xff]  ;;  %v2188_v51 = vpack.c.bf16 %v600_v50, %v596_v47  ;;  %v1549_v47 = vld [vmem:[%s2796_s5 + $0xc8] sm:$0xff] }
 0x158   :  { %2123 = vmatprep.subr.bf16.mxu1 %v2122_v60  ;;  %v541_v60 = vld [vmem:[#allocation2 + $0xe18] sm:$0xff]  ;;  %v2156_v63 = vpack.c.bf16 %v536_v58, %v532_v57 }
 0x159   :  { %2249 = vmatpush1.bf16.msra.mxu0 %v2248_v43  ;;  %v2158_v0 = vpack.c.bf16 %v545_v62, %v541_v60  ;;  %v601_v42 = vld [vmem:[#allocation2 + $0xff8] sm:$0xff]  ;;  %v1304_v62 = vld [vmem:[#allocation6 + $0x200] sm:$0xff] }
 0x15a   :  { %2251 = vmatprep.subr.bf16.mxu0 %v2250_v53  ;;  %v2186_v46 = vpack.c.bf16 %v601_v42, %v597_v40  ;;  %v2673_v53 = vld [vmem:[#allocation4] sm:$0xf]  ;;  %v1530_v40 = vld [vmem:[%s2796_s5 + $0x30] sm:$0xff]  ;;  %v1531_v42 = vld [vmem:[%s2796_s5 + $0x38] sm:$0xff] }
 0x15b   :  { %2125 = vmatpush1.bf16.msra.mxu1 %v2124_v2  ;;  %v544_v2 = vld [vmem:[#allocation2 + $0xe30] sm:$0xff] }
 0x15c   :  { %2127 = vmatprep.subr.bf16.mxu1 %v2126_v3  ;;  %v549_v3 = vld [vmem:[#allocation2 + $0xe58] sm:$0xff] }
 0x15d   :  { %2253 = vmatpush1.bf16.msra.mxu0 %v2252_v59 }
 0x15e   :  { %1159 = vmatmul.mubr.f32.vlgmr.msra.gmra.mrb[2].mxu1 %v2642_v44  ;;  %v2140_v44 = vpack.c.bf16 %v504_v22, %v500_v21  ;;  %2255 = vmatprep.subr.bf16.mxu0 %v2254_v6  ;;  %v564_v21 = vld [vmem:[#allocation2 + $0xed0] sm:$0xff] }
 0x15f   :  { %2129 = vmatpush1.bf16.msra.mxu1 %v2128_v7  ;;  %1229 = vmatprep.mubr.f32.mxu1 %v2656_v11  ;;  %v512_v11 = vld [vmem:[#allocation2 + $0xd30] sm:$0xff]  ;;  %v2160_v7 = vpack.c.bf16 %v544_v2, %v540_v1  ;;  %v1311_v2 = vld [vmem:[#allocation6 + $0x238] sm:$0xff] }
 0x160   :  { %2131 = vmatprep.subr.bf16.mxu1 %v2130_v8  ;;  %v2144_v29 = vpack.c.bf16 %v512_v11, %v508_v26  ;;  %v2162_v8 = vpack.c.bf16 %v553_v4, %v549_v3  ;;  %v568_v22 = vld [vmem:[#allocation2 + $0xef0] sm:$0xff] }
 0x161   :  { %v572_v26 = vld [vmem:[#allocation2 + $0xf10] sm:$0xff] }
 0x162   :  { %v576_v11 = vld [vmem:[#allocation2 + $0xf30] sm:$0xff] }
 0x163   :  { %2133 = vmatpush1.bf16.msra.mxu1 %v2132_v14  ;;  %v2164_v14 = vpack.c.bf16 %v552_v10, %v548_v9  ;;  %v1309_v1 = vld [vmem:[#allocation6 + $0x228] sm:$0xff]  ;;  %v1315_v9 = vld [vmem:[#allocation6 + $0x258] sm:$0xff] }
 0x164   :  { %2135 = vmatprep.subr.bf16.mxu1 %v2134_v15  ;;  %v2166_v15 = vpack.c.bf16 %v561_v13, %v557_v12  ;;  %v2258_v6 = vpack.c.bf16 %v1311_v2, %v1309_v1  ;;  %v1524_v10 = vld [vmem:[%s2796_s5] sm:$0xff]  ;;  %v1525_v13 = vld [vmem:[%s2796_s5 + $0x8] sm:$0xff] }
 0x165   :  { %v1324_v2 = vld [vmem:[#allocation6 + $0x2a0] sm:$0xff] }
 0x167   :  { %2137 = vmatpush1.bf16.msra.mxu1 %v2136_v19  ;;  %v2168_v19 = vpack.c.bf16 %v560_v16, %v556_v25  ;;  %v2320_v16 = vpack.c.bf16 %v1525_v13, %v1524_v10  ;;  %v1330_v13 = vld [vmem:[#allocation6 + $0x2d0] sm:$0xff] }
 0x168   :  { %2139 = vmatprep.subr.bf16.mxu1 %v2138_v20  ;;  %v2170_v20 = vpack.c.bf16 %v569_v18, %v565_v17  ;;  %v1526_v18 = vld [vmem:[%s2796_s5 + $0x10] sm:$0xff] }
 0x16b   :  { %2141 = vmatpush1.bf16.msra.mxu1 %v2140_v44  ;;  %v2172_v44 = vpack.c.bf16 %v568_v22, %v564_v21  ;;  %v1312_v22 = vld [vmem:[#allocation6 + $0x240] sm:$0xff] }
 0x16c   :  { %2143 = vmatprep.subr.bf16.mxu1 %v2142_v24  ;;  %v2174_v24 = vpack.c.bf16 %v577_v23, %v573_v34  ;;  %v1314_v34 = vld [vmem:[#allocation6 + $0x250] sm:$0xff]  ;;  %v1545_v23 = vld [vmem:[%s2796_s5 + $0xa8] sm:$0xff] }
 0x16f   :  { %2145 = vmatpush1.bf16.msra.mxu1 %v2144_v29  ;;  %v2176_v29 = vpack.c.bf16 %v576_v11, %v572_v26 }
 0x170   :  { %2147 = vmatprep.subr.bf16.mxu1 %v2146_v30  ;;  %v2178_v30 = vpack.c.bf16 %v585_v28, %v581_v27  ;;  %v1528_v27 = vld [vmem:[%s2796_s5 + $0x20] sm:$0xff]  ;;  %v1529_v28 = vld [vmem:[%s2796_s5 + $0x28] sm:$0xff] }
 0x171   :  { %v2667_v45 = vpop.f32.mrb[0].mxu1 }
 0x172   :  { %v2669_v49 = vpop.f32.mrb[1].mxu1 }
 0x173   :  { %2149 = vmatpush1.bf16.msra.mxu1 %v2148_v48  ;;  %v2180_v48 = vpack.c.bf16 %v584_v31, %v580_v41  ;;  %v1547_v41 = vld [vmem:[%s2796_s5 + $0xb8] sm:$0xff] }
 0x174   :  { %2151 = vmatprep.subr.bf16.mxu1 %v2150_v39  ;;  %v592_v39 = vld [vmem:[#allocation2 + $0xfb0] sm:$0xff] }
 0x175   :  { %v2184_v43 = vpack.c.bf16 %v592_v39, %v588_v37  ;;  %v2328_v37 = vpack.c.bf16 %v1529_v28, %v1528_v27 }
 0x177   :  { %2153 = vmatpush1.bf16.msra.mxu1 %v2152_v52  ;;  %v606_v52 = vsub.s32 0, %v2608_v61 }
 0x178   :  { %2155 = vmatprep.subr.bf16.mxu1 %v2154_v56  ;;  %v611_v56 = vrot.slane %v2673_v53, %v610_v54 }
 0x179   :  { %v607_v38 = vrot.slane %v2673_v53, %v606_v52 }
 0x17a   :  { %v737_v58 = vadd.f32 %v2669_v49, %v611_v56  ;;  %v1541_v49 = vld [vmem:[%s2796_s5 + $0x88] sm:$0xff] }
 0x17b   :  { %2157 = vmatpush1.bf16.msra.mxu1 %v2156_v63  ;;  %v735_v57 = vadd.f32 %v2667_v45, %v607_v38  ;;  %v1306_v63 = vld [vmem:[#allocation6 + $0x210] sm:$0xff]  ;;  %v1540_v45 = vld [vmem:[%s2796_s5 + $0x80] sm:$0xff]  ;;  %v1325_v56 = vld [vmem:[#allocation6 + $0x2a8] sm:$0xff] }
 0x17c   :  { %2159 = vmatprep.subr.bf16.mxu1 %v2158_v0  ;;  %v2256_v4 = vpack.c.bf16 %v1306_v63, %v1304_v62  ;;  %v2318_v12 = vpack.c.bf16 %v1541_v49, %v1540_v45  ;;  %v1322_v38 = vld [vmem:[#allocation6 + $0x290] sm:$0xff]  ;;  %v1552_v45 = vld [vmem:[%s2796_s5 + $0xe0] sm:$0xff]  ;;  %v1553_v49 = vld [vmem:[%s2796_s5 + $0xe8] sm:$0xff] }
 0x17d   :  { %v1550_v63 = vld [vmem:[%s2796_s5 + $0xd0] sm:$0xff] }
 0x17f   :  { %2161 = vmatpush1.bf16.msra.mxu1 %v2160_v7  ;;  %v1310_v7 = vld [vmem:[#allocation6 + $0x230] sm:$0xff] }
 0x180   :  { %2163 = vmatprep.subr.bf16.mxu1 %v2162_v8  ;;  %v1313_v8 = vld [vmem:[#allocation6 + $0x248] sm:$0xff]  ;;  %v2260_v25 = vpack.c.bf16 %v1310_v7, %v1308_v33  ;;  %v1331_v33 = vld [vmem:[#allocation6 + $0x2d8] sm:$0xff] }
 0x181   :  { %v2262_v21 = vpack.c.bf16 %v1315_v9, %v1313_v8  ;;  %v1534_v7 = vld [vmem:[%s2796_s5 + $0x50] sm:$0xff]  ;;  %v1535_v8 = vld [vmem:[%s2796_s5 + $0x58] sm:$0xff] }
 0x183   :  { %2165 = vmatpush1.bf16.msra.mxu1 %v2164_v14  ;;  %v1542_v14 = vld [vmem:[%s2796_s5 + $0x90] sm:$0xff] }
 0x184   :  { %2167 = vmatprep.subr.bf16.mxu1 %v2166_v15  ;;  %v1543_v15 = vld [vmem:[%s2796_s5 + $0x98] sm:$0xff] }
 0x185   :  { %v2322_v17 = vpack.c.bf16 %v1543_v15, %v1542_v14  ;;  %v1333_v14 = vld [vmem:[#allocation6 + $0x2e8] sm:$0xff]  ;;  %v1335_v15 = vld [vmem:[#allocation6 + $0x2f8] sm:$0xff] }
 0x187   :  { %2169 = vmatpush1.bf16.msra.mxu1 %v2168_v19  ;;  %v1527_v19 = vld [vmem:[%s2796_s5 + $0x18] sm:$0xff] }
 0x188   :  { %2171 = vmatprep.subr.bf16.mxu1 %v2170_v20  ;;  %v1544_v20 = vld [vmem:[%s2796_s5 + $0xa0] sm:$0xff]  ;;  %v2324_v26 = vpack.c.bf16 %v1527_v19, %v1526_v18  ;;  %v2282_v18 = vpack.c.bf16 %v1335_v15, %v1333_v14 }
 0x189   :  { %v2326_v11 = vpack.c.bf16 %v1545_v23, %v1544_v20  ;;  %v1332_v19 = vld [vmem:[#allocation6 + $0x2e0] sm:$0xff]  ;;  %v1334_v20 = vld [vmem:[#allocation6 + $0x2f0] sm:$0xff] }
 0x18b   :  { %2173 = vmatpush1.bf16.msra.mxu1 %v2172_v44  ;;  %v1317_v44 = vld [vmem:[#allocation6 + $0x268] sm:$0xff] }
 0x18c   :  { %2175 = vmatprep.subr.bf16.mxu1 %v2174_v24  ;;  %v1319_v24 = vld [vmem:[#allocation6 + $0x278] sm:$0xff] }
 0x18d   :  { %v2266_v31 = vpack.c.bf16 %v1319_v24, %v1317_v44  ;;  %v1336_v44 = vld [vmem:[#allocation6 + $0x300] sm:$0xff]  ;;  %v1338_v24 = vld [vmem:[#allocation6 + $0x310] sm:$0xff] }
 0x18e   :  { %v2288_v27 = vpack.c.bf16 %v1338_v24, %v1336_v44  ;;  %v1538_v44 = vld [vmem:[%s2796_s5 + $0x70] sm:$0xff]  ;;  %v1539_v24 = vld [vmem:[%s2796_s5 + $0x78] sm:$0xff] }
 0x18f   :  { %2177 = vmatpush1.bf16.msra.mxu1 %v2176_v29  ;;  %v2264_v29 = vpack.c.bf16 %v1314_v34, %v1312_v22  ;;  %v1339_v22 = vld [vmem:[#allocation6 + $0x318] sm:$0xff]  ;;  %v2284_v34 = vpack.c.bf16 %v1334_v20, %v1332_v19 }
 0x190   :  { %2179 = vmatprep.subr.bf16.mxu1 %v2178_v30  ;;  %v1546_v30 = vld [vmem:[%s2796_s5 + $0xb0] sm:$0xff]  ;;  %v1536_v20 = vld [vmem:[%s2796_s5 + $0x60] sm:$0xff] }
 0x191   :  { %v2330_v39 = vpack.c.bf16 %v1547_v41, %v1546_v30  ;;  %v1342_v30 = vld [vmem:[#allocation6 + $0x330] sm:$0xff]  ;;  %v1345_v41 = vld [vmem:[#allocation6 + $0x348] sm:$0xff] }
 0x193   :  { %2181 = vmatpush1.bf16.msra.mxu1 %v2180_v48  ;;  %v1321_v48 = vld [vmem:[#allocation6 + $0x288] sm:$0xff] }
 0x194   :  { %2183 = vmatprep.subr.bf16.mxu1 %v2182_v36  ;;  %v1323_v36 = vld [vmem:[#allocation6 + $0x298] sm:$0xff] }
 0x195   :  { %v2270_v50 = vpack.c.bf16 %v1323_v36, %v1321_v48  ;;  %v1344_v48 = vld [vmem:[#allocation6 + $0x340] sm:$0xff]  ;;  %v1346_v36 = vld [vmem:[#allocation6 + $0x350] sm:$0xff] }
 0x197   :  { %2185 = vmatpush1.bf16.msra.mxu1 %v2184_v43  ;;  %v2268_v43 = vpack.c.bf16 %v1318_v35, %v1316_v32 }
 0x198   :  { %2187 = vmatprep.subr.bf16.mxu1 %v2186_v46  ;;  %v1548_v46 = vld [vmem:[%s2796_s5 + $0xc0] sm:$0xff] }
 0x19b   :  { %2189 = vmatpush1.bf16.msra.mxu1 %v2188_v51  ;;  %v1320_v51 = vld [vmem:[#allocation6 + $0x280] sm:$0xff] }
 0x19c   :  { %2319 = vmatprep.subr.bf16.mxu1 %v2318_v12  ;;  %v2272_v62 = vpack.c.bf16 %v1322_v38, %v1320_v51  ;;  %v1328_v12 = vld [vmem:[#allocation6 + $0x2c0] sm:$0xff] }
 0x19e   :  { %1230 = vmatmul.mubr.f32.vlgmr.msra.gmra.mrb[2].mxu1 %v2652_v55 }
 0x19f   :  { %2321 = vmatpush3.bf16.msra.mxu1 %v2320_v16  ;;  %v2342_v16 = vpack.c.bf16 %v1553_v49, %v1552_v45  ;;  %v1366_v45 = vld [vmem:[#allocation6 + $0x3f0] sm:$0xff] }
 0x1a0   :  { %2323 = vmatprep.subr.bf16.mxu1 %v2322_v17  ;;  %v2280_v17 = vpack.c.bf16 %v1330_v13, %v1328_v12  ;;  %v618_v12 = vsub.s32 3, %v2608_v61 }
 0x1a2   :  { %v619_v14 = vrot.slane %v2673_v53, %v618_v12 }
 0x1a3   :  { %2325 = vmatpush3.bf16.msra.mxu1 %v2324_v26  ;;  %v1341_v26 = vld [vmem:[#allocation6 + $0x328] sm:$0xff] }
 0x1a4   :  { %2327 = vmatprep.subr.bf16.mxu1 %v2326_v11  ;;  %v1343_v11 = vld [vmem:[#allocation6 + $0x338] sm:$0xff] }
 0x1a5   :  { %v2290_v28 = vpack.c.bf16 %v1343_v11, %v1341_v26  ;;  %v2348_v26 = vpack.c.bf16 %v1539_v24, %v1538_v44  ;;  %v1368_v11 = vld [vmem:[#allocation7] sm:$0x3] }
 0x1a7   :  { %2329 = vmatpush3.bf16.msra.mxu1 %v2328_v37  ;;  %v1349_v37 = vld [vmem:[#allocation6 + $0x368] sm:$0xff] }
 0x1a8   :  { %2331 = vmatprep.subr.bf16.mxu1 %v2330_v39  ;;  %v1351_v39 = vld [vmem:[#allocation6 + $0x378] sm:$0xff] }
 0x1f3   :  { %v947_v59 = vpop.f32.mrb[0].mxu0 }
 0x1f4   :  { %v2351_v55 = vadd.f32 %v947_v59, %v735_v57  ;;  %v949_v60 = vpop.f32.mrb[1].mxu0  ;;  %v1327_v57 = vld [vmem:[#allocation6 + $0x2b8] sm:$0xff]  ;;  %v2334_v59 = vpack.c.bf16 %v1549_v47, %v1548_v46  ;;  %v1350_v46 = vld [vmem:[#allocation6 + $0x370] sm:$0xff]  ;;  %v1353_v47 = vld [vmem:[#allocation6 + $0x388] sm:$0xff] }
 0x1f5   :  { %v2353_v0 = vadd.f32 %v949_v60, %v737_v58  ;;  %v2332_v58 = vpack.c.bf16 %v1531_v42, %v1530_v40  ;;  %v1533_v60 = vld [vmem:[%s2796_s5 + $0x48] sm:$0xff]  ;;  %v2274_v1 = vpack.c.bf16 %v1327_v57, %v1325_v56  ;;  %v2296_v40 = vpack.c.bf16 %v1346_v36, %v1344_v48  ;;  %v1354_v57 = vld [vmem:[#allocation6 + $0x390] sm:$0xff]  ;;  %v1642_v36 = vld [vmem:[#allocation9] ss:$0 sm:$0xff] }
 0x1f6   :  { %v1236_v5 = vmax.f32 %v2351_v55, 0.0  ;;  %v1532_v55 = vld [vmem:[%s2796_s5 + $0x40] sm:$0xff]  ;;  %v2298_v42 = vpack.c.bf16 %v1351_v39, %v1349_v37 }
 0x1f7   :  { %v1237_v3 = vmax.f32 %v2353_v0, 0.0  ;;  %v1551_v0 = vld [vmem:[%s2796_s5 + $0xd8] sm:$0xff]  ;;  %2333 = vmatpush3.bf16.msra.mxu1 %v2332_v58  ;;  %v1352_v56 = vld [vmem:[#allocation6 + $0x380] sm:$0xff]  ;;  %v1357_v58 = vld [vmem:[#allocation6 + $0x3a8] sm:$0xff] }
 0x1f8   :  { %2335 = vmatprep.subr.bf16.mxu1 %v2334_v59  ;;  %v1359_v59 = vld [vmem:[#allocation6 + $0x3b8] sm:$0xff] }
 0x1f9   :  { %1444 = vmatprep.mubr.f32.mxu0 %v1237_v3  ;;  %v1326_v3 = vld [vmem:[#allocation6 + $0x2b0] sm:$0xff] }
 0x1fa   :  { %1445 = vmatmul.mubr.f32.vlgmr.msra.gmra.mrb[2].mxu0 %v1236_v5  ;;  %v2336_v5 = vpack.c.bf16 %v1533_v60, %v1532_v55  ;;  %v2276_v9 = vpack.c.bf16 %v1326_v3, %v1324_v2  ;;  %v2304_v55 = vpack.c.bf16 %v1354_v57, %v1352_v56  ;;  %v2306_v60 = vpack.c.bf16 %v1359_v59, %v1357_v58 }
 0x1fb   :  { %2257 = vmatpush1.bf16.msra.mxu0 %v2256_v4  ;;  %v1329_v4 = vld [vmem:[#allocation6 + $0x2c8] sm:$0xff] }
 0x1fc   :  { %2259 = vmatprep.subr.bf16.mxu0 %v2258_v6  ;;  %v2338_v6 = vpack.c.bf16 %v1551_v0, %v1550_v63  ;;  %v2278_v10 = vpack.c.bf16 %v1331_v33, %v1329_v4  ;;  %2337 = vmatpush3.bf16.msra.mxu1 %v2336_v5  ;;  %v1358_v63 = vld [vmem:[#allocation6 + $0x3b0] sm:$0xff]  ;;  %v1361_v0 = vld [vmem:[#allocation6 + $0x3c8] sm:$0xff]  ;;  %v1360_v4 = vld [vmem:[#allocation6 + $0x3c0] sm:$0xff] }
 0x1fd   :  { %v1362_v33 = vld [vmem:[#allocation6 + $0x3d0] sm:$0xff]  ;;  %v1365_v5 = vld [vmem:[#allocation6 + $0x3e8] sm:$0xff] }
 0x1fe   :  { %2339 = vmatprep.subr.bf16.mxu1 %v2338_v6  ;;  %v1367_v6 = vld [vmem:[#allocation6 + $0x3f8] sm:$0xff] }
 0x1ff   :  { %2261 = vmatpush1.bf16.msra.mxu0 %v2260_v25  ;;  %v2340_v25 = vpack.c.bf16 %v1535_v8, %v1534_v7  ;;  %v2312_v7 = vpack.c.bf16 %v1362_v33, %v1360_v4  ;;  %v2314_v8 = vpack.c.bf16 %v1367_v6, %v1365_v5 }
 0x200   :  { %2263 = vmatprep.subr.bf16.mxu0 %v2262_v21  ;;  %v1337_v21 = vld [vmem:[#allocation6 + $0x308] sm:$0xff] }
 0x201   :  { %2341 = vmatpush3.bf16.msra.mxu1 %v2340_v25  ;;  %v2286_v23 = vpack.c.bf16 %v1339_v22, %v1337_v21  ;;  %v1537_v21 = vld [vmem:[%s2796_s5 + $0x68] sm:$0xff] }
 0x202   :  { %2343 = vmatprep.subr.bf16.mxu1 %v2342_v16  ;;  %v2344_v22 = vpack.c.bf16 %v1537_v21, %v1536_v20 }
 0x203   :  { %2265 = vmatpush1.bf16.msra.mxu0 %v2264_v29  ;;  %v1340_v29 = vld [vmem:[#allocation6 + $0x320] sm:$0xff] }
 0x204   :  { %2267 = vmatprep.subr.bf16.mxu0 %v2266_v31  ;;  %v1347_v31 = vld [vmem:[#allocation6 + $0x358] sm:$0xff]  ;;  %v2292_v32 = vpack.c.bf16 %v1342_v30, %v1340_v29 }
 0x205   :  { %v2294_v35 = vpack.c.bf16 %v1347_v31, %v1345_v41  ;;  %2345 = vmatpush3.bf16.msra.mxu1 %v2344_v22 }
 0x207   :  { %2269 = vmatpush1.bf16.msra.mxu0 %v2268_v43  ;;  %v1348_v43 = vld [vmem:[#allocation6 + $0x360] sm:$0xff] }
 0x208   :  { %2271 = vmatprep.subr.bf16.mxu0 %v2270_v50  ;;  %v1355_v50 = vld [vmem:[#allocation6 + $0x398] sm:$0xff]  ;;  %v2300_v51 = vpack.c.bf16 %v1350_v46, %v1348_v43 }
 0x209   :  { %v2302_v38 = vpack.c.bf16 %v1355_v50, %v1353_v47 }
 0x20b   :  { %2273 = vmatpush1.bf16.msra.mxu0 %v2272_v62  ;;  %v1356_v62 = vld [vmem:[#allocation6 + $0x3a0] sm:$0xff] }
 0x20c   :  { %2275 = vmatprep.subr.bf16.mxu0 %v2274_v1  ;;  %v1363_v1 = vld [vmem:[#allocation6 + $0x3d8] sm:$0xff]  ;;  %v2308_v2 = vpack.c.bf16 %v1358_v63, %v1356_v62 }
 0x20d   :  { %v2310_v3 = vpack.c.bf16 %v1363_v1, %v1361_v0 }
 0x20f   :  { %2277 = vmatpush1.bf16.msra.mxu0 %v2276_v9  ;;  %v1364_v9 = vld [vmem:[#allocation6 + $0x3e0] sm:$0xff] }
 0x210   :  { %2279 = vmatprep.subr.bf16.mxu0 %v2278_v10  ;;  %v2316_v49 = vpack.c.bf16 %v1366_v45, %v1364_v9  ;;  %v614_v10 = vsub.s32 2, %v2608_v61 }
 0x212   :  { %v615_v13 = vrot.slane %v2673_v53, %v614_v10  ;;  %v1554_v53 = vld [vmem:[%s2796_s5 + $0xf0] sm:$0xff] }
 0x213   :  { %2281 = vmatpush1.bf16.msra.mxu0 %v2280_v17 }
 0x214   :  { %2283 = vmatprep.subr.bf16.mxu0 %v2282_v18 }
 0x217   :  { %2285 = vmatpush1.bf16.msra.mxu0 %v2284_v34  ;;  %v1555_v34 = vld [vmem:[%s2796_s5 + $0xf8] sm:$0xff] }
 0x218   :  { %2287 = vmatprep.subr.bf16.mxu0 %v2286_v23  ;;  %v2346_v23 = vpack.c.bf16 %v1555_v34, %v1554_v53 }
 0x21a   :  { %2347 = vmatprep.subr.bf16.mxu1 %v2346_v23 }
 0x21b   :  { %2289 = vmatpush1.bf16.msra.mxu0 %v2288_v27  ;;  %2349 = vmatpush3.bf16.msra.mxu1 %v2348_v26  ;;  %v1373_v27 = vrot.slane %v1368_v11, %v606_v52 }
 0x21c   :  { %2291 = vmatprep.subr.bf16.mxu0 %v2290_v28  ;;  %v1377_v28 = vrot.slane %v1368_v11, %v610_v54 }
 0x21f   :  { %2293 = vmatpush1.bf16.msra.mxu0 %v2292_v32 }
 0x220   :  { %2295 = vmatprep.subr.bf16.mxu0 %v2294_v35 }
 0x223   :  { %2297 = vmatpush1.bf16.msra.mxu0 %v2296_v40 }
 0x224   :  { %2299 = vmatprep.subr.bf16.mxu0 %v2298_v42 }
 0x227   :  { %2301 = vmatpush1.bf16.msra.mxu0 %v2300_v51 }
 0x228   :  { %2303 = vmatprep.subr.bf16.mxu0 %v2302_v38 }
 0x22b   :  { %2305 = vmatpush1.bf16.msra.mxu0 %v2304_v55 }
 0x22c   :  { %2307 = vmatprep.subr.bf16.mxu0 %v2306_v60 }
 0x22f   :  { %2309 = vmatpush1.bf16.msra.mxu0 %v2308_v2 }
 0x230   :  { %2311 = vmatprep.subr.bf16.mxu0 %v2310_v3 }
 0x233   :  { %2313 = vmatpush1.bf16.msra.mxu0 %v2312_v7 }
 0x234   :  { %2315 = vmatprep.subr.bf16.mxu0 %v2314_v8 }
 0x237   :  { %2317 = vmatpush1.bf16.msra.mxu0 %v2316_v49 }
 0x271   :  { %v1231_v15 = vpop.f32.mrb[2].mxu1 }
 0x272   :  { %v2354_v25 = vadd.f32 %v1231_v15, %v615_v13  ;;  %v1233_v16 = vpop.f32.mrb[3].mxu1 }
 0x273   :  { %v2355_v17 = vadd.f32 %v1233_v16, %v619_v14 }
 0x274   :  { %v1238_v19 = vmax.f32 %v2354_v25, 0.0 }
 0x275   :  { %v1239_v18 = vmax.f32 %v2355_v17, 0.0 }
 0x277   :  { %1515 = vmatprep.mubr.f32.mxu0 %v1239_v18 }
 0x278   :  { %1516 = vmatmul.mubr.f32.vlgmr.msra.gmra.mrb[2].mxu0 %v1238_v19 }
 0x34b   :  { %v1517_v29 = vpop.f32.mrb[2].mxu0 }
 0x34c   :  { %v2356_v30 = vadd.f32 %v1517_v29, %v1373_v27  ;;  %v1519_v41 = vpop.f32.mrb[3].mxu0 }
 0x34d   :  { %v2357_v31 = vadd.f32 %v1519_v41, %v1377_v28 }
 0x34e   :  { %v1522_v35 = vmax.f32 %v2356_v30, 0.0 }
 0x34f   :  { %v1523_v32 = vmax.f32 %v2357_v31, 0.0 }
 0x351   :  { %1627 = vmatprep.mubr.f32.mxu1 %v1523_v32 }
 0x352   :  { %1628 = vmatmul.mubr.f32.vlgmr.msra.gmra.mrb[4].mxu1 %v1522_v35 }
 0x425   :  { %v1675_v48 = vpop.f32.mrb[4].mxu1 }
 0x426   :  { %v1676_v37 = vpop.f32.mrb[5].mxu1 }
 0x427   :  { %v1677_v39 = vadd.f32 %v1676_v37, %v1675_v48 }
 0x429   :  { %v1630_v40 = vadd.f32 %v1677_v39, %v1642_v36 }
 0x42b   :  { %1634 = vst.msk [vmem:[%s2798_s7] sm:$0x3] %vm1633_vm0, %v1630_v40 }
 0x42c   :  { %1639 = vsyncpa [#allocation3], 1 }
 0x42d   :  { %1640 = vsyncpa [#allocation5], 1 }
 0x42e   :  { %1641 = vsyncpa [#allocation8], 1 }

// kernel: pointnet_cls_forward.7
= control target key start
LH: loop header
LB: loop body
LE: loop exit
PB: predicated region body
PF: predicated region fallthrough
CT: control target
= control target key end

     0   :  { %s4534_s0 = inlined_call_operand.vmem [shape: f32[2,1024], index: 0, kind: input, shape index: {}]   ;;  %s4535_s1 = inlined_call_operand.vmem [shape: f32[1024,512], index: 1, kind: input, shape index: {}]   ;;  %s4536_s2 = inlined_call_operand.vmem [shape: f32[1,512], index: 2, kind: input, shape index: {}]   ;;  %s4537_s3 = inlined_call_operand.vmem [shape: f32[512,256], index: 3, kind: input, shape index: {}]   ;;  %s4538_s4 = inlined_call_operand.vmem [shape: f32[1,256], index: 4, kind: input, shape index: {}]   ;;  %s4539_s5 = inlined_call_operand.vmem [shape: f32[256,2], index: 5, kind: input, shape index: {}]   ;;  %s4540_s6 = inlined_call_operand.vmem [shape: f32[1,2], index: 6, kind: input, shape index: {}]   ;;  %s4541_s7 = inlined_call_operand.hbm [shape: f32[2,2], index: 7, kind: output, shape index: {}]  }
   0x1   :  { %v30_v0 = vld [vmem:[%s4535_s1 + $0x8] sm:$0xff]  ;;  %v29_v5 = vld [vmem:[%s4535_s1] sm:$0xff] }
   0x2   :  { %v34_v1 = vld [vmem:[%s4535_s1 + $0x28] sm:$0xff]  ;;  %v33_v6 = vld [vmem:[%s4535_s1 + $0x20] sm:$0xff] }
   0x3   :  { %v158_v2 = vld [vmem:[%s4535_s1 + $0x408] sm:$0xff]  ;;  %v1644_v3 = vpack.c.bf16 %v34_v1, %v30_v0  ;;  %v1646_v8 = vpack.c.bf16 %v33_v6, %v29_v5  ;;  %v157_v9 = vld [vmem:[%s4535_s1 + $0x400] sm:$0xff] }
   0x4   :  { %v162_v4 = vld [vmem:[%s4535_s1 + $0x428] sm:$0xff]  ;;  %v161_v10 = vld [vmem:[%s4535_s1 + $0x420] sm:$0xff] }
   0x5   :  { %v1708_v7 = vpack.c.bf16 %v162_v4, %v158_v2  ;;  %v38_v11 = vld [vmem:[%s4535_s1 + $0x48] sm:$0xff]  ;;  %1645 = vmatprep.subr.bf16.mxu1 %v1644_v3  ;;  %v1710_v12 = vpack.c.bf16 %v161_v10, %v157_v9  ;;  %v37_v18 = vld [vmem:[%s4535_s1 + $0x40] sm:$0xff] }
   0x6   :  { %v42_v13 = vld [vmem:[%s4535_s1 + $0x68] sm:$0xff]  ;;  %1647 = vmatpush1.bf16.msra.mxu1 %v1646_v8  ;;  %v41_v19 = vld [vmem:[%s4535_s1 + $0x60] sm:$0xff] }
   0x7   :  { %v166_v14 = vld [vmem:[%s4535_s1 + $0x448] sm:$0xff]  ;;  %1709 = vmatprep.subr.bf16.mxu0 %v1708_v7  ;;  %v1648_v16 = vpack.c.bf16 %v42_v13, %v38_v11  ;;  %v165_v20 = vld [vmem:[%s4535_s1 + $0x440] sm:$0xff]  ;;  %v1650_v21 = vpack.c.bf16 %v41_v19, %v37_v18 }
   0x8   :  { %v170_v15 = vld [vmem:[%s4535_s1 + $0x468] sm:$0xff]  ;;  %1711 = vmatpush1.bf16.msra.mxu0 %v1710_v12  ;;  %v169_v22 = vld [vmem:[%s4535_s1 + $0x460] sm:$0xff] }
   0x9   :  { %v1712_v17 = vpack.c.bf16 %v170_v15, %v166_v14  ;;  %v46_v23 = vld [vmem:[%s4535_s1 + $0x88] sm:$0xff]  ;;  %1649 = vmatprep.subr.bf16.mxu1 %v1648_v16  ;;  %v1714_v25 = vpack.c.bf16 %v169_v22, %v165_v20  ;;  %v45_v29 = vld [vmem:[%s4535_s1 + $0x80] sm:$0xff] }
   0xa   :  { %v50_v24 = vld [vmem:[%s4535_s1 + $0xa8] sm:$0xff]  ;;  %v49_v31 = vld [vmem:[%s4535_s1 + $0xa0] sm:$0xff]  ;;  %1651 = vmatpush1.bf16.msra.mxu1 %v1650_v21 }
   0xb   :  { %1713 = vmatprep.subr.bf16.mxu0 %v1712_v17  ;;  %v1652_v26 = vpack.c.bf16 %v50_v24, %v46_v23  ;;  %v174_v27 = vld [vmem:[%s4535_s1 + $0x488] sm:$0xff]  ;;  %v173_v32 = vld [vmem:[%s4535_s1 + $0x480] sm:$0xff]  ;;  %v1654_v34 = vpack.c.bf16 %v49_v31, %v45_v29 }
   0xc   :  { %v178_v28 = vld [vmem:[%s4535_s1 + $0x4a8] sm:$0xff]  ;;  %v177_v33 = vld [vmem:[%s4535_s1 + $0x4a0] sm:$0xff]  ;;  %1715 = vmatpush1.bf16.msra.mxu0 %v1714_v25 }
   0xd   :  { %v1716_v30 = vpack.c.bf16 %v178_v28, %v174_v27  ;;  %v54_v35 = vld [vmem:[%s4535_s1 + $0xc8] sm:$0xff]  ;;  %1653 = vmatprep.subr.bf16.mxu1 %v1652_v26  ;;  %v1718_v38 = vpack.c.bf16 %v177_v33, %v173_v32  ;;  %v53_v41 = vld [vmem:[%s4535_s1 + $0xc0] sm:$0xff] }
   0xe   :  { %v58_v36 = vld [vmem:[%s4535_s1 + $0xe8] sm:$0xff]  ;;  %v57_v42 = vld [vmem:[%s4535_s1 + $0xe0] sm:$0xff]  ;;  %1655 = vmatpush1.bf16.msra.mxu1 %v1654_v34 }
   0xf   :  { %v182_v37 = vld [vmem:[%s4535_s1 + $0x4c8] sm:$0xff]  ;;  %v1656_v39 = vpack.c.bf16 %v58_v36, %v54_v35  ;;  %1717 = vmatprep.subr.bf16.mxu0 %v1716_v30  ;;  %v181_v44 = vld [vmem:[%s4535_s1 + $0x4c0] sm:$0xff]  ;;  %v1658_v50 = vpack.c.bf16 %v57_v42, %v53_v41 }
  0x10   :  { %v186_v40 = vld [vmem:[%s4535_s1 + $0x4e8] sm:$0xff]  ;;  %v185_v45 = vld [vmem:[%s4535_s1 + $0x4e0] sm:$0xff]  ;;  %1719 = vmatpush1.bf16.msra.mxu0 %v1718_v38 }
  0x11   :  { %v1720_v43 = vpack.c.bf16 %v186_v40, %v182_v37  ;;  %v62_v46 = vld [vmem:[%s4535_s1 + $0x108] sm:$0xff]  ;;  %1657 = vmatprep.subr.bf16.mxu1 %v1656_v39  ;;  %v1722_v51 = vpack.c.bf16 %v185_v45, %v181_v44  ;;  %v61_v53 = vld [vmem:[%s4535_s1 + $0x100] sm:$0xff] }
  0x12   :  { %v66_v47 = vld [vmem:[%s4535_s1 + $0x128] sm:$0xff]  ;;  %v65_v54 = vld [vmem:[%s4535_s1 + $0x120] sm:$0xff]  ;;  %1659 = vmatpush1.bf16.msra.mxu1 %v1658_v50 }
  0x13   :  { %v190_v48 = vld [vmem:[%s4535_s1 + $0x508] sm:$0xff]  ;;  %v1660_v52 = vpack.c.bf16 %v66_v47, %v62_v46  ;;  %v189_v55 = vld [vmem:[%s4535_s1 + $0x500] sm:$0xff]  ;;  %1721 = vmatprep.subr.bf16.mxu0 %v1720_v43  ;;  %v1662_v62 = vpack.c.bf16 %v65_v54, %v61_v53  ;;  %v543_v46 = vlaneseq  ;;  %v2368_v47 = vmov 1983009808  }
  0x14   :  { %v194_v49 = vld [vmem:[%s4535_s1 + $0x528] sm:$0xff]  ;;  %v193_v57 = vld [vmem:[%s4535_s1 + $0x520] sm:$0xff]  ;;  %1723 = vmatpush1.bf16.msra.mxu0 %v1722_v51 }
  0x15   :  { %v1724_v56 = vpack.c.bf16 %v194_v49, %v190_v48  ;;  %v70_v58 = vld [vmem:[%s4535_s1 + $0x148] sm:$0xff]  ;;  %1661 = vmatprep.subr.bf16.mxu1 %v1660_v52  ;;  %v1726_v63 = vpack.c.bf16 %v193_v57, %v189_v55  ;;  %v69_v1 = vld [vmem:[%s4535_s1 + $0x140] sm:$0xff]  ;;  %v567_v48 = vunpack.c.l.s4 %v2368_v47 }
  0x16   :  { %v74_v59 = vld [vmem:[%s4535_s1 + $0x168] sm:$0xff]  ;;  %v73_v2 = vld [vmem:[%s4535_s1 + $0x160] sm:$0xff]  ;;  %1663 = vmatpush1.bf16.msra.mxu1 %v1662_v62 }
  0x17   :  { %v198_v60 = vld [vmem:[%s4535_s1 + $0x548] sm:$0xff]  ;;  %v1664_v0 = vpack.c.bf16 %v74_v59, %v70_v58  ;;  %v197_v3 = vld [vmem:[%s4535_s1 + $0x540] sm:$0xff]  ;;  %1725 = vmatprep.subr.bf16.mxu0 %v1724_v56  ;;  %v1666_v10 = vpack.c.bf16 %v73_v2, %v69_v1  ;;  %v568_v62 = vunpack.c.0.s8 %v567_v48 }
  0x18   :  { %v202_v61 = vld [vmem:[%s4535_s1 + $0x568] sm:$0xff]  ;;  %v201_v5 = vld [vmem:[%s4535_s1 + $0x560] sm:$0xff]  ;;  %1727 = vmatpush1.bf16.msra.mxu0 %v1726_v63 }
  0x19   :  { %v1728_v4 = vpack.c.bf16 %v202_v61, %v198_v60  ;;  %v78_v6 = vld [vmem:[%s4535_s1 + $0x188] sm:$0xff]  ;;  %1665 = vmatprep.subr.bf16.mxu1 %v1664_v0  ;;  %v1730_v11 = vpack.c.bf16 %v201_v5, %v197_v3  ;;  %v77_v13 = vld [vmem:[%s4535_s1 + $0x180] sm:$0xff]  ;;  %v2662_v61 = vshrl.u32 %v543_v46, 7 }
  0x1a   :  { %v82_v7 = vld [vmem:[%s4535_s1 + $0x1a8] sm:$0xff]  ;;  %v81_v14 = vld [vmem:[%s4535_s1 + $0x1a0] sm:$0xff]  ;;  %1667 = vmatpush1.bf16.msra.mxu1 %v1666_v10 }
  0x1b   :  { %v206_v8 = vld [vmem:[%s4535_s1 + $0x588] sm:$0xff]  ;;  %v1668_v12 = vpack.c.bf16 %v82_v7, %v78_v6  ;;  %v205_v15 = vld [vmem:[%s4535_s1 + $0x580] sm:$0xff]  ;;  %1729 = vmatprep.subr.bf16.mxu0 %v1728_v4  ;;  %v1670_v22 = vpack.c.bf16 %v81_v14, %v77_v13 }
  0x1c   :  { %v210_v9 = vld [vmem:[%s4535_s1 + $0x5a8] sm:$0xff]  ;;  %v209_v17 = vld [vmem:[%s4535_s1 + $0x5a0] sm:$0xff]  ;;  %1731 = vmatpush1.bf16.msra.mxu0 %v1730_v11  ;;  %v2689_v11 = vsub.s32 %v568_v62, %v2662_v61 }
  0x1d   :  { %v1732_v16 = vpack.c.bf16 %v210_v9, %v206_v8  ;;  %v86_v18 = vld [vmem:[%s4535_s1 + $0x1c8] sm:$0xff]  ;;  %1669 = vmatprep.subr.bf16.mxu1 %v1668_v12  ;;  %v1734_v23 = vpack.c.bf16 %v209_v17, %v205_v15  ;;  %v85_v25 = vld [vmem:[%s4535_s1 + $0x1c0] sm:$0xff] }
  0x1e   :  { %v90_v19 = vld [vmem:[%s4535_s1 + $0x1e8] sm:$0xff]  ;;  %v89_v26 = vld [vmem:[%s4535_s1 + $0x1e0] sm:$0xff]  ;;  %1671 = vmatpush1.bf16.msra.mxu1 %v1670_v22 }
  0x1f   :  { %v214_v20 = vld [vmem:[%s4535_s1 + $0x5c8] sm:$0xff]  ;;  %v1672_v24 = vpack.c.bf16 %v90_v19, %v86_v18  ;;  %v213_v27 = vld [vmem:[%s4535_s1 + $0x5c0] sm:$0xff]  ;;  %1733 = vmatprep.subr.bf16.mxu0 %v1732_v16  ;;  %v1674_v34 = vpack.c.bf16 %v89_v26, %v85_v25 }
  0x20   :  { %v218_v21 = vld [vmem:[%s4535_s1 + $0x5e8] sm:$0xff]  ;;  %v217_v29 = vld [vmem:[%s4535_s1 + $0x5e0] sm:$0xff]  ;;  %1735 = vmatpush1.bf16.msra.mxu0 %v1734_v23 }
  0x21   :  { %v1736_v28 = vpack.c.bf16 %v218_v21, %v214_v20  ;;  %v94_v30 = vld [vmem:[%s4535_s1 + $0x208] sm:$0xff]  ;;  %1673 = vmatprep.subr.bf16.mxu1 %v1672_v24  ;;  %v1738_v35 = vpack.c.bf16 %v217_v29, %v213_v27  ;;  %v93_v37 = vld [vmem:[%s4535_s1 + $0x200] sm:$0xff] }
  0x22   :  { %v98_v31 = vld [vmem:[%s4535_s1 + $0x228] sm:$0xff]  ;;  %v97_v38 = vld [vmem:[%s4535_s1 + $0x220] sm:$0xff]  ;;  %1675 = vmatpush1.bf16.msra.mxu1 %v1674_v34 }
  0x23   :  { %v222_v32 = vld [vmem:[%s4535_s1 + $0x608] sm:$0xff]  ;;  %v1676_v36 = vpack.c.bf16 %v98_v31, %v94_v30  ;;  %v221_v39 = vld [vmem:[%s4535_s1 + $0x600] sm:$0xff]  ;;  %1737 = vmatprep.subr.bf16.mxu0 %v1736_v28  ;;  %v1678_v49 = vpack.c.bf16 %v97_v38, %v93_v37 }
  0x24   :  { %v226_v33 = vld [vmem:[%s4535_s1 + $0x628] sm:$0xff]  ;;  %v225_v41 = vld [vmem:[%s4535_s1 + $0x620] sm:$0xff]  ;;  %1739 = vmatpush1.bf16.msra.mxu0 %v1738_v35 }
  0x25   :  { %v1740_v40 = vpack.c.bf16 %v226_v33, %v222_v32  ;;  %v102_v42 = vld [vmem:[%s4535_s1 + $0x248] sm:$0xff]  ;;  %1677 = vmatprep.subr.bf16.mxu1 %v1676_v36  ;;  %v1742_v50 = vpack.c.bf16 %v225_v41, %v221_v39  ;;  %v101_v52 = vld [vmem:[%s4535_s1 + $0x240] sm:$0xff] }
  0x26   :  { %v106_v43 = vld [vmem:[%s4535_s1 + $0x268] sm:$0xff]  ;;  %v105_v53 = vld [vmem:[%s4535_s1 + $0x260] sm:$0xff]  ;;  %1679 = vmatpush1.bf16.msra.mxu1 %v1678_v49 }
  0x27   :  { %v230_v44 = vld [vmem:[%s4535_s1 + $0x648] sm:$0xff]  ;;  %v1680_v51 = vpack.c.bf16 %v106_v43, %v102_v42  ;;  %v229_v54 = vld [vmem:[%s4535_s1 + $0x640] sm:$0xff]  ;;  %1741 = vmatprep.subr.bf16.mxu0 %v1740_v40  ;;  %v1682_v63 = vpack.c.bf16 %v105_v53, %v101_v52 }
  0x28   :  { %v234_v45 = vld [vmem:[%s4535_s1 + $0x668] sm:$0xff]  ;;  %v233_v56 = vld [vmem:[%s4535_s1 + $0x660] sm:$0xff]  ;;  %1743 = vmatpush1.bf16.msra.mxu0 %v1742_v50 }
  0x29   :  { %v1744_v55 = vpack.c.bf16 %v234_v45, %v230_v44  ;;  %v110_v57 = vld [vmem:[%s4535_s1 + $0x288] sm:$0xff]  ;;  %1681 = vmatprep.subr.bf16.mxu1 %v1680_v51  ;;  %v1746_v0 = vpack.c.bf16 %v233_v56, %v229_v54  ;;  %v109_v2 = vld [vmem:[%s4535_s1 + $0x280] sm:$0xff] }
  0x2a   :  { %v114_v58 = vld [vmem:[%s4535_s1 + $0x2a8] sm:$0xff]  ;;  %v113_v3 = vld [vmem:[%s4535_s1 + $0x2a0] sm:$0xff]  ;;  %1683 = vmatpush1.bf16.msra.mxu1 %v1682_v63 }
  0x2b   :  { %v238_v59 = vld [vmem:[%s4535_s1 + $0x688] sm:$0xff]  ;;  %v1684_v1 = vpack.c.bf16 %v114_v58, %v110_v57  ;;  %v237_v4 = vld [vmem:[%s4535_s1 + $0x680] sm:$0xff]  ;;  %1745 = vmatprep.subr.bf16.mxu0 %v1744_v55  ;;  %v1686_v12 = vpack.c.bf16 %v113_v3, %v109_v2 }
  0x2c   :  { %v242_v60 = vld [vmem:[%s4535_s1 + $0x6a8] sm:$0xff]  ;;  %v241_v6 = vld [vmem:[%s4535_s1 + $0x6a0] sm:$0xff]  ;;  %1747 = vmatpush1.bf16.msra.mxu0 %v1746_v0 }
  0x2d   :  { %v1748_v5 = vpack.c.bf16 %v242_v60, %v238_v59  ;;  %v118_v7 = vld [vmem:[%s4535_s1 + $0x2c8] sm:$0xff]  ;;  %v117_v13 = vld [vmem:[%s4535_s1 + $0x2c0] sm:$0xff]  ;;  %1685 = vmatprep.subr.bf16.mxu1 %v1684_v1  ;;  %v1750_v14 = vpack.c.bf16 %v241_v6, %v237_v4 }
  0x2e   :  { %v122_v8 = vld [vmem:[%s4535_s1 + $0x2e8] sm:$0xff]  ;;  %v121_v16 = vld [vmem:[%s4535_s1 + $0x2e0] sm:$0xff]  ;;  %1687 = vmatpush1.bf16.msra.mxu1 %v1686_v12  ;;  %v32_v12 = vld [vmem:[%s4535_s1 + $0x18] sm:$0xff] }
  0x2f   :  { %v246_v9 = vld [vmem:[%s4535_s1 + $0x6c8] sm:$0xff]  ;;  %v1688_v15 = vpack.c.bf16 %v122_v8, %v118_v7  ;;  %v245_v17 = vld [vmem:[%s4535_s1 + $0x6c0] sm:$0xff]  ;;  %1749 = vmatprep.subr.bf16.mxu0 %v1748_v5  ;;  %v1690_v27 = vpack.c.bf16 %v121_v16, %v117_v13  ;;  %v36_v13 = vld [vmem:[%s4535_s1 + $0x38] sm:$0xff] }
  0x30   :  { %v250_v10 = vld [vmem:[%s4535_s1 + $0x6e8] sm:$0xff]  ;;  %v249_v18 = vld [vmem:[%s4535_s1 + $0x6e0] sm:$0xff]  ;;  %1751 = vmatpush1.bf16.msra.mxu0 %v1750_v14 }
  0x31   :  { %v1752_v19 = vpack.c.bf16 %v250_v10, %v246_v9  ;;  %v126_v20 = vld [vmem:[%s4535_s1 + $0x308] sm:$0xff]  ;;  %v27_v22 = vld [vmem:[%s4534_s0] sm:$0xff]  ;;  %v1754_v28 = vpack.c.bf16 %v249_v18, %v245_v17  ;;  %1689 = vmatprep.subr.bf16.mxu1 %v1688_v15  ;;  %v1900_v18 = vpack.c.bf16 %v36_v13, %v32_v12  ;;  %v72_v13 = vld [vmem:[%s4535_s1 + $0x158] sm:$0xff] }
  0x32   :  { %v130_v21 = vld [vmem:[%s4535_s1 + $0x328] sm:$0xff]  ;;  %v2719_v25 = vrot.slane %v27_v22, %v2689_v11  ;;  %v565_v26 = vcombine.high %v27_v22, %v27_v22  ;;  %v125_v30 = vld [vmem:[%s4535_s1 + $0x300] sm:$0xff]  ;;  %1691 = vmatpush1.bf16.msra.mxu1 %v1690_v27 }
  0x33   :  { %v254_v23 = vld [vmem:[%s4535_s1 + $0x708] sm:$0xff]  ;;  %v1692_v29 = vpack.c.bf16 %v130_v21, %v126_v20  ;;  %v129_v31 = vld [vmem:[%s4535_s1 + $0x320] sm:$0xff]  ;;  %1753 = vmatprep.subr.bf16.mxu0 %v1752_v19  ;;  %v31_v20 = vld [vmem:[%s4535_s1 + $0x10] sm:$0xff] }
  0x34   :  { %v258_v24 = vld [vmem:[%s4535_s1 + $0x728] sm:$0xff]  ;;  %v253_v32 = vld [vmem:[%s4535_s1 + $0x700] sm:$0xff]  ;;  %v2732_v33 = vcombine.high %v2719_v25, %v2719_v25  ;;  %v2735_v34 = vrot.slane %v565_v26, %v2689_v11  ;;  %v1694_v42 = vpack.c.bf16 %v129_v31, %v125_v30  ;;  %1755 = vmatpush1.bf16.msra.mxu0 %v1754_v28  ;;  %v35_v21 = vld [vmem:[%s4535_s1 + $0x30] sm:$0xff] }
  0x35   :  { %v1756_v35 = vpack.c.bf16 %v258_v24, %v254_v23  ;;  %v257_v36 = vld [vmem:[%s4535_s1 + $0x720] sm:$0xff]  ;;  %v134_v37 = vld [vmem:[%s4535_s1 + $0x348] sm:$0xff]  ;;  %1693 = vmatprep.subr.bf16.mxu1 %v1692_v29  ;;  %v40_v24 = vld [vmem:[%s4535_s1 + $0x58] sm:$0xff]  ;;  %v1902_v29 = vpack.c.bf16 %v35_v21, %v31_v20 }
  0x36   :  { %v138_v38 = vld [vmem:[%s4535_s1 + $0x368] sm:$0xff]  ;;  %671 = vmatprep.mubr.f32.mxu1 %v2732_v33  ;;  %v2755_v41 = vcombine.high %v2735_v34, %v2735_v34  ;;  %v1758_v43 = vpack.c.bf16 %v257_v36, %v253_v32  ;;  %v133_v45 = vld [vmem:[%s4535_s1 + $0x340] sm:$0xff]  ;;  %1695 = vmatpush1.bf16.msra.mxu1 %v1694_v42  ;;  %v44_v26 = vld [vmem:[%s4535_s1 + $0x78] sm:$0xff] }
  0x37   :  { %v262_v39 = vld [vmem:[%s4535_s1 + $0x748] sm:$0xff]  ;;  %v1696_v44 = vpack.c.bf16 %v138_v38, %v134_v37  ;;  %v137_v46 = vld [vmem:[%s4535_s1 + $0x360] sm:$0xff]  ;;  %1757 = vmatprep.subr.bf16.mxu0 %v1756_v35  ;;  %v1904_v31 = vpack.c.bf16 %v44_v26, %v40_v24  ;;  %v39_v35 = vld [vmem:[%s4535_s1 + $0x50] sm:$0xff] }
  0x38   :  { %v266_v40 = vld [vmem:[%s4535_s1 + $0x768] sm:$0xff]  ;;  %v261_v47 = vld [vmem:[%s4535_s1 + $0x740] sm:$0xff]  ;;  %742 = vmatprep.mubr.f32.mxu0 %v2755_v41  ;;  %v1698_v54 = vpack.c.bf16 %v137_v46, %v133_v45  ;;  %1759 = vmatpush1.bf16.msra.mxu0 %v1758_v43  ;;  %v43_v36 = vld [vmem:[%s4535_s1 + $0x70] sm:$0xff] }
  0x39   :  { %v1760_v48 = vpack.c.bf16 %v266_v40, %v262_v39  ;;  %v265_v49 = vld [vmem:[%s4535_s1 + $0x760] sm:$0xff]  ;;  %v142_v50 = vld [vmem:[%s4535_s1 + $0x388] sm:$0xff]  ;;  %1697 = vmatprep.subr.bf16.mxu1 %v1696_v44  ;;  %v48_v39 = vld [vmem:[%s4535_s1 + $0x98] sm:$0xff]  ;;  %v1906_v44 = vpack.c.bf16 %v43_v36, %v39_v35 }
  0x3a   :  { %v146_v51 = vld [vmem:[%s4535_s1 + $0x3a8] sm:$0xff]  ;;  %v1762_v55 = vpack.c.bf16 %v265_v49, %v261_v47  ;;  %v141_v57 = vld [vmem:[%s4535_s1 + $0x380] sm:$0xff]  ;;  %1699 = vmatpush1.bf16.msra.mxu1 %v1698_v54  ;;  %v52_v40 = vld [vmem:[%s4535_s1 + $0xb8] sm:$0xff] }
  0x3b   :  { %v270_v52 = vld [vmem:[%s4535_s1 + $0x788] sm:$0xff]  ;;  %v1700_v56 = vpack.c.bf16 %v146_v51, %v142_v50  ;;  %v145_v58 = vld [vmem:[%s4535_s1 + $0x3a0] sm:$0xff]  ;;  %1761 = vmatprep.subr.bf16.mxu0 %v1760_v48  ;;  %v1908_v46 = vpack.c.bf16 %v52_v40, %v48_v39  ;;  %v47_v48 = vld [vmem:[%s4535_s1 + $0x90] sm:$0xff] }
  0x3c   :  { %v274_v53 = vld [vmem:[%s4535_s1 + $0x7a8] sm:$0xff]  ;;  %v269_v59 = vld [vmem:[%s4535_s1 + $0x780] sm:$0xff]  ;;  %v1702_v3 = vpack.c.bf16 %v145_v58, %v141_v57  ;;  %1763 = vmatpush1.bf16.msra.mxu0 %v1762_v55  ;;  %v51_v49 = vld [vmem:[%s4535_s1 + $0xb0] sm:$0xff] }
  0x3d   :  { %v1764_v60 = vpack.c.bf16 %v274_v53, %v270_v52  ;;  %v273_v62 = vld [vmem:[%s4535_s1 + $0x7a0] sm:$0xff]  ;;  %v150_v63 = vld [vmem:[%s4535_s1 + $0x3c8] sm:$0xff]  ;;  %1701 = vmatprep.subr.bf16.mxu1 %v1700_v56  ;;  %v56_v52 = vld [vmem:[%s4535_s1 + $0xd8] sm:$0xff]  ;;  %v1910_v56 = vpack.c.bf16 %v51_v49, %v47_v48 }
  0x3e   :  { %v154_v0 = vld [vmem:[%s4535_s1 + $0x3e8] sm:$0xff]  ;;  %v1766_v4 = vpack.c.bf16 %v273_v62, %v269_v59  ;;  %v149_v6 = vld [vmem:[%s4535_s1 + $0x3c0] sm:$0xff]  ;;  %1703 = vmatpush1.bf16.msra.mxu1 %v1702_v3  ;;  %v60_v53 = vld [vmem:[%s4535_s1 + $0xf8] sm:$0xff] }
  0x3f   :  { %v278_v1 = vld [vmem:[%s4535_s1 + $0x7c8] sm:$0xff]  ;;  %v1704_v5 = vpack.c.bf16 %v154_v0, %v150_v63  ;;  %v153_v7 = vld [vmem:[%s4535_s1 + $0x3e0] sm:$0xff]  ;;  %1765 = vmatprep.subr.bf16.mxu0 %v1764_v60  ;;  %v1912_v58 = vpack.c.bf16 %v60_v53, %v56_v52  ;;  %v59_v60 = vld [vmem:[%s4535_s1 + $0xf0] sm:$0xff] }
  0x40   :  { %v282_v2 = vld [vmem:[%s4535_s1 + $0x7e8] sm:$0xff]  ;;  %v277_v8 = vld [vmem:[%s4535_s1 + $0x7c0] sm:$0xff]  ;;  %v1706_v16 = vpack.c.bf16 %v153_v7, %v149_v6  ;;  %1767 = vmatpush1.bf16.msra.mxu0 %v1766_v4  ;;  %v64_v0 = vld [vmem:[%s4535_s1 + $0x118] sm:$0xff] }
  0x41   :  { %v1768_v9 = vpack.c.bf16 %v282_v2, %v278_v1  ;;  %v281_v10 = vld [vmem:[%s4535_s1 + $0x7e0] sm:$0xff]  ;;  %v286_v14 = vld [vmem:[%s4535_s1 + $0x808] sm:$0xff]  ;;  %1705 = vmatprep.subr.bf16.mxu1 %v1704_v5  ;;  %v68_v1 = vld [vmem:[%s4535_s1 + $0x138] sm:$0xff] }
  0x42   :  { %v290_v15 = vld [vmem:[%s4535_s1 + $0x828] sm:$0xff]  ;;  %v1770_v17 = vpack.c.bf16 %v281_v10, %v277_v8  ;;  %v285_v19 = vld [vmem:[%s4535_s1 + $0x800] sm:$0xff]  ;;  %1707 = vmatpush1.bf16.msra.mxu1 %v1706_v16  ;;  %v1916_v6 = vpack.c.bf16 %v68_v1, %v64_v0  ;;  %v63_v8 = vld [vmem:[%s4535_s1 + $0x110] sm:$0xff] }
  0x43   :  { %1769 = vmatprep.subr.bf16.mxu0 %v1768_v9  ;;  %v1772_v22 = vpack.c.bf16 %v290_v15, %v286_v14  ;;  %v289_v23 = vld [vmem:[%s4535_s1 + $0x820] sm:$0xff]  ;;  %v294_v27 = vld [vmem:[%s4535_s1 + $0x848] sm:$0xff]  ;;  %1901 = vmatprep.subr.bf16.mxu1 %v1900_v18  ;;  %v67_v9 = vld [vmem:[%s4535_s1 + $0x130] sm:$0xff] }
  0x44   :  { %v298_v28 = vld [vmem:[%s4535_s1 + $0x868] sm:$0xff]  ;;  %1771 = vmatpush1.bf16.msra.mxu0 %v1770_v17  ;;  %v1774_v30 = vpack.c.bf16 %v289_v23, %v285_v19  ;;  %v293_v32 = vld [vmem:[%s4535_s1 + $0x840] sm:$0xff]  ;;  %v76_v14 = vld [vmem:[%s4535_s1 + $0x178] sm:$0xff]  ;;  %v1918_v17 = vpack.c.bf16 %v67_v9, %v63_v8 }
  0x45   :  { %1773 = vmatprep.subr.bf16.mxu0 %v1772_v22  ;;  %v1776_v37 = vpack.c.bf16 %v298_v28, %v294_v27  ;;  %v297_v38 = vld [vmem:[%s4535_s1 + $0x860] sm:$0xff]  ;;  %672 = vmatmul.mubr.f32.vlgmr.msra.gmra.mrb[0].mxu1 %v2719_v25  ;;  %v302_v42 = vld [vmem:[%s4535_s1 + $0x888] sm:$0xff]  ;;  %v1920_v19 = vpack.c.bf16 %v76_v14, %v72_v13  ;;  %v71_v21 = vld [vmem:[%s4535_s1 + $0x150] sm:$0xff] }
  0x46   :  { %v306_v43 = vld [vmem:[%s4535_s1 + $0x8a8] sm:$0xff]  ;;  %1903 = vmatpush1.bf16.msra.mxu1 %v1902_v29  ;;  %v1778_v45 = vpack.c.bf16 %v297_v38, %v293_v32  ;;  %v301_v47 = vld [vmem:[%s4535_s1 + $0x880] sm:$0xff]  ;;  %955 = vmatprep.mubr.f32.mxu1 %v2732_v33  ;;  %v55_v33 = vld [vmem:[%s4535_s1 + $0xd0] sm:$0xff] }
  0x47   :  { %743 = vmatmul.mubr.f32.vlgmr.msra.gmra.mrb[0].mxu0 %v2735_v34  ;;  %1905 = vmatprep.subr.bf16.mxu1 %v1904_v31  ;;  %v1780_v50 = vpack.c.bf16 %v306_v43, %v302_v42  ;;  %v305_v51 = vld [vmem:[%s4535_s1 + $0x8a0] sm:$0xff]  ;;  %v310_v54 = vld [vmem:[%s4535_s1 + $0x8c8] sm:$0xff]  ;;  %v1914_v4 = vpack.c.bf16 %v59_v60, %v55_v33  ;;  %v75_v22 = vld [vmem:[%s4535_s1 + $0x170] sm:$0xff] }
  0x48   :  { %1775 = vmatpush1.bf16.msra.mxu0 %v1774_v30  ;;  %v314_v55 = vld [vmem:[%s4535_s1 + $0x8e8] sm:$0xff]  ;;  %v1782_v57 = vpack.c.bf16 %v305_v51, %v301_v47  ;;  %v309_v59 = vld [vmem:[%s4535_s1 + $0x8c0] sm:$0xff]  ;;  %v80_v26 = vld [vmem:[%s4535_s1 + $0x198] sm:$0xff]  ;;  %v1922_v30 = vpack.c.bf16 %v75_v22, %v71_v21 }
  0x49   :  { %1777 = vmatprep.subr.bf16.mxu0 %v1776_v37  ;;  %v1784_v62 = vpack.c.bf16 %v314_v55, %v310_v54  ;;  %v313_v63 = vld [vmem:[%s4535_s1 + $0x8e0] sm:$0xff]  ;;  %v318_v2 = vld [vmem:[%s4535_s1 + $0x908] sm:$0xff]  ;;  %v84_v27 = vld [vmem:[%s4535_s1 + $0x1b8] sm:$0xff] }
  0x4a   :  { %1907 = vmatpush1.bf16.msra.mxu1 %v1906_v44  ;;  %v322_v3 = vld [vmem:[%s4535_s1 + $0x928] sm:$0xff]  ;;  %v1786_v5 = vpack.c.bf16 %v313_v63, %v309_v59  ;;  %v317_v7 = vld [vmem:[%s4535_s1 + $0x900] sm:$0xff]  ;;  %v1924_v35 = vpack.c.bf16 %v84_v27, %v80_v26  ;;  %v79_v36 = vld [vmem:[%s4535_s1 + $0x190] sm:$0xff] }
  0x4b   :  { %1909 = vmatprep.subr.bf16.mxu1 %v1908_v46  ;;  %v1788_v10 = vpack.c.bf16 %v322_v3, %v318_v2  ;;  %v321_v12 = vld [vmem:[%s4535_s1 + $0x920] sm:$0xff]  ;;  %v326_v15 = vld [vmem:[%s4535_s1 + $0x948] sm:$0xff]  ;;  %v83_v37 = vld [vmem:[%s4535_s1 + $0x1b0] sm:$0xff] }
  0x4c   :  { %1779 = vmatpush1.bf16.msra.mxu0 %v1778_v45  ;;  %v330_v16 = vld [vmem:[%s4535_s1 + $0x968] sm:$0xff]  ;;  %v1790_v18 = vpack.c.bf16 %v321_v12, %v317_v7  ;;  %v325_v20 = vld [vmem:[%s4535_s1 + $0x940] sm:$0xff]  ;;  %v88_v42 = vld [vmem:[%s4535_s1 + $0x1d8] sm:$0xff]  ;;  %v1926_v47 = vpack.c.bf16 %v83_v37, %v79_v36 }
  0x4d   :  { %1781 = vmatprep.subr.bf16.mxu0 %v1780_v50  ;;  %v1792_v23 = vpack.c.bf16 %v330_v16, %v326_v15  ;;  %v329_v24 = vld [vmem:[%s4535_s1 + $0x960] sm:$0xff]  ;;  %v334_v28 = vld [vmem:[%s4535_s1 + $0x988] sm:$0xff]  ;;  %v92_v43 = vld [vmem:[%s4535_s1 + $0x1f8] sm:$0xff] }
  0x4e   :  { %1911 = vmatpush1.bf16.msra.mxu1 %v1910_v56  ;;  %v338_v29 = vld [vmem:[%s4535_s1 + $0x9a8] sm:$0xff]  ;;  %v333_v31 = vld [vmem:[%s4535_s1 + $0x980] sm:$0xff]  ;;  %v1794_v32 = vpack.c.bf16 %v329_v24, %v325_v20  ;;  %v1928_v50 = vpack.c.bf16 %v92_v43, %v88_v42  ;;  %v87_v52 = vld [vmem:[%s4535_s1 + $0x1d0] sm:$0xff] }
  0x4f   :  { %1913 = vmatprep.subr.bf16.mxu1 %v1912_v58  ;;  %v2989_v38 = vld [vmem:[%s4534_s0 + $0x8] sm:$0xff]  ;;  %v1796_v39 = vpack.c.bf16 %v338_v29, %v334_v28  ;;  %v337_v40 = vld [vmem:[%s4535_s1 + $0x9a0] sm:$0xff]  ;;  %v91_v53 = vld [vmem:[%s4535_s1 + $0x1f0] sm:$0xff] }
  0x50   :  { %1783 = vmatpush1.bf16.msra.mxu0 %v1782_v57  ;;  %v3002_v44 = vrot.slane %v2989_v38, %v2689_v11  ;;  %v342_v45 = vld [vmem:[%s4535_s1 + $0x9c8] sm:$0xff]  ;;  %v1798_v49 = vpack.c.bf16 %v337_v40, %v333_v31  ;;  %v341_v51 = vld [vmem:[%s4535_s1 + $0x9c0] sm:$0xff]  ;;  %v96_v56 = vld [vmem:[%s4535_s1 + $0x218] sm:$0xff]  ;;  %v1930_v33 = vpack.c.bf16 %v91_v53, %v87_v52 }
  0x51   :  { %1785 = vmatprep.subr.bf16.mxu0 %v1784_v62  ;;  %v346_v46 = vld [vmem:[%s4535_s1 + $0x9e8] sm:$0xff]  ;;  %v345_v55 = vld [vmem:[%s4535_s1 + $0x9e0] sm:$0xff]  ;;  %v100_v57 = vld [vmem:[%s4535_s1 + $0x238] sm:$0xff] }
  0x52   :  { %1915 = vmatpush1.bf16.msra.mxu1 %v1914_v4  ;;  %v3012_v48 = vcombine.high %v3002_v44, %v3002_v44  ;;  %v1800_v54 = vpack.c.bf16 %v346_v46, %v342_v45  ;;  %v350_v58 = vld [vmem:[%s4535_s1 + $0xa08] sm:$0xff]  ;;  %v1802_v60 = vpack.c.bf16 %v345_v55, %v341_v51  ;;  %v1932_v62 = vpack.c.bf16 %v100_v57, %v96_v56  ;;  %v349_v63 = vld [vmem:[%s4535_s1 + $0xa00] sm:$0xff]  ;;  %v95_v0 = vld [vmem:[%s4535_s1 + $0x210] sm:$0xff] }
  0x53   :  { %1917 = vmatprep.subr.bf16.mxu1 %v1916_v6  ;;  %v354_v59 = vld [vmem:[%s4535_s1 + $0xa28] sm:$0xff]  ;;  %v99_v1 = vld [vmem:[%s4535_s1 + $0x230] sm:$0xff]  ;;  %v353_v3 = vld [vmem:[%s4535_s1 + $0xa20] sm:$0xff] }
  0x54   :  { %1787 = vmatpush1.bf16.msra.mxu0 %v1786_v5  ;;  %813 = vmatprep.mubr.f32.mxu0 %v3012_v48  ;;  %v1804_v2 = vpack.c.bf16 %v354_v59, %v350_v58  ;;  %v104_v4 = vld [vmem:[%s4535_s1 + $0x258] sm:$0xff]  ;;  %v358_v6 = vld [vmem:[%s4535_s1 + $0xa48] sm:$0xff]  ;;  %v1934_v8 = vpack.c.bf16 %v99_v1, %v95_v0  ;;  %v1806_v9 = vpack.c.bf16 %v353_v3, %v349_v63  ;;  %v357_v12 = vld [vmem:[%s4535_s1 + $0xa40] sm:$0xff] }
  0x55   :  { %1789 = vmatprep.subr.bf16.mxu0 %v1788_v10  ;;  %v108_v5 = vld [vmem:[%s4535_s1 + $0x278] sm:$0xff]  ;;  %v362_v7 = vld [vmem:[%s4535_s1 + $0xa68] sm:$0xff]  ;;  %v103_v13 = vld [vmem:[%s4535_s1 + $0x250] sm:$0xff] }
  0x56   :  { %1919 = vmatpush1.bf16.msra.mxu1 %v1918_v17  ;;  %v1936_v10 = vpack.c.bf16 %v108_v5, %v104_v4  ;;  %v107_v14 = vld [vmem:[%s4535_s1 + $0x270] sm:$0xff]  ;;  %v1808_v15 = vpack.c.bf16 %v362_v7, %v358_v6  ;;  %v361_v16 = vld [vmem:[%s4535_s1 + $0xa60] sm:$0xff]  ;;  %v112_v17 = vld [vmem:[%s4535_s1 + $0x298] sm:$0xff] }
  0x57   :  { %1921 = vmatprep.subr.bf16.mxu1 %v1920_v19  ;;  %v366_v19 = vld [vmem:[%s4535_s1 + $0xa88] sm:$0xff]  ;;  %v1938_v21 = vpack.c.bf16 %v107_v14, %v103_v13  ;;  %v1810_v22 = vpack.c.bf16 %v361_v16, %v357_v12  ;;  %v365_v24 = vld [vmem:[%s4535_s1 + $0xa80] sm:$0xff]  ;;  %v111_v26 = vld [vmem:[%s4535_s1 + $0x290] sm:$0xff] }
  0x58   :  { %1791 = vmatpush1.bf16.msra.mxu0 %v1790_v18  ;;  %v116_v18 = vld [vmem:[%s4535_s1 + $0x2b8] sm:$0xff]  ;;  %v370_v20 = vld [vmem:[%s4535_s1 + $0xaa8] sm:$0xff]  ;;  %v115_v27 = vld [vmem:[%s4535_s1 + $0x2b0] sm:$0xff] }
  0x59   :  { %1793 = vmatprep.subr.bf16.mxu0 %v1792_v23  ;;  %v1940_v23 = vpack.c.bf16 %v116_v18, %v112_v17  ;;  %v1812_v28 = vpack.c.bf16 %v370_v20, %v366_v19  ;;  %v369_v29 = vld [vmem:[%s4535_s1 + $0xaa0] sm:$0xff]  ;;  %v124_v31 = vld [vmem:[%s4535_s1 + $0x2f8] sm:$0xff]  ;;  %v1942_v36 = vpack.c.bf16 %v115_v27, %v111_v26  ;;  %v119_v42 = vld [vmem:[%s4535_s1 + $0x2d0] sm:$0xff] }
  0x5a   :  { %1923 = vmatpush1.bf16.msra.mxu1 %v1922_v30  ;;  %v120_v30 = vld [vmem:[%s4535_s1 + $0x2d8] sm:$0xff]  ;;  %v1814_v37 = vpack.c.bf16 %v369_v29, %v365_v24  ;;  %v373_v40 = vld [vmem:[%s4535_s1 + $0xac0] sm:$0xff]  ;;  %v123_v43 = vld [vmem:[%s4535_s1 + $0x2f0] sm:$0xff] }
  0x5b   :  { %1925 = vmatprep.subr.bf16.mxu1 %v1924_v35  ;;  %v378_v35 = vld [vmem:[%s4535_s1 + $0xae8] sm:$0xff]  ;;  %v377_v46 = vld [vmem:[%s4535_s1 + $0xae0] sm:$0xff]  ;;  %v1946_v52 = vpack.c.bf16 %v123_v43, %v119_v42  ;;  %v127_v56 = vld [vmem:[%s4535_s1 + $0x310] sm:$0xff] }
  0x5c   :  { %1795 = vmatpush1.bf16.msra.mxu0 %v1794_v32  ;;  %v374_v32 = vld [vmem:[%s4535_s1 + $0xac8] sm:$0xff]  ;;  %v1818_v53 = vpack.c.bf16 %v377_v46, %v373_v40  ;;  %v381_v55 = vld [vmem:[%s4535_s1 + $0xb00] sm:$0xff]  ;;  %v131_v57 = vld [vmem:[%s4535_s1 + $0x330] sm:$0xff] }
  0x5d   :  { %1797 = vmatprep.subr.bf16.mxu0 %v1796_v39  ;;  %v1944_v39 = vpack.c.bf16 %v124_v31, %v120_v30  ;;  %v1816_v45 = vpack.c.bf16 %v378_v35, %v374_v32  ;;  %v386_v51 = vld [vmem:[%s4535_s1 + $0xb28] sm:$0xff]  ;;  %v385_v59 = vld [vmem:[%s4535_s1 + $0xb20] sm:$0xff]  ;;  %v1950_v0 = vpack.c.bf16 %v131_v57, %v127_v56  ;;  %v135_v4 = vld [vmem:[%s4535_s1 + $0x350] sm:$0xff] }
  0x5e   :  { %1927 = vmatpush1.bf16.msra.mxu1 %v1926_v47  ;;  %v128_v47 = vld [vmem:[%s4535_s1 + $0x318] sm:$0xff]  ;;  %v394_v63 = vld [vmem:[%s4535_s1 + $0xb68] sm:$0xff]  ;;  %v1822_v1 = vpack.c.bf16 %v385_v59, %v381_v55  ;;  %v389_v3 = vld [vmem:[%s4535_s1 + $0xb40] sm:$0xff] }
  0x5f   :  { %1929 = vmatprep.subr.bf16.mxu1 %v1928_v50  ;;  %v382_v50 = vld [vmem:[%s4535_s1 + $0xb08] sm:$0xff]  ;;  %v139_v5 = vld [vmem:[%s4535_s1 + $0x370] sm:$0xff]  ;;  %v393_v7 = vld [vmem:[%s4535_s1 + $0xb60] sm:$0xff] }
  0x60   :  { %1799 = vmatpush1.bf16.msra.mxu0 %v1798_v49  ;;  %v132_v49 = vld [vmem:[%s4535_s1 + $0x338] sm:$0xff]  ;;  %v1820_v58 = vpack.c.bf16 %v386_v51, %v382_v50  ;;  %v402_v12 = vld [vmem:[%s4535_s1 + $0xba8] sm:$0xff]  ;;  %v1954_v13 = vpack.c.bf16 %v139_v5, %v135_v4  ;;  %v1826_v14 = vpack.c.bf16 %v393_v7, %v389_v3  ;;  %v397_v16 = vld [vmem:[%s4535_s1 + $0xb80] sm:$0xff] }
  0x61   :  { %1801 = vmatprep.subr.bf16.mxu0 %v1800_v54  ;;  %v1948_v54 = vpack.c.bf16 %v132_v49, %v128_v47  ;;  %v143_v17 = vld [vmem:[%s4535_s1 + $0x390] sm:$0xff]  ;;  %v401_v20 = vld [vmem:[%s4535_s1 + $0xba0] sm:$0xff]  ;;  %v410_v24 = vld [vmem:[%s4535_s1 + $0xbe8] sm:$0xff] }
  0x62   :  { %1931 = vmatpush1.bf16.msra.mxu1 %v1930_v33  ;;  %v136_v33 = vld [vmem:[%s4535_s1 + $0x358] sm:$0xff]  ;;  %v147_v18 = vld [vmem:[%s4535_s1 + $0x3b0] sm:$0xff]  ;;  %v1830_v27 = vpack.c.bf16 %v401_v20, %v397_v16  ;;  %v405_v29 = vld [vmem:[%s4535_s1 + $0xbc0] sm:$0xff] }
  0x63   :  { %1933 = vmatprep.subr.bf16.mxu1 %v1932_v62  ;;  %v390_v62 = vld [vmem:[%s4535_s1 + $0xb48] sm:$0xff]  ;;  %v1958_v26 = vpack.c.bf16 %v147_v18, %v143_v17  ;;  %v151_v30 = vld [vmem:[%s4535_s1 + $0x3d0] sm:$0xff]  ;;  %v409_v35 = vld [vmem:[%s4535_s1 + $0xbe0] sm:$0xff] }
  0x64   :  { %1803 = vmatpush1.bf16.msra.mxu0 %v1802_v60  ;;  %v140_v60 = vld [vmem:[%s4535_s1 + $0x378] sm:$0xff]  ;;  %v1824_v6 = vpack.c.bf16 %v394_v63, %v390_v62  ;;  %v155_v31 = vld [vmem:[%s4535_s1 + $0x3f0] sm:$0xff]  ;;  %v414_v40 = vld [vmem:[%s4535_s1 + $0xc08] sm:$0xff] }
  0x65   :  { %1805 = vmatprep.subr.bf16.mxu0 %v1804_v2  ;;  %v1952_v2 = vpack.c.bf16 %v140_v60, %v136_v33  ;;  %v418_v42 = vld [vmem:[%s4535_s1 + $0xc28] sm:$0xff]  ;;  %v1962_v43 = vpack.c.bf16 %v155_v31, %v151_v30  ;;  %v413_v47 = vld [vmem:[%s4535_s1 + $0xc00] sm:$0xff]  ;;  %v163_v49 = vld [vmem:[%s4535_s1 + $0x430] sm:$0xff] }
  0x66   :  { %1935 = vmatpush1.bf16.msra.mxu1 %v1934_v8  ;;  %v144_v8 = vld [vmem:[%s4535_s1 + $0x398] sm:$0xff]  ;;  %v1836_v50 = vpack.c.bf16 %v418_v42, %v414_v40  ;;  %v417_v51 = vld [vmem:[%s4535_s1 + $0xc20] sm:$0xff]  ;;  %v422_v55 = vld [vmem:[%s4535_s1 + $0xc48] sm:$0xff] }
  0x67   :  { %1937 = vmatprep.subr.bf16.mxu1 %v1936_v10  ;;  %v398_v10 = vld [vmem:[%s4535_s1 + $0xb88] sm:$0xff]  ;;  %v421_v33 = vld [vmem:[%s4535_s1 + $0xc40] sm:$0xff]  ;;  %v171_v60 = vld [vmem:[%s4535_s1 + $0x470] sm:$0xff] }
  0x68   :  { %1807 = vmatpush1.bf16.msra.mxu0 %v1806_v9  ;;  %v148_v9 = vld [vmem:[%s4535_s1 + $0x3b8] sm:$0xff]  ;;  %v1828_v19 = vpack.c.bf16 %v402_v12, %v398_v10  ;;  %v426_v56 = vld [vmem:[%s4535_s1 + $0xc68] sm:$0xff]  ;;  %v425_v63 = vld [vmem:[%s4535_s1 + $0xc60] sm:$0xff] }
  0x69   :  { %1809 = vmatprep.subr.bf16.mxu0 %v1808_v15  ;;  %v1956_v15 = vpack.c.bf16 %v148_v9, %v144_v8  ;;  %v1840_v62 = vpack.c.bf16 %v426_v56, %v422_v55  ;;  %v430_v3 = vld [vmem:[%s4535_s1 + $0xc88] sm:$0xff]  ;;  %v175_v8 = vld [vmem:[%s4535_s1 + $0x490] sm:$0xff]  ;;  %v433_v12 = vld [vmem:[%s4535_s1 + $0xca0] sm:$0xff] }
  0x6a   :  { %1939 = vmatpush1.bf16.msra.mxu1 %v1938_v21  ;;  %v152_v21 = vld [vmem:[%s4535_s1 + $0x3d8] sm:$0xff]  ;;  %v434_v4 = vld [vmem:[%s4535_s1 + $0xca8] sm:$0xff]  ;;  %v179_v9 = vld [vmem:[%s4535_s1 + $0x4b0] sm:$0xff] }
  0x6b   :  { %1941 = vmatprep.subr.bf16.mxu1 %v1940_v23  ;;  %v406_v23 = vld [vmem:[%s4535_s1 + $0xbc8] sm:$0xff]  ;;  %v1844_v10 = vpack.c.bf16 %v434_v4, %v430_v3  ;;  %v1974_v17 = vpack.c.bf16 %v179_v9, %v175_v8  ;;  %v437_v20 = vld [vmem:[%s4535_s1 + $0xcc0] sm:$0xff]  ;;  %v200_v40 = vld [vmem:[%s4535_s1 + $0x558] sm:$0xff] }
  0x6c   :  { %1811 = vmatpush1.bf16.msra.mxu0 %v1810_v22  ;;  %v156_v22 = vld [vmem:[%s4535_s1 + $0x3f8] sm:$0xff]  ;;  %v1832_v32 = vpack.c.bf16 %v410_v24, %v406_v23  ;;  %v442_v16 = vld [vmem:[%s4535_s1 + $0xce8] sm:$0xff]  ;;  %v441_v23 = vld [vmem:[%s4535_s1 + $0xce0] sm:$0xff] }
  0x6d   :  { %1813 = vmatprep.subr.bf16.mxu0 %v1812_v28  ;;  %v1960_v28 = vpack.c.bf16 %v156_v22, %v152_v21  ;;  %v183_v21 = vld [vmem:[%s4535_s1 + $0x4d0] sm:$0xff]  ;;  %v192_v24 = vld [vmem:[%s4535_s1 + $0x518] sm:$0xff]  ;;  %v1850_v30 = vpack.c.bf16 %v441_v23, %v437_v20  ;;  %v469_v9 = vld [vmem:[%s4535_s1 + $0xdc0] sm:$0xff] }
  0x6e   :  { %1943 = vmatpush1.bf16.msra.mxu1 %v1942_v36  ;;  %v160_v36 = vld [vmem:[%s4535_s1 + $0x418] sm:$0xff]  ;;  %v187_v22 = vld [vmem:[%s4535_s1 + $0x4f0] sm:$0xff] }
  0x6f   :  { %1945 = vmatprep.subr.bf16.mxu1 %v1944_v39  ;;  %v582_v39 = vcombine.high %v2989_v38, %v2989_v38  ;;  %v159_v38 = vld [vmem:[%s4535_s1 + $0x410] sm:$0xff]  ;;  %v204_v42 = vld [vmem:[%s4535_s1 + $0x578] sm:$0xff] }
  0x70   :  { %1815 = vmatpush1.bf16.msra.mxu0 %v1814_v37  ;;  %v164_v37 = vld [vmem:[%s4535_s1 + $0x438] sm:$0xff]  ;;  %v1966_v57 = vpack.c.bf16 %v163_v49, %v159_v38  ;;  %v1984_v38 = vpack.c.bf16 %v204_v42, %v200_v40  ;;  %v453_v49 = vld [vmem:[%s4535_s1 + $0xd40] sm:$0xff]  ;;  %v227_v23 = vld [vmem:[%s4535_s1 + $0x630] sm:$0xff] }
  0x71   :  { %1817 = vmatprep.subr.bf16.mxu0 %v1816_v45  ;;  %v1834_v45 = vpack.c.bf16 %v409_v35, %v405_v29  ;;  %v1964_v46 = vpack.c.bf16 %v164_v37, %v160_v36  ;;  %v1978_v29 = vpack.c.bf16 %v187_v22, %v183_v21  ;;  %v191_v35 = vld [vmem:[%s4535_s1 + $0x510] sm:$0xff]  ;;  %v208_v55 = vld [vmem:[%s4535_s1 + $0x598] sm:$0xff]  ;;  %v477_v22 = vld [vmem:[%s4535_s1 + $0xe00] sm:$0xff] }
  0x72   :  { %1947 = vmatpush1.bf16.msra.mxu1 %v1946_v52  ;;  %v168_v52 = vld [vmem:[%s4535_s1 + $0x458] sm:$0xff]  ;;  %v195_v36 = vld [vmem:[%s4535_s1 + $0x530] sm:$0xff] }
  0x73   :  { %1949 = vmatprep.subr.bf16.mxu1 %v1948_v54  ;;  %v3252_v54 = vrot.slane %v582_v39, %v2689_v11  ;;  %v167_v11 = vld [vmem:[%s4535_s1 + $0x450] sm:$0xff]  ;;  %v449_v39 = vld [vmem:[%s4535_s1 + $0xd20] sm:$0xff]  ;;  %v212_v56 = vld [vmem:[%s4535_s1 + $0x5b8] sm:$0xff] }
  0x74   :  { %1819 = vmatpush1.bf16.msra.mxu0 %v1818_v53  ;;  %v172_v53 = vld [vmem:[%s4535_s1 + $0x478] sm:$0xff]  ;;  %v1970_v5 = vpack.c.bf16 %v171_v60, %v167_v11  ;;  %v1988_v11 = vpack.c.bf16 %v212_v56, %v208_v55  ;;  %v461_v60 = vld [vmem:[%s4535_s1 + $0xd80] sm:$0xff]  ;;  %v235_v40 = vld [vmem:[%s4535_s1 + $0x670] sm:$0xff] }
  0x75   :  { %1821 = vmatprep.subr.bf16.mxu0 %v1820_v58  ;;  %v1838_v58 = vpack.c.bf16 %v417_v51, %v413_v47  ;;  %v1968_v59 = vpack.c.bf16 %v172_v53, %v168_v52  ;;  %v203_v51 = vld [vmem:[%s4535_s1 + $0x570] sm:$0xff]  ;;  %v457_v53 = vld [vmem:[%s4535_s1 + $0xd60] sm:$0xff]  ;;  %v216_v3 = vld [vmem:[%s4535_s1 + $0x5d8] sm:$0xff] }
  0x76   :  { %1951 = vmatpush1.bf16.msra.mxu1 %v1950_v0  ;;  %v176_v0 = vld [vmem:[%s4535_s1 + $0x498] sm:$0xff] }
  0x77   :  { %1953 = vmatprep.subr.bf16.mxu1 %v1952_v2  ;;  %v3280_v2 = vcombine.high %v3252_v54, %v3252_v54  ;;  %v220_v4 = vld [vmem:[%s4535_s1 + $0x5f8] sm:$0xff] }
  0x78   :  { %1823 = vmatpush1.bf16.msra.mxu0 %v1822_v1  ;;  %v180_v1 = vld [vmem:[%s4535_s1 + $0x4b8] sm:$0xff]  ;;  %v1992_v8 = vpack.c.bf16 %v220_v4, %v216_v3 }
  0x79   :  { %1825 = vmatprep.subr.bf16.mxu0 %v1824_v6  ;;  %v1842_v6 = vpack.c.bf16 %v425_v63, %v421_v33  ;;  %v1972_v7 = vpack.c.bf16 %v180_v1, %v176_v0  ;;  %v1858_v33 = vpack.c.bf16 %v457_v53, %v453_v49  ;;  %v211_v63 = vld [vmem:[%s4535_s1 + $0x5b0] sm:$0xff]  ;;  %v465_v1 = vld [vmem:[%s4535_s1 + $0xda0] sm:$0xff] }
  0x7a   :  { %1955 = vmatpush1.bf16.msra.mxu1 %v1954_v13  ;;  %v184_v13 = vld [vmem:[%s4535_s1 + $0x4d8] sm:$0xff] }
  0x7b   :  { %1957 = vmatprep.subr.bf16.mxu1 %v1956_v15  ;;  %v438_v15 = vld [vmem:[%s4535_s1 + $0xcc8] sm:$0xff] }
  0x7c   :  { %1827 = vmatpush1.bf16.msra.mxu0 %v1826_v14  ;;  %v188_v14 = vld [vmem:[%s4535_s1 + $0x4f8] sm:$0xff] }
  0x7d   :  { %1829 = vmatprep.subr.bf16.mxu0 %v1828_v19  ;;  %v1976_v19 = vpack.c.bf16 %v188_v14, %v184_v13  ;;  %v473_v14 = vld [vmem:[%s4535_s1 + $0xde0] sm:$0xff] }
  0x7e   :  { %1959 = vmatpush1.bf16.msra.mxu1 %v1958_v26  ;;  %v196_v26 = vld [vmem:[%s4535_s1 + $0x538] sm:$0xff]  ;;  %v1866_v20 = vpack.c.bf16 %v473_v14, %v469_v9 }
  0x7f   :  { %1961 = vmatprep.subr.bf16.mxu1 %v1960_v28  ;;  %v450_v28 = vld [vmem:[%s4535_s1 + $0xd28] sm:$0xff]  ;;  %v1980_v31 = vpack.c.bf16 %v196_v26, %v192_v24  ;;  %v481_v26 = vld [vmem:[%s4535_s1 + $0xe20] sm:$0xff] }
  0x80   :  { %1831 = vmatpush1.bf16.msra.mxu0 %v1830_v27  ;;  %v446_v27 = vld [vmem:[%s4535_s1 + $0xd08] sm:$0xff] }
  0x81   :  { %1833 = vmatprep.subr.bf16.mxu0 %v1832_v32  ;;  %v445_v32 = vld [vmem:[%s4535_s1 + $0xd00] sm:$0xff]  ;;  %v1852_v37 = vpack.c.bf16 %v450_v28, %v446_v27  ;;  %v232_v27 = vld [vmem:[%s4535_s1 + $0x658] sm:$0xff] }
  0x82   :  { %1963 = vmatpush1.bf16.msra.mxu1 %v1962_v43  ;;  %v454_v43 = vld [vmem:[%s4535_s1 + $0xd48] sm:$0xff]  ;;  %v1854_v47 = vpack.c.bf16 %v449_v39, %v445_v32  ;;  %v236_v28 = vld [vmem:[%s4535_s1 + $0x678] sm:$0xff]  ;;  %v485_v32 = vld [vmem:[%s4535_s1 + $0xe40] sm:$0xff] }
  0x83   :  { %1965 = vmatprep.subr.bf16.mxu1 %v1964_v46  ;;  %v1982_v46 = vpack.c.bf16 %v195_v36, %v191_v35  ;;  %v1870_v35 = vpack.c.bf16 %v481_v26, %v477_v22  ;;  %v2000_v36 = vpack.c.bf16 %v236_v28, %v232_v27  ;;  %v231_v39 = vld [vmem:[%s4535_s1 + $0x650] sm:$0xff] }
  0x84   :  { %1835 = vmatpush1.bf16.msra.mxu0 %v1834_v45  ;;  %v458_v45 = vld [vmem:[%s4535_s1 + $0xd68] sm:$0xff] }
  0x85   :  { %1837 = vmatprep.subr.bf16.mxu0 %v1836_v50  ;;  %956 = vmatmul.mubr.f32.vlgmr.msra.gmra.mrb[2].mxu1 %v2719_v25  ;;  %v429_v25 = vld [vmem:[%s4535_s1 + $0xc80] sm:$0xff]  ;;  %v199_v50 = vld [vmem:[%s4535_s1 + $0x550] sm:$0xff]  ;;  %v1856_v52 = vpack.c.bf16 %v458_v45, %v454_v43  ;;  %v240_v43 = vld [vmem:[%s4535_s1 + $0x698] sm:$0xff] }
  0x86   :  { %1967 = vmatpush1.bf16.msra.mxu1 %v1966_v57  ;;  %1026 = vmatprep.mubr.f32.mxu1 %v2755_v41  ;;  %v1846_v18 = vpack.c.bf16 %v433_v12, %v429_v25  ;;  %v1848_v41 = vpack.c.bf16 %v442_v16, %v438_v15  ;;  %v462_v57 = vld [vmem:[%s4535_s1 + $0xd88] sm:$0xff]  ;;  %v1862_v25 = vpack.c.bf16 %v465_v1, %v461_v60  ;;  %v219_v12 = vld [vmem:[%s4535_s1 + $0x5f0] sm:$0xff]  ;;  %v224_v15 = vld [vmem:[%s4535_s1 + $0x618] sm:$0xff] }
  0x87   :  { %814 = vmatmul.mubr.f32.vlgmr.msra.gmra.mrb[0].mxu0 %v3002_v44  ;;  %1969 = vmatprep.subr.bf16.mxu1 %v1968_v59  ;;  %v1986_v59 = vpack.c.bf16 %v203_v51, %v199_v50  ;;  %v228_v16 = vld [vmem:[%s4535_s1 + $0x638] sm:$0xff] }
  0x88   :  { %1839 = vmatpush1.bf16.msra.mxu0 %v1838_v58  ;;  %884 = vmatprep.mubr.f32.mxu0 %v3280_v2  ;;  %v466_v58 = vld [vmem:[%s4535_s1 + $0xda8] sm:$0xff]  ;;  %v1996_v21 = vpack.c.bf16 %v228_v16, %v224_v15  ;;  %v244_v45 = vld [vmem:[%s4535_s1 + $0x6b8] sm:$0xff] }
  0x89   :  { %1841 = vmatprep.subr.bf16.mxu0 %v1840_v62  ;;  %v207_v62 = vld [vmem:[%s4535_s1 + $0x590] sm:$0xff]  ;;  %v1860_v0 = vpack.c.bf16 %v466_v58, %v462_v57 }
  0x8a   :  { %1971 = vmatpush1.bf16.msra.mxu1 %v1970_v5  ;;  %v470_v5 = vld [vmem:[%s4535_s1 + $0xdc8] sm:$0xff] }
  0x8b   :  { %1973 = vmatprep.subr.bf16.mxu1 %v1972_v7  ;;  %v1990_v7 = vpack.c.bf16 %v211_v63, %v207_v62 }
  0x8c   :  { %1843 = vmatpush1.bf16.msra.mxu0 %v1842_v6  ;;  %v474_v6 = vld [vmem:[%s4535_s1 + $0xde8] sm:$0xff] }
  0x8d   :  { %1845 = vmatprep.subr.bf16.mxu0 %v1844_v10  ;;  %v215_v10 = vld [vmem:[%s4535_s1 + $0x5d0] sm:$0xff]  ;;  %v1864_v13 = vpack.c.bf16 %v474_v6, %v470_v5 }
  0x8e   :  { %1975 = vmatpush1.bf16.msra.mxu1 %v1974_v17  ;;  %v478_v17 = vld [vmem:[%s4535_s1 + $0xe08] sm:$0xff] }
  0x8f   :  { %1977 = vmatprep.subr.bf16.mxu1 %v1976_v19  ;;  %v1994_v19 = vpack.c.bf16 %v219_v12, %v215_v10 }
  0x90   :  { %1847 = vmatpush1.bf16.msra.mxu0 %v1846_v18  ;;  %v482_v18 = vld [vmem:[%s4535_s1 + $0xe28] sm:$0xff] }
  0x91   :  { %1849 = vmatprep.subr.bf16.mxu0 %v1848_v41  ;;  %v223_v41 = vld [vmem:[%s4535_s1 + $0x610] sm:$0xff]  ;;  %v1868_v24 = vpack.c.bf16 %v482_v18, %v478_v17 }
  0x92   :  { %1979 = vmatpush1.bf16.msra.mxu1 %v1978_v29  ;;  %v486_v29 = vld [vmem:[%s4535_s1 + $0xe48] sm:$0xff] }
  0x93   :  { %1981 = vmatprep.subr.bf16.mxu1 %v1980_v31  ;;  %v1998_v31 = vpack.c.bf16 %v227_v23, %v223_v41 }
  0x94   :  { %1851 = vmatpush1.bf16.msra.mxu0 %v1850_v30  ;;  %v490_v30 = vld [vmem:[%s4535_s1 + $0xe68] sm:$0xff] }
  0x95   :  { %1853 = vmatprep.subr.bf16.mxu0 %v1852_v37  ;;  %v489_v37 = vld [vmem:[%s4535_s1 + $0xe60] sm:$0xff]  ;;  %v1872_v42 = vpack.c.bf16 %v490_v30, %v486_v29 }
  0x96   :  { %1983 = vmatpush1.bf16.msra.mxu1 %v1982_v46 }
  0x97   :  { %1985 = vmatprep.subr.bf16.mxu1 %v1984_v38 }
  0x98   :  { %1855 = vmatpush1.bf16.msra.mxu0 %v1854_v47 }
  0x99   :  { %1857 = vmatprep.subr.bf16.mxu0 %v1856_v52 }
  0x9a   :  { %1987 = vmatpush1.bf16.msra.mxu1 %v1986_v59 }
  0x9b   :  { %1989 = vmatprep.subr.bf16.mxu1 %v1988_v11 }
  0x9c   :  { %1859 = vmatpush1.bf16.msra.mxu0 %v1858_v33 }
  0x9d   :  { %1861 = vmatprep.subr.bf16.mxu0 %v1860_v0 }
  0x9e   :  { %1991 = vmatpush1.bf16.msra.mxu1 %v1990_v7 }
  0x9f   :  { %1993 = vmatprep.subr.bf16.mxu1 %v1992_v8 }
  0xa0   :  { %1863 = vmatpush1.bf16.msra.mxu0 %v1862_v25 }
  0xa1   :  { %1865 = vmatprep.subr.bf16.mxu0 %v1864_v13 }
  0xa2   :  { %1995 = vmatpush1.bf16.msra.mxu1 %v1994_v19 }
  0xa3   :  { %1997 = vmatprep.subr.bf16.mxu1 %v1996_v21 }
  0xa4   :  { %1867 = vmatpush1.bf16.msra.mxu0 %v1866_v20 }
  0xa5   :  { %1869 = vmatprep.subr.bf16.mxu0 %v1868_v24 }
  0xa6   :  { %12 = vsyncpa [#allocation3], 0  ;;  %v494_v46 = vld [vmem:[%s4535_s1 + $0xe88] sm:$0xff]  ;;  %1999 = vmatpush1.bf16.msra.mxu1 %v1998_v31  ;;  %v2002_v38 = vpack.c.bf16 %v235_v40, %v231_v39  ;;  %v1874_v49 = vpack.c.bf16 %v489_v37, %v485_v32  ;;  %v2004_v50 = vpack.c.bf16 %v244_v45, %v240_v43  ;;  %v493_v51 = vld [vmem:[%s4535_s1 + $0xe80] sm:$0xff]  ;;  %vm1572_vm0 = vcmask 9216  }
  0xa7   :  { %v498_v47 = vld [vmem:[%s4535_s1 + $0xea8] sm:$0xff]  ;;  %2001 = vmatprep.subr.bf16.mxu1 %v2000_v36  ;;  %v239_v52 = vld [vmem:[%s4535_s1 + $0x690] sm:$0xff]  ;;  %v497_v56 = vld [vmem:[%s4535_s1 + $0xea0] sm:$0xff] }
  0xa8   :  { %1871 = vmatpush1.bf16.msra.mxu0 %v1870_v35  ;;  %v243_v53 = vld [vmem:[%s4535_s1 + $0x6b0] sm:$0xff]  ;;  %v1876_v55 = vpack.c.bf16 %v498_v47, %v494_v46  ;;  %v248_v57 = vld [vmem:[%s4535_s1 + $0x6d8] sm:$0xff]  ;;  %v502_v59 = vld [vmem:[%s4535_s1 + $0xec8] sm:$0xff]  ;;  %v1878_v60 = vpack.c.bf16 %v497_v56, %v493_v51 }
  0xa9   :  { %1873 = vmatprep.subr.bf16.mxu0 %v1872_v42  ;;  %v252_v58 = vld [vmem:[%s4535_s1 + $0x6f8] sm:$0xff]  ;;  %v506_v33 = vld [vmem:[%s4535_s1 + $0xee8] sm:$0xff]  ;;  %v2006_v11 = vpack.c.bf16 %v243_v53, %v239_v52  ;;  %v501_v63 = vld [vmem:[%s4535_s1 + $0xec0] sm:$0xff] }
  0xaa   :  { %2003 = vmatpush1.bf16.msra.mxu1 %v2002_v38  ;;  %v2008_v62 = vpack.c.bf16 %v252_v58, %v248_v57  ;;  %v247_v0 = vld [vmem:[%s4535_s1 + $0x6d0] sm:$0xff]  ;;  %v1880_v3 = vpack.c.bf16 %v506_v33, %v502_v59  ;;  %v505_v4 = vld [vmem:[%s4535_s1 + $0xee0] sm:$0xff]  ;;  %v256_v5 = vld [vmem:[%s4535_s1 + $0x718] sm:$0xff] }
  0xab   :  { %2005 = vmatprep.subr.bf16.mxu1 %v2004_v50  ;;  %v251_v1 = vld [vmem:[%s4535_s1 + $0x6f0] sm:$0xff]  ;;  %v260_v6 = vld [vmem:[%s4535_s1 + $0x738] sm:$0xff]  ;;  %v510_v7 = vld [vmem:[%s4535_s1 + $0xf08] sm:$0xff]  ;;  %v1882_v9 = vpack.c.bf16 %v505_v4, %v501_v63 }
  0xac   :  { %1875 = vmatpush1.bf16.msra.mxu0 %v1874_v49  ;;  %v514_v25 = vld [vmem:[%s4535_s1 + $0xf28] sm:$0xff]  ;;  %v2010_v8 = vpack.c.bf16 %v251_v1, %v247_v0  ;;  %v2012_v10 = vpack.c.bf16 %v260_v6, %v256_v5  ;;  %v509_v12 = vld [vmem:[%s4535_s1 + $0xf00] sm:$0xff]  ;;  %v255_v13 = vld [vmem:[%s4535_s1 + $0x710] sm:$0xff] }
  0xad   :  { %1877 = vmatprep.subr.bf16.mxu0 %v1876_v55  ;;  %v259_v14 = vld [vmem:[%s4535_s1 + $0x730] sm:$0xff]  ;;  %v1884_v15 = vpack.c.bf16 %v514_v25, %v510_v7  ;;  %v513_v16 = vld [vmem:[%s4535_s1 + $0xf20] sm:$0xff]  ;;  %v264_v17 = vld [vmem:[%s4535_s1 + $0x758] sm:$0xff] }
  0xae   :  { %2007 = vmatpush1.bf16.msra.mxu1 %v2006_v11  ;;  %v268_v18 = vld [vmem:[%s4535_s1 + $0x778] sm:$0xff]  ;;  %v518_v19 = vld [vmem:[%s4535_s1 + $0xf48] sm:$0xff]  ;;  %v2014_v21 = vpack.c.bf16 %v259_v14, %v255_v13  ;;  %v1886_v22 = vpack.c.bf16 %v513_v16, %v509_v12  ;;  %v517_v23 = vld [vmem:[%s4535_s1 + $0xf40] sm:$0xff] }
  0xaf   :  { %2009 = vmatprep.subr.bf16.mxu1 %v2008_v62  ;;  %v522_v20 = vld [vmem:[%s4535_s1 + $0xf68] sm:$0xff]  ;;  %v2016_v41 = vpack.c.bf16 %v268_v18, %v264_v17  ;;  %v263_v24 = vld [vmem:[%s4535_s1 + $0x750] sm:$0xff]  ;;  %v521_v28 = vld [vmem:[%s4535_s1 + $0xf60] sm:$0xff] }
  0xb0   :  { %1879 = vmatpush1.bf16.msra.mxu0 %v1878_v60  ;;  %v267_v26 = vld [vmem:[%s4535_s1 + $0x770] sm:$0xff]  ;;  %v1888_v27 = vpack.c.bf16 %v522_v20, %v518_v19  ;;  %v272_v29 = vld [vmem:[%s4535_s1 + $0x798] sm:$0xff]  ;;  %v526_v31 = vld [vmem:[%s4535_s1 + $0xf88] sm:$0xff]  ;;  %v1890_v36 = vpack.c.bf16 %v521_v28, %v517_v23 }
  0xb1   :  { %1881 = vmatprep.subr.bf16.mxu0 %v1880_v3  ;;  %v276_v30 = vld [vmem:[%s4535_s1 + $0x7b8] sm:$0xff]  ;;  %v530_v32 = vld [vmem:[%s4535_s1 + $0xfa8] sm:$0xff]  ;;  %v2018_v35 = vpack.c.bf16 %v267_v26, %v263_v24  ;;  %v525_v39 = vld [vmem:[%s4535_s1 + $0xf80] sm:$0xff] }
  0xb2   :  { %2011 = vmatpush1.bf16.msra.mxu1 %v2010_v8  ;;  %v2020_v37 = vpack.c.bf16 %v276_v30, %v272_v29  ;;  %v271_v40 = vld [vmem:[%s4535_s1 + $0x790] sm:$0xff]  ;;  %v1892_v43 = vpack.c.bf16 %v530_v32, %v526_v31  ;;  %v529_v45 = vld [vmem:[%s4535_s1 + $0xfa0] sm:$0xff]  ;;  %v280_v46 = vld [vmem:[%s4535_s1 + $0x7d8] sm:$0xff] }
  0xb3   :  { %2013 = vmatprep.subr.bf16.mxu1 %v2012_v10  ;;  %v275_v42 = vld [vmem:[%s4535_s1 + $0x7b0] sm:$0xff]  ;;  %v284_v47 = vld [vmem:[%s4535_s1 + $0x7f8] sm:$0xff]  ;;  %v534_v38 = vld [vmem:[%s4535_s1 + $0xfc8] sm:$0xff]  ;;  %v1894_v51 = vpack.c.bf16 %v529_v45, %v525_v39 }
  0xb4   :  { %1883 = vmatpush1.bf16.msra.mxu0 %v1882_v9  ;;  %v538_v49 = vld [vmem:[%s4535_s1 + $0xfe8] sm:$0xff]  ;;  %v2022_v50 = vpack.c.bf16 %v275_v42, %v271_v40  ;;  %v2024_v52 = vpack.c.bf16 %v284_v47, %v280_v46  ;;  %v533_v53 = vld [vmem:[%s4535_s1 + $0xfc0] sm:$0xff]  ;;  %v279_v55 = vld [vmem:[%s4535_s1 + $0x7d0] sm:$0xff] }
  0xb5   :  { %1885 = vmatprep.subr.bf16.mxu0 %v1884_v15  ;;  %v283_v56 = vld [vmem:[%s4535_s1 + $0x7f0] sm:$0xff]  ;;  %v1896_v57 = vpack.c.bf16 %v538_v49, %v534_v38  ;;  %v537_v58 = vld [vmem:[%s4535_s1 + $0xfe0] sm:$0xff]  ;;  %v288_v59 = vld [vmem:[%s4535_s1 + $0x818] sm:$0xff] }
  0xb6   :  { %2015 = vmatpush1.bf16.msra.mxu1 %v2014_v21  ;;  %v292_v33 = vld [vmem:[%s4535_s1 + $0x838] sm:$0xff]  ;;  %v2026_v11 = vpack.c.bf16 %v283_v56, %v279_v55  ;;  %v1898_v60 = vpack.c.bf16 %v537_v58, %v533_v53  ;;  %v287_v63 = vld [vmem:[%s4535_s1 + $0x810] sm:$0xff]  ;;  %v1180_v12 = vld [vmem:[%s4537_s3 + $0x8] sm:$0xff] }
  0xb7   :  { %2017 = vmatprep.subr.bf16.mxu1 %v2016_v41  ;;  %v2028_v62 = vpack.c.bf16 %v292_v33, %v288_v59  ;;  %v291_v0 = vld [vmem:[%s4535_s1 + $0x830] sm:$0xff]  ;;  %v296_v1 = vld [vmem:[%s4535_s1 + $0x858] sm:$0xff]  ;;  %v1184_v17 = vld [vmem:[%s4537_s3 + $0x28] sm:$0xff] }
  0xb8   :  { %1887 = vmatpush1.bf16.msra.mxu0 %v1886_v22  ;;  %v300_v3 = vld [vmem:[%s4535_s1 + $0x878] sm:$0xff]  ;;  %v2030_v4 = vpack.c.bf16 %v291_v0, %v287_v63  ;;  %v295_v6 = vld [vmem:[%s4535_s1 + $0x850] sm:$0xff]  ;;  %v1183_v22 = vld [vmem:[%s4537_s3 + $0x20] sm:$0xff] }
  0xb9   :  { %1889 = vmatprep.subr.bf16.mxu0 %v1888_v27  ;;  %v2032_v5 = vpack.c.bf16 %v300_v3, %v296_v1  ;;  %v299_v7 = vld [vmem:[%s4535_s1 + $0x870] sm:$0xff]  ;;  %v304_v25 = vld [vmem:[%s4535_s1 + $0x898] sm:$0xff]  ;;  %v1188_v23 = vld [vmem:[%s4537_s3 + $0x48] sm:$0xff] }
  0xba   :  { %2019 = vmatpush1.bf16.msra.mxu1 %v2018_v35  ;;  %v308_v8 = vld [vmem:[%s4535_s1 + $0x8b8] sm:$0xff]  ;;  %v303_v9 = vld [vmem:[%s4535_s1 + $0x890] sm:$0xff]  ;;  %v2034_v14 = vpack.c.bf16 %v299_v7, %v295_v6  ;;  %v1187_v31 = vld [vmem:[%s4537_s3 + $0x40] sm:$0xff] }
  0xbb   :  { %2021 = vmatprep.subr.bf16.mxu1 %v2020_v37  ;;  %v307_v10 = vld [vmem:[%s4535_s1 + $0x8b0] sm:$0xff]  ;;  %v1182_v13 = vld [vmem:[%s4537_s3 + $0x18] sm:$0xff]  ;;  %v2036_v19 = vpack.c.bf16 %v308_v8, %v304_v25  ;;  %v1192_v37 = vld [vmem:[%s4537_s3 + $0x68] sm:$0xff] }
  0xbc   :  { %1891 = vmatpush1.bf16.msra.mxu0 %v1890_v36  ;;  %v2156_v15 = vpack.c.bf16 %v1182_v13, %v1180_v12  ;;  %v1181_v16 = vld [vmem:[%s4537_s3 + $0x10] sm:$0xff]  ;;  %v1186_v18 = vld [vmem:[%s4537_s3 + $0x38] sm:$0xff]  ;;  %v2038_v28 = vpack.c.bf16 %v307_v10, %v303_v9  ;;  %v1191_v38 = vld [vmem:[%s4537_s3 + $0x60] sm:$0xff] }
  0xbd   :  { %1893 = vmatprep.subr.bf16.mxu0 %v1892_v43  ;;  %v2160_v21 = vpack.c.bf16 %v1186_v18, %v1184_v17  ;;  %v1185_v41 = vld [vmem:[%s4537_s3 + $0x30] sm:$0xff]  ;;  %v312_v24 = vld [vmem:[%s4535_s1 + $0x8d8] sm:$0xff]  ;;  %v1200_v0 = vld [vmem:[%s4537_s3 + $0xa8] sm:$0xff] }
  0xbe   :  { %2023 = vmatpush1.bf16.msra.mxu1 %v2022_v50  ;;  %v1190_v26 = vld [vmem:[%s4537_s3 + $0x58] sm:$0xff]  ;;  %v2162_v27 = vpack.c.bf16 %v1185_v41, %v1183_v22  ;;  %v311_v29 = vld [vmem:[%s4535_s1 + $0x8d0] sm:$0xff]  ;;  %v1199_v8 = vld [vmem:[%s4537_s3 + $0xa0] sm:$0xff] }
  0xbf   :  { %2025 = vmatprep.subr.bf16.mxu1 %v2024_v52  ;;  %v2164_v30 = vpack.c.bf16 %v1190_v26, %v1188_v23  ;;  %v1189_v32 = vld [vmem:[%s4537_s3 + $0x50] sm:$0xff]  ;;  %v1194_v39 = vld [vmem:[%s4537_s3 + $0x78] sm:$0xff]  ;;  %v1196_v52 = vld [vmem:[%s4537_s3 + $0x88] sm:$0xff] }
  0xc0   :  { %1895 = vmatpush1.bf16.msra.mxu0 %v1894_v51  ;;  %v315_v36 = vld [vmem:[%s4535_s1 + $0x8f0] sm:$0xff]  ;;  %v320_v40 = vld [vmem:[%s4535_s1 + $0x918] sm:$0xff]  ;;  %v2166_v43 = vpack.c.bf16 %v1189_v32, %v1187_v31  ;;  %v2168_v47 = vpack.c.bf16 %v1194_v39, %v1192_v37  ;;  %v1204_v13 = vld [vmem:[%s4537_s3 + $0xc8] sm:$0xff] }
  0xc1   :  { %1897 = vmatprep.subr.bf16.mxu0 %v1896_v57  ;;  %v324_v42 = vld [vmem:[%s4535_s1 + $0x938] sm:$0xff]  ;;  %v2042_v45 = vpack.c.bf16 %v315_v36, %v311_v29  ;;  %v319_v46 = vld [vmem:[%s4535_s1 + $0x910] sm:$0xff]  ;;  %v1208_v23 = vld [vmem:[%s4537_s3 + $0xe8] sm:$0xff] }
  0xc2   :  { %2027 = vmatpush1.bf16.msra.mxu1 %v2026_v11  ;;  %v1193_v49 = vld [vmem:[%s4537_s3 + $0x70] sm:$0xff]  ;;  %v2044_v50 = vpack.c.bf16 %v324_v42, %v320_v40  ;;  %v1198_v53 = vld [vmem:[%s4537_s3 + $0x98] sm:$0xff]  ;;  %v1195_v11 = vld [vmem:[%s4537_s3 + $0x80] sm:$0xff] }
  0xc3   :  { %2029 = vmatprep.subr.bf16.mxu1 %v2028_v62  ;;  %v323_v51 = vld [vmem:[%s4535_s1 + $0x930] sm:$0xff]  ;;  %v328_v55 = vld [vmem:[%s4535_s1 + $0x958] sm:$0xff]  ;;  %v2170_v57 = vpack.c.bf16 %v1193_v49, %v1191_v38  ;;  %v2172_v33 = vpack.c.bf16 %v1198_v53, %v1196_v52  ;;  %v1207_v31 = vld [vmem:[%s4537_s3 + $0xe0] sm:$0xff] }
  0xc4   :  { %1899 = vmatpush1.bf16.msra.mxu0 %v1898_v60  ;;  %v332_v56 = vld [vmem:[%s4535_s1 + $0x978] sm:$0xff]  ;;  %v2046_v58 = vpack.c.bf16 %v323_v51, %v319_v46  ;;  %v327_v59 = vld [vmem:[%s4535_s1 + $0x950] sm:$0xff]  ;;  %v1212_v37 = vld [vmem:[%s4537_s3 + $0x108] sm:$0xff] }
  0xc5   :  { %1027 = vmatmul.mubr.f32.vlgmr.msra.gmra.mrb[2].mxu1 %v2735_v34  ;;  %v1179_v34 = vld [vmem:[%s4537_s3] sm:$0xff]  ;;  %2157 = vmatprep.subr.bf16.mxu0 %v2156_v15  ;;  %v1197_v60 = vld [vmem:[%s4537_s3 + $0x90] sm:$0xff]  ;;  %v2048_v62 = vpack.c.bf16 %v332_v56, %v328_v55  ;;  %v1202_v1 = vld [vmem:[%s4537_s3 + $0xb8] sm:$0xff] }
  0xc6   :  { %2031 = vmatpush1.bf16.msra.mxu1 %v2030_v4  ;;  %1097 = vmatprep.mubr.f32.mxu1 %v3012_v48  ;;  %v2158_v20 = vpack.c.bf16 %v1181_v16, %v1179_v34  ;;  %v316_v48 = vld [vmem:[%s4535_s1 + $0x8f8] sm:$0xff]  ;;  %v331_v63 = vld [vmem:[%s4535_s1 + $0x970] sm:$0xff]  ;;  %v2176_v25 = vpack.c.bf16 %v1202_v1, %v1200_v0  ;;  %v1211_v38 = vld [vmem:[%s4537_s3 + $0x100] sm:$0xff] }
  0xc7   :  { %885 = vmatmul.mubr.f32.vlgmr.msra.gmra.mrb[0].mxu0 %v3252_v54  ;;  %2033 = vmatprep.subr.bf16.mxu1 %v2032_v5  ;;  %v2040_v35 = vpack.c.bf16 %v316_v48, %v312_v24  ;;  %v336_v3 = vld [vmem:[%s4535_s1 + $0x998] sm:$0xff]  ;;  %v2174_v5 = vpack.c.bf16 %v1197_v60, %v1195_v11  ;;  %v2050_v6 = vpack.c.bf16 %v331_v63, %v327_v59  ;;  %v335_v7 = vld [vmem:[%s4535_s1 + $0x990] sm:$0xff]  ;;  %v1216_v52 = vld [vmem:[%s4537_s3 + $0x128] sm:$0xff] }
  0xc8   :  { %2159 = vmatpush1.bf16.msra.mxu0 %v2158_v20  ;;  %v340_v4 = vld [vmem:[%s4535_s1 + $0x9b8] sm:$0xff]  ;;  %v1201_v9 = vld [vmem:[%s4537_s3 + $0xb0] sm:$0xff]  ;;  %v1203_v20 = vld [vmem:[%s4537_s3 + $0xc0] sm:$0xff] }
  0xc9   :  { %2161 = vmatprep.subr.bf16.mxu0 %v2160_v21  ;;  %v2052_v10 = vpack.c.bf16 %v340_v4, %v336_v3  ;;  %v339_v12 = vld [vmem:[%s4535_s1 + $0x9b0] sm:$0xff]  ;;  %v1206_v34 = vld [vmem:[%s4537_s3 + $0xd8] sm:$0xff]  ;;  %v2178_v16 = vpack.c.bf16 %v1201_v9, %v1199_v8  ;;  %v1215_v11 = vld [vmem:[%s4537_s3 + $0x120] sm:$0xff] }
  0xca   :  { %2035 = vmatpush1.bf16.msra.mxu1 %v2034_v14  ;;  %v344_v14 = vld [vmem:[%s4535_s1 + $0x9d8] sm:$0xff]  ;;  %v2054_v17 = vpack.c.bf16 %v339_v12, %v335_v7  ;;  %v343_v18 = vld [vmem:[%s4535_s1 + $0x9d0] sm:$0xff]  ;;  %v1220_v0 = vld [vmem:[%s4537_s3 + $0x148] sm:$0xff] }
  0xcb   :  { %2037 = vmatprep.subr.bf16.mxu1 %v2036_v19  ;;  %v348_v15 = vld [vmem:[%s4535_s1 + $0x9f8] sm:$0xff]  ;;  %v2180_v19 = vpack.c.bf16 %v1206_v34, %v1204_v13  ;;  %v1205_v21 = vld [vmem:[%s4537_s3 + $0xd0] sm:$0xff]  ;;  %v1219_v8 = vld [vmem:[%s4537_s3 + $0x140] sm:$0xff] }
  0xcc   :  { %2163 = vmatpush1.bf16.msra.mxu0 %v2162_v27  ;;  %v2056_v22 = vpack.c.bf16 %v348_v15, %v344_v14  ;;  %v347_v41 = vld [vmem:[%s4535_s1 + $0x9f0] sm:$0xff]  ;;  %v1210_v24 = vld [vmem:[%s4537_s3 + $0xf8] sm:$0xff]  ;;  %v2182_v27 = vpack.c.bf16 %v1205_v21, %v1203_v20  ;;  %v1224_v13 = vld [vmem:[%s4537_s3 + $0x168] sm:$0xff] }
  0xcd   :  { %2165 = vmatprep.subr.bf16.mxu0 %v2164_v30  ;;  %v352_v48 = vld [vmem:[%s4535_s1 + $0xa18] sm:$0xff]  ;;  %v351_v29 = vld [vmem:[%s4535_s1 + $0xa10] sm:$0xff]  ;;  %v2184_v30 = vpack.c.bf16 %v1210_v24, %v1208_v23  ;;  %v1223_v20 = vld [vmem:[%s4537_s3 + $0x160] sm:$0xff] }
  0xce   :  { %2039 = vmatpush1.bf16.msra.mxu1 %v2038_v28  ;;  %v356_v26 = vld [vmem:[%s4535_s1 + $0xa38] sm:$0xff]  ;;  %v2058_v28 = vpack.c.bf16 %v347_v41, %v343_v18  ;;  %v1209_v32 = vld [vmem:[%s4537_s3 + $0xf0] sm:$0xff]  ;;  %v1228_v23 = vld [vmem:[%s4537_s3 + $0x188] sm:$0xff] }
  0xcf   :  { %2041 = vmatprep.subr.bf16.mxu1 %v2040_v35  ;;  %v2060_v35 = vpack.c.bf16 %v356_v26, %v352_v48  ;;  %v355_v36 = vld [vmem:[%s4535_s1 + $0xa30] sm:$0xff]  ;;  %v1214_v39 = vld [vmem:[%s4537_s3 + $0x118] sm:$0xff] }
  0xd0   :  { %2167 = vmatpush1.bf16.msra.mxu0 %v2166_v43  ;;  %v360_v40 = vld [vmem:[%s4535_s1 + $0xa58] sm:$0xff]  ;;  %v2186_v43 = vpack.c.bf16 %v1209_v32, %v1207_v31  ;;  %v359_v46 = vld [vmem:[%s4535_s1 + $0xa50] sm:$0xff]  ;;  %v1227_v31 = vld [vmem:[%s4537_s3 + $0x180] sm:$0xff] }
  0xd1   :  { %2169 = vmatprep.subr.bf16.mxu0 %v2168_v47  ;;  %v364_v42 = vld [vmem:[%s4535_s1 + $0xa78] sm:$0xff]  ;;  %v2188_v47 = vpack.c.bf16 %v1214_v39, %v1212_v37  ;;  %v1213_v49 = vld [vmem:[%s4537_s3 + $0x110] sm:$0xff]  ;;  %v1232_v37 = vld [vmem:[%s4537_s3 + $0x1a8] sm:$0xff] }
  0xd2   :  { %2043 = vmatpush1.bf16.msra.mxu1 %v2042_v45  ;;  %v2062_v45 = vpack.c.bf16 %v355_v36, %v351_v29  ;;  %v363_v51 = vld [vmem:[%s4535_s1 + $0xa70] sm:$0xff]  ;;  %v1218_v53 = vld [vmem:[%s4537_s3 + $0x138] sm:$0xff] }
  0xd3   :  { %2045 = vmatprep.subr.bf16.mxu1 %v2044_v50  ;;  %v2064_v50 = vpack.c.bf16 %v364_v42, %v360_v40  ;;  %v368_v55 = vld [vmem:[%s4535_s1 + $0xa98] sm:$0xff]  ;;  %v367_v59 = vld [vmem:[%s4535_s1 + $0xa90] sm:$0xff] }
  0xd4   :  { %2171 = vmatpush1.bf16.msra.mxu0 %v2170_v57  ;;  %v372_v56 = vld [vmem:[%s4535_s1 + $0xab8] sm:$0xff]  ;;  %v2190_v57 = vpack.c.bf16 %v1213_v49, %v1211_v38  ;;  %v1217_v60 = vld [vmem:[%s4537_s3 + $0x130] sm:$0xff]  ;;  %v1231_v38 = vld [vmem:[%s4537_s3 + $0x1a0] sm:$0xff] }
  0xd5   :  { %2173 = vmatprep.subr.bf16.mxu0 %v2172_v33  ;;  %v2192_v33 = vpack.c.bf16 %v1218_v53, %v1216_v52  ;;  %v371_v63 = vld [vmem:[%s4535_s1 + $0xab0] sm:$0xff]  ;;  %v1222_v1 = vld [vmem:[%s4537_s3 + $0x158] sm:$0xff]  ;;  %v1236_v52 = vld [vmem:[%s4537_s3 + $0x1c8] sm:$0xff] }
  0xd6   :  { %2047 = vmatpush1.bf16.msra.mxu1 %v2046_v58  ;;  %v2066_v58 = vpack.c.bf16 %v363_v51, %v359_v46  ;;  %v376_v3 = vld [vmem:[%s4535_s1 + $0xad8] sm:$0xff]  ;;  %v375_v7 = vld [vmem:[%s4535_s1 + $0xad0] sm:$0xff] }
  0xd7   :  { %2049 = vmatprep.subr.bf16.mxu1 %v2048_v62  ;;  %v2068_v62 = vpack.c.bf16 %v372_v56, %v368_v55  ;;  %v380_v4 = vld [vmem:[%s4535_s1 + $0xaf8] sm:$0xff]  ;;  %v1221_v9 = vld [vmem:[%s4537_s3 + $0x150] sm:$0xff] }
  0xd8   :  { %2175 = vmatpush1.bf16.msra.mxu0 %v2174_v5  ;;  %v2194_v5 = vpack.c.bf16 %v1217_v60, %v1215_v11  ;;  %v379_v12 = vld [vmem:[%s4535_s1 + $0xaf0] sm:$0xff]  ;;  %v1226_v34 = vld [vmem:[%s4537_s3 + $0x178] sm:$0xff] }
  0xd9   :  { %2177 = vmatprep.subr.bf16.mxu0 %v2176_v25  ;;  %v2196_v25 = vpack.c.bf16 %v1222_v1, %v1220_v0  ;;  %v384_v14 = vld [vmem:[%s4535_s1 + $0xb18] sm:$0xff]  ;;  %v383_v18 = vld [vmem:[%s4535_s1 + $0xb10] sm:$0xff] }
  0xda   :  { %2051 = vmatpush1.bf16.msra.mxu1 %v2050_v6  ;;  %v2070_v6 = vpack.c.bf16 %v371_v63, %v367_v59  ;;  %v388_v15 = vld [vmem:[%s4535_s1 + $0xb38] sm:$0xff]  ;;  %v1225_v21 = vld [vmem:[%s4537_s3 + $0x170] sm:$0xff] }
  0xdb   :  { %2053 = vmatprep.subr.bf16.mxu1 %v2052_v10  ;;  %v2072_v10 = vpack.c.bf16 %v380_v4, %v376_v3  ;;  %v387_v41 = vld [vmem:[%s4535_s1 + $0xb30] sm:$0xff]  ;;  %v1230_v24 = vld [vmem:[%s4537_s3 + $0x198] sm:$0xff] }
  0xdc   :  { %2179 = vmatpush1.bf16.msra.mxu0 %v2178_v16  ;;  %v2198_v16 = vpack.c.bf16 %v1221_v9, %v1219_v8  ;;  %v392_v48 = vld [vmem:[%s4535_s1 + $0xb58] sm:$0xff]  ;;  %v391_v29 = vld [vmem:[%s4535_s1 + $0xb50] sm:$0xff] }
  0xdd   :  { %2181 = vmatprep.subr.bf16.mxu0 %v2180_v19  ;;  %v2200_v19 = vpack.c.bf16 %v1226_v34, %v1224_v13  ;;  %v396_v26 = vld [vmem:[%s4535_s1 + $0xb78] sm:$0xff]  ;;  %v1229_v32 = vld [vmem:[%s4537_s3 + $0x190] sm:$0xff] }
  0xde   :  { %2055 = vmatpush1.bf16.msra.mxu1 %v2054_v17  ;;  %v2074_v17 = vpack.c.bf16 %v379_v12, %v375_v7  ;;  %v395_v36 = vld [vmem:[%s4535_s1 + $0xb70] sm:$0xff]  ;;  %v1234_v39 = vld [vmem:[%s4537_s3 + $0x1b8] sm:$0xff] }
  0xdf   :  { %2057 = vmatprep.subr.bf16.mxu1 %v2056_v22  ;;  %v2076_v22 = vpack.c.bf16 %v388_v15, %v384_v14  ;;  %v400_v40 = vld [vmem:[%s4535_s1 + $0xb98] sm:$0xff]  ;;  %v399_v46 = vld [vmem:[%s4535_s1 + $0xb90] sm:$0xff] }
  0xe0   :  { %2183 = vmatpush1.bf16.msra.mxu0 %v2182_v27  ;;  %v2202_v27 = vpack.c.bf16 %v1225_v21, %v1223_v20  ;;  %v404_v42 = vld [vmem:[%s4535_s1 + $0xbb8] sm:$0xff]  ;;  %v1233_v49 = vld [vmem:[%s4537_s3 + $0x1b0] sm:$0xff] }
  0xe1   :  { %2185 = vmatprep.subr.bf16.mxu0 %v2184_v30  ;;  %v2204_v30 = vpack.c.bf16 %v1230_v24, %v1228_v23  ;;  %v403_v51 = vld [vmem:[%s4535_s1 + $0xbb0] sm:$0xff]  ;;  %v1238_v53 = vld [vmem:[%s4537_s3 + $0x1d8] sm:$0xff] }
  0xe2   :  { %2059 = vmatpush1.bf16.msra.mxu1 %v2058_v28  ;;  %v2078_v28 = vpack.c.bf16 %v387_v41, %v383_v18  ;;  %v408_v55 = vld [vmem:[%s4535_s1 + $0xbd8] sm:$0xff]  ;;  %v2212_v59 = vpack.c.bf16 %v1238_v53, %v1236_v52  ;;  %v407_v11 = vld [vmem:[%s4535_s1 + $0xbd0] sm:$0xff]  ;;  %v1239_v53 = vld [vmem:[%s4537_s3 + $0x1e0] sm:$0xff] }
  0xe3   :  { %2061 = vmatprep.subr.bf16.mxu1 %v2060_v35  ;;  %v2080_v35 = vpack.c.bf16 %v396_v26, %v392_v48  ;;  %v412_v56 = vld [vmem:[%s4535_s1 + $0xbf8] sm:$0xff]  ;;  %v411_v60 = vld [vmem:[%s4535_s1 + $0xbf0] sm:$0xff] }
  0xe4   :  { %2187 = vmatpush1.bf16.msra.mxu0 %v2186_v43  ;;  %v2206_v43 = vpack.c.bf16 %v1229_v32, %v1227_v31  ;;  %v420_v63 = vld [vmem:[%s4535_s1 + $0xc38] sm:$0xff]  ;;  %v2090_v0 = vpack.c.bf16 %v411_v60, %v407_v11  ;;  %v415_v3 = vld [vmem:[%s4535_s1 + $0xc10] sm:$0xff] }
  0xe5   :  { %2189 = vmatprep.subr.bf16.mxu0 %v2188_v47  ;;  %v2208_v47 = vpack.c.bf16 %v1234_v39, %v1232_v37  ;;  %v419_v4 = vld [vmem:[%s4535_s1 + $0xc30] sm:$0xff]  ;;  %v436_v12 = vld [vmem:[%s4535_s1 + $0xcb8] sm:$0xff] }
  0xe6   :  { %2063 = vmatpush1.bf16.msra.mxu1 %v2062_v45  ;;  %v2082_v45 = vpack.c.bf16 %v395_v36, %v391_v29  ;;  %v2094_v7 = vpack.c.bf16 %v419_v4, %v415_v3  ;;  %v423_v8 = vld [vmem:[%s4535_s1 + $0xc50] sm:$0xff]  ;;  %v448_v20 = vld [vmem:[%s4535_s1 + $0xd18] sm:$0xff]  ;;  %v1235_v36 = vld [vmem:[%s4537_s3 + $0x1c0] sm:$0xff] }
  0xe7   :  { %2065 = vmatprep.subr.bf16.mxu1 %v2064_v50  ;;  %v2084_v50 = vpack.c.bf16 %v404_v42, %v400_v40  ;;  %v427_v9 = vld [vmem:[%s4535_s1 + $0xc70] sm:$0xff]  ;;  %v452_v21 = vld [vmem:[%s4535_s1 + $0xd38] sm:$0xff]  ;;  %v1244_v4 = vld [vmem:[%s4537_s3 + $0x208] sm:$0xff] }
  0xe8   :  { %2191 = vmatpush1.bf16.msra.mxu0 %v2190_v57  ;;  %v2210_v57 = vpack.c.bf16 %v1233_v49, %v1231_v38  ;;  %v2098_v13 = vpack.c.bf16 %v427_v9, %v423_v8  ;;  %v431_v14 = vld [vmem:[%s4535_s1 + $0xc90] sm:$0xff]  ;;  %v2108_v41 = vpack.c.bf16 %v452_v21, %v448_v20  ;;  %v456_v48 = vld [vmem:[%s4535_s1 + $0xd58] sm:$0xff]  ;;  %v1240_v49 = vld [vmem:[%s4537_s3 + $0x1e8] sm:$0xff] }
  0xe9   :  { %2193 = vmatprep.subr.bf16.mxu0 %v2192_v33  ;;  %v2088_v33 = vpack.c.bf16 %v412_v56, %v408_v55  ;;  %v435_v15 = vld [vmem:[%s4535_s1 + $0xcb0] sm:$0xff]  ;;  %v460_v26 = vld [vmem:[%s4535_s1 + $0xd78] sm:$0xff] }
  0xea   :  { %2067 = vmatpush1.bf16.msra.mxu1 %v2066_v58  ;;  %v2086_v58 = vpack.c.bf16 %v403_v51, %v399_v46  ;;  %v439_v18 = vld [vmem:[%s4535_s1 + $0xcd0] sm:$0xff]  ;;  %v464_v31 = vld [vmem:[%s4535_s1 + $0xd98] sm:$0xff] }
  0xeb   :  { %2069 = vmatprep.subr.bf16.mxu1 %v2068_v62  ;;  %v416_v62 = vld [vmem:[%s4535_s1 + $0xc18] sm:$0xff]  ;;  %v447_v23 = vld [vmem:[%s4535_s1 + $0xd10] sm:$0xff] }
  0xec   :  { %2195 = vmatpush1.bf16.msra.mxu0 %v2194_v5  ;;  %v2092_v1 = vpack.c.bf16 %v420_v63, %v416_v62  ;;  %v424_v5 = vld [vmem:[%s4535_s1 + $0xc58] sm:$0xff]  ;;  %v451_v24 = vld [vmem:[%s4535_s1 + $0xd30] sm:$0xff] }
  0xed   :  { %2197 = vmatprep.subr.bf16.mxu0 %v2196_v25  ;;  %v455_v29 = vld [vmem:[%s4535_s1 + $0xd50] sm:$0xff]  ;;  %v468_v32 = vld [vmem:[%s4535_s1 + $0xdb8] sm:$0xff] }
  0xee   :  { %2071 = vmatpush1.bf16.msra.mxu1 %v2070_v6  ;;  %v428_v6 = vld [vmem:[%s4535_s1 + $0xc78] sm:$0xff]  ;;  %v1237_v37 = vld [vmem:[%s4537_s3 + $0x1d0] sm:$0xff]  ;;  %v2116_v39 = vpack.c.bf16 %v468_v32, %v464_v31 }
  0xef   :  { %2073 = vmatprep.subr.bf16.mxu1 %v2072_v10  ;;  %v2096_v25 = vpack.c.bf16 %v428_v6, %v424_v5  ;;  %v432_v10 = vld [vmem:[%s4535_s1 + $0xc98] sm:$0xff]  ;;  %v463_v40 = vld [vmem:[%s4535_s1 + $0xd90] sm:$0xff] }
  0xf0   :  { %2199 = vmatpush1.bf16.msra.mxu0 %v2198_v16  ;;  %v2100_v34 = vpack.c.bf16 %v436_v12, %v432_v10  ;;  %v440_v16 = vld [vmem:[%s4535_s1 + $0xcd8] sm:$0xff]  ;;  %v467_v42 = vld [vmem:[%s4535_s1 + $0xdb0] sm:$0xff] }
  0xf1   :  { %2201 = vmatprep.subr.bf16.mxu0 %v2200_v19  ;;  %v443_v19 = vld [vmem:[%s4535_s1 + $0xcf0] sm:$0xff]  ;;  %v472_v46 = vld [vmem:[%s4535_s1 + $0xdd8] sm:$0xff]  ;;  %v2118_v51 = vpack.c.bf16 %v467_v42, %v463_v40 }
  0xf2   :  { %2075 = vmatpush1.bf16.msra.mxu1 %v2074_v17  ;;  %v1241_v55 = vld [vmem:[%s4537_s3 + $0x1f0] sm:$0xff]  ;;  %v484_v11 = vld [vmem:[%s4535_s1 + $0xe38] sm:$0xff] }
  0xf3   :  { %2077 = vmatprep.subr.bf16.mxu1 %v2076_v22  ;;  %v2106_v22 = vpack.c.bf16 %v443_v19, %v439_v18  ;;  %v479_v63 = vld [vmem:[%s4535_s1 + $0xe10] sm:$0xff]  ;;  %v492_v3 = vld [vmem:[%s4535_s1 + $0xe78] sm:$0xff] }
  0xf4   :  { %2203 = vmatpush1.bf16.msra.mxu0 %v2202_v27  ;;  %v2110_v27 = vpack.c.bf16 %v451_v24, %v447_v23  ;;  %v1246_v5 = vld [vmem:[%s4537_s3 + $0x218] sm:$0xff]  ;;  %v487_v8 = vld [vmem:[%s4535_s1 + $0xe50] sm:$0xff] }
  0xf5   :  { %2205 = vmatprep.subr.bf16.mxu0 %v2204_v30  ;;  %v459_v30 = vld [vmem:[%s4535_s1 + $0xd70] sm:$0xff]  ;;  %v2220_v6 = vpack.c.bf16 %v1246_v5, %v1244_v4  ;;  %v496_v10 = vld [vmem:[%s4535_s1 + $0xe98] sm:$0xff] }
  0xf6   :  { %2079 = vmatpush1.bf16.msra.mxu1 %v2078_v28  ;;  %v2112_v28 = vpack.c.bf16 %v460_v26, %v456_v48  ;;  %v491_v9 = vld [vmem:[%s4535_s1 + $0xe70] sm:$0xff]  ;;  %v500_v12 = vld [vmem:[%s4535_s1 + $0xeb8] sm:$0xff] }
  0xf7   :  { %2081 = vmatprep.subr.bf16.mxu1 %v2080_v35  ;;  %v2114_v35 = vpack.c.bf16 %v459_v30, %v455_v29  ;;  %v503_v18 = vld [vmem:[%s4535_s1 + $0xed0] sm:$0xff]  ;;  %v512_v20 = vld [vmem:[%s4535_s1 + $0xf18] sm:$0xff] }
  0xf8   :  { %2207 = vmatpush1.bf16.msra.mxu0 %v2206_v43  ;;  %v2214_v43 = vpack.c.bf16 %v1237_v37, %v1235_v36  ;;  %v507_v19 = vld [vmem:[%s4535_s1 + $0xef0] sm:$0xff]  ;;  %v516_v21 = vld [vmem:[%s4535_s1 + $0xf38] sm:$0xff] }
  0xf9   :  { %2209 = vmatprep.subr.bf16.mxu0 %v2208_v47  ;;  %v476_v47 = vld [vmem:[%s4535_s1 + $0xdf8] sm:$0xff]  ;;  %v511_v23 = vld [vmem:[%s4535_s1 + $0xf10] sm:$0xff] }
  0xfa   :  { %2083 = vmatpush1.bf16.msra.mxu1 %v2082_v45  ;;  %v2120_v56 = vpack.c.bf16 %v476_v47, %v472_v46  ;;  %v515_v24 = vld [vmem:[%s4535_s1 + $0xf30] sm:$0xff]  ;;  %v520_v48 = vld [vmem:[%s4535_s1 + $0xf58] sm:$0xff] }
  0xfb   :  { %2085 = vmatprep.subr.bf16.mxu1 %v2084_v50  ;;  %v1242_v50 = vld [vmem:[%s4537_s3 + $0x1f8] sm:$0xff]  ;;  %v519_v29 = vld [vmem:[%s4535_s1 + $0xf50] sm:$0xff] }
  0xfc   :  { %2211 = vmatpush1.bf16.msra.mxu0 %v2210_v57  ;;  %v2216_v52 = vpack.c.bf16 %v1242_v50, %v1240_v49  ;;  %v471_v57 = vld [vmem:[%s4535_s1 + $0xdd0] sm:$0xff]  ;;  %v524_v26 = vld [vmem:[%s4535_s1 + $0xf78] sm:$0xff] }
  0xfd   :  { %2213 = vmatprep.subr.bf16.mxu0 %v2212_v59  ;;  %v2218_v59 = vpack.c.bf16 %v1241_v55, %v1239_v53  ;;  %v523_v30 = vld [vmem:[%s4535_s1 + $0xf70] sm:$0xff]  ;;  %v528_v31 = vld [vmem:[%s4535_s1 + $0xf98] sm:$0xff]  ;;  %v549_v53 = vsub.s32 1, %v2662_v61 }
  0xfe   :  { %2087 = vmatpush1.bf16.msra.mxu1 %v2086_v58  ;;  %v475_v58 = vld [vmem:[%s4535_s1 + $0xdf0] sm:$0xff]  ;;  %v532_v32 = vld [vmem:[%s4535_s1 + $0xfb8] sm:$0xff] }
  0xff   :  { %2089 = vmatprep.subr.bf16.mxu1 %v2088_v33  ;;  %v480_v33 = vld [vmem:[%s4535_s1 + $0xe18] sm:$0xff]  ;;  %v2122_v60 = vpack.c.bf16 %v475_v58, %v471_v57  ;;  %v2148_v36 = vpack.c.bf16 %v532_v32, %v528_v31  ;;  %v527_v37 = vld [vmem:[%s4535_s1 + $0xf90] sm:$0xff]  ;;  %v1255_v31 = vld [vmem:[%s4537_s3 + $0x260] sm:$0xff] }
 0x100   :  { %2215 = vmatpush1.bf16.msra.mxu0 %v2214_v43  ;;  %v2124_v62 = vpack.c.bf16 %v484_v11, %v480_v33  ;;  %v536_v40 = vld [vmem:[%s4535_s1 + $0xfd8] sm:$0xff]  ;;  %v535_v47 = vld [vmem:[%s4535_s1 + $0xfd0] sm:$0xff]  ;;  %v1243_v11 = vld [vmem:[%s4537_s3 + $0x200] sm:$0xff] }
 0x101   :  { %2217 = vmatprep.subr.bf16.mxu0 %v2216_v52  ;;  %v540_v42 = vld [vmem:[%s4535_s1 + $0xff8] sm:$0xff]  ;;  %v539_v49 = vld [vmem:[%s4535_s1 + $0xff0] sm:$0xff]  ;;  %v4212_v52 = vld [vmem:[%s4536_s2] sm:$0xf] }
 0x102   :  { %2091 = vmatpush1.bf16.msra.mxu1 %v2090_v0  ;;  %v483_v0 = vld [vmem:[%s4535_s1 + $0xe30] sm:$0xff]  ;;  %v2152_v46 = vpack.c.bf16 %v540_v42, %v536_v40  ;;  %v2154_v50 = vpack.c.bf16 %v539_v49, %v535_v47  ;;  %v1470_v42 = vld [vmem:[%s4539_s5 + $0x38] sm:$0xff]  ;;  %v1488_v47 = vld [vmem:[%s4539_s5 + $0xc8] sm:$0xff] }
 0x103   :  { %2093 = vmatprep.subr.bf16.mxu1 %v2092_v1  ;;  %v488_v1 = vld [vmem:[%s4535_s1 + $0xe58] sm:$0xff]  ;;  %v1249_v5 = vld [vmem:[%s4537_s3 + $0x230] sm:$0xff] }
 0x104   :  { %2219 = vmatpush1.bf16.msra.mxu0 %v2218_v59  ;;  %v1257_v32 = vld [vmem:[%s4537_s3 + $0x270] sm:$0xff] }
 0x105   :  { %1098 = vmatmul.mubr.f32.vlgmr.msra.gmra.mrb[2].mxu1 %v3002_v44  ;;  %v444_v44 = vld [vmem:[%s4535_s1 + $0xcf8] sm:$0xff]  ;;  %2221 = vmatprep.subr.bf16.mxu0 %v2220_v6  ;;  %v1252_v6 = vld [vmem:[%s4537_s3 + $0x248] sm:$0xff]  ;;  %v1469_v40 = vld [vmem:[%s4539_s5 + $0x30] sm:$0xff] }
 0x106   :  { %2095 = vmatpush1.bf16.msra.mxu1 %v2094_v7  ;;  %1168 = vmatprep.mubr.f32.mxu1 %v3280_v2  ;;  %v2102_v2 = vpack.c.bf16 %v435_v15, %v431_v14  ;;  %v2104_v17 = vpack.c.bf16 %v444_v44, %v440_v16  ;;  %v2126_v7 = vpack.c.bf16 %v483_v0, %v479_v63  ;;  %v495_v14 = vld [vmem:[%s4535_s1 + $0xe90] sm:$0xff]  ;;  %v504_v16 = vld [vmem:[%s4535_s1 + $0xed8] sm:$0xff]  ;;  %v1248_v63 = vld [vmem:[%s4537_s3 + $0x228] sm:$0xff] }
 0x107   :  { %2097 = vmatprep.subr.bf16.mxu1 %v2096_v25  ;;  %v2128_v25 = vpack.c.bf16 %v492_v3, %v488_v1  ;;  %v499_v15 = vld [vmem:[%s4535_s1 + $0xeb0] sm:$0xff]  ;;  %v508_v44 = vld [vmem:[%s4535_s1 + $0xef8] sm:$0xff]  ;;  %v1247_v1 = vld [vmem:[%s4537_s3 + $0x220] sm:$0xff] }
 0x10a   :  { %2099 = vmatpush1.bf16.msra.mxu1 %v2098_v13  ;;  %v2130_v13 = vpack.c.bf16 %v491_v9, %v487_v8  ;;  %v1480_v8 = vld [vmem:[%s4539_s5 + $0x88] sm:$0xff]  ;;  %v1463_v9 = vld [vmem:[%s4539_s5] sm:$0xff] }
 0x10b   :  { %2101 = vmatprep.subr.bf16.mxu1 %v2100_v34  ;;  %v2132_v34 = vpack.c.bf16 %v500_v12, %v496_v10  ;;  %v1464_v12 = vld [vmem:[%s4539_s5 + $0x8] sm:$0xff] }
 0x10e   :  { %2103 = vmatpush1.bf16.msra.mxu1 %v2102_v2  ;;  %v2134_v2 = vpack.c.bf16 %v499_v15, %v495_v14  ;;  %v2226_v14 = vpack.c.bf16 %v1249_v5, %v1247_v1  ;;  %v2286_v15 = vpack.c.bf16 %v1464_v12, %v1463_v9  ;;  %v1270_v1 = vld [vmem:[%s4537_s3 + $0x2d8] sm:$0xff]  ;;  %v1473_v5 = vld [vmem:[%s4539_s5 + $0x50] sm:$0xff] }
 0x10f   :  { %2105 = vmatprep.subr.bf16.mxu1 %v2104_v17  ;;  %v2136_v17 = vpack.c.bf16 %v508_v44, %v504_v16  ;;  %v1465_v44 = vld [vmem:[%s4539_s5 + $0x10] sm:$0xff] }
 0x110   :  { %v1269_v12 = vld [vmem:[%s4537_s3 + $0x2d0] sm:$0xff] }
 0x112   :  { %2107 = vmatpush1.bf16.msra.mxu1 %v2106_v22  ;;  %v2138_v22 = vpack.c.bf16 %v507_v19, %v503_v18  ;;  %v1251_v19 = vld [vmem:[%s4537_s3 + $0x240] sm:$0xff] }
 0x113   :  { %2109 = vmatprep.subr.bf16.mxu1 %v2108_v41  ;;  %v2140_v41 = vpack.c.bf16 %v516_v21, %v512_v20  ;;  %v1253_v20 = vld [vmem:[%s4537_s3 + $0x250] sm:$0xff]  ;;  %v1484_v21 = vld [vmem:[%s4539_s5 + $0xa8] sm:$0xff] }
 0x116   :  { %2111 = vmatpush1.bf16.msra.mxu1 %v2110_v27  ;;  %v2142_v27 = vpack.c.bf16 %v515_v24, %v511_v23 }
 0x117   :  { %2113 = vmatprep.subr.bf16.mxu1 %v2112_v28  ;;  %v2144_v28 = vpack.c.bf16 %v524_v26, %v520_v48  ;;  %v1467_v48 = vld [vmem:[%s4539_s5 + $0x20] sm:$0xff]  ;;  %v1468_v26 = vld [vmem:[%s4539_s5 + $0x28] sm:$0xff] }
 0x118   :  { %v4077_v45 = vpop.f32.mrb[0].mxu1 }
 0x119   :  { %v4085_v38 = vpop.f32.mrb[1].mxu1 }
 0x11a   :  { %2115 = vmatpush1.bf16.msra.mxu1 %v2114_v35  ;;  %v2146_v35 = vpack.c.bf16 %v523_v30, %v519_v29  ;;  %v1486_v29 = vld [vmem:[%s4539_s5 + $0xb8] sm:$0xff] }
 0x11b   :  { %2117 = vmatprep.subr.bf16.mxu1 %v2116_v39  ;;  %v531_v39 = vld [vmem:[%s4535_s1 + $0xfb0] sm:$0xff] }
 0x11c   :  { %v2150_v43 = vpack.c.bf16 %v531_v39, %v527_v37  ;;  %v2294_v37 = vpack.c.bf16 %v1468_v26, %v1467_v48 }
 0x11e   :  { %2119 = vmatpush1.bf16.msra.mxu1 %v2118_v51  ;;  %v545_v51 = vsub.s32 0, %v2662_v61 }
 0x11f   :  { %2121 = vmatprep.subr.bf16.mxu1 %v2120_v56  ;;  %v550_v56 = vrot.slane %v4212_v52, %v549_v53 }
 0x120   :  { %v546_v55 = vrot.slane %v4212_v52, %v545_v51 }
 0x122   :  { %2123 = vmatpush1.bf16.msra.mxu1 %v2122_v60  ;;  %v674_v57 = vadd.f32 %v4077_v45, %v546_v55  ;;  %v1245_v60 = vld [vmem:[%s4537_s3 + $0x210] sm:$0xff]  ;;  %v1250_v45 = vld [vmem:[%s4537_s3 + $0x238] sm:$0xff] }
 0x123   :  { %2125 = vmatprep.subr.bf16.mxu1 %v2124_v62  ;;  %v2222_v0 = vpack.c.bf16 %v1245_v60, %v1243_v11  ;;  %v2224_v4 = vpack.c.bf16 %v1250_v45, %v1248_v63  ;;  %v1261_v55 = vld [vmem:[%s4537_s3 + $0x290] sm:$0xff]  ;;  %v1263_v45 = vld [vmem:[%s4537_s3 + $0x2a0] sm:$0xff] }
 0x124   :  { %v1489_v60 = vld [vmem:[%s4539_s5 + $0xd0] sm:$0xff] }
 0x126   :  { %2127 = vmatpush1.bf16.msra.mxu1 %v2126_v7  ;;  %v1254_v7 = vld [vmem:[%s4537_s3 + $0x258] sm:$0xff] }
 0x127   :  { %2129 = vmatprep.subr.bf16.mxu1 %v2128_v25  ;;  %v1479_v25 = vld [vmem:[%s4539_s5 + $0x80] sm:$0xff]  ;;  %v2228_v18 = vpack.c.bf16 %v1254_v7, %v1252_v6  ;;  %v1474_v6 = vld [vmem:[%s4539_s5 + $0x58] sm:$0xff] }
 0x128   :  { %v2284_v10 = vpack.c.bf16 %v1480_v8, %v1479_v25  ;;  %v1491_v25 = vld [vmem:[%s4539_s5 + $0xe0] sm:$0xff]  ;;  %v1492_v8 = vld [vmem:[%s4539_s5 + $0xe8] sm:$0xff] }
 0x12a   :  { %2131 = vmatpush1.bf16.msra.mxu1 %v2130_v13  ;;  %v1481_v13 = vld [vmem:[%s4539_s5 + $0x90] sm:$0xff] }
 0x12b   :  { %2133 = vmatprep.subr.bf16.mxu1 %v2132_v34  ;;  %v1482_v34 = vld [vmem:[%s4539_s5 + $0x98] sm:$0xff] }
 0x12c   :  { %v2288_v16 = vpack.c.bf16 %v1482_v34, %v1481_v13  ;;  %v1272_v13 = vld [vmem:[%s4537_s3 + $0x2e8] sm:$0xff]  ;;  %v1274_v34 = vld [vmem:[%s4537_s3 + $0x2f8] sm:$0xff] }
 0x12e   :  { %2135 = vmatpush1.bf16.msra.mxu1 %v2134_v2  ;;  %v1466_v2 = vld [vmem:[%s4539_s5 + $0x18] sm:$0xff] }
 0x12f   :  { %2137 = vmatprep.subr.bf16.mxu1 %v2136_v17  ;;  %v1483_v17 = vld [vmem:[%s4539_s5 + $0xa0] sm:$0xff]  ;;  %v2290_v23 = vpack.c.bf16 %v1466_v2, %v1465_v44  ;;  %v2248_v44 = vpack.c.bf16 %v1274_v34, %v1272_v13 }
 0x130   :  { %v2292_v24 = vpack.c.bf16 %v1484_v21, %v1483_v17  ;;  %v1271_v2 = vld [vmem:[%s4537_s3 + $0x2e0] sm:$0xff]  ;;  %v1273_v17 = vld [vmem:[%s4537_s3 + $0x2f0] sm:$0xff] }
 0x132   :  { %2139 = vmatpush1.bf16.msra.mxu1 %v2138_v22  ;;  %v1256_v22 = vld [vmem:[%s4537_s3 + $0x268] sm:$0xff] }
 0x133   :  { %2141 = vmatprep.subr.bf16.mxu1 %v2140_v41  ;;  %v1258_v41 = vld [vmem:[%s4537_s3 + $0x278] sm:$0xff] }
 0x134   :  { %v2232_v30 = vpack.c.bf16 %v1258_v41, %v1256_v22  ;;  %v1275_v22 = vld [vmem:[%s4537_s3 + $0x300] sm:$0xff]  ;;  %v1277_v41 = vld [vmem:[%s4537_s3 + $0x310] sm:$0xff] }
 0x135   :  { %v2254_v48 = vpack.c.bf16 %v1277_v41, %v1275_v22  ;;  %v1477_v22 = vld [vmem:[%s4539_s5 + $0x70] sm:$0xff]  ;;  %v1478_v41 = vld [vmem:[%s4539_s5 + $0x78] sm:$0xff] }
 0x136   :  { %2143 = vmatpush1.bf16.msra.mxu1 %v2142_v27  ;;  %v2230_v27 = vpack.c.bf16 %v1253_v20, %v1251_v19  ;;  %v1278_v19 = vld [vmem:[%s4537_s3 + $0x318] sm:$0xff]  ;;  %v2250_v20 = vpack.c.bf16 %v1273_v17, %v1271_v2  ;;  %v1475_v17 = vld [vmem:[%s4539_s5 + $0x60] sm:$0xff] }
 0x137   :  { %2145 = vmatprep.subr.bf16.mxu1 %v2144_v28  ;;  %v1485_v28 = vld [vmem:[%s4539_s5 + $0xb0] sm:$0xff] }
 0x138   :  { %v2296_v39 = vpack.c.bf16 %v1486_v29, %v1485_v28  ;;  %v1281_v28 = vld [vmem:[%s4537_s3 + $0x330] sm:$0xff]  ;;  %v1284_v29 = vld [vmem:[%s4537_s3 + $0x348] sm:$0xff] }
 0x13a   :  { %2147 = vmatpush1.bf16.msra.mxu1 %v2146_v35  ;;  %v1260_v35 = vld [vmem:[%s4537_s3 + $0x288] sm:$0xff] }
 0x13b   :  { %2149 = vmatprep.subr.bf16.mxu1 %v2148_v36  ;;  %v1262_v36 = vld [vmem:[%s4537_s3 + $0x298] sm:$0xff] }
 0x13c   :  { %v2236_v49 = vpack.c.bf16 %v1262_v36, %v1260_v35  ;;  %v1283_v35 = vld [vmem:[%s4537_s3 + $0x340] sm:$0xff]  ;;  %v1285_v36 = vld [vmem:[%s4537_s3 + $0x350] sm:$0xff] }
 0x13e   :  { %2151 = vmatpush1.bf16.msra.mxu1 %v2150_v43  ;;  %v2234_v43 = vpack.c.bf16 %v1257_v32, %v1255_v31 }
 0x13f   :  { %2153 = vmatprep.subr.bf16.mxu1 %v2152_v46  ;;  %v1487_v46 = vld [vmem:[%s4539_s5 + $0xc0] sm:$0xff] }
 0x142   :  { %2155 = vmatpush1.bf16.msra.mxu1 %v2154_v50  ;;  %v1259_v50 = vld [vmem:[%s4537_s3 + $0x280] sm:$0xff] }
 0x143   :  { %2285 = vmatprep.subr.bf16.mxu1 %v2284_v10  ;;  %v2238_v11 = vpack.c.bf16 %v1261_v55, %v1259_v50  ;;  %v1267_v10 = vld [vmem:[%s4537_s3 + $0x2c0] sm:$0xff] }
 0x145   :  { %1169 = vmatmul.mubr.f32.vlgmr.msra.gmra.mrb[2].mxu1 %v3252_v54  ;;  %v676_v54 = vadd.f32 %v4085_v38, %v550_v56  ;;  %v1264_v56 = vld [vmem:[%s4537_s3 + $0x2a8] sm:$0xff] }
 0x146   :  { %2287 = vmatpush3.bf16.msra.mxu1 %v2286_v15  ;;  %v2308_v15 = vpack.c.bf16 %v1492_v8, %v1491_v25  ;;  %v1305_v25 = vld [vmem:[%s4537_s3 + $0x3f0] sm:$0xff] }
 0x147   :  { %2289 = vmatprep.subr.bf16.mxu1 %v2288_v16  ;;  %v2246_v16 = vpack.c.bf16 %v1269_v12, %v1267_v10  ;;  %v557_v10 = vsub.s32 3, %v2662_v61 }
 0x149   :  { %v558_v13 = vrot.slane %v4212_v52, %v557_v10 }
 0x14a   :  { %2291 = vmatpush3.bf16.msra.mxu1 %v2290_v23  ;;  %v1280_v23 = vld [vmem:[%s4537_s3 + $0x328] sm:$0xff] }
 0x14b   :  { %2293 = vmatprep.subr.bf16.mxu1 %v2292_v24  ;;  %v1282_v24 = vld [vmem:[%s4537_s3 + $0x338] sm:$0xff] }
 0x14c   :  { %v2256_v26 = vpack.c.bf16 %v1282_v24, %v1280_v23  ;;  %v2314_v23 = vpack.c.bf16 %v1478_v41, %v1477_v22  ;;  %v1307_v24 = vld [vmem:[%s4538_s4] sm:$0x3]  ;;  %s2369_s4 = smov [#allocation2]  }
 0x14e   :  { %2295 = vmatpush3.bf16.msra.mxu1 %v2294_v37  ;;  %v1288_v37 = vld [vmem:[%s4537_s3 + $0x368] sm:$0xff] }
 0x14f   :  { %2297 = vmatprep.subr.bf16.mxu1 %v2296_v39  ;;  %v1290_v39 = vld [vmem:[%s4537_s3 + $0x378] sm:$0xff] }
 0x19a   :  { %v886_v58 = vpop.f32.mrb[0].mxu0 }
 0x19b   :  { %v2317_v59 = vadd.f32 %v886_v58, %v674_v57  ;;  %v888_v33 = vpop.f32.mrb[1].mxu0  ;;  %v1266_v57 = vld [vmem:[%s4537_s3 + $0x2b8] sm:$0xff]  ;;  %v2300_v58 = vpack.c.bf16 %v1488_v47, %v1487_v46  ;;  %v1289_v46 = vld [vmem:[%s4537_s3 + $0x370] sm:$0xff]  ;;  %v1292_v47 = vld [vmem:[%s4537_s3 + $0x388] sm:$0xff] }
 0x19c   :  { %v2319_v62 = vadd.f32 %v888_v33, %v676_v54  ;;  %v2298_v54 = vpack.c.bf16 %v1470_v42, %v1469_v40  ;;  %v1472_v33 = vld [vmem:[%s4539_s5 + $0x48] sm:$0xff]  ;;  %v2240_v63 = vpack.c.bf16 %v1266_v57, %v1264_v56  ;;  %v2262_v40 = vpack.c.bf16 %v1285_v36, %v1283_v35  ;;  %v1291_v56 = vld [vmem:[%s4537_s3 + $0x380] sm:$0xff]  ;;  %v1293_v57 = vld [vmem:[%s4537_s3 + $0x390] sm:$0xff] }
 0x19d   :  { %v1175_v3 = vmax.f32 %v2317_v59, 0.0  ;;  %v1471_v59 = vld [vmem:[%s4539_s5 + $0x40] sm:$0xff]  ;;  %v2264_v42 = vpack.c.bf16 %v1290_v39, %v1288_v37 }
 0x19e   :  { %v1176_v38 = vmax.f32 %v2319_v62, 0.0  ;;  %v1490_v62 = vld [vmem:[%s4539_s5 + $0xd8] sm:$0xff]  ;;  %2299 = vmatpush3.bf16.msra.mxu1 %v2298_v54  ;;  %v1296_v54 = vld [vmem:[%s4537_s3 + $0x3a8] sm:$0xff]  ;;  %v1608_v36 = vld [vmem:[%s4540_s6] ss:$0 sm:$0xff]  ;;  %s1600_s6 = sshll.u32 %s2369_s4, 4  ;;  %s1601_s6 = int_to_ptr.vmem [resolvable:$true] %s1600_s6 }
 0x19f   :  { %2301 = vmatprep.subr.bf16.mxu1 %v2300_v58  ;;  %v1298_v58 = vld [vmem:[%s4537_s3 + $0x3b8] sm:$0xff]  ;;  %s2344_s0 = scalar_lea.vmem %s1601_s6, 32  ;;  %p2349_p1 = scmp.lt.s32.totalorder %s1601_s6, %s1601_s6 }
 0x1a0   :  { %1383 = vmatprep.mubr.f32.mxu0 %v1176_v38  ;;  %v1265_v38 = vld [vmem:[%s4537_s3 + $0x2b0] sm:$0xff]  ;;  %p2345_p0 = scmp.ne.s32.totalorder %s1601_s6, %s2344_s0  ;;  %p2350_p2 = scmp.lt.s32.totalorder %s2344_s0, %s2344_s0 }
 0x1a1   :  { %1384 = vmatmul.mubr.f32.vlgmr.msra.gmra.mrb[2].mxu0 %v1175_v3  ;;  %v2302_v3 = vpack.c.bf16 %v1472_v33, %v1471_v59  ;;  %v2242_v7 = vpack.c.bf16 %v1265_v38, %v1263_v45  ;;  %v2270_v59 = vpack.c.bf16 %v1293_v57, %v1291_v56  ;;  %v2272_v33 = vpack.c.bf16 %v1298_v58, %v1296_v54 }
 0x1a2   :  { %2223 = vmatpush1.bf16.msra.mxu0 %v2222_v0  ;;  %v1268_v0 = vld [vmem:[%s4537_s3 + $0x2c8] sm:$0xff]  ;;  %p2351_p3 = por %p2350_p2, %p2349_p1 }
 0x1a3   :  { %2225 = vmatprep.subr.bf16.mxu0 %v2224_v4  ;;  %v2304_v4 = vpack.c.bf16 %v1490_v62, %v1489_v60  ;;  %v2244_v9 = vpack.c.bf16 %v1270_v1, %v1268_v0  ;;  %2303 = vmatpush3.bf16.msra.mxu1 %v2302_v3  ;;  %v1297_v60 = vld [vmem:[%s4537_s3 + $0x3b0] sm:$0xff]  ;;  %v1300_v62 = vld [vmem:[%s4537_s3 + $0x3c8] sm:$0xff]  ;;  %v1299_v0 = vld [vmem:[%s4537_s3 + $0x3c0] sm:$0xff] }
 0x1a4   :  { %v1301_v1 = vld [vmem:[%s4537_s3 + $0x3d0] sm:$0xff]  ;;  %v1304_v3 = vld [vmem:[%s4537_s3 + $0x3e8] sm:$0xff]  ;;  %p2352_p4 = pnand %p2351_p3, %p2345_p0 }
 0x1a5   :  { %2305 = vmatprep.subr.bf16.mxu1 %v2304_v4  ;;  %v1306_v4 = vld [vmem:[%s4537_s3 + $0x3f8] sm:$0xff] }
 0x1a6   :  { %2227 = vmatpush1.bf16.msra.mxu0 %v2226_v14  ;;  %v2306_v14 = vpack.c.bf16 %v1474_v6, %v1473_v5  ;;  %v2278_v5 = vpack.c.bf16 %v1301_v1, %v1299_v0  ;;  %v2280_v6 = vpack.c.bf16 %v1306_v4, %v1304_v3 }
 0x1a7   :  { %2229 = vmatprep.subr.bf16.mxu0 %v2228_v18  ;;  %v1276_v18 = vld [vmem:[%s4537_s3 + $0x308] sm:$0xff] }
 0x1a8   :  { %2307 = vmatpush3.bf16.msra.mxu1 %v2306_v14  ;;  %v2252_v21 = vpack.c.bf16 %v1278_v19, %v1276_v18  ;;  %v1476_v18 = vld [vmem:[%s4539_s5 + $0x68] sm:$0xff] }
 0x1a9   :  { %2309 = vmatprep.subr.bf16.mxu1 %v2308_v15  ;;  %v2310_v19 = vpack.c.bf16 %v1476_v18, %v1475_v17 }
 0x1aa   :  { %2231 = vmatpush1.bf16.msra.mxu0 %v2230_v27  ;;  %v1279_v27 = vld [vmem:[%s4537_s3 + $0x320] sm:$0xff] }
 0x1ab   :  { %2233 = vmatprep.subr.bf16.mxu0 %v2232_v30  ;;  %v1286_v30 = vld [vmem:[%s4537_s3 + $0x358] sm:$0xff]  ;;  %v2258_v31 = vpack.c.bf16 %v1281_v28, %v1279_v27 }
 0x1ac   :  { %v2260_v32 = vpack.c.bf16 %v1286_v30, %v1284_v29  ;;  %2311 = vmatpush3.bf16.msra.mxu1 %v2310_v19 }
 0x1ae   :  { %2235 = vmatpush1.bf16.msra.mxu0 %v2234_v43  ;;  %v1287_v43 = vld [vmem:[%s4537_s3 + $0x360] sm:$0xff] }
 0x1af   :  { %2237 = vmatprep.subr.bf16.mxu0 %v2236_v49  ;;  %v1294_v49 = vld [vmem:[%s4537_s3 + $0x398] sm:$0xff]  ;;  %v2266_v50 = vpack.c.bf16 %v1289_v46, %v1287_v43 }
 0x1b0   :  { %v2268_v55 = vpack.c.bf16 %v1294_v49, %v1292_v47 }
 0x1b2   :  { %2239 = vmatpush1.bf16.msra.mxu0 %v2238_v11  ;;  %v1295_v11 = vld [vmem:[%s4537_s3 + $0x3a0] sm:$0xff] }
 0x1b3   :  { %2241 = vmatprep.subr.bf16.mxu0 %v2240_v63  ;;  %v1302_v63 = vld [vmem:[%s4537_s3 + $0x3d8] sm:$0xff]  ;;  %v2274_v45 = vpack.c.bf16 %v1297_v60, %v1295_v11 }
 0x1b4   :  { %v2276_v38 = vpack.c.bf16 %v1302_v63, %v1300_v62 }
 0x1b6   :  { %2243 = vmatpush1.bf16.msra.mxu0 %v2242_v7  ;;  %v1303_v7 = vld [vmem:[%s4537_s3 + $0x3e0] sm:$0xff] }
 0x1b7   :  { %2245 = vmatprep.subr.bf16.mxu0 %v2244_v9  ;;  %v2282_v8 = vpack.c.bf16 %v1305_v25, %v1303_v7  ;;  %v553_v9 = vsub.s32 2, %v2662_v61 }
 0x1b9   :  { %v554_v12 = vrot.slane %v4212_v52, %v553_v9  ;;  %v1493_v52 = vld [vmem:[%s4539_s5 + $0xf0] sm:$0xff] }
 0x1ba   :  { %2247 = vmatpush1.bf16.msra.mxu0 %v2246_v16 }
 0x1bb   :  { %2249 = vmatprep.subr.bf16.mxu0 %v2248_v44 }
 0x1be   :  { %2251 = vmatpush1.bf16.msra.mxu0 %v2250_v20  ;;  %v1494_v20 = vld [vmem:[%s4539_s5 + $0xf8] sm:$0xff] }
 0x1bf   :  { %2253 = vmatprep.subr.bf16.mxu0 %v2252_v21  ;;  %v2312_v21 = vpack.c.bf16 %v1494_v20, %v1493_v52 }
 0x1c1   :  { %2313 = vmatprep.subr.bf16.mxu1 %v2312_v21 }
 0x1c2   :  { %2255 = vmatpush1.bf16.msra.mxu0 %v2254_v48  ;;  %2315 = vmatpush3.bf16.msra.mxu1 %v2314_v23  ;;  %v1312_v48 = vrot.slane %v1307_v24, %v545_v51 }
 0x1c3   :  { %2257 = vmatprep.subr.bf16.mxu0 %v2256_v26  ;;  %v1316_v26 = vrot.slane %v1307_v24, %v549_v53 }
 0x1c6   :  { %2259 = vmatpush1.bf16.msra.mxu0 %v2258_v31 }
 0x1c7   :  { %2261 = vmatprep.subr.bf16.mxu0 %v2260_v32 }
 0x1ca   :  { %2263 = vmatpush1.bf16.msra.mxu0 %v2262_v40 }
 0x1cb   :  { %2265 = vmatprep.subr.bf16.mxu0 %v2264_v42 }
 0x1ce   :  { %2267 = vmatpush1.bf16.msra.mxu0 %v2266_v50 }
 0x1cf   :  { %2269 = vmatprep.subr.bf16.mxu0 %v2268_v55 }
 0x1d2   :  { %2271 = vmatpush1.bf16.msra.mxu0 %v2270_v59 }
 0x1d3   :  { %2273 = vmatprep.subr.bf16.mxu0 %v2272_v33 }
 0x1d6   :  { %2275 = vmatpush1.bf16.msra.mxu0 %v2274_v45 }
 0x1d7   :  { %2277 = vmatprep.subr.bf16.mxu0 %v2276_v38 }
 0x1da   :  { %2279 = vmatpush1.bf16.msra.mxu0 %v2278_v5 }
 0x1db   :  { %2281 = vmatprep.subr.bf16.mxu0 %v2280_v6 }
 0x1de   :  { %2283 = vmatpush1.bf16.msra.mxu0 %v2282_v8 }
 0x218   :  { %v1170_v34 = vpop.f32.mrb[2].mxu1 }
 0x219   :  { %v2320_v14 = vadd.f32 %v1170_v34, %v554_v12  ;;  %v1172_v15 = vpop.f32.mrb[3].mxu1 }
 0x21a   :  { %v2321_v16 = vadd.f32 %v1172_v15, %v558_v13 }
 0x21b   :  { %v1177_v2 = vmax.f32 %v2320_v14, 0.0 }
 0x21c   :  { %v1178_v44 = vmax.f32 %v2321_v16, 0.0 }
 0x21e   :  { %1454 = vmatprep.mubr.f32.mxu0 %v1178_v44 }
 0x21f   :  { %1455 = vmatmul.mubr.f32.vlgmr.msra.gmra.mrb[2].mxu0 %v1177_v2 }
 0x2f2   :  { %v1456_v27 = vpop.f32.mrb[2].mxu0 }
 0x2f3   :  { %v2322_v28 = vadd.f32 %v1456_v27, %v1312_v48  ;;  %v1458_v29 = vpop.f32.mrb[3].mxu0 }
 0x2f4   :  { %v2323_v30 = vadd.f32 %v1458_v29, %v1316_v26 }
 0x2f5   :  { %v1461_v32 = vmax.f32 %v2322_v28, 0.0 }
 0x2f6   :  { %v1462_v31 = vmax.f32 %v2323_v30, 0.0 }
 0x2f8   :  { %1566 = vmatprep.mubr.f32.mxu1 %v1462_v31 }
 0x2f9   :  { %1567 = vmatmul.mubr.f32.vlgmr.msra.gmra.mrb[4].mxu1 %v1461_v32 }
 0x3cc   :  { %v1641_v35 = vpop.f32.mrb[4].mxu1 }
 0x3cd   :  { %v1642_v37 = vpop.f32.mrb[5].mxu1 }
 0x3ce   :  { %v1643_v39 = vadd.f32 %v1642_v37, %v1641_v35 }
 0x3d0   :  { %v1569_v51 = vadd.f32 %v1643_v39, %v1608_v36 }
 0x3d2   :  { %v1573_v61 = vsel %vm1572_vm0, %v1569_v51, -inf }
 0x3d3   :  { %v1574_v53 = vrot.slane %v1573_v61, 4 }
 0x3d5   :  { %v1575_v40 = vmax.f32 %v1573_v61, %v1574_v53 }
 0x3d7   :  { %v1576_v42 = vrot.slane %v1575_v40, 2 }
 0x3d9   :  { %v1577_v43 = vmax.f32 %v1575_v40, %v1576_v42 }
 0x3db   :  { %v1578_v46 = vrot.slane %v1577_v43, 1 }
 0x3dd   :  { %v1579_v47 = vmax.f32 %v1577_v43, %v1578_v46 }
 0x3df   :  { %v1580_v49 = vsub.f32 %v1569_v51, %v1579_v47 }
 0x3e1   :  { %v1581_v50 = vmul.f32 1.442695, %v1580_v49 }
 0x3e3   :  { %2340 = vpow2.f32 %v1581_v50 }
 0x3ed   :  { %v2341_v55 = vpop.eup %2340 }
 0x3ee   :  { %v1583_v56 = vsel %vm1572_vm0, %v2341_v55, 0.0 }
 0x3ef   :  { %v1584_v57 = vrot.slane %v1583_v56, 4 }
 0x3f1   :  { %v1585_v54 = vadd.f32 %v1584_v57, %v1583_v56 }
 0x3f3   :  { %v1586_v58 = vrot.slane %v1585_v54, 2 }
 0x3f5   :  { %v1587_v59 = vadd.f32 %v1586_v58, %v1585_v54 }
 0x3f7   :  { %v1588_v33 = vrot.slane %v1587_v59, 1 }
 0x3f9   :  { %v1589_v11 = vadd.f32 %v1588_v33, %v1587_v59 }
 0x3fb   :  { %2342 = vlog2.f32 %v1589_v11 }
 0x405   :  { %v2343_v60 = vpop.eup %2342 }
 0x406   :  { %v1591_v62 = vmul.f32 0.6931472, %v2343_v60 }
 0x408   :  { %v1592_v63 = vsub.f32 %v1580_v49, %v1591_v62 }
 0x40a   :  { %1593 = vst.msk [vmem:[#allocation2] sm:$0x3] %vm1572_vm0, %v1592_v63 }
 0x40b   :  { %2355 = shalt.err (!%p2352_p4)
}
 0x40c   :  { %s2356_s11 = scalar_lea.hbm %s4541_s7, 32 }
 0x40d   :  { %p2357_p5 = scmp.ne.s32.totalorder %s4541_s7, %s2356_s11  ;;  %p2360_p6 = scmp.lt.u32.totalorder %s2356_s11, %s4541_s7 }
 0x40f   :  { %p2362_p7 = pnand %p2360_p6, %p2357_p5 }
 0x411   :  { %2365 = shalt.err (!%p2362_p7)
}
 0x412   :  { %1603 = dma.vmem_to_hbm [thread:$0]  %s1601_s6, 32, %s4541_s7, [#allocation3]  }
 0x413   :  { %2366 = dma.done.wait [#allocation3], 32  }
 0x414   :  { %2367 = vsyncadd [#allocation3], 4294967264 }
 0x415   :  { %1607 = vsyncpa [#allocation3], 1 }

</bundles_post_ra>
